<compile_context>
chip_gen: v7x
topology: tpu7x:2x2x1
jax: 0.10.0
libtpu: 0.0.40
codegen_flags: <defaults>
</compile_context>

<pallas_src>
import functools
import math

import jax
import jax.numpy as jnp
from jax import lax
from jax.experimental import pallas as pl
from jax.experimental.pallas import tpu as pltpu

VMEM = pltpu.MemorySpace.VMEM
MAX_HITS = 1000


# ------------------------- in-kernel building blocks -------------------------

def _linear(x, wb, relu=False):
    w_ref, b_ref = wb
    y = jnp.dot(x, w_ref[...], preferred_element_type=jnp.float32) + b_ref[...]
    return jnp.maximum(y, 0.0) if relu else y


def _layer_norm(x, lnp, eps=1e-5):
    # Post-LN residual block: LayerNorm with PyTorch eps=1e-5, f32 math.
    g_ref, b_ref = lnp
    mu = jnp.mean(x, axis=-1, keepdims=True)
    xc = x - mu
    var = jnp.mean(xc * xc, axis=-1, keepdims=True)
    return xc * lax.rsqrt(var + eps) * g_ref[...] + b_ref[...]


def _mha(q_in, kv_in, ap, n_heads, self_attn):
    """Multi-head attention on in-VMEM f32 values.

    - fused QKV projection: one (d, 3d) matmul for self-attention; for cross-attention a
      Q matmul plus one packed (d, 2d) KV matmul (memory projected once per layer).
    - per-head softmax(QK^T/sqrt(hd)) V with bf16 MXU inputs and f32 accumulation
      (elementwise softmax math stays f32 for v5e friendliness — no bf16 VPU there).
    - softmax normalisation folded into the (N, hd) PV output via pl.reciprocal
      (one reciprocal per row instead of an NxN divide).
    - output projection of concat(heads) expressed as a sum of per-head partial matmuls
      (== concat(heads) @ Wo), avoiding an in-kernel concatenate.
    """
    w = ap['w_qkv'][...]
    b = ap['b_qkv'][...]
    d = q_in.shape[-1]
    if self_attn:
        qkv = jnp.dot(q_in, w, preferred_element_type=jnp.float32) + b
        qp, kp, vp = qkv[:, :d], qkv[:, d:2 * d], qkv[:, 2 * d:]
    else:
        qp = jnp.dot(q_in, w[:, :d], preferred_element_type=jnp.float32) + b[:, :d]
        kvp = jnp.dot(kv_in, w[:, d:], preferred_element_type=jnp.float32) + b[:, d:]
        kp, vp = kvp[:, :d], kvp[:, d:]

    hd = d // n_heads
    qp = qp * (1.0 / math.sqrt(hd))   # scale queries once (cheaper than scaling NxN scores)
    wo = ap['wo'][...]

    acc = jnp.zeros((q_in.shape[0], d), jnp.float32)
    for h in range(n_heads):          # static unrolled loop over heads
        lo = h * hd
        qh = qp[:, lo:lo + hd].astype(jnp.bfloat16)
        kh = kp[:, lo:lo + hd].astype(jnp.bfloat16)
        vh = vp[:, lo:lo + hd].astype(jnp.bfloat16)
        s = lax.dot_general(qh, kh, (((1,), (1,)), ((), ())),
                            preferred_element_type=jnp.float32)
        s = s - jnp.max(s, axis=-1, keepdims=True)
        e = jnp.exp(s)
        inv = pl.reciprocal(jnp.sum(e, axis=-1, keepdims=True), approx=True)
        oh = jnp.dot(e.astype(jnp.bfloat16), vh,
                     preferred_element_type=jnp.float32) * inv
        acc = acc + jnp.dot(oh, wo[lo:lo + hd, :],
                            preferred_element_type=jnp.float32)
    return acc + ap['bo'][...]


def _encoder_layer(x, lp, n_heads):
    a = _mha(x, x, lp['self_attn'], n_heads, self_attn=True)
    x = _layer_norm(a + x, lp['ln1'])
    h = _linear(x, lp['ff1'], relu=True)
    h = _linear(h, lp['ff2'])
    return _layer_norm(h + x, lp['ln2'])


def _decoder_layer(t, memory, lp, n_heads):
    a = _mha(t, t, lp['self_attn'], n_heads, self_attn=True)
    t = _layer_norm(a + t, lp['ln1'])
    c = _mha(t, memory, lp['cross_attn'], n_heads, self_attn=False)
    t = _layer_norm(c + t, lp['ln2'])
    h = _linear(t, lp['ff1'], relu=True)
    h = _linear(h, lp['ff2'])
    return _layer_norm(h + t, lp['ln3'])


# ------------------------------ Pallas kernels -------------------------------

def _hit_filter_kernel(x_ref, w1_ref, b1_ref, w2_ref, b2_ref, o_ref):
    # hit_filter: Linear(in,64) -> ReLU -> Linear(64,1), fused in one kernel.
    h = jnp.maximum(
        jnp.dot(x_ref[...], w1_ref[...], preferred_element_type=jnp.float32) + b1_ref[...],
        0.0)
    o_ref[...] = jnp.dot(h, w2_ref[...], preferred_element_type=jnp.float32) + b2_ref[...]


def hit_filter_scores(x, hf_params):
    (w1, b1), (w2, b2) = hf_params
    return pl.pallas_call(
        _hit_filter_kernel,
        out_shape=jax.ShapeDtypeStruct((x.shape[0], 1), jnp.float32),
        in_specs=[pl.BlockSpec(memory_space=VMEM)] * 5,
        out_specs=pl.BlockSpec(memory_space=VMEM),
    )(x, w1, b1, w2, b2)


def _fused_trunk_kernel(*refs, treedef, n_param_leaves, n_heads):
    x_ref = refs[0]
    p = jax.tree_util.tree_unflatten(treedef, refs[1:1 + n_param_leaves])
    logits_ref, tparams_ref, mask_ref = refs[1 + n_param_leaves:]

    # input projection (Linear -> ReLU -> Linear)
    h = _linear(x_ref[...], p['input_proj'][0], relu=True)
    h = _linear(h, p['input_proj'][1])

    # encoder stack (batch dim of 1 dropped)
    for lp in p['encoder']:
        h = _encoder_layer(h, lp, n_heads)
    memory = h

    # decoder stack over the learned queries
    t = p['queries'][...]
    for lp in p['decoder']:
        t = _decoder_layer(t, memory, lp, n_heads)

    # heads: epilogue writes inside the same fused kernel (no extra launches)
    logits_ref[...] = _linear(t, p['cls_head'])
    tparams_ref[...] = _linear(t, p['param_head'])
    qf = _linear(t, p['mask_head'])
    hf = _linear(memory, p['hit_proj'])
    mask_ref[...] = lax.dot_general(qf, hf, (((1,), (1,)), ((), ())),
                                    preferred_element_type=jnp.float32)


def fused_trunk(x_sel, params, *, n_heads):
    trunk_params = {k: params[k] for k in
                    ('input_proj', 'encoder', 'queries', 'decoder',
                     'cls_head', 'param_head', 'mask_head', 'hit_proj')}
    leaves, treedef = jax.tree_util.tree_flatten(trunk_params)
    n_q = params['queries'].shape[0]
    k = x_sel.shape[0]
    kernel = functools.partial(_fused_trunk_kernel, treedef=treedef,
                               n_param_leaves=len(leaves), n_heads=n_heads)
    return pl.pallas_call(
        kernel,
        out_shape=(jax.ShapeDtypeStruct((n_q, 1), jnp.float32),
                   jax.ShapeDtypeStruct((n_q, 6), jnp.float32),
                   jax.ShapeDtypeStruct((n_q, k), jnp.float32)),
        in_specs=[pl.BlockSpec(memory_space=VMEM)] * (1 + len(leaves)),
        out_specs=(pl.BlockSpec(memory_space=VMEM),) * 3,
        compiler_params=pltpu.CompilerParams(vmem_limit_bytes=100 * 1024 * 1024),
    )(x_sel, *leaves)


# ------------------------------ full forward ------------------------------

def unitrackformer_forward(params, x, *, n_heads):
    n_hits = x.shape[0]

    # hit filter scores (N, input_dim) -> (N,)   (single fused kernel)
    scores = hit_filter_scores(x, params['hit_filter'])[:, 0]

    k = min(MAX_HITS, n_hits)
    # TODO(synk): torch.topk (selection) has no clean Pallas TPU primitive; lax.top_k +
    #             an XLA row-gather are used as glue between the two fused kernels.
    _, topk_idx = jax.lax.top_k(scores, k)
    x_sel = jnp.take(x, topk_idx, axis=0)

    # everything after the gather runs in ONE fused pallas_call
    track_logits, track_params, mask_logits = fused_trunk(x_sel, params, n_heads=n_heads)

    return {
        'track_logits': track_logits[:, 0],
        'hit_assignment': mask_logits,
        'track_properties': track_params,
        'topk_idx': topk_idx,
    }


# -------------------------- deterministic params ---------------------------

def init_params(key, *, input_dim, model_dim, n_heads, num_encoder_layers,
                num_decoder_layers, num_queries, ffn_dim):
    assert model_dim % n_heads == 0
    keys = iter(jax.random.split(key, 1024))

    def rnd(shape, scale=0.02):
        return (scale * jax.random.normal(next(keys), shape)).astype(jnp.float32)

    def lin(din, dout):
        return (rnd((din, dout)), jnp.zeros((1, dout), jnp.float32))

    def ln(d):
        return (jnp.ones((1, d), jnp.float32), jnp.zeros((1, d), jnp.float32))

    def attn(d):
        return {
            'w_qkv': rnd((d, 3 * d)), 'b_qkv': jnp.zeros((1, 3 * d), jnp.float32),
            'wo': rnd((d, d)), 'bo': jnp.zeros((1, d), jnp.float32),
        }

    def enc_layer():
        return {'self_attn': attn(model_dim), 'ln1': ln(model_dim),
                'ff1': lin(model_dim, ffn_dim), 'ff2': lin(ffn_dim, model_dim),
                'ln2': ln(model_dim)}

    def dec_layer():
        return {'self_attn': attn(model_dim), 'ln1': ln(model_dim),
                'cross_attn': attn(model_dim), 'ln2': ln(model_dim),
                'ff1': lin(model_dim, ffn_dim), 'ff2': lin(ffn_dim, model_dim),
                'ln3': ln(model_dim)}

    return {
        'hit_filter': [lin(input_dim, 64), lin(64, 1)],
        'input_proj': [lin(input_dim, model_dim), lin(model_dim, model_dim)],
        'encoder': [enc_layer() for _ in range(num_encoder_layers)],
        'queries': jax.random.normal(next(keys), (num_queries, model_dim), jnp.float32),
        'decoder': [dec_layer() for _ in range(num_decoder_layers)],
        'cls_head': lin(model_dim, 1),
        'param_head': lin(model_dim, 6),
        'mask_head': lin(model_dim, model_dim),
        'hit_proj': lin(model_dim, model_dim),
    }


if __name__ == "__main__":
    cfg = dict(input_dim=27, model_dim=32, n_heads=4, num_encoder_layers=2,
               num_decoder_layers=2, num_queries=8, ffn_dim=64)
    n_hits = 16

    key = jax.random.PRNGKey(0)
    kx, kp = jax.random.split(key)
    x = jax.random.normal(kx, (n_hits, cfg['input_dim']), dtype=jnp.float32)
    params = init_params(kp, **cfg)

    fwd = jax.jit(functools.partial(unitrackformer_forward, n_heads=cfg['n_heads']))
    out = fwd(params, x)
    jax.block_until_ready(out)

    assert out['track_logits'].shape == (cfg['num_queries'],)
    assert out['hit_assignment'].shape == (cfg['num_queries'], n_hits)
    assert out['track_properties'].shape == (cfg['num_queries'], 6)
    assert out['topk_idx'].shape == (min(MAX_HITS, n_hits),)
    assert bool(jnp.all(jnp.isfinite(out['track_logits'])))
    assert bool(jnp.all(jnp.isfinite(out['hit_assignment'])))
    assert bool(jnp.all(jnp.isfinite(out['track_properties'])))

    print("KERNEL_OK")
</pallas_src>

<mosaic_0001>
module attributes {stable_mosaic.version = 11 : i64} {
  func.func @_hit_filter_kernel(%arg0: memref<16x27xf32, #tpu.memory_space<vmem>>, %arg1: memref<27x64xf32, #tpu.memory_space<vmem>>, %arg2: memref<1x64xf32, #tpu.memory_space<vmem>>, %arg3: memref<64x1xf32, #tpu.memory_space<vmem>>, %arg4: memref<1x1xf32, #tpu.memory_space<vmem>>, %arg5: memref<16x1xf32, #tpu.memory_space<vmem>>) attributes {dimension_semantics = [], scalar_prefetch = 0 : i64, scratch_operands = 0 : i64, tpu.core_type = #tpu.core_type<tc>} {
    %c0 = arith.constant 0 : index
    %c0_0 = arith.constant 0 : index
    %0 = vector.load %arg0[%c0, %c0_0] : memref<16x27xf32, #tpu.memory_space<vmem>>, vector<16x27xf32>
    %c0_1 = arith.constant 0 : index
    %c0_2 = arith.constant 0 : index
    %1 = vector.load %arg1[%c0_1, %c0_2] : memref<27x64xf32, #tpu.memory_space<vmem>>, vector<27x64xf32>
    %cst = arith.constant dense<0.000000e+00> : vector<16x64xf32>
    %2 = tpu.matmul %0, %1, %cst {dimension_numbers = #tpu.dot_dimension_numbers<[1], [0], [0], [1], [0, 0, 1, 1], [], []>} : vector<16x27xf32>, vector<27x64xf32>, vector<16x64xf32> -> vector<16x64xf32>
    %c0_3 = arith.constant 0 : index
    %c0_4 = arith.constant 0 : index
    %3 = vector.load %arg2[%c0_3, %c0_4] : memref<1x64xf32, #tpu.memory_space<vmem>>, vector<1x64xf32>
    %4 = vector.broadcast %3 : vector<1x64xf32> to vector<16x64xf32>
    %5 = arith.addf %2, %4 : vector<16x64xf32>
    %cst_5 = arith.constant 0.000000e+00 : f32
    %6 = vector.broadcast %cst_5 : f32 to vector<16x64xf32>
    %7 = arith.maximumf %5, %6 : vector<16x64xf32>
    %c0_6 = arith.constant 0 : index
    %c0_7 = arith.constant 0 : index
    %8 = vector.load %arg3[%c0_6, %c0_7] : memref<64x1xf32, #tpu.memory_space<vmem>>, vector<64x1xf32>
    %cst_8 = arith.constant dense<0.000000e+00> : vector<16x1xf32>
    %9 = tpu.matmul %7, %8, %cst_8 {dimension_numbers = #tpu.dot_dimension_numbers<[1], [0], [0], [1], [0, 0, 1, 1], [], []>} : vector<16x64xf32>, vector<64x1xf32>, vector<16x1xf32> -> vector<16x1xf32>
    %c0_9 = arith.constant 0 : index
    %c0_10 = arith.constant 0 : index
    %10 = vector.load %arg4[%c0_9, %c0_10] : memref<1x1xf32, #tpu.memory_space<vmem>>, vector<1x1xf32>
    %11 = vector.broadcast %10 : vector<1x1xf32> to vector<16x1xf32>
    %12 = arith.addf %9, %11 : vector<16x1xf32>
    %c0_11 = arith.constant 0 : index
    %c0_12 = arith.constant 0 : index
    %13 = vector.load %arg5[%c0_11, %c0_12] : memref<16x1xf32, #tpu.memory_space<vmem>>, vector<16x1xf32>
    tpu.vector_store %arg5[%c0_11, %c0_12], %12 {strides = array<i32>} : memref<16x1xf32, #tpu.memory_space<vmem>>, vector<16x1xf32>,
    return
  }
}

module attributes {stable_mosaic.version = 11 : i64} {
  func.func @_fused_trunk_kernel(%arg0: memref<16x27xf32, #tpu.memory_space<vmem>>, %arg1: memref<32x1xf32, #tpu.memory_space<vmem>>, %arg2: memref<1x1xf32, #tpu.memory_space<vmem>>, %arg3: memref<1x96xf32, #tpu.memory_space<vmem>>, %arg4: memref<1x32xf32, #tpu.memory_space<vmem>>, %arg5: memref<32x96xf32, #tpu.memory_space<vmem>>, %arg6: memref<32x32xf32, #tpu.memory_space<vmem>>, %arg7: memref<32x64xf32, #tpu.memory_space<vmem>>, %arg8: memref<1x64xf32, #tpu.memory_space<vmem>>, %arg9: memref<64x32xf32, #tpu.memory_space<vmem>>, %arg10: memref<1x32xf32, #tpu.memory_space<vmem>>, %arg11: memref<1x32xf32, #tpu.memory_space<vmem>>, %arg12: memref<1x32xf32, #tpu.memory_space<vmem>>, %arg13: memref<1x32xf32, #tpu.memory_space<vmem>>, %arg14: memref<1x32xf32, #tpu.memory_space<vmem>>, %arg15: memref<1x32xf32, #tpu.memory_space<vmem>>, %arg16: memref<1x32xf32, #tpu.memory_space<vmem>>, %arg17: memref<1x96xf32, #tpu.memory_space<vmem>>, %arg18: memref<1x32xf32, #tpu.memory_space<vmem>>, %arg19: memref<32x96xf32, #tpu.memory_space<vmem>>, %arg20: memref<32x32xf32, #tpu.memory_space<vmem>>, %arg21: memref<1x96xf32, #tpu.memory_space<vmem>>, %arg22: memref<1x32xf32, #tpu.memory_space<vmem>>, %arg23: memref<32x96xf32, #tpu.memory_space<vmem>>, %arg24: memref<32x32xf32, #tpu.memory_space<vmem>>, %arg25: memref<32x64xf32, #tpu.memory_space<vmem>>, %arg26: memref<1x64xf32, #tpu.memory_space<vmem>>, %arg27: memref<64x32xf32, #tpu.memory_space<vmem>>, %arg28: memref<1x32xf32, #tpu.memory_space<vmem>>, %arg29: memref<1x32xf32, #tpu.memory_space<vmem>>, %arg30: memref<1x32xf32, #tpu.memory_space<vmem>>, %arg31: memref<1x32xf32, #tpu.memory_space<vmem>>, %arg32: memref<1x32xf32, #tpu.memory_space<vmem>>, %arg33: memref<1x32xf32, #tpu.memory_space<vmem>>, %arg34: memref<1x32xf32, #tpu.memory_space<vmem>>, %arg35: memref<1x96xf32, #tpu.memory_space<vmem>>, %arg36: memref<1x32xf32, #tpu.memory_space<vmem>>, %arg37: memref<32x96xf32, #tpu.memory_space<vmem>>, %arg38: memref<32x32xf32, #tpu.memory_space<vmem>>, %arg39: memref<32x64xf32, #tpu.memory_space<vmem>>, %arg40: memref<1x64xf32, #tpu.memory_space<vmem>>, %arg41: memref<64x32xf32, #tpu.memory_space<vmem>>, %arg42: memref<1x32xf32, #tpu.memory_space<vmem>>, %arg43: memref<1x32xf32, #tpu.memory_space<vmem>>, %arg44: memref<1x32xf32, #tpu.memory_space<vmem>>, %arg45: memref<1x32xf32, #tpu.memory_space<vmem>>, %arg46: memref<1x32xf32, #tpu.memory_space<vmem>>, %arg47: memref<1x96xf32, #tpu.memory_space<vmem>>, %arg48: memref<1x32xf32, #tpu.memory_space<vmem>>, %arg49: memref<32x96xf32, #tpu.memory_space<vmem>>, %arg50: memref<32x32xf32, #tpu.memory_space<vmem>>, %arg51: memref<32x64xf32, #tpu.memory_space<vmem>>, %arg52: memref<1x64xf32, #tpu.memory_space<vmem>>, %arg53: memref<64x32xf32, #tpu.memory_space<vmem>>, %arg54: memref<1x32xf32, #tpu.memory_space<vmem>>, %arg55: memref<1x32xf32, #tpu.memory_space<vmem>>, %arg56: memref<1x32xf32, #tpu.memory_space<vmem>>, %arg57: memref<1x32xf32, #tpu.memory_space<vmem>>, %arg58: memref<1x32xf32, #tpu.memory_space<vmem>>, %arg59: memref<1x96xf32, #tpu.memory_space<vmem>>, %arg60: memref<1x32xf32, #tpu.memory_space<vmem>>, %arg61: memref<32x96xf32, #tpu.memory_space<vmem>>, %arg62: memref<32x32xf32, #tpu.memory_space<vmem>>, %arg63: memref<32x32xf32, #tpu.memory_space<vmem>>, %arg64: memref<1x32xf32, #tpu.memory_space<vmem>>, %arg65: memref<27x32xf32, #tpu.memory_space<vmem>>, %arg66: memref<1x32xf32, #tpu.memory_space<vmem>>, %arg67: memref<32x32xf32, #tpu.memory_space<vmem>>, %arg68: memref<1x32xf32, #tpu.memory_space<vmem>>, %arg69: memref<32x32xf32, #tpu.memory_space<vmem>>, %arg70: memref<1x32xf32, #tpu.memory_space<vmem>>, %arg71: memref<32x6xf32, #tpu.memory_space<vmem>>, %arg72: memref<1x6xf32, #tpu.memory_space<vmem>>, %arg73: memref<8x32xf32, #tpu.memory_space<vmem>>, %arg74: memref<8x1xf32, #tpu.memory_space<vmem>>, %arg75: memref<8x6xf32, #tpu.memory_space<vmem>>, %arg76: memref<8x16xf32, #tpu.memory_space<vmem>>) attributes {dimension_semantics = [], scalar_prefetch = 0 : i64, scratch_operands = 0 : i64, tpu.core_type = #tpu.core_type<tc>} {
    %c0 = arith.constant 0 : index
    %c0_0 = arith.constant 0 : index
    %0 = vector.load %arg0[%c0, %c0_0] : memref<16x27xf32, #tpu.memory_space<vmem>>, vector<16x27xf32>
    %c0_1 = arith.constant 0 : index
    %c0_2 = arith.constant 0 : index
    %1 = vector.load %arg65[%c0_1, %c0_2] : memref<27x32xf32, #tpu.memory_space<vmem>>, vector<27x32xf32>
    %cst = arith.constant dense<0.000000e+00> : vector<16x32xf32>
    %2 = tpu.matmul %0, %1, %cst {dimension_numbers = #tpu.dot_dimension_numbers<[1], [0], [0], [1], [0, 0, 1, 1], [], []>} : vector<16x27xf32>, vector<27x32xf32>, vector<16x32xf32> -> vector<16x32xf32>
    %c0_3 = arith.constant 0 : index
    %c0_4 = arith.constant 0 : index
    %3 = vector.load %arg66[%c0_3, %c0_4] : memref<1x32xf32, #tpu.memory_space<vmem>>, vector<1x32xf32>
    %4 = vector.broadcast %3 : vector<1x32xf32> to vector<16x32xf32>
    %5 = arith.addf %2, %4 : vector<16x32xf32>
    %cst_5 = arith.constant 0.000000e+00 : f32
    %6 = vector.broadcast %cst_5 : f32 to vector<16x32xf32>
    %7 = arith.maximumf %5, %6 : vector<16x32xf32>
    %c0_6 = arith.constant 0 : index
    %c0_7 = arith.constant 0 : index
    %8 = vector.load %arg67[%c0_6, %c0_7] : memref<32x32xf32, #tpu.memory_space<vmem>>, vector<32x32xf32>
    %cst_8 = arith.constant dense<0.000000e+00> : vector<16x32xf32>
    %9 = tpu.matmul %7, %8, %cst_8 {dimension_numbers = #tpu.dot_dimension_numbers<[1], [0], [0], [1], [0, 0, 1, 1], [], []>} : vector<16x32xf32>, vector<32x32xf32>, vector<16x32xf32> -> vector<16x32xf32>
    %c0_9 = arith.constant 0 : index
    %c0_10 = arith.constant 0 : index
    %10 = vector.load %arg68[%c0_9, %c0_10] : memref<1x32xf32, #tpu.memory_space<vmem>>, vector<1x32xf32>
    %11 = vector.broadcast %10 : vector<1x32xf32> to vector<16x32xf32>
    %12 = arith.addf %9, %11 : vector<16x32xf32>
    %c0_11 = arith.constant 0 : index
    %c0_12 = arith.constant 0 : index
    %13 = vector.load %arg49[%c0_11, %c0_12] : memref<32x96xf32, #tpu.memory_space<vmem>>, vector<32x96xf32>
    %c0_13 = arith.constant 0 : index
    %c0_14 = arith.constant 0 : index
    %14 = vector.load %arg47[%c0_13, %c0_14] : memref<1x96xf32, #tpu.memory_space<vmem>>, vector<1x96xf32>
    %cst_15 = arith.constant dense<0.000000e+00> : vector<16x96xf32>
    %15 = tpu.matmul %12, %13, %cst_15 {dimension_numbers = #tpu.dot_dimension_numbers<[1], [0], [0], [1], [0, 0, 1, 1], [], []>} : vector<16x32xf32>, vector<32x96xf32>, vector<16x96xf32> -> vector<16x96xf32>
    %16 = vector.broadcast %14 : vector<1x96xf32> to vector<16x96xf32>
    %17 = arith.addf %15, %16 : vector<16x96xf32>
    %18 = vector.extract_strided_slice %17 {offsets = [0, 0], sizes = [16, 32], strides = [1, 1]} : vector<16x96xf32> to vector<16x32xf32>
    %19 = vector.extract_strided_slice %17 {offsets = [0, 32], sizes = [16, 32], strides = [1, 1]} : vector<16x96xf32> to vector<16x32xf32>
    %20 = vector.extract_strided_slice %17 {offsets = [0, 64], sizes = [16, 32], strides = [1, 1]} : vector<16x96xf32> to vector<16x32xf32>
    %cst_16 = arith.constant 0.353553385 : f32
    %21 = vector.broadcast %cst_16 : f32 to vector<16x32xf32>
    %22 = arith.mulf %18, %21 : vector<16x32xf32>
    %c0_17 = arith.constant 0 : index
    %c0_18 = arith.constant 0 : index
    %23 = vector.load %arg50[%c0_17, %c0_18] : memref<32x32xf32, #tpu.memory_space<vmem>>, vector<32x32xf32>
    %cst_19 = arith.constant 0.000000e+00 : f32
    %24 = vector.broadcast %cst_19 : f32 to vector<16x32xf32>
    %25 = vector.extract_strided_slice %22 {offsets = [0, 0], sizes = [16, 8], strides = [1, 1]} : vector<16x32xf32> to vector<16x8xf32>
    %26 = arith.truncf %25 : vector<16x8xf32> to vector<16x8xbf16>
    %27 = vector.extract_strided_slice %19 {offsets = [0, 0], sizes = [16, 8], strides = [1, 1]} : vector<16x32xf32> to vector<16x8xf32>
    %28 = arith.truncf %27 : vector<16x8xf32> to vector<16x8xbf16>
    %29 = vector.extract_strided_slice %20 {offsets = [0, 0], sizes = [16, 8], strides = [1, 1]} : vector<16x32xf32> to vector<16x8xf32>
    %30 = arith.truncf %29 : vector<16x8xf32> to vector<16x8xbf16>
    %cst_20 = arith.constant dense<0.000000e+00> : vector<16x16xf32>
    %31 = tpu.matmul %26, %28, %cst_20 {dimension_numbers = #tpu.dot_dimension_numbers<[1], [1], [0], [0], [0, 0, 1, 0], [], []>} : vector<16x8xbf16>, vector<16x8xbf16>, vector<16x16xf32> -> vector<16x16xf32>
    %cst_21 = arith.constant dense<0xFF800000> : vector<16xf32>
    %32 = vector.multi_reduction <maximumf>, %31, %cst_21 [1] : vector<16x16xf32> to vector<16xf32>
    %33 = vector.shape_cast %32 : vector<16xf32> to vector<16x1xf32>
    %34 = vector.broadcast %33 : vector<16x1xf32> to vector<16x16xf32>
    %35 = arith.subf %31, %34 : vector<16x16xf32>
    %36 = math.exp %35 : vector<16x16xf32>
    %cst_22 = arith.constant dense<0.000000e+00> : vector<16xf32>
    %37 = vector.multi_reduction <add>, %36, %cst_22 [1] : vector<16x16xf32> to vector<16xf32>
    %38 = vector.shape_cast %37 : vector<16xf32> to vector<16x1xf32>
    %39 = tpu.reciprocal %38 {approx = true} : vector<16x1xf32> -> vector<16x1xf32>
    %40 = arith.truncf %36 : vector<16x16xf32> to vector<16x16xbf16>
    %cst_23 = arith.constant dense<0.000000e+00> : vector<16x8xf32>
    %41 = tpu.matmul %40, %30, %cst_23 {dimension_numbers = #tpu.dot_dimension_numbers<[1], [0], [0], [1], [0, 0, 1, 1], [], []>} : vector<16x16xbf16>, vector<16x8xbf16>, vector<16x8xf32> -> vector<16x8xf32>
    %42 = vector.broadcast %39 : vector<16x1xf32> to vector<16x8xf32>
    %43 = arith.mulf %41, %42 : vector<16x8xf32>
    %44 = vector.extract_strided_slice %23 {offsets = [0, 0], sizes = [8, 32], strides = [1, 1]} : vector<32x32xf32> to vector<8x32xf32>
    %cst_24 = arith.constant dense<0.000000e+00> : vector<16x32xf32>
    %45 = tpu.matmul %43, %44, %cst_24 {dimension_numbers = #tpu.dot_dimension_numbers<[1], [0], [0], [1], [0, 0, 1, 1], [], []>} : vector<16x8xf32>, vector<8x32xf32>, vector<16x32xf32> -> vector<16x32xf32>
    %46 = arith.addf %24, %45 : vector<16x32xf32>
    %47 = vector.extract_strided_slice %22 {offsets = [0, 8], sizes = [16, 8], strides = [1, 1]} : vector<16x32xf32> to vector<16x8xf32>
    %48 = arith.truncf %47 : vector<16x8xf32> to vector<16x8xbf16>
    %49 = vector.extract_strided_slice %19 {offsets = [0, 8], sizes = [16, 8], strides = [1, 1]} : vector<16x32xf32> to vector<16x8xf32>
    %50 = arith.truncf %49 : vector<16x8xf32> to vector<16x8xbf16>
    %51 = vector.extract_strided_slice %20 {offsets = [0, 8], sizes = [16, 8], strides = [1, 1]} : vector<16x32xf32> to vector<16x8xf32>
    %52 = arith.truncf %51 : vector<16x8xf32> to vector<16x8xbf16>
    %cst_25 = arith.constant dense<0.000000e+00> : vector<16x16xf32>
    %53 = tpu.matmul %48, %50, %cst_25 {dimension_numbers = #tpu.dot_dimension_numbers<[1], [1], [0], [0], [0, 0, 1, 0], [], []>} : vector<16x8xbf16>, vector<16x8xbf16>, vector<16x16xf32> -> vector<16x16xf32>
    %cst_26 = arith.constant dense<0xFF800000> : vector<16xf32>
    %54 = vector.multi_reduction <maximumf>, %53, %cst_26 [1] : vector<16x16xf32> to vector<16xf32>
    %55 = vector.shape_cast %54 : vector<16xf32> to vector<16x1xf32>
    %56 = vector.broadcast %55 : vector<16x1xf32> to vector<16x16xf32>
    %57 = arith.subf %53, %56 : vector<16x16xf32>
    %58 = math.exp %57 : vector<16x16xf32>
    %cst_27 = arith.constant dense<0.000000e+00> : vector<16xf32>
    %59 = vector.multi_reduction <add>, %58, %cst_27 [1] : vector<16x16xf32> to vector<16xf32>
    %60 = vector.shape_cast %59 : vector<16xf32> to vector<16x1xf32>
    %61 = tpu.reciprocal %60 {approx = true} : vector<16x1xf32> -> vector<16x1xf32>
    %62 = arith.truncf %58 : vector<16x16xf32> to vector<16x16xbf16>
    %cst_28 = arith.constant dense<0.000000e+00> : vector<16x8xf32>
    %63 = tpu.matmul %62, %52, %cst_28 {dimension_numbers = #tpu.dot_dimension_numbers<[1], [0], [0], [1], [0, 0, 1, 1], [], []>} : vector<16x16xbf16>, vector<16x8xbf16>, vector<16x8xf32> -> vector<16x8xf32>
    %64 = vector.broadcast %61 : vector<16x1xf32> to vector<16x8xf32>
    %65 = arith.mulf %63, %64 : vector<16x8xf32>
    %66 = vector.extract_strided_slice %23 {offsets = [8, 0], sizes = [8, 32], strides = [1, 1]} : vector<32x32xf32> to vector<8x32xf32>
    %cst_29 = arith.constant dense<0.000000e+00> : vector<16x32xf32>
    %67 = tpu.matmul %65, %66, %cst_29 {dimension_numbers = #tpu.dot_dimension_numbers<[1], [0], [0], [1], [0, 0, 1, 1], [], []>} : vector<16x8xf32>, vector<8x32xf32>, vector<16x32xf32> -> vector<16x32xf32>
    %68 = arith.addf %46, %67 : vector<16x32xf32>
    %69 = vector.extract_strided_slice %22 {offsets = [0, 16], sizes = [16, 8], strides = [1, 1]} : vector<16x32xf32> to vector<16x8xf32>
    %70 = arith.truncf %69 : vector<16x8xf32> to vector<16x8xbf16>
    %71 = vector.extract_strided_slice %19 {offsets = [0, 16], sizes = [16, 8], strides = [1, 1]} : vector<16x32xf32> to vector<16x8xf32>
    %72 = arith.truncf %71 : vector<16x8xf32> to vector<16x8xbf16>
    %73 = vector.extract_strided_slice %20 {offsets = [0, 16], sizes = [16, 8], strides = [1, 1]} : vector<16x32xf32> to vector<16x8xf32>
    %74 = arith.truncf %73 : vector<16x8xf32> to vector<16x8xbf16>
    %cst_30 = arith.constant dense<0.000000e+00> : vector<16x16xf32>
    %75 = tpu.matmul %70, %72, %cst_30 {dimension_numbers = #tpu.dot_dimension_numbers<[1], [1], [0], [0], [0, 0, 1, 0], [], []>} : vector<16x8xbf16>, vector<16x8xbf16>, vector<16x16xf32> -> vector<16x16xf32>
    %cst_31 = arith.constant dense<0xFF800000> : vector<16xf32>
    %76 = vector.multi_reduction <maximumf>, %75, %cst_31 [1] : vector<16x16xf32> to vector<16xf32>
    %77 = vector.shape_cast %76 : vector<16xf32> to vector<16x1xf32>
    %78 = vector.broadcast %77 : vector<16x1xf32> to vector<16x16xf32>
    %79 = arith.subf %75, %78 : vector<16x16xf32>
    %80 = math.exp %79 : vector<16x16xf32>
    %cst_32 = arith.constant dense<0.000000e+00> : vector<16xf32>
    %81 = vector.multi_reduction <add>, %80, %cst_32 [1] : vector<16x16xf32> to vector<16xf32>
    %82 = vector.shape_cast %81 : vector<16xf32> to vector<16x1xf32>
    %83 = tpu.reciprocal %82 {approx = true} : vector<16x1xf32> -> vector<16x1xf32>
    %84 = arith.truncf %80 : vector<16x16xf32> to vector<16x16xbf16>
    %cst_33 = arith.constant dense<0.000000e+00> : vector<16x8xf32>
    %85 = tpu.matmul %84, %74, %cst_33 {dimension_numbers = #tpu.dot_dimension_numbers<[1], [0], [0], [1], [0, 0, 1, 1], [], []>} : vector<16x16xbf16>, vector<16x8xbf16>, vector<16x8xf32> -> vector<16x8xf32>
    %86 = vector.broadcast %83 : vector<16x1xf32> to vector<16x8xf32>
    %87 = arith.mulf %85, %86 : vector<16x8xf32>
    %88 = vector.extract_strided_slice %23 {offsets = [16, 0], sizes = [8, 32], strides = [1, 1]} : vector<32x32xf32> to vector<8x32xf32>
    %cst_34 = arith.constant dense<0.000000e+00> : vector<16x32xf32>
    %89 = tpu.matmul %87, %88, %cst_34 {dimension_numbers = #tpu.dot_dimension_numbers<[1], [0], [0], [1], [0, 0, 1, 1], [], []>} : vector<16x8xf32>, vector<8x32xf32>, vector<16x32xf32> -> vector<16x32xf32>
    %90 = arith.addf %68, %89 : vector<16x32xf32>
    %91 = vector.extract_strided_slice %22 {offsets = [0, 24], sizes = [16, 8], strides = [1, 1]} : vector<16x32xf32> to vector<16x8xf32>
    %92 = arith.truncf %91 : vector<16x8xf32> to vector<16x8xbf16>
    %93 = vector.extract_strided_slice %19 {offsets = [0, 24], sizes = [16, 8], strides = [1, 1]} : vector<16x32xf32> to vector<16x8xf32>
    %94 = arith.truncf %93 : vector<16x8xf32> to vector<16x8xbf16>
    %95 = vector.extract_strided_slice %20 {offsets = [0, 24], sizes = [16, 8], strides = [1, 1]} : vector<16x32xf32> to vector<16x8xf32>
    %96 = arith.truncf %95 : vector<16x8xf32> to vector<16x8xbf16>
    %cst_35 = arith.constant dense<0.000000e+00> : vector<16x16xf32>
    %97 = tpu.matmul %92, %94, %cst_35 {dimension_numbers = #tpu.dot_dimension_numbers<[1], [1], [0], [0], [0, 0, 1, 0], [], []>} : vector<16x8xbf16>, vector<16x8xbf16>, vector<16x16xf32> -> vector<16x16xf32>
    %cst_36 = arith.constant dense<0xFF800000> : vector<16xf32>
    %98 = vector.multi_reduction <maximumf>, %97, %cst_36 [1] : vector<16x16xf32> to vector<16xf32>
    %99 = vector.shape_cast %98 : vector<16xf32> to vector<16x1xf32>
    %100 = vector.broadcast %99 : vector<16x1xf32> to vector<16x16xf32>
    %101 = arith.subf %97, %100 : vector<16x16xf32>
    %102 = math.exp %101 : vector<16x16xf32>
    %cst_37 = arith.constant dense<0.000000e+00> : vector<16xf32>
    %103 = vector.multi_reduction <add>, %102, %cst_37 [1] : vector<16x16xf32> to vector<16xf32>
    %104 = vector.shape_cast %103 : vector<16xf32> to vector<16x1xf32>
    %105 = tpu.reciprocal %104 {approx = true} : vector<16x1xf32> -> vector<16x1xf32>
    %106 = arith.truncf %102 : vector<16x16xf32> to vector<16x16xbf16>
    %cst_38 = arith.constant dense<0.000000e+00> : vector<16x8xf32>
    %107 = tpu.matmul %106, %96, %cst_38 {dimension_numbers = #tpu.dot_dimension_numbers<[1], [0], [0], [1], [0, 0, 1, 1], [], []>} : vector<16x16xbf16>, vector<16x8xbf16>, vector<16x8xf32> -> vector<16x8xf32>
    %108 = vector.broadcast %105 : vector<16x1xf32> to vector<16x8xf32>
    %109 = arith.mulf %107, %108 : vector<16x8xf32>
    %110 = vector.extract_strided_slice %23 {offsets = [24, 0], sizes = [8, 32], strides = [1, 1]} : vector<32x32xf32> to vector<8x32xf32>
    %cst_39 = arith.constant dense<0.000000e+00> : vector<16x32xf32>
    %111 = tpu.matmul %109, %110, %cst_39 {dimension_numbers = #tpu.dot_dimension_numbers<[1], [0], [0], [1], [0, 0, 1, 1], [], []>} : vector<16x8xf32>, vector<8x32xf32>, vector<16x32xf32> -> vector<16x32xf32>
    %112 = arith.addf %90, %111 : vector<16x32xf32>
    %c0_40 = arith.constant 0 : index
    %c0_41 = arith.constant 0 : index
    %113 = vector.load %arg48[%c0_40, %c0_41] : memref<1x32xf32, #tpu.memory_space<vmem>>, vector<1x32xf32>
    %114 = vector.broadcast %113 : vector<1x32xf32> to vector<16x32xf32>
    %115 = arith.addf %112, %114 : vector<16x32xf32>
    %116 = arith.addf %115, %12 : vector<16x32xf32>
    %cst_42 = arith.constant dense<0.000000e+00> : vector<16xf32>
    %117 = vector.multi_reduction <add>, %116, %cst_42 [1] : vector<16x32xf32> to vector<16xf32>
    %118 = vector.shape_cast %117 : vector<16xf32> to vector<16x1xf32>
    %cst_43 = arith.constant 3.200000e+01 : f32
    %119 = vector.broadcast %cst_43 : f32 to vector<16x1xf32>
    %120 = arith.divf %118, %119 : vector<16x1xf32>
    %121 = vector.broadcast %120 : vector<16x1xf32> to vector<16x32xf32>
    %122 = arith.subf %116, %121 : vector<16x32xf32>
    %123 = arith.mulf %122, %122 : vector<16x32xf32>
    %cst_44 = arith.constant dense<0.000000e+00> : vector<16xf32>
    %124 = vector.multi_reduction <add>, %123, %cst_44 [1] : vector<16x32xf32> to vector<16xf32>
    %125 = vector.shape_cast %124 : vector<16xf32> to vector<16x1xf32>
    %cst_45 = arith.constant 3.200000e+01 : f32
    %126 = vector.broadcast %cst_45 : f32 to vector<16x1xf32>
    %127 = arith.divf %125, %126 : vector<16x1xf32>
    %cst_46 = arith.constant 9.99999974E-6 : f32
    %128 = vector.broadcast %cst_46 : f32 to vector<16x1xf32>
    %129 = arith.addf %127, %128 : vector<16x1xf32>
    %130 = math.rsqrt %129 : vector<16x1xf32>
    %131 = vector.broadcast %130 : vector<16x1xf32> to vector<16x32xf32>
    %132 = arith.mulf %122, %131 : vector<16x32xf32>
    %c0_47 = arith.constant 0 : index
    %c0_48 = arith.constant 0 : index
    %133 = vector.load %arg43[%c0_47, %c0_48] : memref<1x32xf32, #tpu.memory_space<vmem>>, vector<1x32xf32>
    %134 = vector.broadcast %133 : vector<1x32xf32> to vector<16x32xf32>
    %135 = arith.mulf %132, %134 : vector<16x32xf32>
    %c0_49 = arith.constant 0 : index
    %c0_50 = arith.constant 0 : index
    %136 = vector.load %arg44[%c0_49, %c0_50] : memref<1x32xf32, #tpu.memory_space<vmem>>, vector<1x32xf32>
    %137 = vector.broadcast %136 : vector<1x32xf32> to vector<16x32xf32>
    %138 = arith.addf %135, %137 : vector<16x32xf32>
    %c0_51 = arith.constant 0 : index
    %c0_52 = arith.constant 0 : index
    %139 = vector.load %arg39[%c0_51, %c0_52] : memref<32x64xf32, #tpu.memory_space<vmem>>, vector<32x64xf32>
    %cst_53 = arith.constant dense<0.000000e+00> : vector<16x64xf32>
    %140 = tpu.matmul %138, %139, %cst_53 {dimension_numbers = #tpu.dot_dimension_numbers<[1], [0], [0], [1], [0, 0, 1, 1], [], []>} : vector<16x32xf32>, vector<32x64xf32>, vector<16x64xf32> -> vector<16x64xf32>
    %c0_54 = arith.constant 0 : index
    %c0_55 = arith.constant 0 : index
    %141 = vector.load %arg40[%c0_54, %c0_55] : memref<1x64xf32, #tpu.memory_space<vmem>>, vector<1x64xf32>
    %142 = vector.broadcast %141 : vector<1x64xf32> to vector<16x64xf32>
    %143 = arith.addf %140, %142 : vector<16x64xf32>
    %cst_56 = arith.constant 0.000000e+00 : f32
    %144 = vector.broadcast %cst_56 : f32 to vector<16x64xf32>
    %145 = arith.maximumf %143, %144 : vector<16x64xf32>
    %c0_57 = arith.constant 0 : index
    %c0_58 = arith.constant 0 : index
    %146 = vector.load %arg41[%c0_57, %c0_58] : memref<64x32xf32, #tpu.memory_space<vmem>>, vector<64x32xf32>
    %cst_59 = arith.constant dense<0.000000e+00> : vector<16x32xf32>
    %147 = tpu.matmul %145, %146, %cst_59 {dimension_numbers = #tpu.dot_dimension_numbers<[1], [0], [0], [1], [0, 0, 1, 1], [], []>} : vector<16x64xf32>, vector<64x32xf32>, vector<16x32xf32> -> vector<16x32xf32>
    %c0_60 = arith.constant 0 : index
    %c0_61 = arith.constant 0 : index
    %148 = vector.load %arg42[%c0_60, %c0_61] : memref<1x32xf32, #tpu.memory_space<vmem>>, vector<1x32xf32>
    %149 = vector.broadcast %148 : vector<1x32xf32> to vector<16x32xf32>
    %150 = arith.addf %147, %149 : vector<16x32xf32>
    %151 = arith.addf %150, %138 : vector<16x32xf32>
    %cst_62 = arith.constant dense<0.000000e+00> : vector<16xf32>
    %152 = vector.multi_reduction <add>, %151, %cst_62 [1] : vector<16x32xf32> to vector<16xf32>
    %153 = vector.shape_cast %152 : vector<16xf32> to vector<16x1xf32>
    %cst_63 = arith.constant 3.200000e+01 : f32
    %154 = vector.broadcast %cst_63 : f32 to vector<16x1xf32>
    %155 = arith.divf %153, %154 : vector<16x1xf32>
    %156 = vector.broadcast %155 : vector<16x1xf32> to vector<16x32xf32>
    %157 = arith.subf %151, %156 : vector<16x32xf32>
    %158 = arith.mulf %157, %157 : vector<16x32xf32>
    %cst_64 = arith.constant dense<0.000000e+00> : vector<16xf32>
    %159 = vector.multi_reduction <add>, %158, %cst_64 [1] : vector<16x32xf32> to vector<16xf32>
    %160 = vector.shape_cast %159 : vector<16xf32> to vector<16x1xf32>
    %cst_65 = arith.constant 3.200000e+01 : f32
    %161 = vector.broadcast %cst_65 : f32 to vector<16x1xf32>
    %162 = arith.divf %160, %161 : vector<16x1xf32>
    %cst_66 = arith.constant 9.99999974E-6 : f32
    %163 = vector.broadcast %cst_66 : f32 to vector<16x1xf32>
    %164 = arith.addf %162, %163 : vector<16x1xf32>
    %165 = math.rsqrt %164 : vector<16x1xf32>
    %166 = vector.broadcast %165 : vector<16x1xf32> to vector<16x32xf32>
    %167 = arith.mulf %157, %166 : vector<16x32xf32>
    %c0_67 = arith.constant 0 : index
    %c0_68 = arith.constant 0 : index
    %168 = vector.load %arg45[%c0_67, %c0_68] : memref<1x32xf32, #tpu.memory_space<vmem>>, vector<1x32xf32>
    %169 = vector.broadcast %168 : vector<1x32xf32> to vector<16x32xf32>
    %170 = arith.mulf %167, %169 : vector<16x32xf32>
    %c0_69 = arith.constant 0 : index
    %c0_70 = arith.constant 0 : index
    %171 = vector.load %arg46[%c0_69, %c0_70] : memref<1x32xf32, #tpu.memory_space<vmem>>, vector<1x32xf32>
    %172 = vector.broadcast %171 : vector<1x32xf32> to vector<16x32xf32>
    %173 = arith.addf %170, %172 : vector<16x32xf32>
    %c0_71 = arith.constant 0 : index
    %c0_72 = arith.constant 0 : index
    %174 = vector.load %arg61[%c0_71, %c0_72] : memref<32x96xf32, #tpu.memory_space<vmem>>, vector<32x96xf32>
    %c0_73 = arith.constant 0 : index
    %c0_74 = arith.constant 0 : index
    %175 = vector.load %arg59[%c0_73, %c0_74] : memref<1x96xf32, #tpu.memory_space<vmem>>, vector<1x96xf32>
    %cst_75 = arith.constant dense<0.000000e+00> : vector<16x96xf32>
    %176 = tpu.matmul %173, %174, %cst_75 {dimension_numbers = #tpu.dot_dimension_numbers<[1], [0], [0], [1], [0, 0, 1, 1], [], []>} : vector<16x32xf32>, vector<32x96xf32>, vector<16x96xf32> -> vector<16x96xf32>
    %177 = vector.broadcast %175 : vector<1x96xf32> to vector<16x96xf32>
    %178 = arith.addf %176, %177 : vector<16x96xf32>
    %179 = vector.extract_strided_slice %178 {offsets = [0, 0], sizes = [16, 32], strides = [1, 1]} : vector<16x96xf32> to vector<16x32xf32>
    %180 = vector.extract_strided_slice %178 {offsets = [0, 32], sizes = [16, 32], strides = [1, 1]} : vector<16x96xf32> to vector<16x32xf32>
    %181 = vector.extract_strided_slice %178 {offsets = [0, 64], sizes = [16, 32], strides = [1, 1]} : vector<16x96xf32> to vector<16x32xf32>
    %cst_76 = arith.constant 0.353553385 : f32
    %182 = vector.broadcast %cst_76 : f32 to vector<16x32xf32>
    %183 = arith.mulf %179, %182 : vector<16x32xf32>
    %c0_77 = arith.constant 0 : index
    %c0_78 = arith.constant 0 : index
    %184 = vector.load %arg62[%c0_77, %c0_78] : memref<32x32xf32, #tpu.memory_space<vmem>>, vector<32x32xf32>
    %cst_79 = arith.constant 0.000000e+00 : f32
    %185 = vector.broadcast %cst_79 : f32 to vector<16x32xf32>
    %186 = vector.extract_strided_slice %183 {offsets = [0, 0], sizes = [16, 8], strides = [1, 1]} : vector<16x32xf32> to vector<16x8xf32>
    %187 = arith.truncf %186 : vector<16x8xf32> to vector<16x8xbf16>
    %188 = vector.extract_strided_slice %180 {offsets = [0, 0], sizes = [16, 8], strides = [1, 1]} : vector<16x32xf32> to vector<16x8xf32>
    %189 = arith.truncf %188 : vector<16x8xf32> to vector<16x8xbf16>
    %190 = vector.extract_strided_slice %181 {offsets = [0, 0], sizes = [16, 8], strides = [1, 1]} : vector<16x32xf32> to vector<16x8xf32>
    %191 = arith.truncf %190 : vector<16x8xf32> to vector<16x8xbf16>
    %cst_80 = arith.constant dense<0.000000e+00> : vector<16x16xf32>
    %192 = tpu.matmul %187, %189, %cst_80 {dimension_numbers = #tpu.dot_dimension_numbers<[1], [1], [0], [0], [0, 0, 1, 0], [], []>} : vector<16x8xbf16>, vector<16x8xbf16>, vector<16x16xf32> -> vector<16x16xf32>
    %cst_81 = arith.constant dense<0xFF800000> : vector<16xf32>
    %193 = vector.multi_reduction <maximumf>, %192, %cst_81 [1] : vector<16x16xf32> to vector<16xf32>
    %194 = vector.shape_cast %193 : vector<16xf32> to vector<16x1xf32>
    %195 = vector.broadcast %194 : vector<16x1xf32> to vector<16x16xf32>
    %196 = arith.subf %192, %195 : vector<16x16xf32>
    %197 = math.exp %196 : vector<16x16xf32>
    %cst_82 = arith.constant dense<0.000000e+00> : vector<16xf32>
    %198 = vector.multi_reduction <add>, %197, %cst_82 [1] : vector<16x16xf32> to vector<16xf32>
    %199 = vector.shape_cast %198 : vector<16xf32> to vector<16x1xf32>
    %200 = tpu.reciprocal %199 {approx = true} : vector<16x1xf32> -> vector<16x1xf32>
    %201 = arith.truncf %197 : vector<16x16xf32> to vector<16x16xbf16>
    %cst_83 = arith.constant dense<0.000000e+00> : vector<16x8xf32>
    %202 = tpu.matmul %201, %191, %cst_83 {dimension_numbers = #tpu.dot_dimension_numbers<[1], [0], [0], [1], [0, 0, 1, 1], [], []>} : vector<16x16xbf16>, vector<16x8xbf16>, vector<16x8xf32> -> vector<16x8xf32>
    %203 = vector.broadcast %200 : vector<16x1xf32> to vector<16x8xf32>
    %204 = arith.mulf %202, %203 : vector<16x8xf32>
    %205 = vector.extract_strided_slice %184 {offsets = [0, 0], sizes = [8, 32], strides = [1, 1]} : vector<32x32xf32> to vector<8x32xf32>
    %cst_84 = arith.constant dense<0.000000e+00> : vector<16x32xf32>
    %206 = tpu.matmul %204, %205, %cst_84 {dimension_numbers = #tpu.dot_dimension_numbers<[1], [0], [0], [1], [0, 0, 1, 1], [], []>} : vector<16x8xf32>, vector<8x32xf32>, vector<16x32xf32> -> vector<16x32xf32>
    %207 = arith.addf %185, %206 : vector<16x32xf32>
    %208 = vector.extract_strided_slice %183 {offsets = [0, 8], sizes = [16, 8], strides = [1, 1]} : vector<16x32xf32> to vector<16x8xf32>
    %209 = arith.truncf %208 : vector<16x8xf32> to vector<16x8xbf16>
    %210 = vector.extract_strided_slice %180 {offsets = [0, 8], sizes = [16, 8], strides = [1, 1]} : vector<16x32xf32> to vector<16x8xf32>
    %211 = arith.truncf %210 : vector<16x8xf32> to vector<16x8xbf16>
    %212 = vector.extract_strided_slice %181 {offsets = [0, 8], sizes = [16, 8], strides = [1, 1]} : vector<16x32xf32> to vector<16x8xf32>
    %213 = arith.truncf %212 : vector<16x8xf32> to vector<16x8xbf16>
    %cst_85 = arith.constant dense<0.000000e+00> : vector<16x16xf32>
    %214 = tpu.matmul %209, %211, %cst_85 {dimension_numbers = #tpu.dot_dimension_numbers<[1], [1], [0], [0], [0, 0, 1, 0], [], []>} : vector<16x8xbf16>, vector<16x8xbf16>, vector<16x16xf32> -> vector<16x16xf32>
    %cst_86 = arith.constant dense<0xFF800000> : vector<16xf32>
    %215 = vector.multi_reduction <maximumf>, %214, %cst_86 [1] : vector<16x16xf32> to vector<16xf32>
    %216 = vector.shape_cast %215 : vector<16xf32> to vector<16x1xf32>
    %217 = vector.broadcast %216 : vector<16x1xf32> to vector<16x16xf32>
    %218 = arith.subf %214, %217 : vector<16x16xf32>
    %219 = math.exp %218 : vector<16x16xf32>
    %cst_87 = arith.constant dense<0.000000e+00> : vector<16xf32>
    %220 = vector.multi_reduction <add>, %219, %cst_87 [1] : vector<16x16xf32> to vector<16xf32>
    %221 = vector.shape_cast %220 : vector<16xf32> to vector<16x1xf32>
    %222 = tpu.reciprocal %221 {approx = true} : vector<16x1xf32> -> vector<16x1xf32>
    %223 = arith.truncf %219 : vector<16x16xf32> to vector<16x16xbf16>
    %cst_88 = arith.constant dense<0.000000e+00> : vector<16x8xf32>
    %224 = tpu.matmul %223, %213, %cst_88 {dimension_numbers = #tpu.dot_dimension_numbers<[1], [0], [0], [1], [0, 0, 1, 1], [], []>} : vector<16x16xbf16>, vector<16x8xbf16>, vector<16x8xf32> -> vector<16x8xf32>
    %225 = vector.broadcast %222 : vector<16x1xf32> to vector<16x8xf32>
    %226 = arith.mulf %224, %225 : vector<16x8xf32>
    %227 = vector.extract_strided_slice %184 {offsets = [8, 0], sizes = [8, 32], strides = [1, 1]} : vector<32x32xf32> to vector<8x32xf32>
    %cst_89 = arith.constant dense<0.000000e+00> : vector<16x32xf32>
    %228 = tpu.matmul %226, %227, %cst_89 {dimension_numbers = #tpu.dot_dimension_numbers<[1], [0], [0], [1], [0, 0, 1, 1], [], []>} : vector<16x8xf32>, vector<8x32xf32>, vector<16x32xf32> -> vector<16x32xf32>
    %229 = arith.addf %207, %228 : vector<16x32xf32>
    %230 = vector.extract_strided_slice %183 {offsets = [0, 16], sizes = [16, 8], strides = [1, 1]} : vector<16x32xf32> to vector<16x8xf32>
    %231 = arith.truncf %230 : vector<16x8xf32> to vector<16x8xbf16>
    %232 = vector.extract_strided_slice %180 {offsets = [0, 16], sizes = [16, 8], strides = [1, 1]} : vector<16x32xf32> to vector<16x8xf32>
    %233 = arith.truncf %232 : vector<16x8xf32> to vector<16x8xbf16>
    %234 = vector.extract_strided_slice %181 {offsets = [0, 16], sizes = [16, 8], strides = [1, 1]} : vector<16x32xf32> to vector<16x8xf32>
    %235 = arith.truncf %234 : vector<16x8xf32> to vector<16x8xbf16>
    %cst_90 = arith.constant dense<0.000000e+00> : vector<16x16xf32>
    %236 = tpu.matmul %231, %233, %cst_90 {dimension_numbers = #tpu.dot_dimension_numbers<[1], [1], [0], [0], [0, 0, 1, 0], [], []>} : vector<16x8xbf16>, vector<16x8xbf16>, vector<16x16xf32> -> vector<16x16xf32>
    %cst_91 = arith.constant dense<0xFF800000> : vector<16xf32>
    %237 = vector.multi_reduction <maximumf>, %236, %cst_91 [1] : vector<16x16xf32> to vector<16xf32>
    %238 = vector.shape_cast %237 : vector<16xf32> to vector<16x1xf32>
    %239 = vector.broadcast %238 : vector<16x1xf32> to vector<16x16xf32>
    %240 = arith.subf %236, %239 : vector<16x16xf32>
    %241 = math.exp %240 : vector<16x16xf32>
    %cst_92 = arith.constant dense<0.000000e+00> : vector<16xf32>
    %242 = vector.multi_reduction <add>, %241, %cst_92 [1] : vector<16x16xf32> to vector<16xf32>
    %243 = vector.shape_cast %242 : vector<16xf32> to vector<16x1xf32>
    %244 = tpu.reciprocal %243 {approx = true} : vector<16x1xf32> -> vector<16x1xf32>
    %245 = arith.truncf %241 : vector<16x16xf32> to vector<16x16xbf16>
    %cst_93 = arith.constant dense<0.000000e+00> : vector<16x8xf32>
    %246 = tpu.matmul %245, %235, %cst_93 {dimension_numbers = #tpu.dot_dimension_numbers<[1], [0], [0], [1], [0, 0, 1, 1], [], []>} : vector<16x16xbf16>, vector<16x8xbf16>, vector<16x8xf32> -> vector<16x8xf32>
    %247 = vector.broadcast %244 : vector<16x1xf32> to vector<16x8xf32>
    %248 = arith.mulf %246, %247 : vector<16x8xf32>
    %249 = vector.extract_strided_slice %184 {offsets = [16, 0], sizes = [8, 32], strides = [1, 1]} : vector<32x32xf32> to vector<8x32xf32>
    %cst_94 = arith.constant dense<0.000000e+00> : vector<16x32xf32>
    %250 = tpu.matmul %248, %249, %cst_94 {dimension_numbers = #tpu.dot_dimension_numbers<[1], [0], [0], [1], [0, 0, 1, 1], [], []>} : vector<16x8xf32>, vector<8x32xf32>, vector<16x32xf32> -> vector<16x32xf32>
    %251 = arith.addf %229, %250 : vector<16x32xf32>
    %252 = vector.extract_strided_slice %183 {offsets = [0, 24], sizes = [16, 8], strides = [1, 1]} : vector<16x32xf32> to vector<16x8xf32>
    %253 = arith.truncf %252 : vector<16x8xf32> to vector<16x8xbf16>
    %254 = vector.extract_strided_slice %180 {offsets = [0, 24], sizes = [16, 8], strides = [1, 1]} : vector<16x32xf32> to vector<16x8xf32>
    %255 = arith.truncf %254 : vector<16x8xf32> to vector<16x8xbf16>
    %256 = vector.extract_strided_slice %181 {offsets = [0, 24], sizes = [16, 8], strides = [1, 1]} : vector<16x32xf32> to vector<16x8xf32>
    %257 = arith.truncf %256 : vector<16x8xf32> to vector<16x8xbf16>
    %cst_95 = arith.constant dense<0.000000e+00> : vector<16x16xf32>
    %258 = tpu.matmul %253, %255, %cst_95 {dimension_numbers = #tpu.dot_dimension_numbers<[1], [1], [0], [0], [0, 0, 1, 0], [], []>} : vector<16x8xbf16>, vector<16x8xbf16>, vector<16x16xf32> -> vector<16x16xf32>
    %cst_96 = arith.constant dense<0xFF800000> : vector<16xf32>
    %259 = vector.multi_reduction <maximumf>, %258, %cst_96 [1] : vector<16x16xf32> to vector<16xf32>
    %260 = vector.shape_cast %259 : vector<16xf32> to vector<16x1xf32>
    %261 = vector.broadcast %260 : vector<16x1xf32> to vector<16x16xf32>
    %262 = arith.subf %258, %261 : vector<16x16xf32>
    %263 = math.exp %262 : vector<16x16xf32>
    %cst_97 = arith.constant dense<0.000000e+00> : vector<16xf32>
    %264 = vector.multi_reduction <add>, %263, %cst_97 [1] : vector<16x16xf32> to vector<16xf32>
    %265 = vector.shape_cast %264 : vector<16xf32> to vector<16x1xf32>
    %266 = tpu.reciprocal %265 {approx = true} : vector<16x1xf32> -> vector<16x1xf32>
    %267 = arith.truncf %263 : vector<16x16xf32> to vector<16x16xbf16>
    %cst_98 = arith.constant dense<0.000000e+00> : vector<16x8xf32>
    %268 = tpu.matmul %267, %257, %cst_98 {dimension_numbers = #tpu.dot_dimension_numbers<[1], [0], [0], [1], [0, 0, 1, 1], [], []>} : vector<16x16xbf16>, vector<16x8xbf16>, vector<16x8xf32> -> vector<16x8xf32>
    %269 = vector.broadcast %266 : vector<16x1xf32> to vector<16x8xf32>
    %270 = arith.mulf %268, %269 : vector<16x8xf32>
    %271 = vector.extract_strided_slice %184 {offsets = [24, 0], sizes = [8, 32], strides = [1, 1]} : vector<32x32xf32> to vector<8x32xf32>
    %cst_99 = arith.constant dense<0.000000e+00> : vector<16x32xf32>
    %272 = tpu.matmul %270, %271, %cst_99 {dimension_numbers = #tpu.dot_dimension_numbers<[1], [0], [0], [1], [0, 0, 1, 1], [], []>} : vector<16x8xf32>, vector<8x32xf32>, vector<16x32xf32> -> vector<16x32xf32>
    %273 = arith.addf %251, %272 : vector<16x32xf32>
    %c0_100 = arith.constant 0 : index
    %c0_101 = arith.constant 0 : index
    %274 = vector.load %arg60[%c0_100, %c0_101] : memref<1x32xf32, #tpu.memory_space<vmem>>, vector<1x32xf32>
    %275 = vector.broadcast %274 : vector<1x32xf32> to vector<16x32xf32>
    %276 = arith.addf %273, %275 : vector<16x32xf32>
    %277 = arith.addf %276, %173 : vector<16x32xf32>
    %cst_102 = arith.constant dense<0.000000e+00> : vector<16xf32>
    %278 = vector.multi_reduction <add>, %277, %cst_102 [1] : vector<16x32xf32> to vector<16xf32>
    %279 = vector.shape_cast %278 : vector<16xf32> to vector<16x1xf32>
    %cst_103 = arith.constant 3.200000e+01 : f32
    %280 = vector.broadcast %cst_103 : f32 to vector<16x1xf32>
    %281 = arith.divf %279, %280 : vector<16x1xf32>
    %282 = vector.broadcast %281 : vector<16x1xf32> to vector<16x32xf32>
    %283 = arith.subf %277, %282 : vector<16x32xf32>
    %284 = arith.mulf %283, %283 : vector<16x32xf32>
    %cst_104 = arith.constant dense<0.000000e+00> : vector<16xf32>
    %285 = vector.multi_reduction <add>, %284, %cst_104 [1] : vector<16x32xf32> to vector<16xf32>
    %286 = vector.shape_cast %285 : vector<16xf32> to vector<16x1xf32>
    %cst_105 = arith.constant 3.200000e+01 : f32
    %287 = vector.broadcast %cst_105 : f32 to vector<16x1xf32>
    %288 = arith.divf %286, %287 : vector<16x1xf32>
    %cst_106 = arith.constant 9.99999974E-6 : f32
    %289 = vector.broadcast %cst_106 : f32 to vector<16x1xf32>
    %290 = arith.addf %288, %289 : vector<16x1xf32>
    %291 = math.rsqrt %290 : vector<16x1xf32>
    %292 = vector.broadcast %291 : vector<16x1xf32> to vector<16x32xf32>
    %293 = arith.mulf %283, %292 : vector<16x32xf32>
    %c0_107 = arith.constant 0 : index
    %c0_108 = arith.constant 0 : index
    %294 = vector.load %arg55[%c0_107, %c0_108] : memref<1x32xf32, #tpu.memory_space<vmem>>, vector<1x32xf32>
    %295 = vector.broadcast %294 : vector<1x32xf32> to vector<16x32xf32>
    %296 = arith.mulf %293, %295 : vector<16x32xf32>
    %c0_109 = arith.constant 0 : index
    %c0_110 = arith.constant 0 : index
    %297 = vector.load %arg56[%c0_109, %c0_110] : memref<1x32xf32, #tpu.memory_space<vmem>>, vector<1x32xf32>
    %298 = vector.broadcast %297 : vector<1x32xf32> to vector<16x32xf32>
    %299 = arith.addf %296, %298 : vector<16x32xf32>
    %c0_111 = arith.constant 0 : index
    %c0_112 = arith.constant 0 : index
    %300 = vector.load %arg51[%c0_111, %c0_112] : memref<32x64xf32, #tpu.memory_space<vmem>>, vector<32x64xf32>
    %cst_113 = arith.constant dense<0.000000e+00> : vector<16x64xf32>
    %301 = tpu.matmul %299, %300, %cst_113 {dimension_numbers = #tpu.dot_dimension_numbers<[1], [0], [0], [1], [0, 0, 1, 1], [], []>} : vector<16x32xf32>, vector<32x64xf32>, vector<16x64xf32> -> vector<16x64xf32>
    %c0_114 = arith.constant 0 : index
    %c0_115 = arith.constant 0 : index
    %302 = vector.load %arg52[%c0_114, %c0_115] : memref<1x64xf32, #tpu.memory_space<vmem>>, vector<1x64xf32>
    %303 = vector.broadcast %302 : vector<1x64xf32> to vector<16x64xf32>
    %304 = arith.addf %301, %303 : vector<16x64xf32>
    %cst_116 = arith.constant 0.000000e+00 : f32
    %305 = vector.broadcast %cst_116 : f32 to vector<16x64xf32>
    %306 = arith.maximumf %304, %305 : vector<16x64xf32>
    %c0_117 = arith.constant 0 : index
    %c0_118 = arith.constant 0 : index
    %307 = vector.load %arg53[%c0_117, %c0_118] : memref<64x32xf32, #tpu.memory_space<vmem>>, vector<64x32xf32>
    %cst_119 = arith.constant dense<0.000000e+00> : vector<16x32xf32>
    %308 = tpu.matmul %306, %307, %cst_119 {dimension_numbers = #tpu.dot_dimension_numbers<[1], [0], [0], [1], [0, 0, 1, 1], [], []>} : vector<16x64xf32>, vector<64x32xf32>, vector<16x32xf32> -> vector<16x32xf32>
    %c0_120 = arith.constant 0 : index
    %c0_121 = arith.constant 0 : index
    %309 = vector.load %arg54[%c0_120, %c0_121] : memref<1x32xf32, #tpu.memory_space<vmem>>, vector<1x32xf32>
    %310 = vector.broadcast %309 : vector<1x32xf32> to vector<16x32xf32>
    %311 = arith.addf %308, %310 : vector<16x32xf32>
    %312 = arith.addf %311, %299 : vector<16x32xf32>
    %cst_122 = arith.constant dense<0.000000e+00> : vector<16xf32>
    %313 = vector.multi_reduction <add>, %312, %cst_122 [1] : vector<16x32xf32> to vector<16xf32>
    %314 = vector.shape_cast %313 : vector<16xf32> to vector<16x1xf32>
    %cst_123 = arith.constant 3.200000e+01 : f32
    %315 = vector.broadcast %cst_123 : f32 to vector<16x1xf32>
    %316 = arith.divf %314, %315 : vector<16x1xf32>
    %317 = vector.broadcast %316 : vector<16x1xf32> to vector<16x32xf32>
    %318 = arith.subf %312, %317 : vector<16x32xf32>
    %319 = arith.mulf %318, %318 : vector<16x32xf32>
    %cst_124 = arith.constant dense<0.000000e+00> : vector<16xf32>
    %320 = vector.multi_reduction <add>, %319, %cst_124 [1] : vector<16x32xf32> to vector<16xf32>
    %321 = vector.shape_cast %320 : vector<16xf32> to vector<16x1xf32>
    %cst_125 = arith.constant 3.200000e+01 : f32
    %322 = vector.broadcast %cst_125 : f32 to vector<16x1xf32>
    %323 = arith.divf %321, %322 : vector<16x1xf32>
    %cst_126 = arith.constant 9.99999974E-6 : f32
    %324 = vector.broadcast %cst_126 : f32 to vector<16x1xf32>
    %325 = arith.addf %323, %324 : vector<16x1xf32>
    %326 = math.rsqrt %325 : vector<16x1xf32>
    %327 = vector.broadcast %326 : vector<16x1xf32> to vector<16x32xf32>
    %328 = arith.mulf %318, %327 : vector<16x32xf32>
    %c0_127 = arith.constant 0 : index
    %c0_128 = arith.constant 0 : index
    %329 = vector.load %arg57[%c0_127, %c0_128] : memref<1x32xf32, #tpu.memory_space<vmem>>, vector<1x32xf32>
    %330 = vector.broadcast %329 : vector<1x32xf32> to vector<16x32xf32>
    %331 = arith.mulf %328, %330 : vector<16x32xf32>
    %c0_129 = arith.constant 0 : index
    %c0_130 = arith.constant 0 : index
    %332 = vector.load %arg58[%c0_129, %c0_130] : memref<1x32xf32, #tpu.memory_space<vmem>>, vector<1x32xf32>
    %333 = vector.broadcast %332 : vector<1x32xf32> to vector<16x32xf32>
    %334 = arith.addf %331, %333 : vector<16x32xf32>
    %c0_131 = arith.constant 0 : index
    %c0_132 = arith.constant 0 : index
    %335 = vector.load %arg73[%c0_131, %c0_132] : memref<8x32xf32, #tpu.memory_space<vmem>>, vector<8x32xf32>
    %c0_133 = arith.constant 0 : index
    %c0_134 = arith.constant 0 : index
    %336 = vector.load %arg19[%c0_133, %c0_134] : memref<32x96xf32, #tpu.memory_space<vmem>>, vector<32x96xf32>
    %c0_135 = arith.constant 0 : index
    %c0_136 = arith.constant 0 : index
    %337 = vector.load %arg17[%c0_135, %c0_136] : memref<1x96xf32, #tpu.memory_space<vmem>>, vector<1x96xf32>
    %cst_137 = arith.constant dense<0.000000e+00> : vector<8x96xf32>
    %338 = tpu.matmul %335, %336, %cst_137 {dimension_numbers = #tpu.dot_dimension_numbers<[1], [0], [0], [1], [0, 0, 1, 1], [], []>} : vector<8x32xf32>, vector<32x96xf32>, vector<8x96xf32> -> vector<8x96xf32>
    %339 = vector.broadcast %337 : vector<1x96xf32> to vector<8x96xf32>
    %340 = arith.addf %338, %339 : vector<8x96xf32>
    %341 = vector.extract_strided_slice %340 {offsets = [0, 0], sizes = [8, 32], strides = [1, 1]} : vector<8x96xf32> to vector<8x32xf32>
    %342 = vector.extract_strided_slice %340 {offsets = [0, 32], sizes = [8, 32], strides = [1, 1]} : vector<8x96xf32> to vector<8x32xf32>
    %343 = vector.extract_strided_slice %340 {offsets = [0, 64], sizes = [8, 32], strides = [1, 1]} : vector<8x96xf32> to vector<8x32xf32>
    %cst_138 = arith.constant 0.353553385 : f32
    %344 = vector.broadcast %cst_138 : f32 to vector<8x32xf32>
    %345 = arith.mulf %341, %344 : vector<8x32xf32>
    %c0_139 = arith.constant 0 : index
    %c0_140 = arith.constant 0 : index
    %346 = vector.load %arg20[%c0_139, %c0_140] : memref<32x32xf32, #tpu.memory_space<vmem>>, vector<32x32xf32>
    %cst_141 = arith.constant 0.000000e+00 : f32
    %347 = vector.broadcast %cst_141 : f32 to vector<8x32xf32>
    %348 = vector.extract_strided_slice %345 {offsets = [0, 0], sizes = [8, 8], strides = [1, 1]} : vector<8x32xf32> to vector<8x8xf32>
    %349 = arith.truncf %348 : vector<8x8xf32> to vector<8x8xbf16>
    %350 = vector.extract_strided_slice %342 {offsets = [0, 0], sizes = [8, 8], strides = [1, 1]} : vector<8x32xf32> to vector<8x8xf32>
    %351 = arith.truncf %350 : vector<8x8xf32> to vector<8x8xbf16>
    %352 = vector.extract_strided_slice %343 {offsets = [0, 0], sizes = [8, 8], strides = [1, 1]} : vector<8x32xf32> to vector<8x8xf32>
    %353 = arith.truncf %352 : vector<8x8xf32> to vector<8x8xbf16>
    %cst_142 = arith.constant dense<0.000000e+00> : vector<8x8xf32>
    %354 = tpu.matmul %349, %351, %cst_142 {dimension_numbers = #tpu.dot_dimension_numbers<[1], [1], [0], [0], [0, 0, 1, 0], [], []>} : vector<8x8xbf16>, vector<8x8xbf16>, vector<8x8xf32> -> vector<8x8xf32>
    %cst_143 = arith.constant dense<0xFF800000> : vector<8xf32>
    %355 = vector.multi_reduction <maximumf>, %354, %cst_143 [1] : vector<8x8xf32> to vector<8xf32>
    %356 = vector.shape_cast %355 : vector<8xf32> to vector<8x1xf32>
    %357 = vector.broadcast %356 : vector<8x1xf32> to vector<8x8xf32>
    %358 = arith.subf %354, %357 : vector<8x8xf32>
    %359 = math.exp %358 : vector<8x8xf32>
    %cst_144 = arith.constant dense<0.000000e+00> : vector<8xf32>
    %360 = vector.multi_reduction <add>, %359, %cst_144 [1] : vector<8x8xf32> to vector<8xf32>
    %361 = vector.shape_cast %360 : vector<8xf32> to vector<8x1xf32>
    %362 = tpu.reciprocal %361 {approx = true} : vector<8x1xf32> -> vector<8x1xf32>
    %363 = arith.truncf %359 : vector<8x8xf32> to vector<8x8xbf16>
    %cst_145 = arith.constant dense<0.000000e+00> : vector<8x8xf32>
    %364 = tpu.matmul %363, %353, %cst_145 {dimension_numbers = #tpu.dot_dimension_numbers<[1], [0], [0], [1], [0, 0, 1, 1], [], []>} : vector<8x8xbf16>, vector<8x8xbf16>, vector<8x8xf32> -> vector<8x8xf32>
    %365 = vector.broadcast %362 : vector<8x1xf32> to vector<8x8xf32>
    %366 = arith.mulf %364, %365 : vector<8x8xf32>
    %367 = vector.extract_strided_slice %346 {offsets = [0, 0], sizes = [8, 32], strides = [1, 1]} : vector<32x32xf32> to vector<8x32xf32>
    %cst_146 = arith.constant dense<0.000000e+00> : vector<8x32xf32>
    %368 = tpu.matmul %366, %367, %cst_146 {dimension_numbers = #tpu.dot_dimension_numbers<[1], [0], [0], [1], [0, 0, 1, 1], [], []>} : vector<8x8xf32>, vector<8x32xf32>, vector<8x32xf32> -> vector<8x32xf32>
    %369 = arith.addf %347, %368 : vector<8x32xf32>
    %370 = vector.extract_strided_slice %345 {offsets = [0, 8], sizes = [8, 8], strides = [1, 1]} : vector<8x32xf32> to vector<8x8xf32>
    %371 = arith.truncf %370 : vector<8x8xf32> to vector<8x8xbf16>
    %372 = vector.extract_strided_slice %342 {offsets = [0, 8], sizes = [8, 8], strides = [1, 1]} : vector<8x32xf32> to vector<8x8xf32>
    %373 = arith.truncf %372 : vector<8x8xf32> to vector<8x8xbf16>
    %374 = vector.extract_strided_slice %343 {offsets = [0, 8], sizes = [8, 8], strides = [1, 1]} : vector<8x32xf32> to vector<8x8xf32>
    %375 = arith.truncf %374 : vector<8x8xf32> to vector<8x8xbf16>
    %cst_147 = arith.constant dense<0.000000e+00> : vector<8x8xf32>
    %376 = tpu.matmul %371, %373, %cst_147 {dimension_numbers = #tpu.dot_dimension_numbers<[1], [1], [0], [0], [0, 0, 1, 0], [], []>} : vector<8x8xbf16>, vector<8x8xbf16>, vector<8x8xf32> -> vector<8x8xf32>
    %cst_148 = arith.constant dense<0xFF800000> : vector<8xf32>
    %377 = vector.multi_reduction <maximumf>, %376, %cst_148 [1] : vector<8x8xf32> to vector<8xf32>
    %378 = vector.shape_cast %377 : vector<8xf32> to vector<8x1xf32>
    %379 = vector.broadcast %378 : vector<8x1xf32> to vector<8x8xf32>
    %380 = arith.subf %376, %379 : vector<8x8xf32>
    %381 = math.exp %380 : vector<8x8xf32>
    %cst_149 = arith.constant dense<0.000000e+00> : vector<8xf32>
    %382 = vector.multi_reduction <add>, %381, %cst_149 [1] : vector<8x8xf32> to vector<8xf32>
    %383 = vector.shape_cast %382 : vector<8xf32> to vector<8x1xf32>
    %384 = tpu.reciprocal %383 {approx = true} : vector<8x1xf32> -> vector<8x1xf32>
    %385 = arith.truncf %381 : vector<8x8xf32> to vector<8x8xbf16>
    %cst_150 = arith.constant dense<0.000000e+00> : vector<8x8xf32>
    %386 = tpu.matmul %385, %375, %cst_150 {dimension_numbers = #tpu.dot_dimension_numbers<[1], [0], [0], [1], [0, 0, 1, 1], [], []>} : vector<8x8xbf16>, vector<8x8xbf16>, vector<8x8xf32> -> vector<8x8xf32>
    %387 = vector.broadcast %384 : vector<8x1xf32> to vector<8x8xf32>
    %388 = arith.mulf %386, %387 : vector<8x8xf32>
    %389 = vector.extract_strided_slice %346 {offsets = [8, 0], sizes = [8, 32], strides = [1, 1]} : vector<32x32xf32> to vector<8x32xf32>
    %cst_151 = arith.constant dense<0.000000e+00> : vector<8x32xf32>
    %390 = tpu.matmul %388, %389, %cst_151 {dimension_numbers = #tpu.dot_dimension_numbers<[1], [0], [0], [1], [0, 0, 1, 1], [], []>} : vector<8x8xf32>, vector<8x32xf32>, vector<8x32xf32> -> vector<8x32xf32>
    %391 = arith.addf %369, %390 : vector<8x32xf32>
    %392 = vector.extract_strided_slice %345 {offsets = [0, 16], sizes = [8, 8], strides = [1, 1]} : vector<8x32xf32> to vector<8x8xf32>
    %393 = arith.truncf %392 : vector<8x8xf32> to vector<8x8xbf16>
    %394 = vector.extract_strided_slice %342 {offsets = [0, 16], sizes = [8, 8], strides = [1, 1]} : vector<8x32xf32> to vector<8x8xf32>
    %395 = arith.truncf %394 : vector<8x8xf32> to vector<8x8xbf16>
    %396 = vector.extract_strided_slice %343 {offsets = [0, 16], sizes = [8, 8], strides = [1, 1]} : vector<8x32xf32> to vector<8x8xf32>
    %397 = arith.truncf %396 : vector<8x8xf32> to vector<8x8xbf16>
    %cst_152 = arith.constant dense<0.000000e+00> : vector<8x8xf32>
    %398 = tpu.matmul %393, %395, %cst_152 {dimension_numbers = #tpu.dot_dimension_numbers<[1], [1], [0], [0], [0, 0, 1, 0], [], []>} : vector<8x8xbf16>, vector<8x8xbf16>, vector<8x8xf32> -> vector<8x8xf32>
    %cst_153 = arith.constant dense<0xFF800000> : vector<8xf32>
    %399 = vector.multi_reduction <maximumf>, %398, %cst_153 [1] : vector<8x8xf32> to vector<8xf32>
    %400 = vector.shape_cast %399 : vector<8xf32> to vector<8x1xf32>
    %401 = vector.broadcast %400 : vector<8x1xf32> to vector<8x8xf32>
    %402 = arith.subf %398, %401 : vector<8x8xf32>
    %403 = math.exp %402 : vector<8x8xf32>
    %cst_154 = arith.constant dense<0.000000e+00> : vector<8xf32>
    %404 = vector.multi_reduction <add>, %403, %cst_154 [1] : vector<8x8xf32> to vector<8xf32>
    %405 = vector.shape_cast %404 : vector<8xf32> to vector<8x1xf32>
    %406 = tpu.reciprocal %405 {approx = true} : vector<8x1xf32> -> vector<8x1xf32>
    %407 = arith.truncf %403 : vector<8x8xf32> to vector<8x8xbf16>
    %cst_155 = arith.constant dense<0.000000e+00> : vector<8x8xf32>
    %408 = tpu.matmul %407, %397, %cst_155 {dimension_numbers = #tpu.dot_dimension_numbers<[1], [0], [0], [1], [0, 0, 1, 1], [], []>} : vector<8x8xbf16>, vector<8x8xbf16>, vector<8x8xf32> -> vector<8x8xf32>
    %409 = vector.broadcast %406 : vector<8x1xf32> to vector<8x8xf32>
    %410 = arith.mulf %408, %409 : vector<8x8xf32>
    %411 = vector.extract_strided_slice %346 {offsets = [16, 0], sizes = [8, 32], strides = [1, 1]} : vector<32x32xf32> to vector<8x32xf32>
    %cst_156 = arith.constant dense<0.000000e+00> : vector<8x32xf32>
    %412 = tpu.matmul %410, %411, %cst_156 {dimension_numbers = #tpu.dot_dimension_numbers<[1], [0], [0], [1], [0, 0, 1, 1], [], []>} : vector<8x8xf32>, vector<8x32xf32>, vector<8x32xf32> -> vector<8x32xf32>
    %413 = arith.addf %391, %412 : vector<8x32xf32>
    %414 = vector.extract_strided_slice %345 {offsets = [0, 24], sizes = [8, 8], strides = [1, 1]} : vector<8x32xf32> to vector<8x8xf32>
    %415 = arith.truncf %414 : vector<8x8xf32> to vector<8x8xbf16>
    %416 = vector.extract_strided_slice %342 {offsets = [0, 24], sizes = [8, 8], strides = [1, 1]} : vector<8x32xf32> to vector<8x8xf32>
    %417 = arith.truncf %416 : vector<8x8xf32> to vector<8x8xbf16>
    %418 = vector.extract_strided_slice %343 {offsets = [0, 24], sizes = [8, 8], strides = [1, 1]} : vector<8x32xf32> to vector<8x8xf32>
    %419 = arith.truncf %418 : vector<8x8xf32> to vector<8x8xbf16>
    %cst_157 = arith.constant dense<0.000000e+00> : vector<8x8xf32>
    %420 = tpu.matmul %415, %417, %cst_157 {dimension_numbers = #tpu.dot_dimension_numbers<[1], [1], [0], [0], [0, 0, 1, 0], [], []>} : vector<8x8xbf16>, vector<8x8xbf16>, vector<8x8xf32> -> vector<8x8xf32>
    %cst_158 = arith.constant dense<0xFF800000> : vector<8xf32>
    %421 = vector.multi_reduction <maximumf>, %420, %cst_158 [1] : vector<8x8xf32> to vector<8xf32>
    %422 = vector.shape_cast %421 : vector<8xf32> to vector<8x1xf32>
    %423 = vector.broadcast %422 : vector<8x1xf32> to vector<8x8xf32>
    %424 = arith.subf %420, %423 : vector<8x8xf32>
    %425 = math.exp %424 : vector<8x8xf32>
    %cst_159 = arith.constant dense<0.000000e+00> : vector<8xf32>
    %426 = vector.multi_reduction <add>, %425, %cst_159 [1] : vector<8x8xf32> to vector<8xf32>
    %427 = vector.shape_cast %426 : vector<8xf32> to vector<8x1xf32>
    %428 = tpu.reciprocal %427 {approx = true} : vector<8x1xf32> -> vector<8x1xf32>
    %429 = arith.truncf %425 : vector<8x8xf32> to vector<8x8xbf16>
    %cst_160 = arith.constant dense<0.000000e+00> : vector<8x8xf32>
    %430 = tpu.matmul %429, %419, %cst_160 {dimension_numbers = #tpu.dot_dimension_numbers<[1], [0], [0], [1], [0, 0, 1, 1], [], []>} : vector<8x8xbf16>, vector<8x8xbf16>, vector<8x8xf32> -> vector<8x8xf32>
    %431 = vector.broadcast %428 : vector<8x1xf32> to vector<8x8xf32>
    %432 = arith.mulf %430, %431 : vector<8x8xf32>
    %433 = vector.extract_strided_slice %346 {offsets = [24, 0], sizes = [8, 32], strides = [1, 1]} : vector<32x32xf32> to vector<8x32xf32>
    %cst_161 = arith.constant dense<0.000000e+00> : vector<8x32xf32>
    %434 = tpu.matmul %432, %433, %cst_161 {dimension_numbers = #tpu.dot_dimension_numbers<[1], [0], [0], [1], [0, 0, 1, 1], [], []>} : vector<8x8xf32>, vector<8x32xf32>, vector<8x32xf32> -> vector<8x32xf32>
    %435 = arith.addf %413, %434 : vector<8x32xf32>
    %c0_162 = arith.constant 0 : index
    %c0_163 = arith.constant 0 : index
    %436 = vector.load %arg18[%c0_162, %c0_163] : memref<1x32xf32, #tpu.memory_space<vmem>>, vector<1x32xf32>
    %437 = vector.broadcast %436 : vector<1x32xf32> to vector<8x32xf32>
    %438 = arith.addf %435, %437 : vector<8x32xf32>
    %439 = arith.addf %438, %335 : vector<8x32xf32>
    %cst_164 = arith.constant dense<0.000000e+00> : vector<8xf32>
    %440 = vector.multi_reduction <add>, %439, %cst_164 [1] : vector<8x32xf32> to vector<8xf32>
    %441 = vector.shape_cast %440 : vector<8xf32> to vector<8x1xf32>
    %cst_165 = arith.constant 3.200000e+01 : f32
    %442 = vector.broadcast %cst_165 : f32 to vector<8x1xf32>
    %443 = arith.divf %441, %442 : vector<8x1xf32>
    %444 = vector.broadcast %443 : vector<8x1xf32> to vector<8x32xf32>
    %445 = arith.subf %439, %444 : vector<8x32xf32>
    %446 = arith.mulf %445, %445 : vector<8x32xf32>
    %cst_166 = arith.constant dense<0.000000e+00> : vector<8xf32>
    %447 = vector.multi_reduction <add>, %446, %cst_166 [1] : vector<8x32xf32> to vector<8xf32>
    %448 = vector.shape_cast %447 : vector<8xf32> to vector<8x1xf32>
    %cst_167 = arith.constant 3.200000e+01 : f32
    %449 = vector.broadcast %cst_167 : f32 to vector<8x1xf32>
    %450 = arith.divf %448, %449 : vector<8x1xf32>
    %cst_168 = arith.constant 9.99999974E-6 : f32
    %451 = vector.broadcast %cst_168 : f32 to vector<8x1xf32>
    %452 = arith.addf %450, %451 : vector<8x1xf32>
    %453 = math.rsqrt %452 : vector<8x1xf32>
    %454 = vector.broadcast %453 : vector<8x1xf32> to vector<8x32xf32>
    %455 = arith.mulf %445, %454 : vector<8x32xf32>
    %c0_169 = arith.constant 0 : index
    %c0_170 = arith.constant 0 : index
    %456 = vector.load %arg11[%c0_169, %c0_170] : memref<1x32xf32, #tpu.memory_space<vmem>>, vector<1x32xf32>
    %457 = vector.broadcast %456 : vector<1x32xf32> to vector<8x32xf32>
    %458 = arith.mulf %455, %457 : vector<8x32xf32>
    %c0_171 = arith.constant 0 : index
    %c0_172 = arith.constant 0 : index
    %459 = vector.load %arg12[%c0_171, %c0_172] : memref<1x32xf32, #tpu.memory_space<vmem>>, vector<1x32xf32>
    %460 = vector.broadcast %459 : vector<1x32xf32> to vector<8x32xf32>
    %461 = arith.addf %458, %460 : vector<8x32xf32>
    %c0_173 = arith.constant 0 : index
    %c0_174 = arith.constant 0 : index
    %462 = vector.load %arg5[%c0_173, %c0_174] : memref<32x96xf32, #tpu.memory_space<vmem>>, vector<32x96xf32>
    %c0_175 = arith.constant 0 : index
    %c0_176 = arith.constant 0 : index
    %463 = vector.load %arg3[%c0_175, %c0_176] : memref<1x96xf32, #tpu.memory_space<vmem>>, vector<1x96xf32>
    %464 = vector.extract_strided_slice %462 {offsets = [0, 0], sizes = [32, 32], strides = [1, 1]} : vector<32x96xf32> to vector<32x32xf32>
    %cst_177 = arith.constant dense<0.000000e+00> : vector<8x32xf32>
    %465 = tpu.matmul %461, %464, %cst_177 {dimension_numbers = #tpu.dot_dimension_numbers<[1], [0], [0], [1], [0, 0, 1, 1], [], []>} : vector<8x32xf32>, vector<32x32xf32>, vector<8x32xf32> -> vector<8x32xf32>
    %466 = vector.extract_strided_slice %463 {offsets = [0, 0], sizes = [1, 32], strides = [1, 1]} : vector<1x96xf32> to vector<1x32xf32>
    %467 = vector.broadcast %466 : vector<1x32xf32> to vector<8x32xf32>
    %468 = arith.addf %465, %467 : vector<8x32xf32>
    %469 = vector.extract_strided_slice %462 {offsets = [0, 32], sizes = [32, 64], strides = [1, 1]} : vector<32x96xf32> to vector<32x64xf32>
    %cst_178 = arith.constant dense<0.000000e+00> : vector<16x64xf32>
    %470 = tpu.matmul %334, %469, %cst_178 {dimension_numbers = #tpu.dot_dimension_numbers<[1], [0], [0], [1], [0, 0, 1, 1], [], []>} : vector<16x32xf32>, vector<32x64xf32>, vector<16x64xf32> -> vector<16x64xf32>
    %471 = vector.extract_strided_slice %463 {offsets = [0, 32], sizes = [1, 64], strides = [1, 1]} : vector<1x96xf32> to vector<1x64xf32>
    %472 = vector.broadcast %471 : vector<1x64xf32> to vector<16x64xf32>
    %473 = arith.addf %470, %472 : vector<16x64xf32>
    %474 = vector.extract_strided_slice %473 {offsets = [0, 0], sizes = [16, 32], strides = [1, 1]} : vector<16x64xf32> to vector<16x32xf32>
    %475 = vector.extract_strided_slice %473 {offsets = [0, 32], sizes = [16, 32], strides = [1, 1]} : vector<16x64xf32> to vector<16x32xf32>
    %cst_179 = arith.constant 0.353553385 : f32
    %476 = vector.broadcast %cst_179 : f32 to vector<8x32xf32>
    %477 = arith.mulf %468, %476 : vector<8x32xf32>
    %c0_180 = arith.constant 0 : index
    %c0_181 = arith.constant 0 : index
    %478 = vector.load %arg6[%c0_180, %c0_181] : memref<32x32xf32, #tpu.memory_space<vmem>>, vector<32x32xf32>
    %cst_182 = arith.constant 0.000000e+00 : f32
    %479 = vector.broadcast %cst_182 : f32 to vector<8x32xf32>
    %480 = vector.extract_strided_slice %477 {offsets = [0, 0], sizes = [8, 8], strides = [1, 1]} : vector<8x32xf32> to vector<8x8xf32>
    %481 = arith.truncf %480 : vector<8x8xf32> to vector<8x8xbf16>
    %482 = vector.extract_strided_slice %474 {offsets = [0, 0], sizes = [16, 8], strides = [1, 1]} : vector<16x32xf32> to vector<16x8xf32>
    %483 = arith.truncf %482 : vector<16x8xf32> to vector<16x8xbf16>
    %484 = vector.extract_strided_slice %475 {offsets = [0, 0], sizes = [16, 8], strides = [1, 1]} : vector<16x32xf32> to vector<16x8xf32>
    %485 = arith.truncf %484 : vector<16x8xf32> to vector<16x8xbf16>
    %cst_183 = arith.constant dense<0.000000e+00> : vector<8x16xf32>
    %486 = tpu.matmul %481, %483, %cst_183 {dimension_numbers = #tpu.dot_dimension_numbers<[1], [1], [0], [0], [0, 0, 1, 0], [], []>} : vector<8x8xbf16>, vector<16x8xbf16>, vector<8x16xf32> -> vector<8x16xf32>
    %cst_184 = arith.constant dense<0xFF800000> : vector<8xf32>
    %487 = vector.multi_reduction <maximumf>, %486, %cst_184 [1] : vector<8x16xf32> to vector<8xf32>
    %488 = vector.shape_cast %487 : vector<8xf32> to vector<8x1xf32>
    %489 = vector.broadcast %488 : vector<8x1xf32> to vector<8x16xf32>
    %490 = arith.subf %486, %489 : vector<8x16xf32>
    %491 = math.exp %490 : vector<8x16xf32>
    %cst_185 = arith.constant dense<0.000000e+00> : vector<8xf32>
    %492 = vector.multi_reduction <add>, %491, %cst_185 [1] : vector<8x16xf32> to vector<8xf32>
    %493 = vector.shape_cast %492 : vector<8xf32> to vector<8x1xf32>
    %494 = tpu.reciprocal %493 {approx = true} : vector<8x1xf32> -> vector<8x1xf32>
    %495 = arith.truncf %491 : vector<8x16xf32> to vector<8x16xbf16>
    %cst_186 = arith.constant dense<0.000000e+00> : vector<8x8xf32>
    %496 = tpu.matmul %495, %485, %cst_186 {dimension_numbers = #tpu.dot_dimension_numbers<[1], [0], [0], [1], [0, 0, 1, 1], [], []>} : vector<8x16xbf16>, vector<16x8xbf16>, vector<8x8xf32> -> vector<8x8xf32>
    %497 = vector.broadcast %494 : vector<8x1xf32> to vector<8x8xf32>
    %498 = arith.mulf %496, %497 : vector<8x8xf32>
    %499 = vector.extract_strided_slice %478 {offsets = [0, 0], sizes = [8, 32], strides = [1, 1]} : vector<32x32xf32> to vector<8x32xf32>
    %cst_187 = arith.constant dense<0.000000e+00> : vector<8x32xf32>
    %500 = tpu.matmul %498, %499, %cst_187 {dimension_numbers = #tpu.dot_dimension_numbers<[1], [0], [0], [1], [0, 0, 1, 1], [], []>} : vector<8x8xf32>, vector<8x32xf32>, vector<8x32xf32> -> vector<8x32xf32>
    %501 = arith.addf %479, %500 : vector<8x32xf32>
    %502 = vector.extract_strided_slice %477 {offsets = [0, 8], sizes = [8, 8], strides = [1, 1]} : vector<8x32xf32> to vector<8x8xf32>
    %503 = arith.truncf %502 : vector<8x8xf32> to vector<8x8xbf16>
    %504 = vector.extract_strided_slice %474 {offsets = [0, 8], sizes = [16, 8], strides = [1, 1]} : vector<16x32xf32> to vector<16x8xf32>
    %505 = arith.truncf %504 : vector<16x8xf32> to vector<16x8xbf16>
    %506 = vector.extract_strided_slice %475 {offsets = [0, 8], sizes = [16, 8], strides = [1, 1]} : vector<16x32xf32> to vector<16x8xf32>
    %507 = arith.truncf %506 : vector<16x8xf32> to vector<16x8xbf16>
    %cst_188 = arith.constant dense<0.000000e+00> : vector<8x16xf32>
    %508 = tpu.matmul %503, %505, %cst_188 {dimension_numbers = #tpu.dot_dimension_numbers<[1], [1], [0], [0], [0, 0, 1, 0], [], []>} : vector<8x8xbf16>, vector<16x8xbf16>, vector<8x16xf32> -> vector<8x16xf32>
    %cst_189 = arith.constant dense<0xFF800000> : vector<8xf32>
    %509 = vector.multi_reduction <maximumf>, %508, %cst_189 [1] : vector<8x16xf32> to vector<8xf32>
    %510 = vector.shape_cast %509 : vector<8xf32> to vector<8x1xf32>
    %511 = vector.broadcast %510 : vector<8x1xf32> to vector<8x16xf32>
    %512 = arith.subf %508, %511 : vector<8x16xf32>
    %513 = math.exp %512 : vector<8x16xf32>
    %cst_190 = arith.constant dense<0.000000e+00> : vector<8xf32>
    %514 = vector.multi_reduction <add>, %513, %cst_190 [1] : vector<8x16xf32> to vector<8xf32>
    %515 = vector.shape_cast %514 : vector<8xf32> to vector<8x1xf32>
    %516 = tpu.reciprocal %515 {approx = true} : vector<8x1xf32> -> vector<8x1xf32>
    %517 = arith.truncf %513 : vector<8x16xf32> to vector<8x16xbf16>
    %cst_191 = arith.constant dense<0.000000e+00> : vector<8x8xf32>
    %518 = tpu.matmul %517, %507, %cst_191 {dimension_numbers = #tpu.dot_dimension_numbers<[1], [0], [0], [1], [0, 0, 1, 1], [], []>} : vector<8x16xbf16>, vector<16x8xbf16>, vector<8x8xf32> -> vector<8x8xf32>
    %519 = vector.broadcast %516 : vector<8x1xf32> to vector<8x8xf32>
    %520 = arith.mulf %518, %519 : vector<8x8xf32>
    %521 = vector.extract_strided_slice %478 {offsets = [8, 0], sizes = [8, 32], strides = [1, 1]} : vector<32x32xf32> to vector<8x32xf32>
    %cst_192 = arith.constant dense<0.000000e+00> : vector<8x32xf32>
    %522 = tpu.matmul %520, %521, %cst_192 {dimension_numbers = #tpu.dot_dimension_numbers<[1], [0], [0], [1], [0, 0, 1, 1], [], []>} : vector<8x8xf32>, vector<8x32xf32>, vector<8x32xf32> -> vector<8x32xf32>
    %523 = arith.addf %501, %522 : vector<8x32xf32>
    %524 = vector.extract_strided_slice %477 {offsets = [0, 16], sizes = [8, 8], strides = [1, 1]} : vector<8x32xf32> to vector<8x8xf32>
    %525 = arith.truncf %524 : vector<8x8xf32> to vector<8x8xbf16>
    %526 = vector.extract_strided_slice %474 {offsets = [0, 16], sizes = [16, 8], strides = [1, 1]} : vector<16x32xf32> to vector<16x8xf32>
    %527 = arith.truncf %526 : vector<16x8xf32> to vector<16x8xbf16>
    %528 = vector.extract_strided_slice %475 {offsets = [0, 16], sizes = [16, 8], strides = [1, 1]} : vector<16x32xf32> to vector<16x8xf32>
    %529 = arith.truncf %528 : vector<16x8xf32> to vector<16x8xbf16>
    %cst_193 = arith.constant dense<0.000000e+00> : vector<8x16xf32>
    %530 = tpu.matmul %525, %527, %cst_193 {dimension_numbers = #tpu.dot_dimension_numbers<[1], [1], [0], [0], [0, 0, 1, 0], [], []>} : vector<8x8xbf16>, vector<16x8xbf16>, vector<8x16xf32> -> vector<8x16xf32>
    %cst_194 = arith.constant dense<0xFF800000> : vector<8xf32>
    %531 = vector.multi_reduction <maximumf>, %530, %cst_194 [1] : vector<8x16xf32> to vector<8xf32>
    %532 = vector.shape_cast %531 : vector<8xf32> to vector<8x1xf32>
    %533 = vector.broadcast %532 : vector<8x1xf32> to vector<8x16xf32>
    %534 = arith.subf %530, %533 : vector<8x16xf32>
    %535 = math.exp %534 : vector<8x16xf32>
    %cst_195 = arith.constant dense<0.000000e+00> : vector<8xf32>
    %536 = vector.multi_reduction <add>, %535, %cst_195 [1] : vector<8x16xf32> to vector<8xf32>
    %537 = vector.shape_cast %536 : vector<8xf32> to vector<8x1xf32>
    %538 = tpu.reciprocal %537 {approx = true} : vector<8x1xf32> -> vector<8x1xf32>
    %539 = arith.truncf %535 : vector<8x16xf32> to vector<8x16xbf16>
    %cst_196 = arith.constant dense<0.000000e+00> : vector<8x8xf32>
    %540 = tpu.matmul %539, %529, %cst_196 {dimension_numbers = #tpu.dot_dimension_numbers<[1], [0], [0], [1], [0, 0, 1, 1], [], []>} : vector<8x16xbf16>, vector<16x8xbf16>, vector<8x8xf32> -> vector<8x8xf32>
    %541 = vector.broadcast %538 : vector<8x1xf32> to vector<8x8xf32>
    %542 = arith.mulf %540, %541 : vector<8x8xf32>
    %543 = vector.extract_strided_slice %478 {offsets = [16, 0], sizes = [8, 32], strides = [1, 1]} : vector<32x32xf32> to vector<8x32xf32>
    %cst_197 = arith.constant dense<0.000000e+00> : vector<8x32xf32>
    %544 = tpu.matmul %542, %543, %cst_197 {dimension_numbers = #tpu.dot_dimension_numbers<[1], [0], [0], [1], [0, 0, 1, 1], [], []>} : vector<8x8xf32>, vector<8x32xf32>, vector<8x32xf32> -> vector<8x32xf32>
    %545 = arith.addf %523, %544 : vector<8x32xf32>
    %546 = vector.extract_strided_slice %477 {offsets = [0, 24], sizes = [8, 8], strides = [1, 1]} : vector<8x32xf32> to vector<8x8xf32>
    %547 = arith.truncf %546 : vector<8x8xf32> to vector<8x8xbf16>
    %548 = vector.extract_strided_slice %474 {offsets = [0, 24], sizes = [16, 8], strides = [1, 1]} : vector<16x32xf32> to vector<16x8xf32>
    %549 = arith.truncf %548 : vector<16x8xf32> to vector<16x8xbf16>
    %550 = vector.extract_strided_slice %475 {offsets = [0, 24], sizes = [16, 8], strides = [1, 1]} : vector<16x32xf32> to vector<16x8xf32>
    %551 = arith.truncf %550 : vector<16x8xf32> to vector<16x8xbf16>
    %cst_198 = arith.constant dense<0.000000e+00> : vector<8x16xf32>
    %552 = tpu.matmul %547, %549, %cst_198 {dimension_numbers = #tpu.dot_dimension_numbers<[1], [1], [0], [0], [0, 0, 1, 0], [], []>} : vector<8x8xbf16>, vector<16x8xbf16>, vector<8x16xf32> -> vector<8x16xf32>
    %cst_199 = arith.constant dense<0xFF800000> : vector<8xf32>
    %553 = vector.multi_reduction <maximumf>, %552, %cst_199 [1] : vector<8x16xf32> to vector<8xf32>
    %554 = vector.shape_cast %553 : vector<8xf32> to vector<8x1xf32>
    %555 = vector.broadcast %554 : vector<8x1xf32> to vector<8x16xf32>
    %556 = arith.subf %552, %555 : vector<8x16xf32>
    %557 = math.exp %556 : vector<8x16xf32>
    %cst_200 = arith.constant dense<0.000000e+00> : vector<8xf32>
    %558 = vector.multi_reduction <add>, %557, %cst_200 [1] : vector<8x16xf32> to vector<8xf32>
    %559 = vector.shape_cast %558 : vector<8xf32> to vector<8x1xf32>
    %560 = tpu.reciprocal %559 {approx = true} : vector<8x1xf32> -> vector<8x1xf32>
    %561 = arith.truncf %557 : vector<8x16xf32> to vector<8x16xbf16>
    %cst_201 = arith.constant dense<0.000000e+00> : vector<8x8xf32>
    %562 = tpu.matmul %561, %551, %cst_201 {dimension_numbers = #tpu.dot_dimension_numbers<[1], [0], [0], [1], [0, 0, 1, 1], [], []>} : vector<8x16xbf16>, vector<16x8xbf16>, vector<8x8xf32> -> vector<8x8xf32>
    %563 = vector.broadcast %560 : vector<8x1xf32> to vector<8x8xf32>
    %564 = arith.mulf %562, %563 : vector<8x8xf32>
    %565 = vector.extract_strided_slice %478 {offsets = [24, 0], sizes = [8, 32], strides = [1, 1]} : vector<32x32xf32> to vector<8x32xf32>
    %cst_202 = arith.constant dense<0.000000e+00> : vector<8x32xf32>
    %566 = tpu.matmul %564, %565, %cst_202 {dimension_numbers = #tpu.dot_dimension_numbers<[1], [0], [0], [1], [0, 0, 1, 1], [], []>} : vector<8x8xf32>, vector<8x32xf32>, vector<8x32xf32> -> vector<8x32xf32>
    %567 = arith.addf %545, %566 : vector<8x32xf32>
    %c0_203 = arith.constant 0 : index
    %c0_204 = arith.constant 0 : index
    %568 = vector.load %arg4[%c0_203, %c0_204] : memref<1x32xf32, #tpu.memory_space<vmem>>, vector<1x32xf32>
    %569 = vector.broadcast %568 : vector<1x32xf32> to vector<8x32xf32>
    %570 = arith.addf %567, %569 : vector<8x32xf32>
    %571 = arith.addf %570, %461 : vector<8x32xf32>
    %cst_205 = arith.constant dense<0.000000e+00> : vector<8xf32>
    %572 = vector.multi_reduction <add>, %571, %cst_205 [1] : vector<8x32xf32> to vector<8xf32>
    %573 = vector.shape_cast %572 : vector<8xf32> to vector<8x1xf32>
    %cst_206 = arith.constant 3.200000e+01 : f32
    %574 = vector.broadcast %cst_206 : f32 to vector<8x1xf32>
    %575 = arith.divf %573, %574 : vector<8x1xf32>
    %576 = vector.broadcast %575 : vector<8x1xf32> to vector<8x32xf32>
    %577 = arith.subf %571, %576 : vector<8x32xf32>
    %578 = arith.mulf %577, %577 : vector<8x32xf32>
    %cst_207 = arith.constant dense<0.000000e+00> : vector<8xf32>
    %579 = vector.multi_reduction <add>, %578, %cst_207 [1] : vector<8x32xf32> to vector<8xf32>
    %580 = vector.shape_cast %579 : vector<8xf32> to vector<8x1xf32>
    %cst_208 = arith.constant 3.200000e+01 : f32
    %581 = vector.broadcast %cst_208 : f32 to vector<8x1xf32>
    %582 = arith.divf %580, %581 : vector<8x1xf32>
    %cst_209 = arith.constant 9.99999974E-6 : f32
    %583 = vector.broadcast %cst_209 : f32 to vector<8x1xf32>
    %584 = arith.addf %582, %583 : vector<8x1xf32>
    %585 = math.rsqrt %584 : vector<8x1xf32>
    %586 = vector.broadcast %585 : vector<8x1xf32> to vector<8x32xf32>
    %587 = arith.mulf %577, %586 : vector<8x32xf32>
    %c0_210 = arith.constant 0 : index
    %c0_211 = arith.constant 0 : index
    %588 = vector.load %arg13[%c0_210, %c0_211] : memref<1x32xf32, #tpu.memory_space<vmem>>, vector<1x32xf32>
    %589 = vector.broadcast %588 : vector<1x32xf32> to vector<8x32xf32>
    %590 = arith.mulf %587, %589 : vector<8x32xf32>
    %c0_212 = arith.constant 0 : index
    %c0_213 = arith.constant 0 : index
    %591 = vector.load %arg14[%c0_212, %c0_213] : memref<1x32xf32, #tpu.memory_space<vmem>>, vector<1x32xf32>
    %592 = vector.broadcast %591 : vector<1x32xf32> to vector<8x32xf32>
    %593 = arith.addf %590, %592 : vector<8x32xf32>
    %c0_214 = arith.constant 0 : index
    %c0_215 = arith.constant 0 : index
    %594 = vector.load %arg7[%c0_214, %c0_215] : memref<32x64xf32, #tpu.memory_space<vmem>>, vector<32x64xf32>
    %cst_216 = arith.constant dense<0.000000e+00> : vector<8x64xf32>
    %595 = tpu.matmul %593, %594, %cst_216 {dimension_numbers = #tpu.dot_dimension_numbers<[1], [0], [0], [1], [0, 0, 1, 1], [], []>} : vector<8x32xf32>, vector<32x64xf32>, vector<8x64xf32> -> vector<8x64xf32>
    %c0_217 = arith.constant 0 : index
    %c0_218 = arith.constant 0 : index
    %596 = vector.load %arg8[%c0_217, %c0_218] : memref<1x64xf32, #tpu.memory_space<vmem>>, vector<1x64xf32>
    %597 = vector.broadcast %596 : vector<1x64xf32> to vector<8x64xf32>
    %598 = arith.addf %595, %597 : vector<8x64xf32>
    %cst_219 = arith.constant 0.000000e+00 : f32
    %599 = vector.broadcast %cst_219 : f32 to vector<8x64xf32>
    %600 = arith.maximumf %598, %599 : vector<8x64xf32>
    %c0_220 = arith.constant 0 : index
    %c0_221 = arith.constant 0 : index
    %601 = vector.load %arg9[%c0_220, %c0_221] : memref<64x32xf32, #tpu.memory_space<vmem>>, vector<64x32xf32>
    %cst_222 = arith.constant dense<0.000000e+00> : vector<8x32xf32>
    %602 = tpu.matmul %600, %601, %cst_222 {dimension_numbers = #tpu.dot_dimension_numbers<[1], [0], [0], [1], [0, 0, 1, 1], [], []>} : vector<8x64xf32>, vector<64x32xf32>, vector<8x32xf32> -> vector<8x32xf32>
    %c0_223 = arith.constant 0 : index
    %c0_224 = arith.constant 0 : index
    %603 = vector.load %arg10[%c0_223, %c0_224] : memref<1x32xf32, #tpu.memory_space<vmem>>, vector<1x32xf32>
    %604 = vector.broadcast %603 : vector<1x32xf32> to vector<8x32xf32>
    %605 = arith.addf %602, %604 : vector<8x32xf32>
    %606 = arith.addf %605, %593 : vector<8x32xf32>
    %cst_225 = arith.constant dense<0.000000e+00> : vector<8xf32>
    %607 = vector.multi_reduction <add>, %606, %cst_225 [1] : vector<8x32xf32> to vector<8xf32>
    %608 = vector.shape_cast %607 : vector<8xf32> to vector<8x1xf32>
    %cst_226 = arith.constant 3.200000e+01 : f32
    %609 = vector.broadcast %cst_226 : f32 to vector<8x1xf32>
    %610 = arith.divf %608, %609 : vector<8x1xf32>
    %611 = vector.broadcast %610 : vector<8x1xf32> to vector<8x32xf32>
    %612 = arith.subf %606, %611 : vector<8x32xf32>
    %613 = arith.mulf %612, %612 : vector<8x32xf32>
    %cst_227 = arith.constant dense<0.000000e+00> : vector<8xf32>
    %614 = vector.multi_reduction <add>, %613, %cst_227 [1] : vector<8x32xf32> to vector<8xf32>
    %615 = vector.shape_cast %614 : vector<8xf32> to vector<8x1xf32>
    %cst_228 = arith.constant 3.200000e+01 : f32
    %616 = vector.broadcast %cst_228 : f32 to vector<8x1xf32>
    %617 = arith.divf %615, %616 : vector<8x1xf32>
    %cst_229 = arith.constant 9.99999974E-6 : f32
    %618 = vector.broadcast %cst_229 : f32 to vector<8x1xf32>
    %619 = arith.addf %617, %618 : vector<8x1xf32>
    %620 = math.rsqrt %619 : vector<8x1xf32>
    %621 = vector.broadcast %620 : vector<8x1xf32> to vector<8x32xf32>
    %622 = arith.mulf %612, %621 : vector<8x32xf32>
    %c0_230 = arith.constant 0 : index
    %c0_231 = arith.constant 0 : index
    %623 = vector.load %arg15[%c0_230, %c0_231] : memref<1x32xf32, #tpu.memory_space<vmem>>, vector<1x32xf32>
    %624 = vector.broadcast %623 : vector<1x32xf32> to vector<8x32xf32>
    %625 = arith.mulf %622, %624 : vector<8x32xf32>
    %c0_232 = arith.constant 0 : index
    %c0_233 = arith.constant 0 : index
    %626 = vector.load %arg16[%c0_232, %c0_233] : memref<1x32xf32, #tpu.memory_space<vmem>>, vector<1x32xf32>
    %627 = vector.broadcast %626 : vector<1x32xf32> to vector<8x32xf32>
    %628 = arith.addf %625, %627 : vector<8x32xf32>
    %c0_234 = arith.constant 0 : index
    %c0_235 = arith.constant 0 : index
    %629 = vector.load %arg37[%c0_234, %c0_235] : memref<32x96xf32, #tpu.memory_space<vmem>>, vector<32x96xf32>
    %c0_236 = arith.constant 0 : index
    %c0_237 = arith.constant 0 : index
    %630 = vector.load %arg35[%c0_236, %c0_237] : memref<1x96xf32, #tpu.memory_space<vmem>>, vector<1x96xf32>
    %cst_238 = arith.constant dense<0.000000e+00> : vector<8x96xf32>
    %631 = tpu.matmul %628, %629, %cst_238 {dimension_numbers = #tpu.dot_dimension_numbers<[1], [0], [0], [1], [0, 0, 1, 1], [], []>} : vector<8x32xf32>, vector<32x96xf32>, vector<8x96xf32> -> vector<8x96xf32>
    %632 = vector.broadcast %630 : vector<1x96xf32> to vector<8x96xf32>
    %633 = arith.addf %631, %632 : vector<8x96xf32>
    %634 = vector.extract_strided_slice %633 {offsets = [0, 0], sizes = [8, 32], strides = [1, 1]} : vector<8x96xf32> to vector<8x32xf32>
    %635 = vector.extract_strided_slice %633 {offsets = [0, 32], sizes = [8, 32], strides = [1, 1]} : vector<8x96xf32> to vector<8x32xf32>
    %636 = vector.extract_strided_slice %633 {offsets = [0, 64], sizes = [8, 32], strides = [1, 1]} : vector<8x96xf32> to vector<8x32xf32>
    %cst_239 = arith.constant 0.353553385 : f32
    %637 = vector.broadcast %cst_239 : f32 to vector<8x32xf32>
    %638 = arith.mulf %634, %637 : vector<8x32xf32>
    %c0_240 = arith.constant 0 : index
    %c0_241 = arith.constant 0 : index
    %639 = vector.load %arg38[%c0_240, %c0_241] : memref<32x32xf32, #tpu.memory_space<vmem>>, vector<32x32xf32>
    %cst_242 = arith.constant 0.000000e+00 : f32
    %640 = vector.broadcast %cst_242 : f32 to vector<8x32xf32>
    %641 = vector.extract_strided_slice %638 {offsets = [0, 0], sizes = [8, 8], strides = [1, 1]} : vector<8x32xf32> to vector<8x8xf32>
    %642 = arith.truncf %641 : vector<8x8xf32> to vector<8x8xbf16>
    %643 = vector.extract_strided_slice %635 {offsets = [0, 0], sizes = [8, 8], strides = [1, 1]} : vector<8x32xf32> to vector<8x8xf32>
    %644 = arith.truncf %643 : vector<8x8xf32> to vector<8x8xbf16>
    %645 = vector.extract_strided_slice %636 {offsets = [0, 0], sizes = [8, 8], strides = [1, 1]} : vector<8x32xf32> to vector<8x8xf32>
    %646 = arith.truncf %645 : vector<8x8xf32> to vector<8x8xbf16>
    %cst_243 = arith.constant dense<0.000000e+00> : vector<8x8xf32>
    %647 = tpu.matmul %642, %644, %cst_243 {dimension_numbers = #tpu.dot_dimension_numbers<[1], [1], [0], [0], [0, 0, 1, 0], [], []>} : vector<8x8xbf16>, vector<8x8xbf16>, vector<8x8xf32> -> vector<8x8xf32>
    %cst_244 = arith.constant dense<0xFF800000> : vector<8xf32>
    %648 = vector.multi_reduction <maximumf>, %647, %cst_244 [1] : vector<8x8xf32> to vector<8xf32>
    %649 = vector.shape_cast %648 : vector<8xf32> to vector<8x1xf32>
    %650 = vector.broadcast %649 : vector<8x1xf32> to vector<8x8xf32>
    %651 = arith.subf %647, %650 : vector<8x8xf32>
    %652 = math.exp %651 : vector<8x8xf32>
    %cst_245 = arith.constant dense<0.000000e+00> : vector<8xf32>
    %653 = vector.multi_reduction <add>, %652, %cst_245 [1] : vector<8x8xf32> to vector<8xf32>
    %654 = vector.shape_cast %653 : vector<8xf32> to vector<8x1xf32>
    %655 = tpu.reciprocal %654 {approx = true} : vector<8x1xf32> -> vector<8x1xf32>
    %656 = arith.truncf %652 : vector<8x8xf32> to vector<8x8xbf16>
    %cst_246 = arith.constant dense<0.000000e+00> : vector<8x8xf32>
    %657 = tpu.matmul %656, %646, %cst_246 {dimension_numbers = #tpu.dot_dimension_numbers<[1], [0], [0], [1], [0, 0, 1, 1], [], []>} : vector<8x8xbf16>, vector<8x8xbf16>, vector<8x8xf32> -> vector<8x8xf32>
    %658 = vector.broadcast %655 : vector<8x1xf32> to vector<8x8xf32>
    %659 = arith.mulf %657, %658 : vector<8x8xf32>
    %660 = vector.extract_strided_slice %639 {offsets = [0, 0], sizes = [8, 32], strides = [1, 1]} : vector<32x32xf32> to vector<8x32xf32>
    %cst_247 = arith.constant dense<0.000000e+00> : vector<8x32xf32>
    %661 = tpu.matmul %659, %660, %cst_247 {dimension_numbers = #tpu.dot_dimension_numbers<[1], [0], [0], [1], [0, 0, 1, 1], [], []>} : vector<8x8xf32>, vector<8x32xf32>, vector<8x32xf32> -> vector<8x32xf32>
    %662 = arith.addf %640, %661 : vector<8x32xf32>
    %663 = vector.extract_strided_slice %638 {offsets = [0, 8], sizes = [8, 8], strides = [1, 1]} : vector<8x32xf32> to vector<8x8xf32>
    %664 = arith.truncf %663 : vector<8x8xf32> to vector<8x8xbf16>
    %665 = vector.extract_strided_slice %635 {offsets = [0, 8], sizes = [8, 8], strides = [1, 1]} : vector<8x32xf32> to vector<8x8xf32>
    %666 = arith.truncf %665 : vector<8x8xf32> to vector<8x8xbf16>
    %667 = vector.extract_strided_slice %636 {offsets = [0, 8], sizes = [8, 8], strides = [1, 1]} : vector<8x32xf32> to vector<8x8xf32>
    %668 = arith.truncf %667 : vector<8x8xf32> to vector<8x8xbf16>
    %cst_248 = arith.constant dense<0.000000e+00> : vector<8x8xf32>
    %669 = tpu.matmul %664, %666, %cst_248 {dimension_numbers = #tpu.dot_dimension_numbers<[1], [1], [0], [0], [0, 0, 1, 0], [], []>} : vector<8x8xbf16>, vector<8x8xbf16>, vector<8x8xf32> -> vector<8x8xf32>
    %cst_249 = arith.constant dense<0xFF800000> : vector<8xf32>
    %670 = vector.multi_reduction <maximumf>, %669, %cst_249 [1] : vector<8x8xf32> to vector<8xf32>
    %671 = vector.shape_cast %670 : vector<8xf32> to vector<8x1xf32>
    %672 = vector.broadcast %671 : vector<8x1xf32> to vector<8x8xf32>
    %673 = arith.subf %669, %672 : vector<8x8xf32>
    %674 = math.exp %673 : vector<8x8xf32>
    %cst_250 = arith.constant dense<0.000000e+00> : vector<8xf32>
    %675 = vector.multi_reduction <add>, %674, %cst_250 [1] : vector<8x8xf32> to vector<8xf32>
    %676 = vector.shape_cast %675 : vector<8xf32> to vector<8x1xf32>
    %677 = tpu.reciprocal %676 {approx = true} : vector<8x1xf32> -> vector<8x1xf32>
    %678 = arith.truncf %674 : vector<8x8xf32> to vector<8x8xbf16>
    %cst_251 = arith.constant dense<0.000000e+00> : vector<8x8xf32>
    %679 = tpu.matmul %678, %668, %cst_251 {dimension_numbers = #tpu.dot_dimension_numbers<[1], [0], [0], [1], [0, 0, 1, 1], [], []>} : vector<8x8xbf16>, vector<8x8xbf16>, vector<8x8xf32> -> vector<8x8xf32>
    %680 = vector.broadcast %677 : vector<8x1xf32> to vector<8x8xf32>
    %681 = arith.mulf %679, %680 : vector<8x8xf32>
    %682 = vector.extract_strided_slice %639 {offsets = [8, 0], sizes = [8, 32], strides = [1, 1]} : vector<32x32xf32> to vector<8x32xf32>
    %cst_252 = arith.constant dense<0.000000e+00> : vector<8x32xf32>
    %683 = tpu.matmul %681, %682, %cst_252 {dimension_numbers = #tpu.dot_dimension_numbers<[1], [0], [0], [1], [0, 0, 1, 1], [], []>} : vector<8x8xf32>, vector<8x32xf32>, vector<8x32xf32> -> vector<8x32xf32>
    %684 = arith.addf %662, %683 : vector<8x32xf32>
    %685 = vector.extract_strided_slice %638 {offsets = [0, 16], sizes = [8, 8], strides = [1, 1]} : vector<8x32xf32> to vector<8x8xf32>
    %686 = arith.truncf %685 : vector<8x8xf32> to vector<8x8xbf16>
    %687 = vector.extract_strided_slice %635 {offsets = [0, 16], sizes = [8, 8], strides = [1, 1]} : vector<8x32xf32> to vector<8x8xf32>
    %688 = arith.truncf %687 : vector<8x8xf32> to vector<8x8xbf16>
    %689 = vector.extract_strided_slice %636 {offsets = [0, 16], sizes = [8, 8], strides = [1, 1]} : vector<8x32xf32> to vector<8x8xf32>
    %690 = arith.truncf %689 : vector<8x8xf32> to vector<8x8xbf16>
    %cst_253 = arith.constant dense<0.000000e+00> : vector<8x8xf32>
    %691 = tpu.matmul %686, %688, %cst_253 {dimension_numbers = #tpu.dot_dimension_numbers<[1], [1], [0], [0], [0, 0, 1, 0], [], []>} : vector<8x8xbf16>, vector<8x8xbf16>, vector<8x8xf32> -> vector<8x8xf32>
    %cst_254 = arith.constant dense<0xFF800000> : vector<8xf32>
    %692 = vector.multi_reduction <maximumf>, %691, %cst_254 [1] : vector<8x8xf32> to vector<8xf32>
    %693 = vector.shape_cast %692 : vector<8xf32> to vector<8x1xf32>
    %694 = vector.broadcast %693 : vector<8x1xf32> to vector<8x8xf32>
    %695 = arith.subf %691, %694 : vector<8x8xf32>
    %696 = math.exp %695 : vector<8x8xf32>
    %cst_255 = arith.constant dense<0.000000e+00> : vector<8xf32>
    %697 = vector.multi_reduction <add>, %696, %cst_255 [1] : vector<8x8xf32> to vector<8xf32>
    %698 = vector.shape_cast %697 : vector<8xf32> to vector<8x1xf32>
    %699 = tpu.reciprocal %698 {approx = true} : vector<8x1xf32> -> vector<8x1xf32>
    %700 = arith.truncf %696 : vector<8x8xf32> to vector<8x8xbf16>
    %cst_256 = arith.constant dense<0.000000e+00> : vector<8x8xf32>
    %701 = tpu.matmul %700, %690, %cst_256 {dimension_numbers = #tpu.dot_dimension_numbers<[1], [0], [0], [1], [0, 0, 1, 1], [], []>} : vector<8x8xbf16>, vector<8x8xbf16>, vector<8x8xf32> -> vector<8x8xf32>
    %702 = vector.broadcast %699 : vector<8x1xf32> to vector<8x8xf32>
    %703 = arith.mulf %701, %702 : vector<8x8xf32>
    %704 = vector.extract_strided_slice %639 {offsets = [16, 0], sizes = [8, 32], strides = [1, 1]} : vector<32x32xf32> to vector<8x32xf32>
    %cst_257 = arith.constant dense<0.000000e+00> : vector<8x32xf32>
    %705 = tpu.matmul %703, %704, %cst_257 {dimension_numbers = #tpu.dot_dimension_numbers<[1], [0], [0], [1], [0, 0, 1, 1], [], []>} : vector<8x8xf32>, vector<8x32xf32>, vector<8x32xf32> -> vector<8x32xf32>
    %706 = arith.addf %684, %705 : vector<8x32xf32>
    %707 = vector.extract_strided_slice %638 {offsets = [0, 24], sizes = [8, 8], strides = [1, 1]} : vector<8x32xf32> to vector<8x8xf32>
    %708 = arith.truncf %707 : vector<8x8xf32> to vector<8x8xbf16>
    %709 = vector.extract_strided_slice %635 {offsets = [0, 24], sizes = [8, 8], strides = [1, 1]} : vector<8x32xf32> to vector<8x8xf32>
    %710 = arith.truncf %709 : vector<8x8xf32> to vector<8x8xbf16>
    %711 = vector.extract_strided_slice %636 {offsets = [0, 24], sizes = [8, 8], strides = [1, 1]} : vector<8x32xf32> to vector<8x8xf32>
    %712 = arith.truncf %711 : vector<8x8xf32> to vector<8x8xbf16>
    %cst_258 = arith.constant dense<0.000000e+00> : vector<8x8xf32>
    %713 = tpu.matmul %708, %710, %cst_258 {dimension_numbers = #tpu.dot_dimension_numbers<[1], [1], [0], [0], [0, 0, 1, 0], [], []>} : vector<8x8xbf16>, vector<8x8xbf16>, vector<8x8xf32> -> vector<8x8xf32>
    %cst_259 = arith.constant dense<0xFF800000> : vector<8xf32>
    %714 = vector.multi_reduction <maximumf>, %713, %cst_259 [1] : vector<8x8xf32> to vector<8xf32>
    %715 = vector.shape_cast %714 : vector<8xf32> to vector<8x1xf32>
    %716 = vector.broadcast %715 : vector<8x1xf32> to vector<8x8xf32>
    %717 = arith.subf %713, %716 : vector<8x8xf32>
    %718 = math.exp %717 : vector<8x8xf32>
    %cst_260 = arith.constant dense<0.000000e+00> : vector<8xf32>
    %719 = vector.multi_reduction <add>, %718, %cst_260 [1] : vector<8x8xf32> to vector<8xf32>
    %720 = vector.shape_cast %719 : vector<8xf32> to vector<8x1xf32>
    %721 = tpu.reciprocal %720 {approx = true} : vector<8x1xf32> -> vector<8x1xf32>
    %722 = arith.truncf %718 : vector<8x8xf32> to vector<8x8xbf16>
    %cst_261 = arith.constant dense<0.000000e+00> : vector<8x8xf32>
    %723 = tpu.matmul %722, %712, %cst_261 {dimension_numbers = #tpu.dot_dimension_numbers<[1], [0], [0], [1], [0, 0, 1, 1], [], []>} : vector<8x8xbf16>, vector<8x8xbf16>, vector<8x8xf32> -> vector<8x8xf32>
    %724 = vector.broadcast %721 : vector<8x1xf32> to vector<8x8xf32>
    %725 = arith.mulf %723, %724 : vector<8x8xf32>
    %726 = vector.extract_strided_slice %639 {offsets = [24, 0], sizes = [8, 32], strides = [1, 1]} : vector<32x32xf32> to vector<8x32xf32>
    %cst_262 = arith.constant dense<0.000000e+00> : vector<8x32xf32>
    %727 = tpu.matmul %725, %726, %cst_262 {dimension_numbers = #tpu.dot_dimension_numbers<[1], [0], [0], [1], [0, 0, 1, 1], [], []>} : vector<8x8xf32>, vector<8x32xf32>, vector<8x32xf32> -> vector<8x32xf32>
    %728 = arith.addf %706, %727 : vector<8x32xf32>
    %c0_263 = arith.constant 0 : index
    %c0_264 = arith.constant 0 : index
    %729 = vector.load %arg36[%c0_263, %c0_264] : memref<1x32xf32, #tpu.memory_space<vmem>>, vector<1x32xf32>
    %730 = vector.broadcast %729 : vector<1x32xf32> to vector<8x32xf32>
    %731 = arith.addf %728, %730 : vector<8x32xf32>
    %732 = arith.addf %731, %628 : vector<8x32xf32>
    %cst_265 = arith.constant dense<0.000000e+00> : vector<8xf32>
    %733 = vector.multi_reduction <add>, %732, %cst_265 [1] : vector<8x32xf32> to vector<8xf32>
    %734 = vector.shape_cast %733 : vector<8xf32> to vector<8x1xf32>
    %cst_266 = arith.constant 3.200000e+01 : f32
    %735 = vector.broadcast %cst_266 : f32 to vector<8x1xf32>
    %736 = arith.divf %734, %735 : vector<8x1xf32>
    %737 = vector.broadcast %736 : vector<8x1xf32> to vector<8x32xf32>
    %738 = arith.subf %732, %737 : vector<8x32xf32>
    %739 = arith.mulf %738, %738 : vector<8x32xf32>
    %cst_267 = arith.constant dense<0.000000e+00> : vector<8xf32>
    %740 = vector.multi_reduction <add>, %739, %cst_267 [1] : vector<8x32xf32> to vector<8xf32>
    %741 = vector.shape_cast %740 : vector<8xf32> to vector<8x1xf32>
    %cst_268 = arith.constant 3.200000e+01 : f32
    %742 = vector.broadcast %cst_268 : f32 to vector<8x1xf32>
    %743 = arith.divf %741, %742 : vector<8x1xf32>
    %cst_269 = arith.constant 9.99999974E-6 : f32
    %744 = vector.broadcast %cst_269 : f32 to vector<8x1xf32>
    %745 = arith.addf %743, %744 : vector<8x1xf32>
    %746 = math.rsqrt %745 : vector<8x1xf32>
    %747 = vector.broadcast %746 : vector<8x1xf32> to vector<8x32xf32>
    %748 = arith.mulf %738, %747 : vector<8x32xf32>
    %c0_270 = arith.constant 0 : index
    %c0_271 = arith.constant 0 : index
    %749 = vector.load %arg29[%c0_270, %c0_271] : memref<1x32xf32, #tpu.memory_space<vmem>>, vector<1x32xf32>
    %750 = vector.broadcast %749 : vector<1x32xf32> to vector<8x32xf32>
    %751 = arith.mulf %748, %750 : vector<8x32xf32>
    %c0_272 = arith.constant 0 : index
    %c0_273 = arith.constant 0 : index
    %752 = vector.load %arg30[%c0_272, %c0_273] : memref<1x32xf32, #tpu.memory_space<vmem>>, vector<1x32xf32>
    %753 = vector.broadcast %752 : vector<1x32xf32> to vector<8x32xf32>
    %754 = arith.addf %751, %753 : vector<8x32xf32>
    %c0_274 = arith.constant 0 : index
    %c0_275 = arith.constant 0 : index
    %755 = vector.load %arg23[%c0_274, %c0_275] : memref<32x96xf32, #tpu.memory_space<vmem>>, vector<32x96xf32>
    %c0_276 = arith.constant 0 : index
    %c0_277 = arith.constant 0 : index
    %756 = vector.load %arg21[%c0_276, %c0_277] : memref<1x96xf32, #tpu.memory_space<vmem>>, vector<1x96xf32>
    %757 = vector.extract_strided_slice %755 {offsets = [0, 0], sizes = [32, 32], strides = [1, 1]} : vector<32x96xf32> to vector<32x32xf32>
    %cst_278 = arith.constant dense<0.000000e+00> : vector<8x32xf32>
    %758 = tpu.matmul %754, %757, %cst_278 {dimension_numbers = #tpu.dot_dimension_numbers<[1], [0], [0], [1], [0, 0, 1, 1], [], []>} : vector<8x32xf32>, vector<32x32xf32>, vector<8x32xf32> -> vector<8x32xf32>
    %759 = vector.extract_strided_slice %756 {offsets = [0, 0], sizes = [1, 32], strides = [1, 1]} : vector<1x96xf32> to vector<1x32xf32>
    %760 = vector.broadcast %759 : vector<1x32xf32> to vector<8x32xf32>
    %761 = arith.addf %758, %760 : vector<8x32xf32>
    %762 = vector.extract_strided_slice %755 {offsets = [0, 32], sizes = [32, 64], strides = [1, 1]} : vector<32x96xf32> to vector<32x64xf32>
    %cst_279 = arith.constant dense<0.000000e+00> : vector<16x64xf32>
    %763 = tpu.matmul %334, %762, %cst_279 {dimension_numbers = #tpu.dot_dimension_numbers<[1], [0], [0], [1], [0, 0, 1, 1], [], []>} : vector<16x32xf32>, vector<32x64xf32>, vector<16x64xf32> -> vector<16x64xf32>
    %764 = vector.extract_strided_slice %756 {offsets = [0, 32], sizes = [1, 64], strides = [1, 1]} : vector<1x96xf32> to vector<1x64xf32>
    %765 = vector.broadcast %764 : vector<1x64xf32> to vector<16x64xf32>
    %766 = arith.addf %763, %765 : vector<16x64xf32>
    %767 = vector.extract_strided_slice %766 {offsets = [0, 0], sizes = [16, 32], strides = [1, 1]} : vector<16x64xf32> to vector<16x32xf32>
    %768 = vector.extract_strided_slice %766 {offsets = [0, 32], sizes = [16, 32], strides = [1, 1]} : vector<16x64xf32> to vector<16x32xf32>
    %cst_280 = arith.constant 0.353553385 : f32
    %769 = vector.broadcast %cst_280 : f32 to vector<8x32xf32>
    %770 = arith.mulf %761, %769 : vector<8x32xf32>
    %c0_281 = arith.constant 0 : index
    %c0_282 = arith.constant 0 : index
    %771 = vector.load %arg24[%c0_281, %c0_282] : memref<32x32xf32, #tpu.memory_space<vmem>>, vector<32x32xf32>
    %cst_283 = arith.constant 0.000000e+00 : f32
    %772 = vector.broadcast %cst_283 : f32 to vector<8x32xf32>
    %773 = vector.extract_strided_slice %770 {offsets = [0, 0], sizes = [8, 8], strides = [1, 1]} : vector<8x32xf32> to vector<8x8xf32>
    %774 = arith.truncf %773 : vector<8x8xf32> to vector<8x8xbf16>
    %775 = vector.extract_strided_slice %767 {offsets = [0, 0], sizes = [16, 8], strides = [1, 1]} : vector<16x32xf32> to vector<16x8xf32>
    %776 = arith.truncf %775 : vector<16x8xf32> to vector<16x8xbf16>
    %777 = vector.extract_strided_slice %768 {offsets = [0, 0], sizes = [16, 8], strides = [1, 1]} : vector<16x32xf32> to vector<16x8xf32>
    %778 = arith.truncf %777 : vector<16x8xf32> to vector<16x8xbf16>
    %cst_284 = arith.constant dense<0.000000e+00> : vector<8x16xf32>
    %779 = tpu.matmul %774, %776, %cst_284 {dimension_numbers = #tpu.dot_dimension_numbers<[1], [1], [0], [0], [0, 0, 1, 0], [], []>} : vector<8x8xbf16>, vector<16x8xbf16>, vector<8x16xf32> -> vector<8x16xf32>
    %cst_285 = arith.constant dense<0xFF800000> : vector<8xf32>
    %780 = vector.multi_reduction <maximumf>, %779, %cst_285 [1] : vector<8x16xf32> to vector<8xf32>
    %781 = vector.shape_cast %780 : vector<8xf32> to vector<8x1xf32>
    %782 = vector.broadcast %781 : vector<8x1xf32> to vector<8x16xf32>
    %783 = arith.subf %779, %782 : vector<8x16xf32>
    %784 = math.exp %783 : vector<8x16xf32>
    %cst_286 = arith.constant dense<0.000000e+00> : vector<8xf32>
    %785 = vector.multi_reduction <add>, %784, %cst_286 [1] : vector<8x16xf32> to vector<8xf32>
    %786 = vector.shape_cast %785 : vector<8xf32> to vector<8x1xf32>
    %787 = tpu.reciprocal %786 {approx = true} : vector<8x1xf32> -> vector<8x1xf32>
    %788 = arith.truncf %784 : vector<8x16xf32> to vector<8x16xbf16>
    %cst_287 = arith.constant dense<0.000000e+00> : vector<8x8xf32>
    %789 = tpu.matmul %788, %778, %cst_287 {dimension_numbers = #tpu.dot_dimension_numbers<[1], [0], [0], [1], [0, 0, 1, 1], [], []>} : vector<8x16xbf16>, vector<16x8xbf16>, vector<8x8xf32> -> vector<8x8xf32>
    %790 = vector.broadcast %787 : vector<8x1xf32> to vector<8x8xf32>
    %791 = arith.mulf %789, %790 : vector<8x8xf32>
    %792 = vector.extract_strided_slice %771 {offsets = [0, 0], sizes = [8, 32], strides = [1, 1]} : vector<32x32xf32> to vector<8x32xf32>
    %cst_288 = arith.constant dense<0.000000e+00> : vector<8x32xf32>
    %793 = tpu.matmul %791, %792, %cst_288 {dimension_numbers = #tpu.dot_dimension_numbers<[1], [0], [0], [1], [0, 0, 1, 1], [], []>} : vector<8x8xf32>, vector<8x32xf32>, vector<8x32xf32> -> vector<8x32xf32>
    %794 = arith.addf %772, %793 : vector<8x32xf32>
    %795 = vector.extract_strided_slice %770 {offsets = [0, 8], sizes = [8, 8], strides = [1, 1]} : vector<8x32xf32> to vector<8x8xf32>
    %796 = arith.truncf %795 : vector<8x8xf32> to vector<8x8xbf16>
    %797 = vector.extract_strided_slice %767 {offsets = [0, 8], sizes = [16, 8], strides = [1, 1]} : vector<16x32xf32> to vector<16x8xf32>
    %798 = arith.truncf %797 : vector<16x8xf32> to vector<16x8xbf16>
    %799 = vector.extract_strided_slice %768 {offsets = [0, 8], sizes = [16, 8], strides = [1, 1]} : vector<16x32xf32> to vector<16x8xf32>
    %800 = arith.truncf %799 : vector<16x8xf32> to vector<16x8xbf16>
    %cst_289 = arith.constant dense<0.000000e+00> : vector<8x16xf32>
    %801 = tpu.matmul %796, %798, %cst_289 {dimension_numbers = #tpu.dot_dimension_numbers<[1], [1], [0], [0], [0, 0, 1, 0], [], []>} : vector<8x8xbf16>, vector<16x8xbf16>, vector<8x16xf32> -> vector<8x16xf32>
    %cst_290 = arith.constant dense<0xFF800000> : vector<8xf32>
    %802 = vector.multi_reduction <maximumf>, %801, %cst_290 [1] : vector<8x16xf32> to vector<8xf32>
    %803 = vector.shape_cast %802 : vector<8xf32> to vector<8x1xf32>
    %804 = vector.broadcast %803 : vector<8x1xf32> to vector<8x16xf32>
    %805 = arith.subf %801, %804 : vector<8x16xf32>
    %806 = math.exp %805 : vector<8x16xf32>
    %cst_291 = arith.constant dense<0.000000e+00> : vector<8xf32>
    %807 = vector.multi_reduction <add>, %806, %cst_291 [1] : vector<8x16xf32> to vector<8xf32>
    %808 = vector.shape_cast %807 : vector<8xf32> to vector<8x1xf32>
    %809 = tpu.reciprocal %808 {approx = true} : vector<8x1xf32> -> vector<8x1xf32>
    %810 = arith.truncf %806 : vector<8x16xf32> to vector<8x16xbf16>
    %cst_292 = arith.constant dense<0.000000e+00> : vector<8x8xf32>
    %811 = tpu.matmul %810, %800, %cst_292 {dimension_numbers = #tpu.dot_dimension_numbers<[1], [0], [0], [1], [0, 0, 1, 1], [], []>} : vector<8x16xbf16>, vector<16x8xbf16>, vector<8x8xf32> -> vector<8x8xf32>
    %812 = vector.broadcast %809 : vector<8x1xf32> to vector<8x8xf32>
    %813 = arith.mulf %811, %812 : vector<8x8xf32>
    %814 = vector.extract_strided_slice %771 {offsets = [8, 0], sizes = [8, 32], strides = [1, 1]} : vector<32x32xf32> to vector<8x32xf32>
    %cst_293 = arith.constant dense<0.000000e+00> : vector<8x32xf32>
    %815 = tpu.matmul %813, %814, %cst_293 {dimension_numbers = #tpu.dot_dimension_numbers<[1], [0], [0], [1], [0, 0, 1, 1], [], []>} : vector<8x8xf32>, vector<8x32xf32>, vector<8x32xf32> -> vector<8x32xf32>
    %816 = arith.addf %794, %815 : vector<8x32xf32>
    %817 = vector.extract_strided_slice %770 {offsets = [0, 16], sizes = [8, 8], strides = [1, 1]} : vector<8x32xf32> to vector<8x8xf32>
    %818 = arith.truncf %817 : vector<8x8xf32> to vector<8x8xbf16>
    %819 = vector.extract_strided_slice %767 {offsets = [0, 16], sizes = [16, 8], strides = [1, 1]} : vector<16x32xf32> to vector<16x8xf32>
    %820 = arith.truncf %819 : vector<16x8xf32> to vector<16x8xbf16>
    %821 = vector.extract_strided_slice %768 {offsets = [0, 16], sizes = [16, 8], strides = [1, 1]} : vector<16x32xf32> to vector<16x8xf32>
    %822 = arith.truncf %821 : vector<16x8xf32> to vector<16x8xbf16>
    %cst_294 = arith.constant dense<0.000000e+00> : vector<8x16xf32>
    %823 = tpu.matmul %818, %820, %cst_294 {dimension_numbers = #tpu.dot_dimension_numbers<[1], [1], [0], [0], [0, 0, 1, 0], [], []>} : vector<8x8xbf16>, vector<16x8xbf16>, vector<8x16xf32> -> vector<8x16xf32>
    %cst_295 = arith.constant dense<0xFF800000> : vector<8xf32>
    %824 = vector.multi_reduction <maximumf>, %823, %cst_295 [1] : vector<8x16xf32> to vector<8xf32>
    %825 = vector.shape_cast %824 : vector<8xf32> to vector<8x1xf32>
    %826 = vector.broadcast %825 : vector<8x1xf32> to vector<8x16xf32>
    %827 = arith.subf %823, %826 : vector<8x16xf32>
    %828 = math.exp %827 : vector<8x16xf32>
    %cst_296 = arith.constant dense<0.000000e+00> : vector<8xf32>
    %829 = vector.multi_reduction <add>, %828, %cst_296 [1] : vector<8x16xf32> to vector<8xf32>
    %830 = vector.shape_cast %829 : vector<8xf32> to vector<8x1xf32>
    %831 = tpu.reciprocal %830 {approx = true} : vector<8x1xf32> -> vector<8x1xf32>
    %832 = arith.truncf %828 : vector<8x16xf32> to vector<8x16xbf16>
    %cst_297 = arith.constant dense<0.000000e+00> : vector<8x8xf32>
    %833 = tpu.matmul %832, %822, %cst_297 {dimension_numbers = #tpu.dot_dimension_numbers<[1], [0], [0], [1], [0, 0, 1, 1], [], []>} : vector<8x16xbf16>, vector<16x8xbf16>, vector<8x8xf32> -> vector<8x8xf32>
    %834 = vector.broadcast %831 : vector<8x1xf32> to vector<8x8xf32>
    %835 = arith.mulf %833, %834 : vector<8x8xf32>
    %836 = vector.extract_strided_slice %771 {offsets = [16, 0], sizes = [8, 32], strides = [1, 1]} : vector<32x32xf32> to vector<8x32xf32>
    %cst_298 = arith.constant dense<0.000000e+00> : vector<8x32xf32>
    %837 = tpu.matmul %835, %836, %cst_298 {dimension_numbers = #tpu.dot_dimension_numbers<[1], [0], [0], [1], [0, 0, 1, 1], [], []>} : vector<8x8xf32>, vector<8x32xf32>, vector<8x32xf32> -> vector<8x32xf32>
    %838 = arith.addf %816, %837 : vector<8x32xf32>
    %839 = vector.extract_strided_slice %770 {offsets = [0, 24], sizes = [8, 8], strides = [1, 1]} : vector<8x32xf32> to vector<8x8xf32>
    %840 = arith.truncf %839 : vector<8x8xf32> to vector<8x8xbf16>
    %841 = vector.extract_strided_slice %767 {offsets = [0, 24], sizes = [16, 8], strides = [1, 1]} : vector<16x32xf32> to vector<16x8xf32>
    %842 = arith.truncf %841 : vector<16x8xf32> to vector<16x8xbf16>
    %843 = vector.extract_strided_slice %768 {offsets = [0, 24], sizes = [16, 8], strides = [1, 1]} : vector<16x32xf32> to vector<16x8xf32>
    %844 = arith.truncf %843 : vector<16x8xf32> to vector<16x8xbf16>
    %cst_299 = arith.constant dense<0.000000e+00> : vector<8x16xf32>
    %845 = tpu.matmul %840, %842, %cst_299 {dimension_numbers = #tpu.dot_dimension_numbers<[1], [1], [0], [0], [0, 0, 1, 0], [], []>} : vector<8x8xbf16>, vector<16x8xbf16>, vector<8x16xf32> -> vector<8x16xf32>
    %cst_300 = arith.constant dense<0xFF800000> : vector<8xf32>
    %846 = vector.multi_reduction <maximumf>, %845, %cst_300 [1] : vector<8x16xf32> to vector<8xf32>
    %847 = vector.shape_cast %846 : vector<8xf32> to vector<8x1xf32>
    %848 = vector.broadcast %847 : vector<8x1xf32> to vector<8x16xf32>
    %849 = arith.subf %845, %848 : vector<8x16xf32>
    %850 = math.exp %849 : vector<8x16xf32>
    %cst_301 = arith.constant dense<0.000000e+00> : vector<8xf32>
    %851 = vector.multi_reduction <add>, %850, %cst_301 [1] : vector<8x16xf32> to vector<8xf32>
    %852 = vector.shape_cast %851 : vector<8xf32> to vector<8x1xf32>
    %853 = tpu.reciprocal %852 {approx = true} : vector<8x1xf32> -> vector<8x1xf32>
    %854 = arith.truncf %850 : vector<8x16xf32> to vector<8x16xbf16>
    %cst_302 = arith.constant dense<0.000000e+00> : vector<8x8xf32>
    %855 = tpu.matmul %854, %844, %cst_302 {dimension_numbers = #tpu.dot_dimension_numbers<[1], [0], [0], [1], [0, 0, 1, 1], [], []>} : vector<8x16xbf16>, vector<16x8xbf16>, vector<8x8xf32> -> vector<8x8xf32>
    %856 = vector.broadcast %853 : vector<8x1xf32> to vector<8x8xf32>
    %857 = arith.mulf %855, %856 : vector<8x8xf32>
    %858 = vector.extract_strided_slice %771 {offsets = [24, 0], sizes = [8, 32], strides = [1, 1]} : vector<32x32xf32> to vector<8x32xf32>
    %cst_303 = arith.constant dense<0.000000e+00> : vector<8x32xf32>
    %859 = tpu.matmul %857, %858, %cst_303 {dimension_numbers = #tpu.dot_dimension_numbers<[1], [0], [0], [1], [0, 0, 1, 1], [], []>} : vector<8x8xf32>, vector<8x32xf32>, vector<8x32xf32> -> vector<8x32xf32>
    %860 = arith.addf %838, %859 : vector<8x32xf32>
    %c0_304 = arith.constant 0 : index
    %c0_305 = arith.constant 0 : index
    %861 = vector.load %arg22[%c0_304, %c0_305] : memref<1x32xf32, #tpu.memory_space<vmem>>, vector<1x32xf32>
    %862 = vector.broadcast %861 : vector<1x32xf32> to vector<8x32xf32>
    %863 = arith.addf %860, %862 : vector<8x32xf32>
    %864 = arith.addf %863, %754 : vector<8x32xf32>
    %cst_306 = arith.constant dense<0.000000e+00> : vector<8xf32>
    %865 = vector.multi_reduction <add>, %864, %cst_306 [1] : vector<8x32xf32> to vector<8xf32>
    %866 = vector.shape_cast %865 : vector<8xf32> to vector<8x1xf32>
    %cst_307 = arith.constant 3.200000e+01 : f32
    %867 = vector.broadcast %cst_307 : f32 to vector<8x1xf32>
    %868 = arith.divf %866, %867 : vector<8x1xf32>
    %869 = vector.broadcast %868 : vector<8x1xf32> to vector<8x32xf32>
    %870 = arith.subf %864, %869 : vector<8x32xf32>
    %871 = arith.mulf %870, %870 : vector<8x32xf32>
    %cst_308 = arith.constant dense<0.000000e+00> : vector<8xf32>
    %872 = vector.multi_reduction <add>, %871, %cst_308 [1] : vector<8x32xf32> to vector<8xf32>
    %873 = vector.shape_cast %872 : vector<8xf32> to vector<8x1xf32>
    %cst_309 = arith.constant 3.200000e+01 : f32
    %874 = vector.broadcast %cst_309 : f32 to vector<8x1xf32>
    %875 = arith.divf %873, %874 : vector<8x1xf32>
    %cst_310 = arith.constant 9.99999974E-6 : f32
    %876 = vector.broadcast %cst_310 : f32 to vector<8x1xf32>
    %877 = arith.addf %875, %876 : vector<8x1xf32>
    %878 = math.rsqrt %877 : vector<8x1xf32>
    %879 = vector.broadcast %878 : vector<8x1xf32> to vector<8x32xf32>
    %880 = arith.mulf %870, %879 : vector<8x32xf32>
    %c0_311 = arith.constant 0 : index
    %c0_312 = arith.constant 0 : index
    %881 = vector.load %arg31[%c0_311, %c0_312] : memref<1x32xf32, #tpu.memory_space<vmem>>, vector<1x32xf32>
    %882 = vector.broadcast %881 : vector<1x32xf32> to vector<8x32xf32>
    %883 = arith.mulf %880, %882 : vector<8x32xf32>
    %c0_313 = arith.constant 0 : index
    %c0_314 = arith.constant 0 : index
    %884 = vector.load %arg32[%c0_313, %c0_314] : memref<1x32xf32, #tpu.memory_space<vmem>>, vector<1x32xf32>
    %885 = vector.broadcast %884 : vector<1x32xf32> to vector<8x32xf32>
    %886 = arith.addf %883, %885 : vector<8x32xf32>
    %c0_315 = arith.constant 0 : index
    %c0_316 = arith.constant 0 : index
    %887 = vector.load %arg25[%c0_315, %c0_316] : memref<32x64xf32, #tpu.memory_space<vmem>>, vector<32x64xf32>
    %cst_317 = arith.constant dense<0.000000e+00> : vector<8x64xf32>
    %888 = tpu.matmul %886, %887, %cst_317 {dimension_numbers = #tpu.dot_dimension_numbers<[1], [0], [0], [1], [0, 0, 1, 1], [], []>} : vector<8x32xf32>, vector<32x64xf32>, vector<8x64xf32> -> vector<8x64xf32>
    %c0_318 = arith.constant 0 : index
    %c0_319 = arith.constant 0 : index
    %889 = vector.load %arg26[%c0_318, %c0_319] : memref<1x64xf32, #tpu.memory_space<vmem>>, vector<1x64xf32>
    %890 = vector.broadcast %889 : vector<1x64xf32> to vector<8x64xf32>
    %891 = arith.addf %888, %890 : vector<8x64xf32>
    %cst_320 = arith.constant 0.000000e+00 : f32
    %892 = vector.broadcast %cst_320 : f32 to vector<8x64xf32>
    %893 = arith.maximumf %891, %892 : vector<8x64xf32>
    %c0_321 = arith.constant 0 : index
    %c0_322 = arith.constant 0 : index
    %894 = vector.load %arg27[%c0_321, %c0_322] : memref<64x32xf32, #tpu.memory_space<vmem>>, vector<64x32xf32>
    %cst_323 = arith.constant dense<0.000000e+00> : vector<8x32xf32>
    %895 = tpu.matmul %893, %894, %cst_323 {dimension_numbers = #tpu.dot_dimension_numbers<[1], [0], [0], [1], [0, 0, 1, 1], [], []>} : vector<8x64xf32>, vector<64x32xf32>, vector<8x32xf32> -> vector<8x32xf32>
    %c0_324 = arith.constant 0 : index
    %c0_325 = arith.constant 0 : index
    %896 = vector.load %arg28[%c0_324, %c0_325] : memref<1x32xf32, #tpu.memory_space<vmem>>, vector<1x32xf32>
    %897 = vector.broadcast %896 : vector<1x32xf32> to vector<8x32xf32>
    %898 = arith.addf %895, %897 : vector<8x32xf32>
    %899 = arith.addf %898, %886 : vector<8x32xf32>
    %cst_326 = arith.constant dense<0.000000e+00> : vector<8xf32>
    %900 = vector.multi_reduction <add>, %899, %cst_326 [1] : vector<8x32xf32> to vector<8xf32>
    %901 = vector.shape_cast %900 : vector<8xf32> to vector<8x1xf32>
    %cst_327 = arith.constant 3.200000e+01 : f32
    %902 = vector.broadcast %cst_327 : f32 to vector<8x1xf32>
    %903 = arith.divf %901, %902 : vector<8x1xf32>
    %904 = vector.broadcast %903 : vector<8x1xf32> to vector<8x32xf32>
    %905 = arith.subf %899, %904 : vector<8x32xf32>
    %906 = arith.mulf %905, %905 : vector<8x32xf32>
    %cst_328 = arith.constant dense<0.000000e+00> : vector<8xf32>
    %907 = vector.multi_reduction <add>, %906, %cst_328 [1] : vector<8x32xf32> to vector<8xf32>
    %908 = vector.shape_cast %907 : vector<8xf32> to vector<8x1xf32>
    %cst_329 = arith.constant 3.200000e+01 : f32
    %909 = vector.broadcast %cst_329 : f32 to vector<8x1xf32>
    %910 = arith.divf %908, %909 : vector<8x1xf32>
    %cst_330 = arith.constant 9.99999974E-6 : f32
    %911 = vector.broadcast %cst_330 : f32 to vector<8x1xf32>
    %912 = arith.addf %910, %911 : vector<8x1xf32>
    %913 = math.rsqrt %912 : vector<8x1xf32>
    %914 = vector.broadcast %913 : vector<8x1xf32> to vector<8x32xf32>
    %915 = arith.mulf %905, %914 : vector<8x32xf32>
    %c0_331 = arith.constant 0 : index
    %c0_332 = arith.constant 0 : index
    %916 = vector.load %arg33[%c0_331, %c0_332] : memref<1x32xf32, #tpu.memory_space<vmem>>, vector<1x32xf32>
    %917 = vector.broadcast %916 : vector<1x32xf32> to vector<8x32xf32>
    %918 = arith.mulf %915, %917 : vector<8x32xf32>
    %c0_333 = arith.constant 0 : index
    %c0_334 = arith.constant 0 : index
    %919 = vector.load %arg34[%c0_333, %c0_334] : memref<1x32xf32, #tpu.memory_space<vmem>>, vector<1x32xf32>
    %920 = vector.broadcast %919 : vector<1x32xf32> to vector<8x32xf32>
    %921 = arith.addf %918, %920 : vector<8x32xf32>
    %c0_335 = arith.constant 0 : index
    %c0_336 = arith.constant 0 : index
    %922 = vector.load %arg1[%c0_335, %c0_336] : memref<32x1xf32, #tpu.memory_space<vmem>>, vector<32x1xf32>
    %cst_337 = arith.constant dense<0.000000e+00> : vector<8x1xf32>
    %923 = tpu.matmul %921, %922, %cst_337 {dimension_numbers = #tpu.dot_dimension_numbers<[1], [0], [0], [1], [0, 0, 1, 1], [], []>} : vector<8x32xf32>, vector<32x1xf32>, vector<8x1xf32> -> vector<8x1xf32>
    %c0_338 = arith.constant 0 : index
    %c0_339 = arith.constant 0 : index
    %924 = vector.load %arg2[%c0_338, %c0_339] : memref<1x1xf32, #tpu.memory_space<vmem>>, vector<1x1xf32>
    %925 = vector.broadcast %924 : vector<1x1xf32> to vector<8x1xf32>
    %926 = arith.addf %923, %925 : vector<8x1xf32>
    %c0_340 = arith.constant 0 : index
    %c0_341 = arith.constant 0 : index
    %927 = vector.load %arg74[%c0_340, %c0_341] : memref<8x1xf32, #tpu.memory_space<vmem>>, vector<8x1xf32>
    tpu.vector_store %arg74[%c0_340, %c0_341], %926 {strides = array<i32>} : memref<8x1xf32, #tpu.memory_space<vmem>>, vector<8x1xf32>,
    %c0_342 = arith.constant 0 : index
    %c0_343 = arith.constant 0 : index
    %928 = vector.load %arg71[%c0_342, %c0_343] : memref<32x6xf32, #tpu.memory_space<vmem>>, vector<32x6xf32>
    %cst_344 = arith.constant dense<0.000000e+00> : vector<8x6xf32>
    %929 = tpu.matmul %921, %928, %cst_344 {dimension_numbers = #tpu.dot_dimension_numbers<[1], [0], [0], [1], [0, 0, 1, 1], [], []>} : vector<8x32xf32>, vector<32x6xf32>, vector<8x6xf32> -> vector<8x6xf32>
    %c0_345 = arith.constant 0 : index
    %c0_346 = arith.constant 0 : index
    %930 = vector.load %arg72[%c0_345, %c0_346] : memref<1x6xf32, #tpu.memory_space<vmem>>, vector<1x6xf32>
    %931 = vector.broadcast %930 : vector<1x6xf32> to vector<8x6xf32>
    %932 = arith.addf %929, %931 : vector<8x6xf32>
    %c0_347 = arith.constant 0 : index
    %c0_348 = arith.constant 0 : index
    %933 = vector.load %arg75[%c0_347, %c0_348] : memref<8x6xf32, #tpu.memory_space<vmem>>, vector<8x6xf32>
    tpu.vector_store %arg75[%c0_347, %c0_348], %932 {strides = array<i32>} : memref<8x6xf32, #tpu.memory_space<vmem>>, vector<8x6xf32>,
    %c0_349 = arith.constant 0 : index
    %c0_350 = arith.constant 0 : index
    %934 = vector.load %arg69[%c0_349, %c0_350] : memref<32x32xf32, #tpu.memory_space<vmem>>, vector<32x32xf32>
    %cst_351 = arith.constant dense<0.000000e+00> : vector<8x32xf32>
    %935 = tpu.matmul %921, %934, %cst_351 {dimension_numbers = #tpu.dot_dimension_numbers<[1], [0], [0], [1], [0, 0, 1, 1], [], []>} : vector<8x32xf32>, vector<32x32xf32>, vector<8x32xf32> -> vector<8x32xf32>
    %c0_352 = arith.constant 0 : index
    %c0_353 = arith.constant 0 : index
    %936 = vector.load %arg70[%c0_352, %c0_353] : memref<1x32xf32, #tpu.memory_space<vmem>>, vector<1x32xf32>
    %937 = vector.broadcast %936 : vector<1x32xf32> to vector<8x32xf32>
    %938 = arith.addf %935, %937 : vector<8x32xf32>
    %c0_354 = arith.constant 0 : index
    %c0_355 = arith.constant 0 : index
    %939 = vector.load %arg63[%c0_354, %c0_355] : memref<32x32xf32, #tpu.memory_space<vmem>>, vector<32x32xf32>
    %cst_356 = arith.constant dense<0.000000e+00> : vector<16x32xf32>
    %940 = tpu.matmul %334, %939, %cst_356 {dimension_numbers = #tpu.dot_dimension_numbers<[1], [0], [0], [1], [0, 0, 1, 1], [], []>} : vector<16x32xf32>, vector<32x32xf32>, vector<16x32xf32> -> vector<16x32xf32>
    %c0_357 = arith.constant 0 : index
    %c0_358 = arith.constant 0 : index
    %941 = vector.load %arg64[%c0_357, %c0_358] : memref<1x32xf32, #tpu.memory_space<vmem>>, vector<1x32xf32>
    %942 = vector.broadcast %941 : vector<1x32xf32> to vector<16x32xf32>
    %943 = arith.addf %940, %942 : vector<16x32xf32>
    %cst_359 = arith.constant dense<0.000000e+00> : vector<8x16xf32>
    %944 = tpu.matmul %938, %943, %cst_359 {dimension_numbers = #tpu.dot_dimension_numbers<[1], [1], [0], [0], [0, 0, 1, 0], [], []>} : vector<8x32xf32>, vector<16x32xf32>, vector<8x16xf32> -> vector<8x16xf32>
    %c0_360 = arith.constant 0 : index
    %c0_361 = arith.constant 0 : index
    %945 = vector.load %arg76[%c0_360, %c0_361] : memref<8x16xf32, #tpu.memory_space<vmem>>, vector<8x16xf32>
    tpu.vector_store %arg76[%c0_360, %c0_361], %944 {strides = array<i32>} : memref<8x16xf32, #tpu.memory_space<vmem>>, vector<8x16xf32>,
    return
  }
}

</mosaic_0001>

<bundles_post_ra>
// kernel: unitrackformer_forward.2
= control target key start
LH: loop header
LB: loop body
LE: loop exit
PB: predicated region body
PF: predicated region fallthrough
CT: control target
= control target key end

     0   :  { %vm42_vm0 = vcmask 1042432   ;;  %vm35_vm1 = vcmask 220160   ;;  %vm307_vm2 = vmmov 1   ;;  %vm138_vm4 = vcmask 523264   ;;  %s402_s1 = inlined_call_operand.vmem [shape: f32[27,64], index: 1, kind: input, shape index: {}]   ;;  %s403_s0 = inlined_call_operand.vmem [shape: f32[16,27], index: 0, kind: input, shape index: {}]   ;;  %s404_s3 = inlined_call_operand.vmem [shape: f32[64,1], index: 3, kind: input, shape index: {}]   ;;  %s405_s4 = inlined_call_operand.<no memory space> [shape: f32[1,1], index: 4, kind: input, shape index: {}]   ;;  %s406_s2 = inlined_call_operand.vmem [shape: f32[1,64], index: 2, kind: input, shape index: {}]   ;;  %s407_s5 = inlined_call_operand.vmem [shape: f32[16,1], index: 5, kind: output, shape index: {}]  }
   0x1   :  { %v24_v0 = vld [vmem:[%s402_s1] sm:$0xff]  ;;  %v25_v1 = vld [vmem:[%s402_s1 + $0x8] sm:$0xff]  ;;  %v26_v2 = vld [vmem:[%s402_s1 + $0x10] sm:$0xff]  ;;  %v10_v21 = vstv %s405_s4  ;;  %vm220_vm5 = vcmask 7168  }
   0x2   :  { %v280_v3 = vpack.c.bf16 %v25_v1, %v24_v0  ;;  %v27_v4 = vld [vmem:[%s402_s1 + $0x18] sm:$0x7]  ;;  %v22_v5 = vld [vmem:[%s403_s0] sm:$0xff]  ;;  %vm353_vm3 = vmpackc.low %vm42_vm0, %vm307_vm2  ;;  %11 = vst [vmem:[#allocation2] sm:$0x1] %v10_v21 }
   0x3   :  { %v284_v6 = vpack.c.bf16 %v27_v4, %v26_v2  ;;  %258 = vmatprep.mubr.msk.f32.mxu0 %vm35_vm1, %v22_v5  ;;  %v123_v8 = vld [vmem:[%s404_s3] sm:$0xff]  ;;  %v124_v9 = vld [vmem:[%s404_s3 + $0x8] sm:$0xff]  ;;  %v125_v11 = vld [vmem:[%s404_s3 + $0x10] sm:$0xff] }
   0x4   :  { %281 = vmatprep.subr.bf16.mxu0 %v280_v3  ;;  %v290_v10 = vpack.c.bf16 %v124_v9, %v123_v8  ;;  %v126_v12 = vld [vmem:[%s404_s3 + $0x18] sm:$0xff]  ;;  %v127_v14 = vld [vmem:[%s404_s3 + $0x20] sm:$0xff]  ;;  %v128_v15 = vld [vmem:[%s404_s3 + $0x28] sm:$0xff] }
   0x5   :  { %283 = vmatpush3.bf16.msra.mxu0 %v280_v3  ;;  %v294_v13 = vpack.c.bf16 %v126_v12, %v125_v11  ;;  %v298_v16 = vpack.c.bf16 %v128_v15, %v127_v14  ;;  %v23_v17 = vld [vmem:[%s403_s0 + $0x8] sm:$0xff]  ;;  %v129_v18 = vld [vmem:[%s404_s3 + $0x30] sm:$0xff]  ;;  %v130_v19 = vld [vmem:[%s404_s3 + $0x38] sm:$0xff] }
   0x6   :  { %286 = vmatprep.subr.msk.bf16.mxu0 %vm353_vm3, %v284_v6  ;;  %291 = vmatprep.subr.bf16.mxu1 %v290_v10  ;;  %v302_v20 = vpack.c.bf16 %v130_v19, %v129_v18  ;;  %v227_v22 = vld [vmem:[%s406_s2] ss:$0 sm:$0xff] }
   0x7   :  { %293 = vmatpush3.bf16.msra.mxu1 %v290_v10 }
   0x8   :  { %295 = vmatprep.subr.bf16.mxu1 %v294_v13 }
   0x9   :  { %289 = vmatpush3.bf16.msk.msra.mxu0 %vm353_vm3, %v284_v6  ;;  %v231_v29 = vld [vmem:[#allocation2] ss:$0 sm:$0xff] }
   0xb   :  { %297 = vmatpush3.bf16.msra.mxu1 %v294_v13 }
   0xc   :  { %259 = vmatmul.mubr.msk.f32.vlgmr.msra.gmra.mrb[0].mxu0 %vm35_vm1, %v23_v17  ;;  %299 = vmatprep.subr.bf16.mxu1 %v298_v16 }
   0xf   :  { %301 = vmatpush3.bf16.msra.mxu1 %v298_v16 }
  0x10   :  { %303 = vmatprep.subr.bf16.mxu1 %v302_v20 }
  0x13   :  { %305 = vmatpush3.bf16.msra.mxu1 %v302_v20 }
  0xdf   :  { %v260_v23 = vpop.f32.mrb[0].mxu0 }
  0xe0   :  { %v118_v24 = vadd.f32 %v260_v23, %v227_v22  ;;  %v112_v25 = vpop.f32.mrb[1].mxu0 }
  0xe1   :  { %v113_v26 = vadd.f32 %v227_v22, %v112_v25 }
  0xe2   :  { %v122_v28 = vmax.f32 %v118_v24, 0.0 }
  0xe3   :  { %v121_v27 = vmax.f32 %v113_v26, 0.0 }
  0xe5   :  { %277 = vmatprep.mubr.msk.f32.mxu1 %vm138_vm4, %v121_v27 }
  0xe6   :  { %278 = vmatmul.mubr.msk.f32.vlgmr.msra.gmra.mrb[0].mxu1 %vm138_vm4, %v122_v28 }
 0x1b9   :  { %v279_v30 = vpop.f32.mrb[0].mxu1 }
 0x1ba   :  { %v217_v31 = vadd.f32 %v279_v30, %v231_v29  ;;  %v211_v32 = vpop.f32.mrb[1].mxu1 }
 0x1bb   :  { %v212_v33 = vadd.f32 %v231_v29, %v211_v32 }
 0x1bc   :  { %222 = vst.msk [vmem:[%s407_s5 + $0x8] sm:$0xff] %vm220_vm5, %v217_v31 }
 0x1bd   :  { %221 = vst.msk [vmem:[%s407_s5] sm:$0xff] %vm220_vm5, %v212_v33 }

// kernel: unitrackformer_forward.3
= control target key start
LH: loop header
LB: loop body
LE: loop exit
PB: predicated region body
PF: predicated region fallthrough
CT: control target
= control target key end

     0   :  { %s11853_s6 = smov 1   ;;  %s11854_s10 = smov 2   ;;  %s13569_s0 = inlined_call_operand.smem [shape: u32[77], index: -1, kind: input, shape index: {}] }
   0x1   :  { %s12030_s5 = sld [smem:[%s13569_s0]]   ;;  %s11855_s14 = smov 3  }
   0x2   :  { %s12035_s9 = sld [smem:[%s13569_s0 + %s11853_s6]]   ;;  %s11856_s18 = smov 4  }
   0x3   :  { %s8339_s13 = sld [smem:[%s13569_s0 + %s11854_s10]]   ;;  %s11857_s22 = smov 5  }
   0x4   :  { %s12043_s17 = sld [smem:[%s13569_s0 + %s11855_s14]]   ;;  %s11858_s26 = smov 6  }
   0x5   :  { %s12048_s21 = sld [smem:[%s13569_s0 + %s11856_s18]]   ;;  %s11859_s30 = smov 7  }
   0x6   :  { %s12053_s25 = sld [smem:[%s13569_s0 + %s11857_s22]]   ;;  %s11860_s4 = smov 8  }
   0x7   :  { %13628 = sst [smem:[#allocation157_spill]] %s12030_s5  ;;  %s11861_s10 = smov 9  }
   0x8   :  { %s12058_s29 = sld [smem:[%s13569_s0 + %s11858_s26]]   ;;  %s11862_s15 = smov 10  }
   0x9   :  { %s12063_s3 = sld [smem:[%s13569_s0 + %s11859_s30]]   ;;  %v159_v0 = vstv %s8339_s13  ;;  %s11863_s20 = smov 11  }
   0xa   :  { %13629 = sst [smem:[#allocation158_spill]] %s12043_s17  ;;  %160 = vst [vmem:[#allocation2] sm:$0x1] %v159_v0  ;;  %s11864_s13 = smov 12  }
   0xb   :  { %s12068_s8 = sld [smem:[%s13569_s0 + %s11860_s4]]   ;;  %s11865_s30 = smov 13  }
   0xc   :  { %13630 = sst [smem:[#allocation159_spill]] %s12053_s25  ;;  %s11866_s6 = smov 14  }
   0xd   :  { %s12073_s14 = sld [smem:[%s13569_s0 + %s11861_s10]]   ;;  %s11867_s12 = smov 15  }
   0xe   :  { %s12078_s19 = sld [smem:[%s13569_s0 + %s11862_s15]]   ;;  %s11869_s26 = smov 17  }
   0xf   :  { %13631 = sst [smem:[#allocation160_spill]] %s12063_s3  ;;  %s11870_s2 = smov 18  }
  0x10   :  { %s12083_s24 = sld [smem:[%s13569_s0 + %s11863_s20]]   ;;  %s11868_s20 = smov 16  }
  0x11   :  { %s12088_s28 = sld [smem:[%s13569_s0 + %s11864_s13]]  }
  0x12   :  { %s12093_s4 = sld [smem:[%s13569_s0 + %s11865_s30]]  }
  0x13   :  { %13632 = sst [smem:[#allocation161_spill]] %s12073_s14 }
  0x14   :  { %s12098_s11 = sld [smem:[%s13569_s0 + %s11866_s6]]  }
  0x15   :  { %s12103_s18 = sld [smem:[%s13569_s0 + %s11867_s12]]   ;;  %s11871_s12 = smov 19  }
  0x16   :  { %13633 = sst [smem:[#allocation162_spill]] %s12083_s24 }
  0x17   :  { %s12108_s13 = sld [smem:[%s13569_s0 + %s11868_s20]]   ;;  %s11872_s20 = smov 20  }
  0x18   :  { %13634 = sst [smem:[#allocation163_spill]] %s12093_s4 }
  0x19   :  { %s12113_s1 = sld [smem:[%s13569_s0 + %s11869_s26]]   ;;  %s11873_s26 = smov 21  }
  0x1a   :  { %s12118_s10 = sld [smem:[%s13569_s0 + %s11870_s2]]   ;;  %s11874_s2 = smov 22  }
  0x1b   :  { %13635 = sst [smem:[#allocation164_spill]] %s12103_s18 }
  0x1c   :  { %s12123_s18 = sld [smem:[%s13569_s0 + %s11871_s12]]   ;;  %s11875_s12 = smov 23  }
  0x1d   :  { %s12128_s4 = sld [smem:[%s13569_s0 + %s11872_s20]]   ;;  %s11876_s20 = smov 24  }
  0x1e   :  { %s12138_s24 = sld [smem:[%s13569_s0 + %s11874_s2]]   ;;  %s11878_s2 = smov 26  }
  0x1f   :  { %13636 = sst [smem:[#allocation165_spill]] %s12113_s1 }
  0x20   :  { %s12133_s1 = sld [smem:[%s13569_s0 + %s11873_s26]]   ;;  %s11877_s26 = smov 25  }
  0x21   :  { %s12148_s14 = sld [smem:[%s13569_s0 + %s11876_s20]]   ;;  %s11880_s20 = smov 28  }
  0x22   :  { %13637 = sst [smem:[#allocation166_spill]] %s12123_s18 }
  0x23   :  { %s12143_s18 = sld [smem:[%s13569_s0 + %s11875_s12]]   ;;  %s11879_s12 = smov 27  }
  0x24   :  { %s12158_s3 = sld [smem:[%s13569_s0 + %s11878_s2]]   ;;  %s11882_s2 = smov 30  }
  0x25   :  { %s12168_s25 = sld [smem:[%s13569_s0 + %s11880_s20]]   ;;  %s11884_s20 = smov 32  }
  0x26   :  { %13638 = sst [smem:[#allocation167_spill]] %s12133_s1 }
  0x27   :  { %s12153_s1 = sld [smem:[%s13569_s0 + %s11877_s26]]   ;;  %s11881_s26 = smov 29  }
  0x28   :  { %s12178_s17 = sld [smem:[%s13569_s0 + %s11882_s2]]   ;;  %s11886_s2 = smov 34  }
  0x29   :  { %13639 = sst [smem:[#allocation168_spill]] %s12143_s18 }
  0x2a   :  { %s12163_s18 = sld [smem:[%s13569_s0 + %s11879_s12]]   ;;  %s11883_s12 = smov 31  }
  0x2b   :  { %s12188_s5 = sld [smem:[%s13569_s0 + %s11884_s20]]   ;;  %s11888_s20 = smov 36  }
  0x2d   :  { %13640 = sst [smem:[#allocation169_spill]] %s12153_s1 }
  0x2e   :  { %s12173_s1 = sld [smem:[%s13569_s0 + %s11881_s26]]   ;;  %s11885_s26 = smov 33  }
  0x2f   :  { %13643 = sst [smem:[#allocation172_spill]] %s12178_s17 }
  0x30   :  { %13641 = sst [smem:[#allocation170_spill]] %s12163_s18 }
  0x31   :  { %s12183_s18 = sld [smem:[%s13569_s0 + %s11883_s12]]   ;;  %s11887_s12 = smov 35  }
  0x32   :  { %13645 = sst [smem:[#allocation174_spill]] %s12188_s5 }
  0x33   :  { %s12198_s17 = sld [smem:[%s13569_s0 + %s11886_s2]]   ;;  %s11890_s2 = smov 38  }
  0x34   :  { %13642 = sst [smem:[#allocation171_spill]] %s12173_s1 }
  0x35   :  { %s12193_s1 = sld [smem:[%s13569_s0 + %s11885_s26]]   ;;  %s11889_s26 = smov 37  }
  0x36   :  { %s12208_s5 = sld [smem:[%s13569_s0 + %s11888_s20]]   ;;  %s11892_s20 = smov 40  }
  0x37   :  { %13644 = sst [smem:[#allocation173_spill]] %s12183_s18 }
  0x38   :  { %s12203_s18 = sld [smem:[%s13569_s0 + %s11887_s12]]   ;;  %s11891_s12 = smov 39  }
  0x39   :  { %13647 = sst [smem:[#allocation176_spill]] %s12198_s17 }
  0x3a   :  { %s12218_s17 = sld [smem:[%s13569_s0 + %s11890_s2]]   ;;  %s11894_s2 = smov 42  }
  0x3b   :  { %13646 = sst [smem:[#allocation175_spill]] %s12193_s1 }
  0x3c   :  { %13649 = sst [smem:[#allocation178_spill]] %s12208_s5 }
  0x3d   :  { %s12213_s1 = sld [smem:[%s13569_s0 + %s11889_s26]]   ;;  %s11893_s26 = smov 41  }
  0x3e   :  { %13648 = sst [smem:[#allocation177_spill]] %s12203_s18 }
  0x3f   :  { %s12223_s18 = sld [smem:[%s13569_s0 + %s11891_s12]]   ;;  %s11895_s12 = smov 43  }
  0x40   :  { %13651 = sst [smem:[#allocation180_spill]] %s12218_s17 }
  0x41   :  { %s12228_s5 = sld [smem:[%s13569_s0 + %s11892_s20]]   ;;  %s11896_s20 = smov 44  }
  0x42   :  { %s12238_s17 = sld [smem:[%s13569_s0 + %s11894_s2]]   ;;  %s11898_s2 = smov 46  }
  0x43   :  { %13650 = sst [smem:[#allocation179_spill]] %s12213_s1 }
  0x44   :  { %s12233_s1 = sld [smem:[%s13569_s0 + %s11893_s26]]   ;;  %s11897_s26 = smov 45  }
  0x45   :  { %13652 = sst [smem:[#allocation181_spill]] %s12223_s18 }
  0x46   :  { %s12243_s18 = sld [smem:[%s13569_s0 + %s11895_s12]]   ;;  %s11899_s12 = smov 47  }
  0x47   :  { %13653 = sst [smem:[#allocation182_spill]] %s12228_s5 }
  0x48   :  { %13655 = sst [smem:[#allocation184_spill]] %s12238_s17 }
  0x49   :  { %s12248_s5 = sld [smem:[%s13569_s0 + %s11896_s20]]   ;;  %s11900_s20 = smov 48  }
  0x4a   :  { %13654 = sst [smem:[#allocation183_spill]] %s12233_s1 }
  0x4b   :  { %s12253_s1 = sld [smem:[%s13569_s0 + %s11897_s26]]   ;;  %s11901_s26 = smov 49  }
  0x4c   :  { %13656 = sst [smem:[#allocation185_spill]] %s12243_s18 }
  0x4d   :  { %s12258_s17 = sld [smem:[%s13569_s0 + %s11898_s2]]   ;;  %s11902_s2 = smov 50  }
  0x4e   :  { %s12263_s18 = sld [smem:[%s13569_s0 + %s11899_s12]]   ;;  %s11903_s12 = smov 51  }
  0x4f   :  { %13657 = sst [smem:[#allocation186_spill]] %s12248_s5 }
  0x50   :  { %s12268_s5 = sld [smem:[%s13569_s0 + %s11900_s20]]   ;;  %s11904_s20 = smov 52  }
  0x51   :  { %13658 = sst [smem:[#allocation187_spill]] %s12253_s1 }
  0x52   :  { %s12273_s1 = sld [smem:[%s13569_s0 + %s11901_s26]]   ;;  %s11905_s26 = smov 53  }
  0x53   :  { %13659 = sst [smem:[#allocation188_spill]] %s12258_s17 }
  0x54   :  { %13660 = sst [smem:[#allocation189_spill]] %s12263_s18 }
  0x55   :  { %s12278_s17 = sld [smem:[%s13569_s0 + %s11902_s2]]   ;;  %s11906_s2 = smov 54  }
  0x56   :  { %13661 = sst [smem:[#allocation190_spill]] %s12268_s5 }
  0x57   :  { %s12283_s18 = sld [smem:[%s13569_s0 + %s11903_s12]]   ;;  %s11907_s12 = smov 55  }
  0x58   :  { %13662 = sst [smem:[#allocation191_spill]] %s12273_s1 }
  0x59   :  { %s12288_s5 = sld [smem:[%s13569_s0 + %s11904_s20]]   ;;  %s11908_s20 = smov 56  }
  0x5a   :  { %s12293_s1 = sld [smem:[%s13569_s0 + %s11905_s26]]   ;;  %s11909_s26 = smov 57  }
  0x5b   :  { %13663 = sst [smem:[#allocation192_spill]] %s12278_s17 }
  0x5c   :  { %s12298_s17 = sld [smem:[%s13569_s0 + %s11906_s2]]   ;;  %s11910_s2 = smov 58  }
  0x5d   :  { %13664 = sst [smem:[#allocation193_spill]] %s12283_s18 }
  0x5e   :  { %s12303_s18 = sld [smem:[%s13569_s0 + %s11907_s12]]   ;;  %s11911_s12 = smov 59  }
  0x5f   :  { %13665 = sst [smem:[#allocation194_spill]] %s12288_s5 }
  0x60   :  { %13666 = sst [smem:[#allocation195_spill]] %s12293_s1 }
  0x61   :  { %s12308_s5 = sld [smem:[%s13569_s0 + %s11908_s20]]   ;;  %s11912_s20 = smov 60  }
  0x62   :  { %13667 = sst [smem:[#allocation196_spill]] %s12298_s17 }
  0x63   :  { %s12313_s1 = sld [smem:[%s13569_s0 + %s11909_s26]]   ;;  %s11913_s26 = smov 61  }
  0x64   :  { %13668 = sst [smem:[#allocation197_spill]] %s12303_s18 }
  0x65   :  { %s12318_s17 = sld [smem:[%s13569_s0 + %s11910_s2]]   ;;  %s11914_s2 = smov 62  }
  0x66   :  { %s12323_s18 = sld [smem:[%s13569_s0 + %s11911_s12]]   ;;  %s11915_s12 = smov 63  }
  0x67   :  { %13669 = sst [smem:[#allocation198_spill]] %s12308_s5 }
  0x68   :  { %s12328_s5 = sld [smem:[%s13569_s0 + %s11912_s20]]   ;;  %s11916_s20 = smov 64  }
  0x69   :  { %13670 = sst [smem:[#allocation199_spill]] %s12313_s1 }
  0x6a   :  { %s12333_s1 = sld [smem:[%s13569_s0 + %s11913_s26]]   ;;  %s11917_s26 = smov 65  }
  0x6b   :  { %13671 = sst [smem:[#allocation200_spill]] %s12318_s17 }
  0x6c   :  { %13672 = sst [smem:[#allocation201_spill]] %s12323_s18 }
  0x6d   :  { %s12338_s17 = sld [smem:[%s13569_s0 + %s11914_s2]]   ;;  %s11918_s2 = smov 66  }
  0x6e   :  { %13673 = sst [smem:[#allocation202_spill]] %s12328_s5 }
  0x6f   :  { %s12343_s18 = sld [smem:[%s13569_s0 + %s11915_s12]]   ;;  %s11919_s12 = smov 67  }
  0x70   :  { %13674 = sst [smem:[#allocation203_spill]] %s12333_s1 }
  0x71   :  { %s12348_s5 = sld [smem:[%s13569_s0 + %s11916_s20]]   ;;  %s11920_s20 = smov 68  }
  0x72   :  { %s12353_s1 = sld [smem:[%s13569_s0 + %s11917_s26]]   ;;  %s11921_s26 = smov 69  }
  0x73   :  { %13675 = sst [smem:[#allocation204_spill]] %s12338_s17 }
  0x74   :  { %s12358_s17 = sld [smem:[%s13569_s0 + %s11918_s2]]   ;;  %s11922_s2 = smov 70  }
  0x75   :  { %13676 = sst [smem:[#allocation205_spill]] %s12343_s18 }
  0x76   :  { %s12363_s18 = sld [smem:[%s13569_s0 + %s11919_s12]]   ;;  %s11923_s12 = smov 71  }
  0x77   :  { %13677 = sst [smem:[#allocation206_spill]] %s12348_s5 }
  0x78   :  { %13678 = sst [smem:[#allocation207_spill]] %s12353_s1 }
  0x79   :  { %s12368_s5 = sld [smem:[%s13569_s0 + %s11920_s20]]   ;;  %s11924_s20 = smov 72  }
  0x7a   :  { %13679 = sst [smem:[#allocation208_spill]] %s12358_s17 }
  0x7b   :  { %s12373_s1 = sld [smem:[%s13569_s0 + %s11921_s26]]   ;;  %s11925_s26 = smov 73  }
  0x7c   :  { %13680 = sst [smem:[#allocation209_spill]] %s12363_s18 }
  0x7d   :  { %s12378_s17 = sld [smem:[%s13569_s0 + %s11922_s2]]   ;;  %s11926_s2 = smov 74  }
  0x7e   :  { %s12383_s18 = sld [smem:[%s13569_s0 + %s11923_s12]]   ;;  %s11927_s12 = smov 75  }
  0x7f   :  { %13681 = sst [smem:[#allocation210_spill]] %s12368_s5 }
  0x80   :  { %s12388_s5 = sld [smem:[%s13569_s0 + %s11924_s20]]   ;;  %s11928_s20 = smov 76  }
  0x81   :  { %13682 = sst [smem:[#allocation211_spill]] %s12373_s1 }
  0x82   :  { %s12393_s1 = sld [smem:[%s13569_s0 + %s11925_s26]]  }
  0x83   :  { %13683 = sst [smem:[#allocation212_spill]] %s12378_s17 }
  0x84   :  { %13684 = sst [smem:[#allocation213_spill]] %s12383_s18 }
  0x85   :  { %s12398_s17 = sld [smem:[%s13569_s0 + %s11926_s2]]  }
  0x86   :  { %13685 = sst [smem:[#allocation214_spill]] %s12388_s5 }
  0x87   :  { %s12403_s18 = sld [smem:[%s13569_s0 + %s11927_s12]]  }
  0x88   :  { %s12408_s5 = sld [smem:[%s13569_s0 + %s11928_s20]]  }
  0x89   :  { %161 = vsyncpa [#allocation4], 0 }
  0x8a   :  { %162 = vsyncpa [#allocation7], 0 }
  0x8b   :  { %163 = vsyncpa [#allocation10], 0 }
  0x8c   :  { %164 = vsyncpa [#allocation13], 0 }
  0x8d   :  { %165 = vsyncpa [#allocation16], 0 }
  0x8e   :  { %166 = vsyncpa [#allocation19], 0 }
  0x8f   :  { %167 = vsyncpa [#allocation22], 0 }
  0x90   :  { %168 = vsyncpa [#allocation25], 0 }
  0x91   :  { %169 = vsyncpa [#allocation28], 0 }
  0x92   :  { %170 = vsyncpa [#allocation31], 0 }
  0x93   :  { %171 = vsyncpa [#allocation34], 0 }
  0x94   :  { %172 = vsyncpa [#allocation37], 0 }
  0x95   :  { %173 = vsyncpa [#allocation40], 0 }
  0x96   :  { %174 = vsyncpa [#allocation43], 0 }
  0x97   :  { %175 = vsyncpa [#allocation46], 0 }
  0x98   :  { %176 = vsyncpa [#allocation49], 0 }
  0x99   :  { %177 = vsyncpa [#allocation52], 0 }
  0x9a   :  { %178 = vsyncpa [#allocation55], 0 }
  0x9b   :  { %179 = vsyncpa [#allocation58], 0 }
  0x9c   :  { %180 = vsyncpa [#allocation61], 0 }
  0x9d   :  { %181 = vsyncpa [#allocation64], 0 }
  0x9e   :  { %182 = vsyncpa [#allocation67], 0 }
  0x9f   :  { %183 = vsyncpa [#allocation70], 0 }
  0xa0   :  { %184 = vsyncpa [#allocation73], 0 }
  0xa1   :  { %185 = vsyncpa [#allocation76], 0 }
  0xa2   :  { %186 = vsyncpa [#allocation79], 0 }
  0xa3   :  { %187 = vsyncpa [#allocation82], 0 }
  0xa4   :  { %188 = vsyncpa [#allocation85], 0 }
  0xa5   :  { %189 = vsyncpa [#allocation88], 0 }
  0xa6   :  { %190 = vsyncpa [#allocation91], 0 }
  0xa7   :  { %191 = vsyncpa [#allocation94], 0 }
  0xa8   :  { %192 = vsyncpa [#allocation97], 0 }
  0xa9   :  { %193 = vsyncpa [#allocation100], 0 }
  0xaa   :  { %194 = vsyncpa [#allocation103], 0 }
  0xab   :  { %195 = vsyncpa [#allocation106], 0 }
  0xac   :  { %196 = vsyncpa [#allocation109], 0 }
  0xad   :  { %197 = vsyncpa [#allocation112], 0 }
  0xae   :  { %198 = vsyncpa [#allocation5], 0 }
  0xaf   :  { %199 = vsyncpa [#allocation116], 0  ;;  %s11929_s0 = smov [#allocation6]   ;;  %s11930_s27 = smov [#allocation9]  }
  0xb0   :  { %s217_s26 = sshll.u32 %s11929_s0, 4  ;;  %s242_s30 = sshll.u32 %s11930_s27, 4  ;;  %s218_s26 = int_to_ptr.vmem [resolvable:$true] %s217_s26  ;;  %s12410_s30 = int_to_ptr.vmem [resolvable:$true] %s242_s30 }
  0xb1   :  { %s10103_s2 = scalar_lea.hbm %s12035_s9, 512 }
  0xb2   :  { %p10104_p0 = scmp.ne.s32.totalorder %s12035_s9, %s10103_s2  ;;  %p10107_p1 = scmp.lt.u32.totalorder %s10103_s2, %s12035_s9 }
  0xb4   :  { %p10109_p2 = pnand %p10107_p1, %p10104_p0 }
  0xb6   :  { %10112 = shalt.err (!%p10109_p2)
}
  0xb7   :  { %s10113_s6 = scalar_lea.vmem %s218_s26, 512  ;;  %p10118_p4 = scmp.lt.s32.totalorder %s218_s26, %s218_s26 }
  0xb8   :  { %p10114_p3 = scmp.ne.s32.totalorder %s218_s26, %s10113_s6  ;;  %p10119_p5 = scmp.lt.s32.totalorder %s10113_s6, %s10113_s6 }
  0xba   :  { %p10120_p6 = por %p10119_p5, %p10118_p4 }
  0xbc   :  { %p10121_p7 = pnand %p10120_p6, %p10114_p3 }
  0xbe   :  { %10124 = shalt.err (!%p10121_p7)
}
  0xbf   :  { %s11931_s7 = smov 128   ;;  %s11932_s12 = smov 8  }
  0xc0   :  { %223 = dma.hbm_to_vmem [thread:$0]  %s12035_s9, 512, %s218_s26, [#allocation7], %s11931_s7, %s11931_s7, %s11932_s12  }
  0xc1   :  { %s10125_s15 = scalar_lea.hbm %s12048_s21, 16 }
  0xc2   :  { %p10126_p8 = scmp.ne.s32.totalorder %s12048_s21, %s10125_s15  ;;  %p10129_p9 = scmp.lt.u32.totalorder %s10125_s15, %s12048_s21 }
  0xc4   :  { %p10131_p10 = pnand %p10129_p9, %p10126_p8 }
  0xc6   :  { %10134 = shalt.err (!%p10131_p10)
}
  0xc7   :  { %s10135_s16 = scalar_lea.vmem %s12410_s30, 16  ;;  %s10139_s20 = scalar_lea.vmem %s12410_s30, 32 }
  0xc8   :  { %p10136_p11 = scmp.ne.s32.totalorder %s12410_s30, %s10135_s16  ;;  %p10140_p12 = scmp.lt.s32.totalorder %s12410_s30, %s12410_s30 }
  0xc9   :  { %p10141_p13 = scmp.lt.s32.totalorder %s10139_s20, %s10135_s16 }
  0xcb   :  { %p10142_p0 = por %p10141_p13, %p10140_p12 }
  0xcd   :  { %p10143_p1 = pnand %p10142_p0, %p10136_p11 }
  0xcf   :  { %10146 = shalt.err (!%p10143_p1)
}
  0xd0   :  { %245 = dma.hbm_to_vmem [thread:$0]  %s12048_s21, 16, %s12410_s30, [#allocation10]  }
  0xd1   :  { %s11933_s9 = smov [#allocation12]   ;;  %s11934_s23 = smov [#allocation15]  }
  0xd2   :  { %s263_s22 = sshll.u32 %s11933_s9, 4  ;;  %s288_s0 = sshll.u32 %s11934_s23, 4  ;;  %s264_s22 = int_to_ptr.vmem [resolvable:$true] %s263_s22  ;;  %s289_s0 = int_to_ptr.vmem [resolvable:$true] %s288_s0 }
  0xd3   :  { %s10147_s26 = scalar_lea.hbm %s12058_s29, 512 }
  0xd4   :  { %p10148_p2 = scmp.ne.s32.totalorder %s12058_s29, %s10147_s26  ;;  %p10151_p3 = scmp.lt.u32.totalorder %s10147_s26, %s12058_s29 }
  0xd6   :  { %p10153_p4 = pnand %p10151_p3, %p10148_p2 }
  0xd8   :  { %10156 = shalt.err (!%p10153_p4)
}
  0xd9   :  { %s10157_s27 = scalar_lea.vmem %s264_s22, 512  ;;  %p10162_p6 = scmp.lt.s32.totalorder %s264_s22, %s264_s22 }
  0xda   :  { %p10158_p5 = scmp.ne.s32.totalorder %s264_s22, %s10157_s27  ;;  %p10163_p7 = scmp.lt.s32.totalorder %s10157_s27, %s10157_s27 }
  0xdc   :  { %p10164_p8 = por %p10163_p7, %p10162_p6 }
  0xde   :  { %p10165_p9 = pnand %p10164_p8, %p10158_p5 }
  0xe0   :  { %10168 = shalt.err (!%p10165_p9)
}
  0xe1   :  { %269 = dma.hbm_to_vmem [thread:$0]  %s12058_s29, 512, %s264_s22, [#allocation13], %s11931_s7, %s11931_s7, %s11932_s12  }
  0xe2   :  { %s10169_s21 = scalar_lea.hbm %s12068_s8, 16 }
  0xe3   :  { %p10170_p10 = scmp.ne.s32.totalorder %s12068_s8, %s10169_s21  ;;  %p10173_p11 = scmp.lt.u32.totalorder %s10169_s21, %s12068_s8 }
  0xe5   :  { %p10175_p12 = pnand %p10173_p11, %p10170_p10 }
  0xe7   :  { %10178 = shalt.err (!%p10175_p12)
}
  0xe8   :  { %s10179_s30 = scalar_lea.vmem %s289_s0, 16  ;;  %s10183_s2 = scalar_lea.vmem %s289_s0, 32 }
  0xe9   :  { %p10180_p13 = scmp.ne.s32.totalorder %s289_s0, %s10179_s30  ;;  %p10184_p0 = scmp.lt.s32.totalorder %s289_s0, %s289_s0 }
  0xea   :  { %p10185_p1 = scmp.lt.s32.totalorder %s10183_s2, %s10179_s30 }
  0xec   :  { %p10186_p2 = por %p10185_p1, %p10184_p0 }
  0xee   :  { %p10187_p3 = pnand %p10186_p2, %p10180_p13 }
  0xf0   :  { %10190 = shalt.err (!%p10187_p3)
}
  0xf1   :  { %291 = dma.hbm_to_vmem [thread:$0]  %s12068_s8, 16, %s289_s0, [#allocation16]  }
  0xf2   :  { %s11935_s6 = smov [#allocation18]   ;;  %s11936_s15 = smov [#allocation21]  }
  0xf3   :  { %s310_s29 = sshll.u32 %s11935_s6, 4  ;;  %s330_s16 = sshll.u32 %s11936_s15, 4  ;;  %s311_s29 = int_to_ptr.vmem [resolvable:$true] %s310_s29  ;;  %s331_s16 = int_to_ptr.vmem [resolvable:$true] %s330_s16 }
  0xf4   :  { %s10191_s20 = scalar_lea.hbm %s12078_s19, 16 }
  0xf5   :  { %p10192_p4 = scmp.ne.s32.totalorder %s12078_s19, %s10191_s20  ;;  %p10195_p5 = scmp.lt.u32.totalorder %s10191_s20, %s12078_s19 }
  0xf7   :  { %p10197_p6 = pnand %p10195_p5, %p10192_p4 }
  0xf9   :  { %10200 = shalt.err (!%p10197_p6)
}
  0xfa   :  { %s10201_s9 = scalar_lea.vmem %s311_s29, 16  ;;  %s10205_s22 = scalar_lea.vmem %s311_s29, 32 }
  0xfb   :  { %p10202_p7 = scmp.ne.s32.totalorder %s311_s29, %s10201_s9  ;;  %p10206_p8 = scmp.lt.s32.totalorder %s311_s29, %s311_s29 }
  0xfc   :  { %p10207_p9 = scmp.lt.s32.totalorder %s10205_s22, %s10201_s9 }
  0xfe   :  { %p10208_p10 = por %p10207_p9, %p10206_p8 }
 0x100   :  { %p10209_p11 = pnand %p10208_p10, %p10202_p7 }
 0x102   :  { %10212 = shalt.err (!%p10209_p11)
}
 0x103   :  { %313 = dma.hbm_to_vmem [thread:$0]  %s12078_s19, 16, %s311_s29, [#allocation19]  }
 0x104   :  { %s10213_s8 = scalar_lea.hbm %s12088_s28, 16 }
 0x105   :  { %p10214_p12 = scmp.ne.s32.totalorder %s12088_s28, %s10213_s8  ;;  %p10217_p13 = scmp.lt.u32.totalorder %s10213_s8, %s12088_s28 }
 0x107   :  { %p10219_p0 = pnand %p10217_p13, %p10214_p12 }
 0x109   :  { %10222 = shalt.err (!%p10219_p0)
}
 0x10a   :  { %s10223_s23 = scalar_lea.vmem %s331_s16, 16  ;;  %s10227_s0 = scalar_lea.vmem %s331_s16, 32 }
 0x10b   :  { %p10224_p1 = scmp.ne.s32.totalorder %s331_s16, %s10223_s23  ;;  %p10228_p2 = scmp.lt.s32.totalorder %s331_s16, %s331_s16 }
 0x10c   :  { %p10229_p3 = scmp.lt.s32.totalorder %s10227_s0, %s10223_s23 }
 0x10e   :  { %p10230_p4 = por %p10229_p3, %p10228_p2 }
 0x110   :  { %p10231_p5 = pnand %p10230_p4, %p10224_p1 }
 0x112   :  { %10234 = shalt.err (!%p10231_p5)
}
 0x113   :  { %333 = dma.hbm_to_vmem [thread:$0]  %s12088_s28, 16, %s331_s16, [#allocation22]  }
 0x114   :  { %s11937_s26 = smov [#allocation24]   ;;  %s11938_s27 = smov [#allocation27]  }
 0x115   :  { %s350_s19 = sshll.u32 %s11937_s26, 4  ;;  %s370_s21 = sshll.u32 %s11938_s27, 4  ;;  %s351_s19 = int_to_ptr.vmem [resolvable:$true] %s350_s19  ;;  %s371_s21 = int_to_ptr.vmem [resolvable:$true] %s370_s21 }
 0x116   :  { %s10235_s30 = scalar_lea.hbm %s12098_s11, 16 }
 0x117   :  { %p10236_p6 = scmp.ne.s32.totalorder %s12098_s11, %s10235_s30  ;;  %p10239_p7 = scmp.lt.u32.totalorder %s10235_s30, %s12098_s11 }
 0x119   :  { %p10241_p8 = pnand %p10239_p7, %p10236_p6 }
 0x11b   :  { %10244 = shalt.err (!%p10241_p8)
}
 0x11c   :  { %s10245_s2 = scalar_lea.vmem %s351_s19, 16  ;;  %s10249_s6 = scalar_lea.vmem %s351_s19, 32 }
 0x11d   :  { %p10246_p9 = scmp.ne.s32.totalorder %s351_s19, %s10245_s2  ;;  %p10250_p10 = scmp.lt.s32.totalorder %s351_s19, %s351_s19 }
 0x11e   :  { %p10251_p11 = scmp.lt.s32.totalorder %s10249_s6, %s10245_s2 }
 0x120   :  { %p10252_p12 = por %p10251_p11, %p10250_p10 }
 0x122   :  { %p10253_p13 = pnand %p10252_p12, %p10246_p9 }
 0x124   :  { %10256 = shalt.err (!%p10253_p13)
}
 0x125   :  { %353 = dma.hbm_to_vmem [thread:$0]  %s12098_s11, 16, %s351_s19, [#allocation25]  }
 0x126   :  { %s10257_s28 = scalar_lea.hbm %s12108_s13, 16 }
 0x127   :  { %p10258_p0 = scmp.ne.s32.totalorder %s12108_s13, %s10257_s28  ;;  %p10261_p1 = scmp.lt.u32.totalorder %s10257_s28, %s12108_s13 }
 0x129   :  { %p10263_p2 = pnand %p10261_p1, %p10258_p0 }
 0x12b   :  { %10266 = shalt.err (!%p10263_p2)
}
 0x12c   :  { %s10267_s29 = scalar_lea.vmem %s371_s21, 16  ;;  %s10271_s15 = scalar_lea.vmem %s371_s21, 32 }
 0x12d   :  { %p10268_p3 = scmp.ne.s32.totalorder %s371_s21, %s10267_s29  ;;  %p10272_p4 = scmp.lt.s32.totalorder %s371_s21, %s371_s21 }
 0x12e   :  { %p10273_p5 = scmp.lt.s32.totalorder %s10271_s15, %s10267_s29 }
 0x130   :  { %p10274_p6 = por %p10273_p5, %p10272_p4 }
 0x132   :  { %p10275_p7 = pnand %p10274_p6, %p10268_p3 }
 0x134   :  { %10278 = shalt.err (!%p10275_p7)
}
 0x135   :  { %373 = dma.hbm_to_vmem [thread:$0]  %s12108_s13, 16, %s371_s21, [#allocation28]  }
 0x136   :  { %s11939_s16 = smov [#allocation30]   ;;  %s11940_s20 = smov [#allocation33]  }
 0x137   :  { %s390_s11 = sshll.u32 %s11939_s16, 4  ;;  %s411_s9 = sshll.u32 %s11940_s20, 4  ;;  %s391_s11 = int_to_ptr.vmem [resolvable:$true] %s390_s11  ;;  %s12456_s9 = int_to_ptr.vmem [resolvable:$true] %s411_s9 }
 0x138   :  { %s10279_s22 = scalar_lea.hbm %s12118_s10, 16 }
 0x139   :  { %p10280_p8 = scmp.ne.s32.totalorder %s12118_s10, %s10279_s22  ;;  %p10283_p9 = scmp.lt.u32.totalorder %s10279_s22, %s12118_s10 }
 0x13b   :  { %p10285_p10 = pnand %p10283_p9, %p10280_p8 }
 0x13d   :  { %10288 = shalt.err (!%p10285_p10)
}
 0x13e   :  { %s10289_s8 = scalar_lea.vmem %s391_s11, 16  ;;  %s10293_s23 = scalar_lea.vmem %s391_s11, 32 }
 0x13f   :  { %p10290_p11 = scmp.ne.s32.totalorder %s391_s11, %s10289_s8  ;;  %p10294_p12 = scmp.lt.s32.totalorder %s391_s11, %s391_s11 }
 0x140   :  { %p10295_p13 = scmp.lt.s32.totalorder %s10293_s23, %s10289_s8 }
 0x142   :  { %p10296_p0 = por %p10295_p13, %p10294_p12 }
 0x144   :  { %p10297_p1 = pnand %p10296_p0, %p10290_p11 }
 0x146   :  { %10300 = shalt.err (!%p10297_p1)
}
 0x147   :  { %393 = dma.hbm_to_vmem [thread:$0]  %s12118_s10, 16, %s391_s11, [#allocation31]  }
 0x148   :  { %s10301_s13 = scalar_lea.hbm %s12128_s4, 512 }
 0x149   :  { %p10302_p2 = scmp.ne.s32.totalorder %s12128_s4, %s10301_s13  ;;  %p10305_p3 = scmp.lt.u32.totalorder %s10301_s13, %s12128_s4 }
 0x14b   :  { %p10307_p4 = pnand %p10305_p3, %p10302_p2 }
 0x14d   :  { %10310 = shalt.err (!%p10307_p4)
}
 0x14e   :  { %s10311_s0 = scalar_lea.vmem %s12456_s9, 512  ;;  %p10316_p6 = scmp.lt.s32.totalorder %s12456_s9, %s12456_s9 }
 0x14f   :  { %p10312_p5 = scmp.ne.s32.totalorder %s12456_s9, %s10311_s0  ;;  %p10317_p7 = scmp.lt.s32.totalorder %s10311_s0, %s10311_s0 }
 0x151   :  { %p10318_p8 = por %p10317_p7, %p10316_p6 }
 0x153   :  { %p10319_p9 = pnand %p10318_p8, %p10312_p5 }
 0x155   :  { %10322 = shalt.err (!%p10319_p9)
}
 0x156   :  { %417 = dma.hbm_to_vmem [thread:$0]  %s12128_s4, 512, %s12456_s9, [#allocation34], %s11931_s7, %s11931_s7, %s11932_s12  }
 0x157   :  { %s11941_s10 = smov [#allocation36]   ;;  %s11942_s19 = smov [#allocation39]  }
 0x158   :  { %s434_s26 = sshll.u32 %s11941_s10, 4  ;;  %s455_s27 = sshll.u32 %s11942_s19, 4  ;;  %s435_s26 = int_to_ptr.vmem [resolvable:$true] %s434_s26  ;;  %s12474_s27 = int_to_ptr.vmem [resolvable:$true] %s455_s27 }
 0x159   :  { %s10323_s21 = scalar_lea.hbm %s12138_s24, 16 }
 0x15a   :  { %p10324_p10 = scmp.ne.s32.totalorder %s12138_s24, %s10323_s21  ;;  %p10327_p11 = scmp.lt.u32.totalorder %s10323_s21, %s12138_s24 }
 0x15c   :  { %p10329_p12 = pnand %p10327_p11, %p10324_p10 }
 0x15e   :  { %10332 = shalt.err (!%p10329_p12)
}
 0x15f   :  { %s10333_s30 = scalar_lea.vmem %s435_s26, 16  ;;  %s10337_s2 = scalar_lea.vmem %s435_s26, 32 }
 0x160   :  { %p10334_p13 = scmp.ne.s32.totalorder %s435_s26, %s10333_s30  ;;  %p10338_p0 = scmp.lt.s32.totalorder %s435_s26, %s435_s26 }
 0x161   :  { %p10339_p1 = scmp.lt.s32.totalorder %s10337_s2, %s10333_s30 }
 0x163   :  { %p10340_p2 = por %p10339_p1, %p10338_p0 }
 0x165   :  { %p10341_p3 = pnand %p10340_p2, %p10334_p13 }
 0x167   :  { %10344 = shalt.err (!%p10341_p3)
}
 0x168   :  { %437 = dma.hbm_to_vmem [thread:$0]  %s12138_s24, 16, %s435_s26, [#allocation37]  }
 0x169   :  { %s10345_s4 = scalar_lea.hbm %s12148_s14, 512 }
 0x16a   :  { %p10346_p4 = scmp.ne.s32.totalorder %s12148_s14, %s10345_s4  ;;  %p10349_p5 = scmp.lt.u32.totalorder %s10345_s4, %s12148_s14 }
 0x16c   :  { %p10351_p6 = pnand %p10349_p5, %p10346_p4 }
 0x16e   :  { %10354 = shalt.err (!%p10351_p6)
}
 0x16f   :  { %s10355_s6 = scalar_lea.vmem %s12474_s27, 512  ;;  %p10360_p8 = scmp.lt.s32.totalorder %s12474_s27, %s12474_s27 }
 0x170   :  { %p10356_p7 = scmp.ne.s32.totalorder %s12474_s27, %s10355_s6  ;;  %p10361_p9 = scmp.lt.s32.totalorder %s10355_s6, %s10355_s6 }
 0x172   :  { %p10362_p10 = por %p10361_p9, %p10360_p8 }
 0x174   :  { %p10363_p11 = pnand %p10362_p10, %p10356_p7 }
 0x176   :  { %10366 = shalt.err (!%p10363_p11)
}
 0x177   :  { %461 = dma.hbm_to_vmem [thread:$0]  %s12148_s14, 512, %s12474_s27, [#allocation40], %s11931_s7, %s11931_s7, %s11932_s12  }
 0x178   :  { %s11943_s24 = smov [#allocation42]   ;;  %s11944_s29 = smov [#allocation45]  }
 0x179   :  { %s480_s28 = sshll.u32 %s11943_s24, 4  ;;  %s502_s15 = sshll.u32 %s11944_s29, 4  ;;  %s481_s28 = int_to_ptr.vmem [resolvable:$true] %s480_s28  ;;  %s503_s15 = int_to_ptr.vmem [resolvable:$true] %s502_s15 }
 0x17a   :  { %s10367_s16 = scalar_lea.hbm %s12158_s3, 16 }
 0x17b   :  { %p10368_p12 = scmp.ne.s32.totalorder %s12158_s3, %s10367_s16  ;;  %p10371_p13 = scmp.lt.u32.totalorder %s10367_s16, %s12158_s3 }
 0x17d   :  { %p10373_p0 = pnand %p10371_p13, %p10368_p12 }
 0x17f   :  { %10376 = shalt.err (!%p10373_p0)
}
 0x180   :  { %s10377_s11 = scalar_lea.vmem %s481_s28, 16  ;;  %s10381_s20 = scalar_lea.vmem %s481_s28, 32 }
 0x181   :  { %p10378_p1 = scmp.ne.s32.totalorder %s481_s28, %s10377_s11  ;;  %p10382_p2 = scmp.lt.s32.totalorder %s481_s28, %s481_s28 }
 0x182   :  { %p10383_p3 = scmp.lt.s32.totalorder %s10381_s20, %s10377_s11 }
 0x184   :  { %p10384_p4 = por %p10383_p3, %p10382_p2 }
 0x186   :  { %p10385_p5 = pnand %p10384_p4, %p10378_p1 }
 0x188   :  { %10388 = shalt.err (!%p10385_p5)
}
 0x189   :  { %483 = dma.hbm_to_vmem [thread:$0]  %s12158_s3, 16, %s481_s28, [#allocation43]  }
 0x18a   :  { %s10389_s14 = scalar_lea.hbm %s12168_s25, 16 }
 0x18b   :  { %p10390_p6 = scmp.ne.s32.totalorder %s12168_s25, %s10389_s14  ;;  %p10393_p7 = scmp.lt.u32.totalorder %s10389_s14, %s12168_s25 }
 0x18d   :  { %p10395_p8 = pnand %p10393_p7, %p10390_p6 }
 0x18f   :  { %10398 = shalt.err (!%p10395_p8)
}
 0x190   :  { %s10399_s9 = scalar_lea.vmem %s503_s15, 16  ;;  %s10403_s22 = scalar_lea.vmem %s503_s15, 32 }
 0x191   :  { %p10400_p9 = scmp.ne.s32.totalorder %s503_s15, %s10399_s9  ;;  %p10404_p10 = scmp.lt.s32.totalorder %s503_s15, %s503_s15 }
 0x192   :  { %p10405_p11 = scmp.lt.s32.totalorder %s10403_s22, %s10399_s9 }
 0x194   :  { %p10406_p12 = por %p10405_p11, %p10404_p10 }
 0x196   :  { %p10407_p13 = pnand %p10406_p12, %p10400_p9 }
 0x198   :  { %10410 = shalt.err (!%p10407_p13)
}
 0x199   :  { %s13686_s8 = sld [smem:[#allocation172_spill]]  ;;  %s11945_s23 = smov [#allocation48]  }
 0x19a   :  { %505 = dma.hbm_to_vmem [thread:$0]  %s12168_s25, 16, %s503_s15, [#allocation46]  }
 0x19b   :  { %s522_s3 = sshll.u32 %s11945_s23, 4  ;;  %s11946_s13 = smov [#allocation51]   ;;  %s523_s3 = int_to_ptr.vmem [resolvable:$true] %s522_s3 }
 0x19c   :  { %s542_s0 = sshll.u32 %s11946_s13, 4  ;;  %s543_s0 = int_to_ptr.vmem [resolvable:$true] %s542_s0 }
 0x19f   :  { %s10411_s10 = scalar_lea.hbm %s13686_s8, 16 }
 0x1a0   :  { %p10412_p0 = scmp.ne.s32.totalorder %s13686_s8, %s10411_s10  ;;  %p10415_p1 = scmp.lt.u32.totalorder %s10411_s10, %s13686_s8 }
 0x1a2   :  { %p10417_p2 = pnand %p10415_p1, %p10412_p0 }
 0x1a4   :  { %10420 = shalt.err (!%p10417_p2)
}
 0x1a5   :  { %s10421_s26 = scalar_lea.vmem %s523_s3, 16  ;;  %s10425_s19 = scalar_lea.vmem %s523_s3, 32 }
 0x1a6   :  { %p10422_p3 = scmp.ne.s32.totalorder %s523_s3, %s10421_s26  ;;  %p10426_p4 = scmp.lt.s32.totalorder %s523_s3, %s523_s3 }
 0x1a7   :  { %p10427_p5 = scmp.lt.s32.totalorder %s10425_s19, %s10421_s26 }
 0x1a9   :  { %p10428_p6 = por %p10427_p5, %p10426_p4 }
 0x1ab   :  { %p10429_p7 = pnand %p10428_p6, %p10422_p3 }
 0x1ad   :  { %10432 = shalt.err (!%p10429_p7)
}
 0x1ae   :  { %s13687_s25 = sld [smem:[#allocation174_spill]] }
 0x1af   :  { %525 = dma.hbm_to_vmem [thread:$0]  %s13686_s8, 16, %s523_s3, [#allocation49]  }
 0x1b4   :  { %s10433_s27 = scalar_lea.hbm %s13687_s25, 16 }
 0x1b5   :  { %p10434_p8 = scmp.ne.s32.totalorder %s13687_s25, %s10433_s27  ;;  %p10437_p9 = scmp.lt.u32.totalorder %s10433_s27, %s13687_s25 }
 0x1b7   :  { %p10439_p10 = pnand %p10437_p9, %p10434_p8 }
 0x1b9   :  { %10442 = shalt.err (!%p10439_p10)
}
 0x1ba   :  { %s10443_s21 = scalar_lea.vmem %s543_s0, 16  ;;  %s10447_s30 = scalar_lea.vmem %s543_s0, 32 }
 0x1bb   :  { %p10444_p11 = scmp.ne.s32.totalorder %s543_s0, %s10443_s21  ;;  %p10448_p12 = scmp.lt.s32.totalorder %s543_s0, %s543_s0 }
 0x1bc   :  { %p10449_p13 = scmp.lt.s32.totalorder %s10447_s30, %s10443_s21 }
 0x1be   :  { %p10450_p0 = por %p10449_p13, %p10448_p12 }
 0x1c0   :  { %p10451_p1 = pnand %p10450_p0, %p10444_p11 }
 0x1c2   :  { %10454 = shalt.err (!%p10451_p1)
}
 0x1c3   :  { %s13688_s2 = sld [smem:[#allocation176_spill]]  ;;  %s11947_s4 = smov [#allocation54]  }
 0x1c4   :  { %545 = dma.hbm_to_vmem [thread:$0]  %s13687_s25, 16, %s543_s0, [#allocation52]  }
 0x1c5   :  { %s562_s6 = sshll.u32 %s11947_s4, 4  ;;  %s11948_s24 = smov [#allocation57]   ;;  %s563_s6 = int_to_ptr.vmem [resolvable:$true] %s562_s6 }
 0x1c6   :  { %s582_s28 = sshll.u32 %s11948_s24, 4  ;;  %s583_s28 = int_to_ptr.vmem [resolvable:$true] %s582_s28 }
 0x1c9   :  { %s10455_s29 = scalar_lea.hbm %s13688_s2, 16 }
 0x1ca   :  { %p10456_p2 = scmp.ne.s32.totalorder %s13688_s2, %s10455_s29  ;;  %p10459_p3 = scmp.lt.u32.totalorder %s10455_s29, %s13688_s2 }
 0x1cc   :  { %p10461_p4 = pnand %p10459_p3, %p10456_p2 }
 0x1ce   :  { %10464 = shalt.err (!%p10461_p4)
}
 0x1cf   :  { %s10465_s15 = scalar_lea.vmem %s563_s6, 16  ;;  %s10469_s16 = scalar_lea.vmem %s563_s6, 32 }
 0x1d0   :  { %p10466_p5 = scmp.ne.s32.totalorder %s563_s6, %s10465_s15  ;;  %p10470_p6 = scmp.lt.s32.totalorder %s563_s6, %s563_s6 }
 0x1d1   :  { %p10471_p7 = scmp.lt.s32.totalorder %s10469_s16, %s10465_s15 }
 0x1d3   :  { %p10472_p8 = por %p10471_p7, %p10470_p6 }
 0x1d5   :  { %p10473_p9 = pnand %p10472_p8, %p10466_p5 }
 0x1d7   :  { %10476 = shalt.err (!%p10473_p9)
}
 0x1d8   :  { %s13689_s11 = sld [smem:[#allocation178_spill]] }
 0x1d9   :  { %565 = dma.hbm_to_vmem [thread:$0]  %s13688_s2, 16, %s563_s6, [#allocation55]  }
 0x1de   :  { %s10477_s20 = scalar_lea.hbm %s13689_s11, 16 }
 0x1df   :  { %p10478_p10 = scmp.ne.s32.totalorder %s13689_s11, %s10477_s20  ;;  %p10481_p11 = scmp.lt.u32.totalorder %s10477_s20, %s13689_s11 }
 0x1e1   :  { %p10483_p12 = pnand %p10481_p11, %p10478_p10 }
 0x1e3   :  { %10486 = shalt.err (!%p10483_p12)
}
 0x1e4   :  { %s10487_s14 = scalar_lea.vmem %s583_s28, 16  ;;  %s10491_s9 = scalar_lea.vmem %s583_s28, 32 }
 0x1e5   :  { %p10488_p13 = scmp.ne.s32.totalorder %s583_s28, %s10487_s14  ;;  %p10492_p0 = scmp.lt.s32.totalorder %s583_s28, %s583_s28 }
 0x1e6   :  { %p10493_p1 = scmp.lt.s32.totalorder %s10491_s9, %s10487_s14 }
 0x1e8   :  { %p10494_p2 = por %p10493_p1, %p10492_p0 }
 0x1ea   :  { %p10495_p3 = pnand %p10494_p2, %p10488_p13 }
 0x1ec   :  { %10498 = shalt.err (!%p10495_p3)
}
 0x1ed   :  { %s13690_s22 = sld [smem:[#allocation180_spill]]  ;;  %s11949_s8 = smov [#allocation60]  }
 0x1ee   :  { %585 = dma.hbm_to_vmem [thread:$0]  %s13689_s11, 16, %s583_s28, [#allocation58]  }
 0x1ef   :  { %s603_s23 = sshll.u32 %s11949_s8, 4  ;;  %s11950_s3 = smov [#allocation63]   ;;  %s604_s23 = int_to_ptr.vmem [resolvable:$true] %s603_s23 }
 0x1f0   :  { %s628_s13 = sshll.u32 %s11950_s3, 4  ;;  %s629_s13 = int_to_ptr.vmem [resolvable:$true] %s628_s13 }
 0x1f3   :  { %s10499_s0 = scalar_lea.hbm %s13690_s22, 512 }
 0x1f4   :  { %p10500_p4 = scmp.ne.s32.totalorder %s13690_s22, %s10499_s0  ;;  %p10503_p5 = scmp.lt.u32.totalorder %s10499_s0, %s13690_s22 }
 0x1f6   :  { %p10505_p6 = pnand %p10503_p5, %p10500_p4 }
 0x1f8   :  { %10508 = shalt.err (!%p10505_p6)
}
 0x1f9   :  { %s10509_s10 = scalar_lea.vmem %s604_s23, 512  ;;  %p10514_p8 = scmp.lt.s32.totalorder %s604_s23, %s604_s23 }
 0x1fa   :  { %p10510_p7 = scmp.ne.s32.totalorder %s604_s23, %s10509_s10  ;;  %p10515_p9 = scmp.lt.s32.totalorder %s10509_s10, %s10509_s10 }
 0x1fc   :  { %p10516_p10 = por %p10515_p9, %p10514_p8 }
 0x1fe   :  { %p10517_p11 = pnand %p10516_p10, %p10510_p7 }
 0x200   :  { %10520 = shalt.err (!%p10517_p11)
}
 0x201   :  { %s13691_s26 = sld [smem:[#allocation182_spill]] }
 0x202   :  { %609 = dma.hbm_to_vmem [thread:$0]  %s13690_s22, 512, %s604_s23, [#allocation61], %s11931_s7, %s11931_s7, %s11932_s12  }
 0x207   :  { %s10521_s19 = scalar_lea.hbm %s13691_s26, 16 }
 0x208   :  { %p10522_p12 = scmp.ne.s32.totalorder %s13691_s26, %s10521_s19  ;;  %p10525_p13 = scmp.lt.u32.totalorder %s10521_s19, %s13691_s26 }
 0x20a   :  { %p10527_p0 = pnand %p10525_p13, %p10522_p12 }
 0x20c   :  { %10530 = shalt.err (!%p10527_p0)
}
 0x20d   :  { %s10531_s25 = scalar_lea.vmem %s629_s13, 16  ;;  %s10535_s27 = scalar_lea.vmem %s629_s13, 32 }
 0x20e   :  { %p10532_p1 = scmp.ne.s32.totalorder %s629_s13, %s10531_s25  ;;  %p10536_p2 = scmp.lt.s32.totalorder %s629_s13, %s629_s13 }
 0x20f   :  { %p10537_p3 = scmp.lt.s32.totalorder %s10535_s27, %s10531_s25 }
 0x211   :  { %p10538_p4 = por %p10537_p3, %p10536_p2 }
 0x213   :  { %p10539_p5 = pnand %p10538_p4, %p10532_p1 }
 0x215   :  { %10542 = shalt.err (!%p10539_p5)
}
 0x216   :  { %s13692_s21 = sld [smem:[#allocation184_spill]]  ;;  %s11951_s30 = smov [#allocation66]  }
 0x217   :  { %631 = dma.hbm_to_vmem [thread:$0]  %s13691_s26, 16, %s629_s13, [#allocation64]  }
 0x218   :  { %s650_s2 = sshll.u32 %s11951_s30, 4  ;;  %s11952_s4 = smov [#allocation69]   ;;  %s651_s2 = int_to_ptr.vmem [resolvable:$true] %s650_s2 }
 0x219   :  { %s670_s6 = sshll.u32 %s11952_s4, 4  ;;  %s671_s6 = int_to_ptr.vmem [resolvable:$true] %s670_s6 }
 0x21c   :  { %s10543_s24 = scalar_lea.hbm %s13692_s21, 16 }
 0x21d   :  { %p10544_p6 = scmp.ne.s32.totalorder %s13692_s21, %s10543_s24  ;;  %p10547_p7 = scmp.lt.u32.totalorder %s10543_s24, %s13692_s21 }
 0x21f   :  { %p10549_p8 = pnand %p10547_p7, %p10544_p6 }
 0x221   :  { %10552 = shalt.err (!%p10549_p8)
}
 0x222   :  { %s10553_s28 = scalar_lea.vmem %s651_s2, 16  ;;  %s10557_s29 = scalar_lea.vmem %s651_s2, 32 }
 0x223   :  { %p10554_p9 = scmp.ne.s32.totalorder %s651_s2, %s10553_s28  ;;  %p10558_p10 = scmp.lt.s32.totalorder %s651_s2, %s651_s2 }
 0x224   :  { %p10559_p11 = scmp.lt.s32.totalorder %s10557_s29, %s10553_s28 }
 0x226   :  { %p10560_p12 = por %p10559_p11, %p10558_p10 }
 0x228   :  { %p10561_p13 = pnand %p10560_p12, %p10554_p9 }
 0x22a   :  { %10564 = shalt.err (!%p10561_p13)
}
 0x22b   :  { %s13693_s15 = sld [smem:[#allocation186_spill]] }
 0x22c   :  { %653 = dma.hbm_to_vmem [thread:$0]  %s13692_s21, 16, %s651_s2, [#allocation67]  }
 0x231   :  { %s10565_s16 = scalar_lea.hbm %s13693_s15, 16 }
 0x232   :  { %p10566_p0 = scmp.ne.s32.totalorder %s13693_s15, %s10565_s16  ;;  %p10569_p1 = scmp.lt.u32.totalorder %s10565_s16, %s13693_s15 }
 0x234   :  { %p10571_p2 = pnand %p10569_p1, %p10566_p0 }
 0x236   :  { %10574 = shalt.err (!%p10571_p2)
}
 0x237   :  { %s10575_s11 = scalar_lea.vmem %s671_s6, 16  ;;  %s10579_s20 = scalar_lea.vmem %s671_s6, 32 }
 0x238   :  { %p10576_p3 = scmp.ne.s32.totalorder %s671_s6, %s10575_s11  ;;  %p10580_p4 = scmp.lt.s32.totalorder %s671_s6, %s671_s6 }
 0x239   :  { %p10581_p5 = scmp.lt.s32.totalorder %s10579_s20, %s10575_s11 }
 0x23b   :  { %p10582_p6 = por %p10581_p5, %p10580_p4 }
 0x23d   :  { %p10583_p7 = pnand %p10582_p6, %p10576_p3 }
 0x23f   :  { %10586 = shalt.err (!%p10583_p7)
}
 0x240   :  { %s13694_s14 = sld [smem:[#allocation188_spill]]  ;;  %s11953_s9 = smov [#allocation72]  }
 0x241   :  { %673 = dma.hbm_to_vmem [thread:$0]  %s13693_s15, 16, %s671_s6, [#allocation70]  }
 0x242   :  { %s690_s22 = sshll.u32 %s11953_s9, 4  ;;  %s11954_s8 = smov [#allocation75]   ;;  %s691_s22 = int_to_ptr.vmem [resolvable:$true] %s690_s22 }
 0x243   :  { %s710_s23 = sshll.u32 %s11954_s8, 4  ;;  %s711_s23 = int_to_ptr.vmem [resolvable:$true] %s710_s23 }
 0x246   :  { %s10587_s3 = scalar_lea.hbm %s13694_s14, 16 }
 0x247   :  { %p10588_p8 = scmp.ne.s32.totalorder %s13694_s14, %s10587_s3  ;;  %p10591_p9 = scmp.lt.u32.totalorder %s10587_s3, %s13694_s14 }
 0x249   :  { %p10593_p10 = pnand %p10591_p9, %p10588_p8 }
 0x24b   :  { %10596 = shalt.err (!%p10593_p10)
}
 0x24c   :  { %s10597_s13 = scalar_lea.vmem %s691_s22, 16  ;;  %s10601_s0 = scalar_lea.vmem %s691_s22, 32 }
 0x24d   :  { %p10598_p11 = scmp.ne.s32.totalorder %s691_s22, %s10597_s13  ;;  %p10602_p12 = scmp.lt.s32.totalorder %s691_s22, %s691_s22 }
 0x24e   :  { %p10603_p13 = scmp.lt.s32.totalorder %s10601_s0, %s10597_s13 }
 0x250   :  { %p10604_p0 = por %p10603_p13, %p10602_p12 }
 0x252   :  { %p10605_p1 = pnand %p10604_p0, %p10598_p11 }
 0x254   :  { %10608 = shalt.err (!%p10605_p1)
}
 0x255   :  { %s13695_s10 = sld [smem:[#allocation190_spill]] }
 0x256   :  { %693 = dma.hbm_to_vmem [thread:$0]  %s13694_s14, 16, %s691_s22, [#allocation73]  }
 0x25b   :  { %s10609_s26 = scalar_lea.hbm %s13695_s10, 16 }
 0x25c   :  { %p10610_p2 = scmp.ne.s32.totalorder %s13695_s10, %s10609_s26  ;;  %p10613_p3 = scmp.lt.u32.totalorder %s10609_s26, %s13695_s10 }
 0x25e   :  { %p10615_p4 = pnand %p10613_p3, %p10610_p2 }
 0x260   :  { %10618 = shalt.err (!%p10615_p4)
}
 0x261   :  { %s10619_s19 = scalar_lea.vmem %s711_s23, 16  ;;  %s10623_s25 = scalar_lea.vmem %s711_s23, 32 }
 0x262   :  { %p10620_p5 = scmp.ne.s32.totalorder %s711_s23, %s10619_s19  ;;  %p10624_p6 = scmp.lt.s32.totalorder %s711_s23, %s711_s23 }
 0x263   :  { %p10625_p7 = scmp.lt.s32.totalorder %s10623_s25, %s10619_s19 }
 0x265   :  { %p10626_p8 = por %p10625_p7, %p10624_p6 }
 0x267   :  { %p10627_p9 = pnand %p10626_p8, %p10620_p5 }
 0x269   :  { %10630 = shalt.err (!%p10627_p9)
}
 0x26a   :  { %s13696_s27 = sld [smem:[#allocation192_spill]]  ;;  %s11955_s21 = smov [#allocation78]  }
 0x26b   :  { %713 = dma.hbm_to_vmem [thread:$0]  %s13695_s10, 16, %s711_s23, [#allocation76]  }
 0x26c   :  { %s731_s30 = sshll.u32 %s11955_s21, 4  ;;  %s11956_s2 = smov [#allocation81]   ;;  %s732_s30 = int_to_ptr.vmem [resolvable:$true] %s731_s30 }
 0x26d   :  { %s756_s4 = sshll.u32 %s11956_s2, 4  ;;  %s757_s4 = int_to_ptr.vmem [resolvable:$true] %s756_s4 }
 0x270   :  { %s10631_s6 = scalar_lea.hbm %s13696_s27, 512 }
 0x271   :  { %p10632_p10 = scmp.ne.s32.totalorder %s13696_s27, %s10631_s6  ;;  %p10635_p11 = scmp.lt.u32.totalorder %s10631_s6, %s13696_s27 }
 0x273   :  { %p10637_p12 = pnand %p10635_p11, %p10632_p10 }
 0x275   :  { %10640 = shalt.err (!%p10637_p12)
}
 0x276   :  { %s10641_s24 = scalar_lea.vmem %s732_s30, 512  ;;  %p10646_p0 = scmp.lt.s32.totalorder %s732_s30, %s732_s30 }
 0x277   :  { %p10642_p13 = scmp.ne.s32.totalorder %s732_s30, %s10641_s24  ;;  %p10647_p1 = scmp.lt.s32.totalorder %s10641_s24, %s10641_s24 }
 0x279   :  { %p10648_p2 = por %p10647_p1, %p10646_p0 }
 0x27b   :  { %p10649_p3 = pnand %p10648_p2, %p10642_p13 }
 0x27d   :  { %10652 = shalt.err (!%p10649_p3)
}
 0x27e   :  { %s13697_s28 = sld [smem:[#allocation194_spill]] }
 0x27f   :  { %737 = dma.hbm_to_vmem [thread:$0]  %s13696_s27, 512, %s732_s30, [#allocation79], %s11931_s7, %s11931_s7, %s11932_s12  }
 0x284   :  { %s10653_s29 = scalar_lea.hbm %s13697_s28, 16 }
 0x285   :  { %p10654_p4 = scmp.ne.s32.totalorder %s13697_s28, %s10653_s29  ;;  %p10657_p5 = scmp.lt.u32.totalorder %s10653_s29, %s13697_s28 }
 0x287   :  { %p10659_p6 = pnand %p10657_p5, %p10654_p4 }
 0x289   :  { %10662 = shalt.err (!%p10659_p6)
}
 0x28a   :  { %s10663_s15 = scalar_lea.vmem %s757_s4, 16  ;;  %s10667_s16 = scalar_lea.vmem %s757_s4, 32 }
 0x28b   :  { %p10664_p7 = scmp.ne.s32.totalorder %s757_s4, %s10663_s15  ;;  %p10668_p8 = scmp.lt.s32.totalorder %s757_s4, %s757_s4 }
 0x28c   :  { %p10669_p9 = scmp.lt.s32.totalorder %s10667_s16, %s10663_s15 }
 0x28e   :  { %p10670_p10 = por %p10669_p9, %p10668_p8 }
 0x290   :  { %p10671_p11 = pnand %p10670_p10, %p10664_p7 }
 0x292   :  { %10674 = shalt.err (!%p10671_p11)
}
 0x293   :  { %s13698_s11 = sld [smem:[#allocation196_spill]]  ;;  %s11957_s20 = smov [#allocation84]  }
 0x294   :  { %759 = dma.hbm_to_vmem [thread:$0]  %s13697_s28, 16, %s757_s4, [#allocation82]  }
 0x295   :  { %s778_s14 = sshll.u32 %s11957_s20, 4  ;;  %s11958_s9 = smov [#allocation87]   ;;  %s779_s14 = int_to_ptr.vmem [resolvable:$true] %s778_s14 }
 0x296   :  { %s798_s22 = sshll.u32 %s11958_s9, 4  ;;  %s799_s22 = int_to_ptr.vmem [resolvable:$true] %s798_s22 }
 0x299   :  { %s10675_s8 = scalar_lea.hbm %s13698_s11, 16 }
 0x29a   :  { %p10676_p12 = scmp.ne.s32.totalorder %s13698_s11, %s10675_s8  ;;  %p10679_p13 = scmp.lt.u32.totalorder %s10675_s8, %s13698_s11 }
 0x29c   :  { %p10681_p0 = pnand %p10679_p13, %p10676_p12 }
 0x29e   :  { %10684 = shalt.err (!%p10681_p0)
}
 0x29f   :  { %s10685_s23 = scalar_lea.vmem %s779_s14, 16  ;;  %s10689_s3 = scalar_lea.vmem %s779_s14, 32 }
 0x2a0   :  { %p10686_p1 = scmp.ne.s32.totalorder %s779_s14, %s10685_s23  ;;  %p10690_p2 = scmp.lt.s32.totalorder %s779_s14, %s779_s14 }
 0x2a1   :  { %p10691_p3 = scmp.lt.s32.totalorder %s10689_s3, %s10685_s23 }
 0x2a3   :  { %p10692_p4 = por %p10691_p3, %p10690_p2 }
 0x2a5   :  { %p10693_p5 = pnand %p10692_p4, %p10686_p1 }
 0x2a7   :  { %10696 = shalt.err (!%p10693_p5)
}
 0x2a8   :  { %s13699_s13 = sld [smem:[#allocation198_spill]] }
 0x2a9   :  { %781 = dma.hbm_to_vmem [thread:$0]  %s13698_s11, 16, %s779_s14, [#allocation85]  }
 0x2ae   :  { %s10697_s0 = scalar_lea.hbm %s13699_s13, 16 }
 0x2af   :  { %p10698_p6 = scmp.ne.s32.totalorder %s13699_s13, %s10697_s0  ;;  %p10701_p7 = scmp.lt.u32.totalorder %s10697_s0, %s13699_s13 }
 0x2b1   :  { %p10703_p8 = pnand %p10701_p7, %p10698_p6 }
 0x2b3   :  { %10706 = shalt.err (!%p10703_p8)
}
 0x2b4   :  { %s10707_s10 = scalar_lea.vmem %s799_s22, 16  ;;  %s10711_s26 = scalar_lea.vmem %s799_s22, 32 }
 0x2b5   :  { %p10708_p9 = scmp.ne.s32.totalorder %s799_s22, %s10707_s10  ;;  %p10712_p10 = scmp.lt.s32.totalorder %s799_s22, %s799_s22 }
 0x2b6   :  { %p10713_p11 = scmp.lt.s32.totalorder %s10711_s26, %s10707_s10 }
 0x2b8   :  { %p10714_p12 = por %p10713_p11, %p10712_p10 }
 0x2ba   :  { %p10715_p13 = pnand %p10714_p12, %p10708_p9 }
 0x2bc   :  { %10718 = shalt.err (!%p10715_p13)
}
 0x2bd   :  { %s13700_s19 = sld [smem:[#allocation200_spill]]  ;;  %s11959_s25 = smov [#allocation90]  }
 0x2be   :  { %801 = dma.hbm_to_vmem [thread:$0]  %s13699_s13, 16, %s799_s22, [#allocation88]  }
 0x2bf   :  { %s818_s27 = sshll.u32 %s11959_s25, 4  ;;  %s11960_s21 = smov [#allocation93]   ;;  %s819_s27 = int_to_ptr.vmem [resolvable:$true] %s818_s27 }
 0x2c0   :  { %s838_s30 = sshll.u32 %s11960_s21, 4  ;;  %s839_s30 = int_to_ptr.vmem [resolvable:$true] %s838_s30 }
 0x2c3   :  { %s10719_s2 = scalar_lea.hbm %s13700_s19, 16 }
 0x2c4   :  { %p10720_p0 = scmp.ne.s32.totalorder %s13700_s19, %s10719_s2  ;;  %p10723_p1 = scmp.lt.u32.totalorder %s10719_s2, %s13700_s19 }
 0x2c6   :  { %p10725_p2 = pnand %p10723_p1, %p10720_p0 }
 0x2c8   :  { %10728 = shalt.err (!%p10725_p2)
}
 0x2c9   :  { %s10729_s4 = scalar_lea.vmem %s819_s27, 16  ;;  %s10733_s6 = scalar_lea.vmem %s819_s27, 32 }
 0x2ca   :  { %p10730_p3 = scmp.ne.s32.totalorder %s819_s27, %s10729_s4  ;;  %p10734_p4 = scmp.lt.s32.totalorder %s819_s27, %s819_s27 }
 0x2cb   :  { %p10735_p5 = scmp.lt.s32.totalorder %s10733_s6, %s10729_s4 }
 0x2cd   :  { %p10736_p6 = por %p10735_p5, %p10734_p4 }
 0x2cf   :  { %p10737_p7 = pnand %p10736_p6, %p10730_p3 }
 0x2d1   :  { %10740 = shalt.err (!%p10737_p7)
}
 0x2d2   :  { %s13701_s24 = sld [smem:[#allocation202_spill]] }
 0x2d3   :  { %821 = dma.hbm_to_vmem [thread:$0]  %s13700_s19, 16, %s819_s27, [#allocation91]  }
 0x2d8   :  { %s10741_s28 = scalar_lea.hbm %s13701_s24, 16 }
 0x2d9   :  { %p10742_p8 = scmp.ne.s32.totalorder %s13701_s24, %s10741_s28  ;;  %p10745_p9 = scmp.lt.u32.totalorder %s10741_s28, %s13701_s24 }
 0x2db   :  { %p10747_p10 = pnand %p10745_p9, %p10742_p8 }
 0x2dd   :  { %10750 = shalt.err (!%p10747_p10)
}
 0x2de   :  { %s10751_s29 = scalar_lea.vmem %s839_s30, 16  ;;  %s10755_s15 = scalar_lea.vmem %s839_s30, 32 }
 0x2df   :  { %p10752_p11 = scmp.ne.s32.totalorder %s839_s30, %s10751_s29  ;;  %p10756_p12 = scmp.lt.s32.totalorder %s839_s30, %s839_s30 }
 0x2e0   :  { %p10757_p13 = scmp.lt.s32.totalorder %s10755_s15, %s10751_s29 }
 0x2e2   :  { %p10758_p0 = por %p10757_p13, %p10756_p12 }
 0x2e4   :  { %p10759_p1 = pnand %p10758_p0, %p10752_p11 }
 0x2e6   :  { %10762 = shalt.err (!%p10759_p1)
}
 0x2e7   :  { %s13702_s16 = sld [smem:[#allocation204_spill]]  ;;  %s11961_s11 = smov [#allocation96]  }
 0x2e8   :  { %841 = dma.hbm_to_vmem [thread:$0]  %s13701_s24, 16, %s839_s30, [#allocation94]  }
 0x2e9   :  { %s859_s20 = sshll.u32 %s11961_s11, 4  ;;  %s11962_s14 = smov [#allocation99]   ;;  %s860_s20 = int_to_ptr.vmem [resolvable:$true] %s859_s20 }
 0x2ea   :  { %s884_s9 = sshll.u32 %s11962_s14, 4  ;;  %s885_s9 = int_to_ptr.vmem [resolvable:$true] %s884_s9 }
 0x2ed   :  { %s10763_s22 = scalar_lea.hbm %s13702_s16, 512 }
 0x2ee   :  { %p10764_p2 = scmp.ne.s32.totalorder %s13702_s16, %s10763_s22  ;;  %p10767_p3 = scmp.lt.u32.totalorder %s10763_s22, %s13702_s16 }
 0x2f0   :  { %p10769_p4 = pnand %p10767_p3, %p10764_p2 }
 0x2f2   :  { %10772 = shalt.err (!%p10769_p4)
}
 0x2f3   :  { %s10773_s8 = scalar_lea.vmem %s860_s20, 512  ;;  %p10778_p6 = scmp.lt.s32.totalorder %s860_s20, %s860_s20 }
 0x2f4   :  { %p10774_p5 = scmp.ne.s32.totalorder %s860_s20, %s10773_s8  ;;  %p10779_p7 = scmp.lt.s32.totalorder %s10773_s8, %s10773_s8 }
 0x2f6   :  { %p10780_p8 = por %p10779_p7, %p10778_p6 }
 0x2f8   :  { %p10781_p9 = pnand %p10780_p8, %p10774_p5 }
 0x2fa   :  { %10784 = shalt.err (!%p10781_p9)
}
 0x2fb   :  { %s13703_s23 = sld [smem:[#allocation206_spill]] }
 0x2fc   :  { %865 = dma.hbm_to_vmem [thread:$0]  %s13702_s16, 512, %s860_s20, [#allocation97], %s11931_s7, %s11931_s7, %s11932_s12  }
 0x301   :  { %s10785_s3 = scalar_lea.hbm %s13703_s23, 16 }
 0x302   :  { %p10786_p10 = scmp.ne.s32.totalorder %s13703_s23, %s10785_s3  ;;  %p10789_p11 = scmp.lt.u32.totalorder %s10785_s3, %s13703_s23 }
 0x304   :  { %p10791_p12 = pnand %p10789_p11, %p10786_p10 }
 0x306   :  { %10794 = shalt.err (!%p10791_p12)
}
 0x307   :  { %s10795_s13 = scalar_lea.vmem %s885_s9, 16  ;;  %s10799_s0 = scalar_lea.vmem %s885_s9, 32 }
 0x308   :  { %p10796_p13 = scmp.ne.s32.totalorder %s885_s9, %s10795_s13  ;;  %p10800_p0 = scmp.lt.s32.totalorder %s885_s9, %s885_s9 }
 0x309   :  { %p10801_p1 = scmp.lt.s32.totalorder %s10799_s0, %s10795_s13 }
 0x30b   :  { %p10802_p2 = por %p10801_p1, %p10800_p0 }
 0x30d   :  { %p10803_p3 = pnand %p10802_p2, %p10796_p13 }
 0x30f   :  { %10806 = shalt.err (!%p10803_p3)
}
 0x310   :  { %s13704_s10 = sld [smem:[#allocation208_spill]]  ;;  %s11963_s26 = smov [#allocation102]  }
 0x311   :  { %887 = dma.hbm_to_vmem [thread:$0]  %s13703_s23, 16, %s885_s9, [#allocation100]  }
 0x312   :  { %s906_s19 = sshll.u32 %s11963_s26, 4  ;;  %s11964_s25 = smov [#allocation105]   ;;  %s907_s19 = int_to_ptr.vmem [resolvable:$true] %s906_s19 }
 0x313   :  { %s928_s27 = sshll.u32 %s11964_s25, 4  ;;  %s929_s27 = int_to_ptr.vmem [resolvable:$true] %s928_s27 }
 0x316   :  { %s10807_s21 = scalar_lea.hbm %s13704_s10, 16 }
 0x317   :  { %p10808_p4 = scmp.ne.s32.totalorder %s13704_s10, %s10807_s21  ;;  %p10811_p5 = scmp.lt.u32.totalorder %s10807_s21, %s13704_s10 }
 0x319   :  { %p10813_p6 = pnand %p10811_p5, %p10808_p4 }
 0x31b   :  { %10816 = shalt.err (!%p10813_p6)
}
 0x31c   :  { %s10817_s30 = scalar_lea.vmem %s907_s19, 16  ;;  %s10821_s2 = scalar_lea.vmem %s907_s19, 32 }
 0x31d   :  { %p10818_p7 = scmp.ne.s32.totalorder %s907_s19, %s10817_s30  ;;  %p10822_p8 = scmp.lt.s32.totalorder %s907_s19, %s907_s19 }
 0x31e   :  { %p10823_p9 = scmp.lt.s32.totalorder %s10821_s2, %s10817_s30 }
 0x320   :  { %p10824_p10 = por %p10823_p9, %p10822_p8 }
 0x322   :  { %p10825_p11 = pnand %p10824_p10, %p10818_p7 }
 0x324   :  { %10828 = shalt.err (!%p10825_p11)
}
 0x325   :  { %s13705_s4 = sld [smem:[#allocation210_spill]] }
 0x326   :  { %909 = dma.hbm_to_vmem [thread:$0]  %s13704_s10, 16, %s907_s19, [#allocation103]  }
 0x32b   :  { %s10829_s6 = scalar_lea.hbm %s13705_s4, 16 }
 0x32c   :  { %p10830_p12 = scmp.ne.s32.totalorder %s13705_s4, %s10829_s6  ;;  %p10833_p13 = scmp.lt.u32.totalorder %s10829_s6, %s13705_s4 }
 0x32e   :  { %p10835_p0 = pnand %p10833_p13, %p10830_p12 }
 0x330   :  { %10838 = shalt.err (!%p10835_p0)
}
 0x331   :  { %s10839_s24 = scalar_lea.vmem %s929_s27, 16  ;;  %s10843_s28 = scalar_lea.vmem %s929_s27, 32 }
 0x332   :  { %p10840_p1 = scmp.ne.s32.totalorder %s929_s27, %s10839_s24  ;;  %p10844_p2 = scmp.lt.s32.totalorder %s929_s27, %s929_s27 }
 0x333   :  { %p10845_p3 = scmp.lt.s32.totalorder %s10843_s28, %s10839_s24 }
 0x335   :  { %p10846_p4 = por %p10845_p3, %p10844_p2 }
 0x337   :  { %p10847_p5 = pnand %p10846_p4, %p10840_p1 }
 0x339   :  { %10850 = shalt.err (!%p10847_p5)
}
 0x33a   :  { %s13706_s29 = sld [smem:[#allocation212_spill]]  ;;  %s11965_s15 = smov [#allocation108]  }
 0x33b   :  { %931 = dma.hbm_to_vmem [thread:$0]  %s13705_s4, 16, %s929_s27, [#allocation106]  }
 0x33c   :  { %s950_s16 = sshll.u32 %s11965_s15, 4  ;;  %s11966_s11 = smov [#allocation111]   ;;  %s951_s16 = int_to_ptr.vmem [resolvable:$true] %s950_s16 }
 0x33d   :  { %s972_s20 = sshll.u32 %s11966_s11, 4  ;;  %s973_s20 = int_to_ptr.vmem [resolvable:$true] %s972_s20 }
 0x340   :  { %s10851_s14 = scalar_lea.hbm %s13706_s29, 16 }
 0x341   :  { %p10852_p6 = scmp.ne.s32.totalorder %s13706_s29, %s10851_s14  ;;  %p10855_p7 = scmp.lt.u32.totalorder %s10851_s14, %s13706_s29 }
 0x343   :  { %p10857_p8 = pnand %p10855_p7, %p10852_p6 }
 0x345   :  { %10860 = shalt.err (!%p10857_p8)
}
 0x346   :  { %s10861_s9 = scalar_lea.vmem %s951_s16, 16  ;;  %s10865_s22 = scalar_lea.vmem %s951_s16, 32 }
 0x347   :  { %p10862_p9 = scmp.ne.s32.totalorder %s951_s16, %s10861_s9  ;;  %p10866_p10 = scmp.lt.s32.totalorder %s951_s16, %s951_s16 }
 0x348   :  { %p10867_p11 = scmp.lt.s32.totalorder %s10865_s22, %s10861_s9 }
 0x34a   :  { %p10868_p12 = por %p10867_p11, %p10866_p10 }
 0x34c   :  { %p10869_p13 = pnand %p10868_p12, %p10862_p9 }
 0x34e   :  { %10872 = shalt.err (!%p10869_p13)
}
 0x34f   :  { %s13707_s8 = sld [smem:[#allocation214_spill]] }
 0x350   :  { %953 = dma.hbm_to_vmem [thread:$0]  %s13706_s29, 16, %s951_s16, [#allocation109]  }
 0x355   :  { %s10873_s23 = scalar_lea.hbm %s13707_s8, 16 }
 0x356   :  { %p10874_p0 = scmp.ne.s32.totalorder %s13707_s8, %s10873_s23  ;;  %p10877_p1 = scmp.lt.u32.totalorder %s10873_s23, %s13707_s8 }
 0x358   :  { %p10879_p2 = pnand %p10877_p1, %p10874_p0 }
 0x35a   :  { %10882 = shalt.err (!%p10879_p2)
}
 0x35b   :  { %s10883_s3 = scalar_lea.vmem %s973_s20, 16  ;;  %s10887_s13 = scalar_lea.vmem %s973_s20, 32 }
 0x35c   :  { %p10884_p3 = scmp.ne.s32.totalorder %s973_s20, %s10883_s3  ;;  %p10888_p4 = scmp.lt.s32.totalorder %s973_s20, %s973_s20 }
 0x35d   :  { %p10889_p5 = scmp.lt.s32.totalorder %s10887_s13, %s10883_s3 }
 0x35f   :  { %p10890_p6 = por %p10889_p5, %p10888_p4 }
 0x361   :  { %p10891_p7 = pnand %p10890_p6, %p10884_p3 }
 0x363   :  { %10894 = shalt.err (!%p10891_p7)
}
 0x364   :  { %s13708_s0 = sld [smem:[#allocation157_spill]]  ;;  %s11967_s10 = smov [#allocation3]  }
 0x365   :  { %975 = dma.hbm_to_vmem [thread:$0]  %s13707_s8, 16, %s973_s20, [#allocation112]  }
 0x366   :  { %s205_s26 = sshll.u32 %s11967_s10, 4  ;;  %s11968_s19 = smov [#allocation8]   ;;  %s206_s26 = int_to_ptr.vmem [resolvable:$true] %s205_s26 }
 0x367   :  { %s232_s25 = sshll.u32 %s11968_s19, 4  ;;  %s233_s25 = int_to_ptr.vmem [resolvable:$true] %s232_s25 }
 0x36a   :  { %s10895_s27 = scalar_lea.hbm %s13708_s0, 256 }
 0x36b   :  { %p10896_p8 = scmp.ne.s32.totalorder %s13708_s0, %s10895_s27  ;;  %p10899_p9 = scmp.lt.u32.totalorder %s10895_s27, %s13708_s0 }
 0x36d   :  { %p10901_p10 = pnand %p10899_p9, %p10896_p8 }
 0x36f   :  { %10904 = shalt.err (!%p10901_p10)
}
 0x370   :  { %s10905_s21 = scalar_lea.vmem %s206_s26, 256  ;;  %p10910_p12 = scmp.lt.s32.totalorder %s206_s26, %s206_s26 }
 0x371   :  { %p10906_p11 = scmp.ne.s32.totalorder %s206_s26, %s10905_s21  ;;  %p10911_p13 = scmp.lt.s32.totalorder %s10905_s21, %s10905_s21 }
 0x373   :  { %p10912_p0 = por %p10911_p13, %p10910_p12 }
 0x375   :  { %p10913_p1 = pnand %p10912_p0, %p10906_p11 }
 0x377   :  { %10916 = shalt.err (!%p10913_p1)
}
 0x378   :  { %s13709_s30 = sld [smem:[#allocation158_spill]] }
 0x379   :  { %211 = dma.hbm_to_vmem [thread:$0]  %s13708_s0, 256, %s206_s26, [#allocation4], %s11931_s7, %s11931_s7, %s11932_s12  }
 0x37e   :  { %s10917_s2 = scalar_lea.hbm %s13709_s30, 16 }
 0x37f   :  { %p10918_p2 = scmp.ne.s32.totalorder %s13709_s30, %s10917_s2  ;;  %p10921_p3 = scmp.lt.u32.totalorder %s10917_s2, %s13709_s30 }
 0x381   :  { %p10923_p4 = pnand %p10921_p3, %p10918_p2 }
 0x383   :  { %10926 = shalt.err (!%p10923_p4)
}
 0x384   :  { %s10927_s4 = scalar_lea.vmem %s233_s25, 16  ;;  %s10931_s6 = scalar_lea.vmem %s233_s25, 32 }
 0x385   :  { %p10928_p5 = scmp.ne.s32.totalorder %s233_s25, %s10927_s4  ;;  %p10932_p6 = scmp.lt.s32.totalorder %s233_s25, %s233_s25 }
 0x386   :  { %p10933_p7 = scmp.lt.s32.totalorder %s10931_s6, %s10927_s4 }
 0x388   :  { %p10934_p8 = por %p10933_p7, %p10932_p6 }
 0x38a   :  { %p10935_p9 = pnand %p10934_p8, %p10928_p5 }
 0x38c   :  { %10938 = shalt.err (!%p10935_p9)
}
 0x38d   :  { %s13710_s24 = sld [smem:[#allocation159_spill]]  ;;  %s11969_s28 = smov [#allocation11]  }
 0x38e   :  { %235 = dma.hbm_to_vmem [thread:$0]  %s13709_s30, 16, %s233_s25, [#allocation7]  }
 0x38f   :  { %s251_s29 = sshll.u32 %s11969_s28, 4  ;;  %s11970_s15 = smov [#allocation14]   ;;  %s252_s29 = int_to_ptr.vmem [resolvable:$true] %s251_s29 }
 0x390   :  { %s275_s16 = sshll.u32 %s11970_s15, 4  ;;  %s12608_s16 = int_to_ptr.vmem [resolvable:$true] %s275_s16 }
 0x393   :  { %s10939_s11 = scalar_lea.hbm %s13710_s24, 512 }
 0x394   :  { %p10940_p10 = scmp.ne.s32.totalorder %s13710_s24, %s10939_s11  ;;  %p10943_p11 = scmp.lt.u32.totalorder %s10939_s11, %s13710_s24 }
 0x396   :  { %p10945_p12 = pnand %p10943_p11, %p10940_p10 }
 0x398   :  { %10948 = shalt.err (!%p10945_p12)
}
 0x399   :  { %s10949_s20 = scalar_lea.vmem %s252_s29, 512  ;;  %p10954_p0 = scmp.lt.s32.totalorder %s252_s29, %s252_s29 }
 0x39a   :  { %p10950_p13 = scmp.ne.s32.totalorder %s252_s29, %s10949_s20  ;;  %p10955_p1 = scmp.lt.s32.totalorder %s10949_s20, %s10949_s20 }
 0x39c   :  { %p10956_p2 = por %p10955_p1, %p10954_p0 }
 0x39e   :  { %p10957_p3 = pnand %p10956_p2, %p10950_p13 }
 0x3a0   :  { %10960 = shalt.err (!%p10957_p3)
}
 0x3a1   :  { %s13711_s14 = sld [smem:[#allocation160_spill]] }
 0x3a2   :  { %257 = dma.hbm_to_vmem [thread:$0]  %s13710_s24, 512, %s252_s29, [#allocation10], %s11931_s7, %s11931_s7, %s11932_s12  }
 0x3a7   :  { %s10961_s9 = scalar_lea.hbm %s13711_s14, 512 }
 0x3a8   :  { %p10962_p4 = scmp.ne.s32.totalorder %s13711_s14, %s10961_s9  ;;  %p10965_p5 = scmp.lt.u32.totalorder %s10961_s9, %s13711_s14 }
 0x3aa   :  { %p10967_p6 = pnand %p10965_p5, %p10962_p4 }
 0x3ac   :  { %10970 = shalt.err (!%p10967_p6)
}
 0x3ad   :  { %s10971_s22 = scalar_lea.vmem %s12608_s16, 512  ;;  %p10976_p8 = scmp.lt.s32.totalorder %s12608_s16, %s12608_s16 }
 0x3ae   :  { %p10972_p7 = scmp.ne.s32.totalorder %s12608_s16, %s10971_s22  ;;  %p10977_p9 = scmp.lt.s32.totalorder %s10971_s22, %s10971_s22 }
 0x3b0   :  { %p10978_p10 = por %p10977_p9, %p10976_p8 }
 0x3b2   :  { %p10979_p11 = pnand %p10978_p10, %p10972_p7 }
 0x3b4   :  { %10982 = shalt.err (!%p10979_p11)
}
 0x3b5   :  { %s13712_s8 = sld [smem:[#allocation161_spill]]  ;;  %s11971_s23 = smov [#allocation17]  }
 0x3b6   :  { %281 = dma.hbm_to_vmem [thread:$0]  %s13711_s14, 512, %s12608_s16, [#allocation13], %s11931_s7, %s11931_s7, %s11932_s12  }
 0x3b7   :  { %s297_s3 = sshll.u32 %s11971_s23, 4  ;;  %s11972_s13 = smov [#allocation20]   ;;  %s298_s3 = int_to_ptr.vmem [resolvable:$true] %s297_s3 }
 0x3b8   :  { %s320_s0 = sshll.u32 %s11972_s13, 4  ;;  %s321_s0 = int_to_ptr.vmem [resolvable:$true] %s320_s0 }
 0x3bb   :  { %s10983_s10 = scalar_lea.hbm %s13712_s8, 1024 }
 0x3bc   :  { %p10984_p12 = scmp.ne.s32.totalorder %s13712_s8, %s10983_s10  ;;  %p10987_p13 = scmp.lt.u32.totalorder %s10983_s10, %s13712_s8 }
 0x3be   :  { %p10989_p0 = pnand %p10987_p13, %p10984_p12 }
 0x3c0   :  { %10992 = shalt.err (!%p10989_p0)
}
 0x3c1   :  { %s10993_s26 = scalar_lea.vmem %s298_s3, 1024  ;;  %p10998_p2 = scmp.lt.s32.totalorder %s298_s3, %s298_s3 }
 0x3c2   :  { %p10994_p1 = scmp.ne.s32.totalorder %s298_s3, %s10993_s26  ;;  %p10999_p3 = scmp.lt.s32.totalorder %s10993_s26, %s10993_s26 }
 0x3c4   :  { %p11000_p4 = por %p10999_p3, %p10998_p2 }
 0x3c6   :  { %p11001_p5 = pnand %p11000_p4, %p10994_p1 }
 0x3c8   :  { %11004 = shalt.err (!%p11001_p5)
}
 0x3c9   :  { %s13713_s19 = sld [smem:[#allocation162_spill]] }
 0x3ca   :  { %303 = dma.hbm_to_vmem [thread:$0]  %s13712_s8, 1024, %s298_s3, [#allocation16], %s11931_s7, %s11931_s7, %s11932_s12  }
 0x3cf   :  { %s11005_s25 = scalar_lea.hbm %s13713_s19, 16 }
 0x3d0   :  { %p11006_p6 = scmp.ne.s32.totalorder %s13713_s19, %s11005_s25  ;;  %p11009_p7 = scmp.lt.u32.totalorder %s11005_s25, %s13713_s19 }
 0x3d2   :  { %p11011_p8 = pnand %p11009_p7, %p11006_p6 }
 0x3d4   :  { %11014 = shalt.err (!%p11011_p8)
}
 0x3d5   :  { %s11015_s27 = scalar_lea.vmem %s321_s0, 16  ;;  %s11019_s21 = scalar_lea.vmem %s321_s0, 32 }
 0x3d6   :  { %p11016_p9 = scmp.ne.s32.totalorder %s321_s0, %s11015_s27  ;;  %p11020_p10 = scmp.lt.s32.totalorder %s321_s0, %s321_s0 }
 0x3d7   :  { %p11021_p11 = scmp.lt.s32.totalorder %s11019_s21, %s11015_s27 }
 0x3d9   :  { %p11022_p12 = por %p11021_p11, %p11020_p10 }
 0x3db   :  { %p11023_p13 = pnand %p11022_p12, %p11016_p9 }
 0x3dd   :  { %11026 = shalt.err (!%p11023_p13)
}
 0x3de   :  { %s13714_s30 = sld [smem:[#allocation163_spill]]  ;;  %s11973_s2 = smov [#allocation23]  }
 0x3df   :  { %323 = dma.hbm_to_vmem [thread:$0]  %s13713_s19, 16, %s321_s0, [#allocation19]  }
 0x3e0   :  { %s340_s4 = sshll.u32 %s11973_s2, 4  ;;  %s11974_s6 = smov [#allocation26]   ;;  %s341_s4 = int_to_ptr.vmem [resolvable:$true] %s340_s4 }
 0x3e1   :  { %s360_s24 = sshll.u32 %s11974_s6, 4  ;;  %s361_s24 = int_to_ptr.vmem [resolvable:$true] %s360_s24 }
 0x3e4   :  { %s11027_s28 = scalar_lea.hbm %s13714_s30, 16 }
 0x3e5   :  { %p11028_p0 = scmp.ne.s32.totalorder %s13714_s30, %s11027_s28  ;;  %p11031_p1 = scmp.lt.u32.totalorder %s11027_s28, %s13714_s30 }
 0x3e7   :  { %p11033_p2 = pnand %p11031_p1, %p11028_p0 }
 0x3e9   :  { %11036 = shalt.err (!%p11033_p2)
}
 0x3ea   :  { %s11037_s29 = scalar_lea.vmem %s341_s4, 16  ;;  %s11041_s15 = scalar_lea.vmem %s341_s4, 32 }
 0x3eb   :  { %p11038_p3 = scmp.ne.s32.totalorder %s341_s4, %s11037_s29  ;;  %p11042_p4 = scmp.lt.s32.totalorder %s341_s4, %s341_s4 }
 0x3ec   :  { %p11043_p5 = scmp.lt.s32.totalorder %s11041_s15, %s11037_s29 }
 0x3ee   :  { %p11044_p6 = por %p11043_p5, %p11042_p4 }
 0x3f0   :  { %p11045_p7 = pnand %p11044_p6, %p11038_p3 }
 0x3f2   :  { %11048 = shalt.err (!%p11045_p7)
}
 0x3f3   :  { %s13715_s16 = sld [smem:[#allocation164_spill]] }
 0x3f4   :  { %343 = dma.hbm_to_vmem [thread:$0]  %s13714_s30, 16, %s341_s4, [#allocation22]  }
 0x3f9   :  { %s11049_s11 = scalar_lea.hbm %s13715_s16, 16 }
 0x3fa   :  { %p11050_p8 = scmp.ne.s32.totalorder %s13715_s16, %s11049_s11  ;;  %p11053_p9 = scmp.lt.u32.totalorder %s11049_s11, %s13715_s16 }
 0x3fc   :  { %p11055_p10 = pnand %p11053_p9, %p11050_p8 }
 0x3fe   :  { %11058 = shalt.err (!%p11055_p10)
}
 0x3ff   :  { %s11059_s20 = scalar_lea.vmem %s361_s24, 16  ;;  %s11063_s14 = scalar_lea.vmem %s361_s24, 32 }
 0x400   :  { %p11060_p11 = scmp.ne.s32.totalorder %s361_s24, %s11059_s20  ;;  %p11064_p12 = scmp.lt.s32.totalorder %s361_s24, %s361_s24 }
 0x401   :  { %p11065_p13 = scmp.lt.s32.totalorder %s11063_s14, %s11059_s20 }
 0x403   :  { %p11066_p0 = por %p11065_p13, %p11064_p12 }
 0x405   :  { %p11067_p1 = pnand %p11066_p0, %p11060_p11 }
 0x407   :  { %11070 = shalt.err (!%p11067_p1)
}
 0x408   :  { %s13716_s9 = sld [smem:[#allocation165_spill]]  ;;  %s11975_s22 = smov [#allocation29]  }
 0x409   :  { %363 = dma.hbm_to_vmem [thread:$0]  %s13715_s16, 16, %s361_s24, [#allocation25]  }
 0x40a   :  { %s380_s8 = sshll.u32 %s11975_s22, 4  ;;  %s11976_s23 = smov [#allocation32]   ;;  %s381_s8 = int_to_ptr.vmem [resolvable:$true] %s380_s8 }
 0x40b   :  { %s399_s3 = sshll.u32 %s11976_s23, 4  ;;  %s12648_s3 = int_to_ptr.vmem [resolvable:$true] %s399_s3 }
 0x40e   :  { %s11071_s13 = scalar_lea.hbm %s13716_s9, 16 }
 0x40f   :  { %p11072_p2 = scmp.ne.s32.totalorder %s13716_s9, %s11071_s13  ;;  %p11075_p3 = scmp.lt.u32.totalorder %s11071_s13, %s13716_s9 }
 0x411   :  { %p11077_p4 = pnand %p11075_p3, %p11072_p2 }
 0x413   :  { %11080 = shalt.err (!%p11077_p4)
}
 0x414   :  { %s11081_s0 = scalar_lea.vmem %s381_s8, 16  ;;  %s11085_s10 = scalar_lea.vmem %s381_s8, 32 }
 0x415   :  { %p11082_p5 = scmp.ne.s32.totalorder %s381_s8, %s11081_s0  ;;  %p11086_p6 = scmp.lt.s32.totalorder %s381_s8, %s381_s8 }
 0x416   :  { %p11087_p7 = scmp.lt.s32.totalorder %s11085_s10, %s11081_s0 }
 0x418   :  { %p11088_p8 = por %p11087_p7, %p11086_p6 }
 0x41a   :  { %p11089_p9 = pnand %p11088_p8, %p11082_p5 }
 0x41c   :  { %11092 = shalt.err (!%p11089_p9)
}
 0x41d   :  { %s13717_s26 = sld [smem:[#allocation166_spill]] }
 0x41e   :  { %383 = dma.hbm_to_vmem [thread:$0]  %s13716_s9, 16, %s381_s8, [#allocation28]  }
 0x423   :  { %s11093_s19 = scalar_lea.hbm %s13717_s26, 512 }
 0x424   :  { %p11094_p10 = scmp.ne.s32.totalorder %s13717_s26, %s11093_s19  ;;  %p11097_p11 = scmp.lt.u32.totalorder %s11093_s19, %s13717_s26 }
 0x426   :  { %p11099_p12 = pnand %p11097_p11, %p11094_p10 }
 0x428   :  { %11102 = shalt.err (!%p11099_p12)
}
 0x429   :  { %s11103_s25 = scalar_lea.vmem %s12648_s3, 512  ;;  %p11108_p0 = scmp.lt.s32.totalorder %s12648_s3, %s12648_s3 }
 0x42a   :  { %p11104_p13 = scmp.ne.s32.totalorder %s12648_s3, %s11103_s25  ;;  %p11109_p1 = scmp.lt.s32.totalorder %s11103_s25, %s11103_s25 }
 0x42c   :  { %p11110_p2 = por %p11109_p1, %p11108_p0 }
 0x42e   :  { %p11111_p3 = pnand %p11110_p2, %p11104_p13 }
 0x430   :  { %11114 = shalt.err (!%p11111_p3)
}
 0x431   :  { %s13718_s27 = sld [smem:[#allocation167_spill]]  ;;  %s11977_s21 = smov [#allocation35]  }
 0x432   :  { %405 = dma.hbm_to_vmem [thread:$0]  %s13717_s26, 512, %s12648_s3, [#allocation31], %s11931_s7, %s11931_s7, %s11932_s12  }
 0x433   :  { %s424_s30 = sshll.u32 %s11977_s21, 4  ;;  %s11978_s2 = smov [#allocation38]   ;;  %s425_s30 = int_to_ptr.vmem [resolvable:$true] %s424_s30 }
 0x434   :  { %s443_s4 = sshll.u32 %s11978_s2, 4  ;;  %s12666_s4 = int_to_ptr.vmem [resolvable:$true] %s443_s4 }
 0x437   :  { %s11115_s6 = scalar_lea.hbm %s13718_s27, 16 }
 0x438   :  { %p11116_p4 = scmp.ne.s32.totalorder %s13718_s27, %s11115_s6  ;;  %p11119_p5 = scmp.lt.u32.totalorder %s11115_s6, %s13718_s27 }
 0x43a   :  { %p11121_p6 = pnand %p11119_p5, %p11116_p4 }
 0x43c   :  { %11124 = shalt.err (!%p11121_p6)
}
 0x43d   :  { %s11125_s24 = scalar_lea.vmem %s425_s30, 16  ;;  %s11129_s28 = scalar_lea.vmem %s425_s30, 32 }
 0x43e   :  { %p11126_p7 = scmp.ne.s32.totalorder %s425_s30, %s11125_s24  ;;  %p11130_p8 = scmp.lt.s32.totalorder %s425_s30, %s425_s30 }
 0x43f   :  { %p11131_p9 = scmp.lt.s32.totalorder %s11129_s28, %s11125_s24 }
 0x441   :  { %p11132_p10 = por %p11131_p9, %p11130_p8 }
 0x443   :  { %p11133_p11 = pnand %p11132_p10, %p11126_p7 }
 0x445   :  { %11136 = shalt.err (!%p11133_p11)
}
 0x446   :  { %s13719_s29 = sld [smem:[#allocation168_spill]] }
 0x447   :  { %427 = dma.hbm_to_vmem [thread:$0]  %s13718_s27, 16, %s425_s30, [#allocation34]  }
 0x44c   :  { %s11137_s15 = scalar_lea.hbm %s13719_s29, 512 }
 0x44d   :  { %p11138_p12 = scmp.ne.s32.totalorder %s13719_s29, %s11137_s15  ;;  %p11141_p13 = scmp.lt.u32.totalorder %s11137_s15, %s13719_s29 }
 0x44f   :  { %p11143_p0 = pnand %p11141_p13, %p11138_p12 }
 0x451   :  { %11146 = shalt.err (!%p11143_p0)
}
 0x452   :  { %s11147_s16 = scalar_lea.vmem %s12666_s4, 512  ;;  %p11152_p2 = scmp.lt.s32.totalorder %s12666_s4, %s12666_s4 }
 0x453   :  { %p11148_p1 = scmp.ne.s32.totalorder %s12666_s4, %s11147_s16  ;;  %p11153_p3 = scmp.lt.s32.totalorder %s11147_s16, %s11147_s16 }
 0x455   :  { %p11154_p4 = por %p11153_p3, %p11152_p2 }
 0x457   :  { %p11155_p5 = pnand %p11154_p4, %p11148_p1 }
 0x459   :  { %11158 = shalt.err (!%p11155_p5)
}
 0x45a   :  { %s13720_s11 = sld [smem:[#allocation169_spill]]  ;;  %s11979_s20 = smov [#allocation41]  }
 0x45b   :  { %449 = dma.hbm_to_vmem [thread:$0]  %s13719_s29, 512, %s12666_s4, [#allocation37], %s11931_s7, %s11931_s7, %s11932_s12  }
 0x45c   :  { %s467_s14 = sshll.u32 %s11979_s20, 4  ;;  %s11980_s9 = smov [#allocation44]   ;;  %s468_s14 = int_to_ptr.vmem [resolvable:$true] %s467_s14 }
 0x45d   :  { %s489_s22 = sshll.u32 %s11980_s9, 4  ;;  %s12684_s22 = int_to_ptr.vmem [resolvable:$true] %s489_s22 }
 0x460   :  { %s11159_s8 = scalar_lea.hbm %s13720_s11, 512 }
 0x461   :  { %p11160_p6 = scmp.ne.s32.totalorder %s13720_s11, %s11159_s8  ;;  %p11163_p7 = scmp.lt.u32.totalorder %s11159_s8, %s13720_s11 }
 0x463   :  { %p11165_p8 = pnand %p11163_p7, %p11160_p6 }
 0x465   :  { %11168 = shalt.err (!%p11165_p8)
}
 0x466   :  { %s11169_s23 = scalar_lea.vmem %s468_s14, 512  ;;  %p11174_p10 = scmp.lt.s32.totalorder %s468_s14, %s468_s14 }
 0x467   :  { %p11170_p9 = scmp.ne.s32.totalorder %s468_s14, %s11169_s23  ;;  %p11175_p11 = scmp.lt.s32.totalorder %s11169_s23, %s11169_s23 }
 0x469   :  { %p11176_p12 = por %p11175_p11, %p11174_p10 }
 0x46b   :  { %p11177_p13 = pnand %p11176_p12, %p11170_p9 }
 0x46d   :  { %11180 = shalt.err (!%p11177_p13)
}
 0x46e   :  { %s13721_s3 = sld [smem:[#allocation170_spill]] }
 0x46f   :  { %473 = dma.hbm_to_vmem [thread:$0]  %s13720_s11, 512, %s468_s14, [#allocation40], %s11931_s7, %s11931_s7, %s11932_s12  }
 0x474   :  { %s11181_s13 = scalar_lea.hbm %s13721_s3, 1024 }
 0x475   :  { %p11182_p0 = scmp.ne.s32.totalorder %s13721_s3, %s11181_s13  ;;  %p11185_p1 = scmp.lt.u32.totalorder %s11181_s13, %s13721_s3 }
 0x477   :  { %p11187_p2 = pnand %p11185_p1, %p11182_p0 }
 0x479   :  { %11190 = shalt.err (!%p11187_p2)
}
 0x47a   :  { %s11191_s0 = scalar_lea.vmem %s12684_s22, 1024  ;;  %p11196_p4 = scmp.lt.s32.totalorder %s12684_s22, %s12684_s22 }
 0x47b   :  { %p11192_p3 = scmp.ne.s32.totalorder %s12684_s22, %s11191_s0  ;;  %p11197_p5 = scmp.lt.s32.totalorder %s11191_s0, %s11191_s0 }
 0x47d   :  { %p11198_p6 = por %p11197_p5, %p11196_p4 }
 0x47f   :  { %p11199_p7 = pnand %p11198_p6, %p11192_p3 }
 0x481   :  { %11202 = shalt.err (!%p11199_p7)
}
 0x482   :  { %s13722_s10 = sld [smem:[#allocation171_spill]]  ;;  %s11981_s26 = smov [#allocation47]  }
 0x483   :  { %495 = dma.hbm_to_vmem [thread:$0]  %s13721_s3, 1024, %s12684_s22, [#allocation43], %s11931_s7, %s11931_s7, %s11932_s12  }
 0x484   :  { %s512_s19 = sshll.u32 %s11981_s26, 4  ;;  %s11982_s25 = smov [#allocation50]   ;;  %s513_s19 = int_to_ptr.vmem [resolvable:$true] %s512_s19 }
 0x485   :  { %s532_s27 = sshll.u32 %s11982_s25, 4  ;;  %s533_s27 = int_to_ptr.vmem [resolvable:$true] %s532_s27 }
 0x488   :  { %s11203_s21 = scalar_lea.hbm %s13722_s10, 16 }
 0x489   :  { %p11204_p8 = scmp.ne.s32.totalorder %s13722_s10, %s11203_s21  ;;  %p11207_p9 = scmp.lt.u32.totalorder %s11203_s21, %s13722_s10 }
 0x48b   :  { %p11209_p10 = pnand %p11207_p9, %p11204_p8 }
 0x48d   :  { %11212 = shalt.err (!%p11209_p10)
}
 0x48e   :  { %s11213_s30 = scalar_lea.vmem %s513_s19, 16  ;;  %s11217_s2 = scalar_lea.vmem %s513_s19, 32 }
 0x48f   :  { %p11214_p11 = scmp.ne.s32.totalorder %s513_s19, %s11213_s30  ;;  %p11218_p12 = scmp.lt.s32.totalorder %s513_s19, %s513_s19 }
 0x490   :  { %p11219_p13 = scmp.lt.s32.totalorder %s11217_s2, %s11213_s30 }
 0x492   :  { %p11220_p0 = por %p11219_p13, %p11218_p12 }
 0x494   :  { %p11221_p1 = pnand %p11220_p0, %p11214_p11 }
 0x496   :  { %11224 = shalt.err (!%p11221_p1)
}
 0x497   :  { %s13723_s4 = sld [smem:[#allocation173_spill]] }
 0x498   :  { %515 = dma.hbm_to_vmem [thread:$0]  %s13722_s10, 16, %s513_s19, [#allocation46]  }
 0x49d   :  { %s11225_s6 = scalar_lea.hbm %s13723_s4, 16 }
 0x49e   :  { %p11226_p2 = scmp.ne.s32.totalorder %s13723_s4, %s11225_s6  ;;  %p11229_p3 = scmp.lt.u32.totalorder %s11225_s6, %s13723_s4 }
 0x4a0   :  { %p11231_p4 = pnand %p11229_p3, %p11226_p2 }
 0x4a2   :  { %11234 = shalt.err (!%p11231_p4)
}
 0x4a3   :  { %s11235_s24 = scalar_lea.vmem %s533_s27, 16  ;;  %s11239_s28 = scalar_lea.vmem %s533_s27, 32 }
 0x4a4   :  { %p11236_p5 = scmp.ne.s32.totalorder %s533_s27, %s11235_s24  ;;  %p11240_p6 = scmp.lt.s32.totalorder %s533_s27, %s533_s27 }
 0x4a5   :  { %p11241_p7 = scmp.lt.s32.totalorder %s11239_s28, %s11235_s24 }
 0x4a7   :  { %p11242_p8 = por %p11241_p7, %p11240_p6 }
 0x4a9   :  { %p11243_p9 = pnand %p11242_p8, %p11236_p5 }
 0x4ab   :  { %11246 = shalt.err (!%p11243_p9)
}
 0x4ac   :  { %s13724_s29 = sld [smem:[#allocation175_spill]]  ;;  %s11983_s15 = smov [#allocation53]  }
 0x4ad   :  { %535 = dma.hbm_to_vmem [thread:$0]  %s13723_s4, 16, %s533_s27, [#allocation49]  }
 0x4ae   :  { %s552_s16 = sshll.u32 %s11983_s15, 4  ;;  %s11984_s11 = smov [#allocation56]   ;;  %s553_s16 = int_to_ptr.vmem [resolvable:$true] %s552_s16 }
 0x4af   :  { %s572_s20 = sshll.u32 %s11984_s11, 4  ;;  %s573_s20 = int_to_ptr.vmem [resolvable:$true] %s572_s20 }
 0x4b2   :  { %s11247_s14 = scalar_lea.hbm %s13724_s29, 16 }
 0x4b3   :  { %p11248_p10 = scmp.ne.s32.totalorder %s13724_s29, %s11247_s14  ;;  %p11251_p11 = scmp.lt.u32.totalorder %s11247_s14, %s13724_s29 }
 0x4b5   :  { %p11253_p12 = pnand %p11251_p11, %p11248_p10 }
 0x4b7   :  { %11256 = shalt.err (!%p11253_p12)
}
 0x4b8   :  { %s11257_s9 = scalar_lea.vmem %s553_s16, 16  ;;  %s11261_s22 = scalar_lea.vmem %s553_s16, 32 }
 0x4b9   :  { %p11258_p13 = scmp.ne.s32.totalorder %s553_s16, %s11257_s9  ;;  %p11262_p0 = scmp.lt.s32.totalorder %s553_s16, %s553_s16 }
 0x4ba   :  { %p11263_p1 = scmp.lt.s32.totalorder %s11261_s22, %s11257_s9 }
 0x4bc   :  { %p11264_p2 = por %p11263_p1, %p11262_p0 }
 0x4be   :  { %p11265_p3 = pnand %p11264_p2, %p11258_p13 }
 0x4c0   :  { %11268 = shalt.err (!%p11265_p3)
}
 0x4c1   :  { %s13725_s8 = sld [smem:[#allocation177_spill]] }
 0x4c2   :  { %555 = dma.hbm_to_vmem [thread:$0]  %s13724_s29, 16, %s553_s16, [#allocation52]  }
 0x4c7   :  { %s11269_s23 = scalar_lea.hbm %s13725_s8, 16 }
 0x4c8   :  { %p11270_p4 = scmp.ne.s32.totalorder %s13725_s8, %s11269_s23  ;;  %p11273_p5 = scmp.lt.u32.totalorder %s11269_s23, %s13725_s8 }
 0x4ca   :  { %p11275_p6 = pnand %p11273_p5, %p11270_p4 }
 0x4cc   :  { %11278 = shalt.err (!%p11275_p6)
}
 0x4cd   :  { %s11279_s3 = scalar_lea.vmem %s573_s20, 16  ;;  %s11283_s13 = scalar_lea.vmem %s573_s20, 32 }
 0x4ce   :  { %p11280_p7 = scmp.ne.s32.totalorder %s573_s20, %s11279_s3  ;;  %p11284_p8 = scmp.lt.s32.totalorder %s573_s20, %s573_s20 }
 0x4cf   :  { %p11285_p9 = scmp.lt.s32.totalorder %s11283_s13, %s11279_s3 }
 0x4d1   :  { %p11286_p10 = por %p11285_p9, %p11284_p8 }
 0x4d3   :  { %p11287_p11 = pnand %p11286_p10, %p11280_p7 }
 0x4d5   :  { %11290 = shalt.err (!%p11287_p11)
}
 0x4d6   :  { %s13726_s0 = sld [smem:[#allocation179_spill]]  ;;  %s11985_s10 = smov [#allocation59]  }
 0x4d7   :  { %575 = dma.hbm_to_vmem [thread:$0]  %s13725_s8, 16, %s573_s20, [#allocation55]  }
 0x4d8   :  { %s591_s26 = sshll.u32 %s11985_s10, 4  ;;  %s11986_s19 = smov [#allocation62]   ;;  %s592_s26 = int_to_ptr.vmem [resolvable:$true] %s591_s26 }
 0x4d9   :  { %s615_s25 = sshll.u32 %s11986_s19, 4  ;;  %s12721_s25 = int_to_ptr.vmem [resolvable:$true] %s615_s25 }
 0x4dc   :  { %s11291_s27 = scalar_lea.hbm %s13726_s0, 512 }
 0x4dd   :  { %p11292_p12 = scmp.ne.s32.totalorder %s13726_s0, %s11291_s27  ;;  %p11295_p13 = scmp.lt.u32.totalorder %s11291_s27, %s13726_s0 }
 0x4df   :  { %p11297_p0 = pnand %p11295_p13, %p11292_p12 }
 0x4e1   :  { %11300 = shalt.err (!%p11297_p0)
}
 0x4e2   :  { %s11301_s21 = scalar_lea.vmem %s592_s26, 512  ;;  %p11306_p2 = scmp.lt.s32.totalorder %s592_s26, %s592_s26 }
 0x4e3   :  { %p11302_p1 = scmp.ne.s32.totalorder %s592_s26, %s11301_s21  ;;  %p11307_p3 = scmp.lt.s32.totalorder %s11301_s21, %s11301_s21 }
 0x4e5   :  { %p11308_p4 = por %p11307_p3, %p11306_p2 }
 0x4e7   :  { %p11309_p5 = pnand %p11308_p4, %p11302_p1 }
 0x4e9   :  { %11312 = shalt.err (!%p11309_p5)
}
 0x4ea   :  { %s13727_s30 = sld [smem:[#allocation181_spill]] }
 0x4eb   :  { %597 = dma.hbm_to_vmem [thread:$0]  %s13726_s0, 512, %s592_s26, [#allocation58], %s11931_s7, %s11931_s7, %s11932_s12  }
 0x4f0   :  { %s11313_s2 = scalar_lea.hbm %s13727_s30, 512 }
 0x4f1   :  { %p11314_p6 = scmp.ne.s32.totalorder %s13727_s30, %s11313_s2  ;;  %p11317_p7 = scmp.lt.u32.totalorder %s11313_s2, %s13727_s30 }
 0x4f3   :  { %p11319_p8 = pnand %p11317_p7, %p11314_p6 }
 0x4f5   :  { %11322 = shalt.err (!%p11319_p8)
}
 0x4f6   :  { %s11323_s4 = scalar_lea.vmem %s12721_s25, 512  ;;  %p11328_p10 = scmp.lt.s32.totalorder %s12721_s25, %s12721_s25 }
 0x4f7   :  { %p11324_p9 = scmp.ne.s32.totalorder %s12721_s25, %s11323_s4  ;;  %p11329_p11 = scmp.lt.s32.totalorder %s11323_s4, %s11323_s4 }
 0x4f9   :  { %p11330_p12 = por %p11329_p11, %p11328_p10 }
 0x4fb   :  { %p11331_p13 = pnand %p11330_p12, %p11324_p9 }
 0x4fd   :  { %11334 = shalt.err (!%p11331_p13)
}
 0x4fe   :  { %s13728_s6 = sld [smem:[#allocation183_spill]]  ;;  %s11987_s24 = smov [#allocation65]  }
 0x4ff   :  { %621 = dma.hbm_to_vmem [thread:$0]  %s13727_s30, 512, %s12721_s25, [#allocation61], %s11931_s7, %s11931_s7, %s11932_s12  }
 0x500   :  { %s637_s28 = sshll.u32 %s11987_s24, 4  ;;  %s11988_s29 = smov [#allocation68]   ;;  %s638_s28 = int_to_ptr.vmem [resolvable:$true] %s637_s28 }
 0x501   :  { %s660_s15 = sshll.u32 %s11988_s29, 4  ;;  %s661_s15 = int_to_ptr.vmem [resolvable:$true] %s660_s15 }
 0x504   :  { %s11335_s16 = scalar_lea.hbm %s13728_s6, 1024 }
 0x505   :  { %p11336_p0 = scmp.ne.s32.totalorder %s13728_s6, %s11335_s16  ;;  %p11339_p1 = scmp.lt.u32.totalorder %s11335_s16, %s13728_s6 }
 0x507   :  { %p11341_p2 = pnand %p11339_p1, %p11336_p0 }
 0x509   :  { %11344 = shalt.err (!%p11341_p2)
}
 0x50a   :  { %s11345_s11 = scalar_lea.vmem %s638_s28, 1024  ;;  %p11350_p4 = scmp.lt.s32.totalorder %s638_s28, %s638_s28 }
 0x50b   :  { %p11346_p3 = scmp.ne.s32.totalorder %s638_s28, %s11345_s11  ;;  %p11351_p5 = scmp.lt.s32.totalorder %s11345_s11, %s11345_s11 }
 0x50d   :  { %p11352_p6 = por %p11351_p5, %p11350_p4 }
 0x50f   :  { %p11353_p7 = pnand %p11352_p6, %p11346_p3 }
 0x511   :  { %11356 = shalt.err (!%p11353_p7)
}
 0x512   :  { %s13729_s20 = sld [smem:[#allocation185_spill]] }
 0x513   :  { %643 = dma.hbm_to_vmem [thread:$0]  %s13728_s6, 1024, %s638_s28, [#allocation64], %s11931_s7, %s11931_s7, %s11932_s12  }
 0x518   :  { %s11357_s14 = scalar_lea.hbm %s13729_s20, 16 }
 0x519   :  { %p11358_p8 = scmp.ne.s32.totalorder %s13729_s20, %s11357_s14  ;;  %p11361_p9 = scmp.lt.u32.totalorder %s11357_s14, %s13729_s20 }
 0x51b   :  { %p11363_p10 = pnand %p11361_p9, %p11358_p8 }
 0x51d   :  { %11366 = shalt.err (!%p11363_p10)
}
 0x51e   :  { %s11367_s9 = scalar_lea.vmem %s661_s15, 16  ;;  %s11371_s22 = scalar_lea.vmem %s661_s15, 32 }
 0x51f   :  { %p11368_p11 = scmp.ne.s32.totalorder %s661_s15, %s11367_s9  ;;  %p11372_p12 = scmp.lt.s32.totalorder %s661_s15, %s661_s15 }
 0x520   :  { %p11373_p13 = scmp.lt.s32.totalorder %s11371_s22, %s11367_s9 }
 0x522   :  { %p11374_p0 = por %p11373_p13, %p11372_p12 }
 0x524   :  { %p11375_p1 = pnand %p11374_p0, %p11368_p11 }
 0x526   :  { %11378 = shalt.err (!%p11375_p1)
}
 0x527   :  { %s13730_s8 = sld [smem:[#allocation187_spill]]  ;;  %s11989_s23 = smov [#allocation71]  }
 0x528   :  { %663 = dma.hbm_to_vmem [thread:$0]  %s13729_s20, 16, %s661_s15, [#allocation67]  }
 0x529   :  { %s680_s3 = sshll.u32 %s11989_s23, 4  ;;  %s11990_s13 = smov [#allocation74]   ;;  %s681_s3 = int_to_ptr.vmem [resolvable:$true] %s680_s3 }
 0x52a   :  { %s700_s0 = sshll.u32 %s11990_s13, 4  ;;  %s701_s0 = int_to_ptr.vmem [resolvable:$true] %s700_s0 }
 0x52d   :  { %s11379_s10 = scalar_lea.hbm %s13730_s8, 16 }
 0x52e   :  { %p11380_p2 = scmp.ne.s32.totalorder %s13730_s8, %s11379_s10  ;;  %p11383_p3 = scmp.lt.u32.totalorder %s11379_s10, %s13730_s8 }
 0x530   :  { %p11385_p4 = pnand %p11383_p3, %p11380_p2 }
 0x532   :  { %11388 = shalt.err (!%p11385_p4)
}
 0x533   :  { %s11389_s26 = scalar_lea.vmem %s681_s3, 16  ;;  %s11393_s19 = scalar_lea.vmem %s681_s3, 32 }
 0x534   :  { %p11390_p5 = scmp.ne.s32.totalorder %s681_s3, %s11389_s26  ;;  %p11394_p6 = scmp.lt.s32.totalorder %s681_s3, %s681_s3 }
 0x535   :  { %p11395_p7 = scmp.lt.s32.totalorder %s11393_s19, %s11389_s26 }
 0x537   :  { %p11396_p8 = por %p11395_p7, %p11394_p6 }
 0x539   :  { %p11397_p9 = pnand %p11396_p8, %p11390_p5 }
 0x53b   :  { %11400 = shalt.err (!%p11397_p9)
}
 0x53c   :  { %s13731_s25 = sld [smem:[#allocation189_spill]] }
 0x53d   :  { %683 = dma.hbm_to_vmem [thread:$0]  %s13730_s8, 16, %s681_s3, [#allocation70]  }
 0x542   :  { %s11401_s27 = scalar_lea.hbm %s13731_s25, 16 }
 0x543   :  { %p11402_p10 = scmp.ne.s32.totalorder %s13731_s25, %s11401_s27  ;;  %p11405_p11 = scmp.lt.u32.totalorder %s11401_s27, %s13731_s25 }
 0x545   :  { %p11407_p12 = pnand %p11405_p11, %p11402_p10 }
 0x547   :  { %11410 = shalt.err (!%p11407_p12)
}
 0x548   :  { %s11411_s21 = scalar_lea.vmem %s701_s0, 16  ;;  %s11415_s30 = scalar_lea.vmem %s701_s0, 32 }
 0x549   :  { %p11412_p13 = scmp.ne.s32.totalorder %s701_s0, %s11411_s21  ;;  %p11416_p0 = scmp.lt.s32.totalorder %s701_s0, %s701_s0 }
 0x54a   :  { %p11417_p1 = scmp.lt.s32.totalorder %s11415_s30, %s11411_s21 }
 0x54c   :  { %p11418_p2 = por %p11417_p1, %p11416_p0 }
 0x54e   :  { %p11419_p3 = pnand %p11418_p2, %p11412_p13 }
 0x550   :  { %11422 = shalt.err (!%p11419_p3)
}
 0x551   :  { %s13732_s2 = sld [smem:[#allocation191_spill]]  ;;  %s11991_s4 = smov [#allocation77]  }
 0x552   :  { %703 = dma.hbm_to_vmem [thread:$0]  %s13731_s25, 16, %s701_s0, [#allocation73]  }
 0x553   :  { %s719_s6 = sshll.u32 %s11991_s4, 4  ;;  %s11992_s24 = smov [#allocation80]   ;;  %s720_s6 = int_to_ptr.vmem [resolvable:$true] %s719_s6 }
 0x554   :  { %s743_s28 = sshll.u32 %s11992_s24, 4  ;;  %s12761_s28 = int_to_ptr.vmem [resolvable:$true] %s743_s28 }
 0x557   :  { %s11423_s29 = scalar_lea.hbm %s13732_s2, 512 }
 0x558   :  { %p11424_p4 = scmp.ne.s32.totalorder %s13732_s2, %s11423_s29  ;;  %p11427_p5 = scmp.lt.u32.totalorder %s11423_s29, %s13732_s2 }
 0x55a   :  { %p11429_p6 = pnand %p11427_p5, %p11424_p4 }
 0x55c   :  { %11432 = shalt.err (!%p11429_p6)
}
 0x55d   :  { %s11433_s15 = scalar_lea.vmem %s720_s6, 512  ;;  %p11438_p8 = scmp.lt.s32.totalorder %s720_s6, %s720_s6 }
 0x55e   :  { %p11434_p7 = scmp.ne.s32.totalorder %s720_s6, %s11433_s15  ;;  %p11439_p9 = scmp.lt.s32.totalorder %s11433_s15, %s11433_s15 }
 0x560   :  { %p11440_p10 = por %p11439_p9, %p11438_p8 }
 0x562   :  { %p11441_p11 = pnand %p11440_p10, %p11434_p7 }
 0x564   :  { %11444 = shalt.err (!%p11441_p11)
}
 0x565   :  { %s13733_s16 = sld [smem:[#allocation193_spill]] }
 0x566   :  { %725 = dma.hbm_to_vmem [thread:$0]  %s13732_s2, 512, %s720_s6, [#allocation76], %s11931_s7, %s11931_s7, %s11932_s12  }
 0x56b   :  { %s11445_s11 = scalar_lea.hbm %s13733_s16, 512 }
 0x56c   :  { %p11446_p12 = scmp.ne.s32.totalorder %s13733_s16, %s11445_s11  ;;  %p11449_p13 = scmp.lt.u32.totalorder %s11445_s11, %s13733_s16 }
 0x56e   :  { %p11451_p0 = pnand %p11449_p13, %p11446_p12 }
 0x570   :  { %11454 = shalt.err (!%p11451_p0)
}
 0x571   :  { %s11455_s20 = scalar_lea.vmem %s12761_s28, 512  ;;  %p11460_p2 = scmp.lt.s32.totalorder %s12761_s28, %s12761_s28 }
 0x572   :  { %p11456_p1 = scmp.ne.s32.totalorder %s12761_s28, %s11455_s20  ;;  %p11461_p3 = scmp.lt.s32.totalorder %s11455_s20, %s11455_s20 }
 0x574   :  { %p11462_p4 = por %p11461_p3, %p11460_p2 }
 0x576   :  { %p11463_p5 = pnand %p11462_p4, %p11456_p1 }
 0x578   :  { %11466 = shalt.err (!%p11463_p5)
}
 0x579   :  { %s13734_s14 = sld [smem:[#allocation195_spill]]  ;;  %s11993_s9 = smov [#allocation83]  }
 0x57a   :  { %749 = dma.hbm_to_vmem [thread:$0]  %s13733_s16, 512, %s12761_s28, [#allocation79], %s11931_s7, %s11931_s7, %s11932_s12  }
 0x57b   :  { %s765_s22 = sshll.u32 %s11993_s9, 4  ;;  %s11994_s8 = smov [#allocation86]   ;;  %s766_s22 = int_to_ptr.vmem [resolvable:$true] %s765_s22 }
 0x57c   :  { %s788_s23 = sshll.u32 %s11994_s8, 4  ;;  %s789_s23 = int_to_ptr.vmem [resolvable:$true] %s788_s23 }
 0x57f   :  { %s11467_s3 = scalar_lea.hbm %s13734_s14, 1024 }
 0x580   :  { %p11468_p6 = scmp.ne.s32.totalorder %s13734_s14, %s11467_s3  ;;  %p11471_p7 = scmp.lt.u32.totalorder %s11467_s3, %s13734_s14 }
 0x582   :  { %p11473_p8 = pnand %p11471_p7, %p11468_p6 }
 0x584   :  { %11476 = shalt.err (!%p11473_p8)
}
 0x585   :  { %s11477_s13 = scalar_lea.vmem %s766_s22, 1024  ;;  %p11482_p10 = scmp.lt.s32.totalorder %s766_s22, %s766_s22 }
 0x586   :  { %p11478_p9 = scmp.ne.s32.totalorder %s766_s22, %s11477_s13  ;;  %p11483_p11 = scmp.lt.s32.totalorder %s11477_s13, %s11477_s13 }
 0x588   :  { %p11484_p12 = por %p11483_p11, %p11482_p10 }
 0x58a   :  { %p11485_p13 = pnand %p11484_p12, %p11478_p9 }
 0x58c   :  { %11488 = shalt.err (!%p11485_p13)
}
 0x58d   :  { %s13735_s0 = sld [smem:[#allocation197_spill]] }
 0x58e   :  { %771 = dma.hbm_to_vmem [thread:$0]  %s13734_s14, 1024, %s766_s22, [#allocation82], %s11931_s7, %s11931_s7, %s11932_s12  }
 0x593   :  { %s11489_s10 = scalar_lea.hbm %s13735_s0, 16 }
 0x594   :  { %p11490_p0 = scmp.ne.s32.totalorder %s13735_s0, %s11489_s10  ;;  %p11493_p1 = scmp.lt.u32.totalorder %s11489_s10, %s13735_s0 }
 0x596   :  { %p11495_p2 = pnand %p11493_p1, %p11490_p0 }
 0x598   :  { %11498 = shalt.err (!%p11495_p2)
}
 0x599   :  { %s11499_s26 = scalar_lea.vmem %s789_s23, 16  ;;  %s11503_s19 = scalar_lea.vmem %s789_s23, 32 }
 0x59a   :  { %p11500_p3 = scmp.ne.s32.totalorder %s789_s23, %s11499_s26  ;;  %p11504_p4 = scmp.lt.s32.totalorder %s789_s23, %s789_s23 }
 0x59b   :  { %p11505_p5 = scmp.lt.s32.totalorder %s11503_s19, %s11499_s26 }
 0x59d   :  { %p11506_p6 = por %p11505_p5, %p11504_p4 }
 0x59f   :  { %p11507_p7 = pnand %p11506_p6, %p11500_p3 }
 0x5a1   :  { %11510 = shalt.err (!%p11507_p7)
}
 0x5a2   :  { %s13736_s25 = sld [smem:[#allocation199_spill]]  ;;  %s11995_s27 = smov [#allocation89]  }
 0x5a3   :  { %791 = dma.hbm_to_vmem [thread:$0]  %s13735_s0, 16, %s789_s23, [#allocation85]  }
 0x5a4   :  { %s808_s21 = sshll.u32 %s11995_s27, 4  ;;  %s11996_s30 = smov [#allocation92]   ;;  %s809_s21 = int_to_ptr.vmem [resolvable:$true] %s808_s21 }
 0x5a5   :  { %s828_s2 = sshll.u32 %s11996_s30, 4  ;;  %s829_s2 = int_to_ptr.vmem [resolvable:$true] %s828_s2 }
 0x5a8   :  { %s11511_s4 = scalar_lea.hbm %s13736_s25, 16 }
 0x5a9   :  { %p11512_p8 = scmp.ne.s32.totalorder %s13736_s25, %s11511_s4  ;;  %p11515_p9 = scmp.lt.u32.totalorder %s11511_s4, %s13736_s25 }
 0x5ab   :  { %p11517_p10 = pnand %p11515_p9, %p11512_p8 }
 0x5ad   :  { %11520 = shalt.err (!%p11517_p10)
}
 0x5ae   :  { %s11521_s6 = scalar_lea.vmem %s809_s21, 16  ;;  %s11525_s24 = scalar_lea.vmem %s809_s21, 32 }
 0x5af   :  { %p11522_p11 = scmp.ne.s32.totalorder %s809_s21, %s11521_s6  ;;  %p11526_p12 = scmp.lt.s32.totalorder %s809_s21, %s809_s21 }
 0x5b0   :  { %p11527_p13 = scmp.lt.s32.totalorder %s11525_s24, %s11521_s6 }
 0x5b2   :  { %p11528_p0 = por %p11527_p13, %p11526_p12 }
 0x5b4   :  { %p11529_p1 = pnand %p11528_p0, %p11522_p11 }
 0x5b6   :  { %11532 = shalt.err (!%p11529_p1)
}
 0x5b7   :  { %s13737_s28 = sld [smem:[#allocation201_spill]] }
 0x5b8   :  { %811 = dma.hbm_to_vmem [thread:$0]  %s13736_s25, 16, %s809_s21, [#allocation88]  }
 0x5bd   :  { %s11533_s29 = scalar_lea.hbm %s13737_s28, 16 }
 0x5be   :  { %p11534_p2 = scmp.ne.s32.totalorder %s13737_s28, %s11533_s29  ;;  %p11537_p3 = scmp.lt.u32.totalorder %s11533_s29, %s13737_s28 }
 0x5c0   :  { %p11539_p4 = pnand %p11537_p3, %p11534_p2 }
 0x5c2   :  { %11542 = shalt.err (!%p11539_p4)
}
 0x5c3   :  { %s11543_s15 = scalar_lea.vmem %s829_s2, 16  ;;  %s11547_s16 = scalar_lea.vmem %s829_s2, 32 }
 0x5c4   :  { %p11544_p5 = scmp.ne.s32.totalorder %s829_s2, %s11543_s15  ;;  %p11548_p6 = scmp.lt.s32.totalorder %s829_s2, %s829_s2 }
 0x5c5   :  { %p11549_p7 = scmp.lt.s32.totalorder %s11547_s16, %s11543_s15 }
 0x5c7   :  { %p11550_p8 = por %p11549_p7, %p11548_p6 }
 0x5c9   :  { %p11551_p9 = pnand %p11550_p8, %p11544_p5 }
 0x5cb   :  { %11554 = shalt.err (!%p11551_p9)
}
 0x5cc   :  { %s13738_s11 = sld [smem:[#allocation203_spill]]  ;;  %s11997_s20 = smov [#allocation95]  }
 0x5cd   :  { %831 = dma.hbm_to_vmem [thread:$0]  %s13737_s28, 16, %s829_s2, [#allocation91]  }
 0x5ce   :  { %s847_s14 = sshll.u32 %s11997_s20, 4  ;;  %s11998_s9 = smov [#allocation98]   ;;  %s848_s14 = int_to_ptr.vmem [resolvable:$true] %s847_s14 }
 0x5cf   :  { %s871_s22 = sshll.u32 %s11998_s9, 4  ;;  %s12801_s22 = int_to_ptr.vmem [resolvable:$true] %s871_s22 }
 0x5d2   :  { %s11555_s8 = scalar_lea.hbm %s13738_s11, 512 }
 0x5d3   :  { %p11556_p10 = scmp.ne.s32.totalorder %s13738_s11, %s11555_s8  ;;  %p11559_p11 = scmp.lt.u32.totalorder %s11555_s8, %s13738_s11 }
 0x5d5   :  { %p11561_p12 = pnand %p11559_p11, %p11556_p10 }
 0x5d7   :  { %11564 = shalt.err (!%p11561_p12)
}
 0x5d8   :  { %s11565_s23 = scalar_lea.vmem %s848_s14, 512  ;;  %p11570_p0 = scmp.lt.s32.totalorder %s848_s14, %s848_s14 }
 0x5d9   :  { %p11566_p13 = scmp.ne.s32.totalorder %s848_s14, %s11565_s23  ;;  %p11571_p1 = scmp.lt.s32.totalorder %s11565_s23, %s11565_s23 }
 0x5db   :  { %p11572_p2 = por %p11571_p1, %p11570_p0 }
 0x5dd   :  { %p11573_p3 = pnand %p11572_p2, %p11566_p13 }
 0x5df   :  { %11576 = shalt.err (!%p11573_p3)
}
 0x5e0   :  { %s13739_s3 = sld [smem:[#allocation205_spill]] }
 0x5e1   :  { %853 = dma.hbm_to_vmem [thread:$0]  %s13738_s11, 512, %s848_s14, [#allocation94], %s11931_s7, %s11931_s7, %s11932_s12  }
 0x5e6   :  { %s11577_s13 = scalar_lea.hbm %s13739_s3, 512 }
 0x5e7   :  { %p11578_p4 = scmp.ne.s32.totalorder %s13739_s3, %s11577_s13  ;;  %p11581_p5 = scmp.lt.u32.totalorder %s11577_s13, %s13739_s3 }
 0x5e9   :  { %p11583_p6 = pnand %p11581_p5, %p11578_p4 }
 0x5eb   :  { %11586 = shalt.err (!%p11583_p6)
}
 0x5ec   :  { %s11587_s0 = scalar_lea.vmem %s12801_s22, 512  ;;  %p11592_p8 = scmp.lt.s32.totalorder %s12801_s22, %s12801_s22 }
 0x5ed   :  { %p11588_p7 = scmp.ne.s32.totalorder %s12801_s22, %s11587_s0  ;;  %p11593_p9 = scmp.lt.s32.totalorder %s11587_s0, %s11587_s0 }
 0x5ef   :  { %p11594_p10 = por %p11593_p9, %p11592_p8 }
 0x5f1   :  { %p11595_p11 = pnand %p11594_p10, %p11588_p7 }
 0x5f3   :  { %11598 = shalt.err (!%p11595_p11)
}
 0x5f4   :  { %s13740_s10 = sld [smem:[#allocation207_spill]]  ;;  %s11999_s26 = smov [#allocation101]  }
 0x5f5   :  { %877 = dma.hbm_to_vmem [thread:$0]  %s13739_s3, 512, %s12801_s22, [#allocation97], %s11931_s7, %s11931_s7, %s11932_s12  }
 0x5f6   :  { %s893_s19 = sshll.u32 %s11999_s26, 4  ;;  %s12000_s25 = smov [#allocation104]   ;;  %s894_s19 = int_to_ptr.vmem [resolvable:$true] %s893_s19 }
 0x5f7   :  { %s915_s27 = sshll.u32 %s12000_s25, 4  ;;  %s12822_s27 = int_to_ptr.vmem [resolvable:$true] %s915_s27 }
 0x5fa   :  { %s11599_s21 = scalar_lea.hbm %s13740_s10, 512 }
 0x5fb   :  { %p11600_p12 = scmp.ne.s32.totalorder %s13740_s10, %s11599_s21  ;;  %p11603_p13 = scmp.lt.u32.totalorder %s11599_s21, %s13740_s10 }
 0x5fd   :  { %p11605_p0 = pnand %p11603_p13, %p11600_p12 }
 0x5ff   :  { %11608 = shalt.err (!%p11605_p0)
}
 0x600   :  { %s11609_s30 = scalar_lea.vmem %s894_s19, 512  ;;  %p11614_p2 = scmp.lt.s32.totalorder %s894_s19, %s894_s19 }
 0x601   :  { %p11610_p1 = scmp.ne.s32.totalorder %s894_s19, %s11609_s30  ;;  %p11615_p3 = scmp.lt.s32.totalorder %s11609_s30, %s11609_s30 }
 0x603   :  { %p11616_p4 = por %p11615_p3, %p11614_p2 }
 0x605   :  { %p11617_p5 = pnand %p11616_p4, %p11610_p1 }
 0x607   :  { %11620 = shalt.err (!%p11617_p5)
}
 0x608   :  { %s13741_s2 = sld [smem:[#allocation209_spill]] }
 0x609   :  { %899 = dma.hbm_to_vmem [thread:$0]  %s13740_s10, 512, %s894_s19, [#allocation100], %s11931_s7, %s11931_s7, %s11932_s12  }
 0x60e   :  { %s11621_s4 = scalar_lea.hbm %s13741_s2, 512 }
 0x60f   :  { %p11622_p6 = scmp.ne.s32.totalorder %s13741_s2, %s11621_s4  ;;  %p11625_p7 = scmp.lt.u32.totalorder %s11621_s4, %s13741_s2 }
 0x611   :  { %p11627_p8 = pnand %p11625_p7, %p11622_p6 }
 0x613   :  { %11630 = shalt.err (!%p11627_p8)
}
 0x614   :  { %s11631_s6 = scalar_lea.vmem %s12822_s27, 512  ;;  %p11636_p10 = scmp.lt.s32.totalorder %s12822_s27, %s12822_s27 }
 0x615   :  { %p11632_p9 = scmp.ne.s32.totalorder %s12822_s27, %s11631_s6  ;;  %p11637_p11 = scmp.lt.s32.totalorder %s11631_s6, %s11631_s6 }
 0x617   :  { %p11638_p12 = por %p11637_p11, %p11636_p10 }
 0x619   :  { %p11639_p13 = pnand %p11638_p12, %p11632_p9 }
 0x61b   :  { %11642 = shalt.err (!%p11639_p13)
}
 0x61c   :  { %s13742_s24 = sld [smem:[#allocation211_spill]]  ;;  %s12001_s28 = smov [#allocation107]  }
 0x61d   :  { %921 = dma.hbm_to_vmem [thread:$0]  %s13741_s2, 512, %s12822_s27, [#allocation103], %s11931_s7, %s11931_s7, %s11932_s12  }
 0x61e   :  { %s937_s29 = sshll.u32 %s12001_s28, 4  ;;  %s12002_s15 = smov [#allocation110]   ;;  %s938_s29 = int_to_ptr.vmem [resolvable:$true] %s937_s29 }
 0x61f   :  { %s959_s16 = sshll.u32 %s12002_s15, 4  ;;  %s12843_s16 = int_to_ptr.vmem [resolvable:$true] %s959_s16 }
 0x622   :  { %s11643_s11 = scalar_lea.hbm %s13742_s24, 512 }
 0x623   :  { %p11644_p0 = scmp.ne.s32.totalorder %s13742_s24, %s11643_s11  ;;  %p11647_p1 = scmp.lt.u32.totalorder %s11643_s11, %s13742_s24 }
 0x625   :  { %p11649_p2 = pnand %p11647_p1, %p11644_p0 }
 0x627   :  { %11652 = shalt.err (!%p11649_p2)
}
 0x628   :  { %s11653_s20 = scalar_lea.vmem %s938_s29, 512  ;;  %p11658_p4 = scmp.lt.s32.totalorder %s938_s29, %s938_s29 }
 0x629   :  { %p11654_p3 = scmp.ne.s32.totalorder %s938_s29, %s11653_s20  ;;  %p11659_p5 = scmp.lt.s32.totalorder %s11653_s20, %s11653_s20 }
 0x62b   :  { %p11660_p6 = por %p11659_p5, %p11658_p4 }
 0x62d   :  { %p11661_p7 = pnand %p11660_p6, %p11654_p3 }
 0x62f   :  { %11664 = shalt.err (!%p11661_p7)
}
 0x630   :  { %s13743_s14 = sld [smem:[#allocation213_spill]] }
 0x631   :  { %943 = dma.hbm_to_vmem [thread:$0]  %s13742_s24, 512, %s938_s29, [#allocation106], %s11931_s7, %s11931_s7, %s11932_s12  }
 0x636   :  { %s11665_s9 = scalar_lea.hbm %s13743_s14, 512 }
 0x637   :  { %p11666_p8 = scmp.ne.s32.totalorder %s13743_s14, %s11665_s9  ;;  %p11669_p9 = scmp.lt.u32.totalorder %s11665_s9, %s13743_s14 }
 0x639   :  { %p11671_p10 = pnand %p11669_p9, %p11666_p8 }
 0x63b   :  { %11674 = shalt.err (!%p11671_p10)
}
 0x63c   :  { %s11675_s22 = scalar_lea.vmem %s12843_s16, 512  ;;  %p11680_p12 = scmp.lt.s32.totalorder %s12843_s16, %s12843_s16 }
 0x63d   :  { %p11676_p11 = scmp.ne.s32.totalorder %s12843_s16, %s11675_s22  ;;  %p11681_p13 = scmp.lt.s32.totalorder %s11675_s22, %s11675_s22 }
 0x63f   :  { %p11682_p0 = por %p11681_p13, %p11680_p12 }
 0x641   :  { %p11683_p1 = pnand %p11682_p0, %p11676_p11 }
 0x643   :  { %11686 = shalt.err (!%p11683_p1)
}
 0x644   :  { %965 = dma.hbm_to_vmem [thread:$0]  %s13743_s14, 512, %s12843_s16, [#allocation109], %s11931_s7, %s11931_s7, %s11932_s12  }
 0x645   :  { %s12003_s8 = smov [#allocation113]   ;;  %s11687_s3 = scalar_lea.hbm %s12393_s1, 128 }
 0x646   :  { %s982_s23 = sshll.u32 %s12003_s8, 4  ;;  %p11688_p2 = scmp.ne.s32.totalorder %s12393_s1, %s11687_s3  ;;  %s983_s23 = int_to_ptr.vmem [resolvable:$true] %s982_s23 }
 0x647   :  { %p11691_p3 = scmp.lt.u32.totalorder %s11687_s3, %s12393_s1 }
 0x649   :  { %p11693_p4 = pnand %p11691_p3, %p11688_p2 }
 0x64b   :  { %11696 = shalt.err (!%p11693_p4)
}
 0x64c   :  { %s11697_s13 = scalar_lea.vmem %s983_s23, 128  ;;  %p11702_p6 = scmp.lt.s32.totalorder %s983_s23, %s983_s23 }
 0x64d   :  { %p11698_p5 = scmp.ne.s32.totalorder %s983_s23, %s11697_s13  ;;  %p11703_p7 = scmp.lt.s32.totalorder %s11697_s13, %s11697_s13 }
 0x64f   :  { %p11704_p8 = por %p11703_p7, %p11702_p6 }
 0x651   :  { %p11705_p9 = pnand %p11704_p8, %p11698_p5 }
 0x653   :  { %11708 = shalt.err (!%p11705_p9)
}
 0x654   :  { %985 = dma.hbm_to_vmem [thread:$0]  %s12393_s1, 128, %s983_s23, [#allocation112]  }
 0x655   :  { %11775 = dma.done.wait [#allocation4], 256  }
 0x656   :  { %11776 = vsyncadd [#allocation4], 4294967040 }
 0x657   :  { %11777 = dma.done.wait [#allocation7], 528  }
 0x658   :  { %11778 = vsyncadd [#allocation7], 4294966768 }
 0x659   :  { %11779 = dma.done.wait [#allocation10], 528  }
 0x65a   :  { %11780 = vsyncadd [#allocation10], 4294966768 }
 0x65b   :  { %11781 = dma.done.wait [#allocation13], 1024  }
 0x65c   :  { %11782 = vsyncadd [#allocation13], 4294966272 }
 0x65d   :  { %11783 = dma.done.wait [#allocation16], 1040  }
 0x65e   :  { %11784 = vsyncadd [#allocation16], 4294966256 }
 0x65f   :  { %11785 = dma.done.wait [#allocation19], 32  }
 0x660   :  { %11786 = vsyncadd [#allocation19], 4294967264 }
 0x661   :  { %11787 = dma.done.wait [#allocation22], 32  }
 0x662   :  { %11788 = vsyncadd [#allocation22], 4294967264 }
 0x663   :  { %11789 = dma.done.wait [#allocation25], 32  }
 0x664   :  { %11790 = vsyncadd [#allocation25], 4294967264 }
 0x665   :  { %11791 = dma.done.wait [#allocation28], 32  }
 0x666   :  { %11792 = vsyncadd [#allocation28], 4294967264 }
 0x667   :  { %11793 = dma.done.wait [#allocation31], 528  }
 0x668   :  { %11794 = vsyncadd [#allocation31], 4294966768 }
 0x669   :  { %11795 = dma.done.wait [#allocation34], 528  }
 0x66a   :  { %11796 = vsyncadd [#allocation34], 4294966768 }
 0x66b   :  { %11797 = dma.done.wait [#allocation37], 528  }
 0x66c   :  { %11798 = vsyncadd [#allocation37], 4294966768 }
 0x66d   :  { %11799 = dma.done.wait [#allocation40], 1024  }
 0x66e   :  { %11800 = vsyncadd [#allocation40], 4294966272 }
 0x66f   :  { %11801 = dma.done.wait [#allocation43], 1040  }
 0x670   :  { %11802 = vsyncadd [#allocation43], 4294966256 }
 0x671   :  { %11803 = dma.done.wait [#allocation46], 32  }
 0x672   :  { %11804 = vsyncadd [#allocation46], 4294967264 }
 0x673   :  { %11805 = dma.done.wait [#allocation49], 32  }
 0x674   :  { %11806 = vsyncadd [#allocation49], 4294967264 }
 0x675   :  { %11807 = dma.done.wait [#allocation52], 32  }
 0x676   :  { %11808 = vsyncadd [#allocation52], 4294967264 }
 0x677   :  { %11809 = dma.done.wait [#allocation55], 32  }
 0x678   :  { %11810 = vsyncadd [#allocation55], 4294967264 }
 0x679   :  { %11811 = dma.done.wait [#allocation58], 528  }
 0x67a   :  { %11812 = vsyncadd [#allocation58], 4294966768 }
 0x67b   :  { %11813 = dma.done.wait [#allocation61], 1024  }
 0x67c   :  { %11814 = vsyncadd [#allocation61], 4294966272 }
 0x67d   :  { %11815 = dma.done.wait [#allocation64], 1040  }
 0x67e   :  { %11816 = vsyncadd [#allocation64], 4294966256 }
 0x67f   :  { %11817 = dma.done.wait [#allocation67], 32  }
 0x680   :  { %11818 = vsyncadd [#allocation67], 4294967264 }
 0x681   :  { %11819 = dma.done.wait [#allocation70], 32  }
 0x682   :  { %11820 = vsyncadd [#allocation70], 4294967264 }
 0x683   :  { %11821 = dma.done.wait [#allocation73], 32  }
 0x684   :  { %11822 = vsyncadd [#allocation73], 4294967264 }
 0x685   :  { %11823 = dma.done.wait [#allocation76], 528  }
 0x686   :  { %11824 = vsyncadd [#allocation76], 4294966768 }
 0x687   :  { %11825 = dma.done.wait [#allocation79], 1024  }
 0x688   :  { %11826 = vsyncadd [#allocation79], 4294966272 }
 0x689   :  { %11827 = dma.done.wait [#allocation82], 1040  }
 0x68a   :  { %11828 = vsyncadd [#allocation82], 4294966256 }
 0x68b   :  { %11829 = dma.done.wait [#allocation85], 32  }
 0x68c   :  { %11830 = vsyncadd [#allocation85], 4294967264 }
 0x68d   :  { %11831 = dma.done.wait [#allocation88], 32  }
 0x68e   :  { %11832 = vsyncadd [#allocation88], 4294967264 }
 0x68f   :  { %11833 = dma.done.wait [#allocation91], 32  }
 0x690   :  { %11834 = vsyncadd [#allocation91], 4294967264 }
 0x691   :  { %11835 = dma.done.wait [#allocation94], 528  }
 0x692   :  { %11836 = vsyncadd [#allocation94], 4294966768 }
 0x693   :  { %11837 = dma.done.wait [#allocation97], 1024  }
 0x694   :  { %11838 = vsyncadd [#allocation97], 4294966272 }
 0x695   :  { %11839 = dma.done.wait [#allocation100], 528  }
 0x696   :  { %11840 = vsyncadd [#allocation100], 4294966768 }
 0x697   :  { %11841 = dma.done.wait [#allocation103], 528  }
 0x698   :  { %11842 = vsyncadd [#allocation103], 4294966768 }
 0x699   :  { %11843 = dma.done.wait [#allocation106], 528  }
 0x69a   :  { %11844 = vsyncadd [#allocation106], 4294966768 }
 0x69b   :  { %11845 = dma.done.wait [#allocation109], 528  }
 0x69c   :  { %11846 = vsyncadd [#allocation109], 4294966768 }
 0x69d   :  { %11847 = dma.done.wait [#allocation112], 144  }
 0x69e   :  { %11848 = vsyncadd [#allocation112], 4294967152  ;;  %vm1226_vm0 = vcmask 1042432   ;;  %vm1219_vm1 = vcmask 220160   ;;  %v1208_v1 = vld [vmem:[#allocation101] sm:$0xff]  ;;  %v1209_v2 = vld [vmem:[#allocation101 + $0x8] sm:$0xff] }
 0x69f   :  { %v1210_v3 = vld [vmem:[#allocation101 + $0x10] sm:$0xff]  ;;  %v9558_v4 = vpack.c.bf16 %v1209_v2, %v1208_v1  ;;  %v1211_v5 = vld [vmem:[#allocation101 + $0x18] sm:$0x7]  ;;  %v1206_v6 = vld [vmem:[#allocation3] sm:$0xff]  ;;  %vm12004_vm2 = vmmov 1   ;;  %vm1318_vm4 = vcmask 261120  }
 0x6a0   :  { %v9562_v7 = vpack.c.bf16 %v1211_v5, %v1210_v3  ;;  %vm9563_vm3 = vmpackc.low %vm1226_vm0, %vm12004_vm2  ;;  %8877 = vmatprep.mubr.msk.f32.mxu0 %vm1219_vm1, %v1206_v6  ;;  %v1307_v8 = vld [vmem:[#allocation104] sm:$0xff]  ;;  %v1308_v9 = vld [vmem:[#allocation104 + $0x8] sm:$0xff]  ;;  %v12005_v33 = vmov 0.0   ;;  %vm12006_vm5 = vmmov 0   ;;  %s12007_s1 = smov 96   ;;  %s12008_s7 = smov 120  }
 0x6a1   :  { %9559 = vmatprep.subr.bf16.mxu0 %v9558_v4  ;;  %v9568_v10 = vpack.c.bf16 %v1308_v9, %v1307_v8  ;;  %v1207_v11 = vld [vmem:[#allocation3 + $0x8] sm:$0xff]  ;;  %v1309_v12 = vld [vmem:[#allocation104 + $0x10] sm:$0xff]  ;;  %v1310_v13 = vld [vmem:[#allocation104 + $0x18] sm:$0xff]  ;;  %s12009_s12 = smov 88   ;;  %vm1503_vm6 = vcmask 64512   ;;  %vm1551_vm7 = vcmask 130048  }
 0x6a2   :  { %9561 = vmatpush3.bf16.msra.mxu0 %v9558_v4  ;;  %v9572_v14 = vpack.c.bf16 %v1310_v13, %v1309_v12  ;;  %v1400_v15 = vld [vmem:[#allocation77] sm:$0xff]  ;;  %v1401_v16 = vld [vmem:[#allocation77 + $0x8] sm:$0xff]  ;;  %v8414_v18 = vld [vmem:[#allocation102] ss:$0 sm:$0xff]  ;;  %s12010_s0 = smov 56   ;;  %s12011_s10 = smov 64  }
 0x6a3   :  { %9564 = vmatprep.subr.msk.bf16.mxu0 %vm9563_vm3, %v9562_v7  ;;  %9569 = vmatprep.subr.bf16.mxu1 %v9568_v10  ;;  %v9576_v17 = vpack.c.bf16 %v1401_v16, %v1400_v15  ;;  %v1402_v25 = vld [vmem:[#allocation77 + $0x10] sm:$0xff]  ;;  %v1403_v26 = vld [vmem:[#allocation77 + $0x18] sm:$0xff]  ;;  %s12012_s26 = smov 112   ;;  %s12013_s19 = smov 104   ;;  %vm2479_vm8 = vcmask 523264   ;;  %vm3967_vm9 = vcmask 1043456   ;;  %vm9744_vm12 = vmpackc.low %vm1318_vm4, %vm1318_vm4 }
 0x6a4   :  { %9571 = vmatpush3.bf16.msra.mxu1 %v9568_v10  ;;  %v9580_v27 = vpack.c.bf16 %v1403_v26, %v1402_v25  ;;  %v8418_v28 = vld [vmem:[#allocation105] ss:$0 sm:$0xff]  ;;  %v8421_v34 = vld [vmem:[#allocation74] ss:$0 sm:$0xff]  ;;  %s12014_s25 = smov 80   ;;  %s12015_s27 = smov 72  }
 0x6a5   :  { %9573 = vmatprep.subr.bf16.mxu1 %v9572_v14  ;;  %v1495_v26 = vld [vmem:[#allocation78 + $0x8] sm:$0xff]  ;;  %s12016_s21 = smov 40   ;;  %s12017_s30 = smov 48   ;;  %vm7928_vm10 = vcmask 7168   ;;  %vm8011_vm11 = vcmask 48128  }
 0x6a6   :  { %9567 = vmatpush3.bf16.msk.msra.mxu0 %vm9563_vm3, %v9562_v7  ;;  %s12019_s2 = smov [#allocation115]   ;;  %s12020_s6 = smov [#allocation114]  }
 0x6a7   :  { %9577 = vmatprep.subr.bf16.mxu0 %v9576_v17  ;;  %s8276_s4 = sshll.u32 %s12019_s2, 4  ;;  %s8266_s24 = sshll.u32 %s12020_s6, 4  ;;  %s8277_s4 = int_to_ptr.vmem [resolvable:$true] %s8276_s4  ;;  %s8267_s24 = int_to_ptr.vmem [resolvable:$true] %s8266_s24 }
 0x6a8   :  { %9575 = vmatpush3.bf16.msra.mxu1 %v9572_v14  ;;  %s11709_s28 = scalar_lea.vmem %s8277_s4, 128  ;;  %p11714_p11 = scmp.lt.s32.totalorder %s8277_s4, %s8277_s4 }
 0x6a9   :  { %8878 = vmatmul.mubr.msk.f32.vlgmr.msra.gmra.mrb[0].mxu0 %vm1219_vm1, %v1207_v11  ;;  %8902 = vmatprep.subr.bf16.mxu1 %v12005_v33  ;;  %p11710_p10 = scmp.ne.s32.totalorder %s8277_s4, %s11709_s28  ;;  %p11715_p12 = scmp.lt.s32.totalorder %s11709_s28, %s11709_s28 }
 0x6aa   :  { %9579 = vmatpush3.bf16.msra.mxu0 %v9576_v17 }
 0x6ab   :  { %9581 = vmatprep.subr.bf16.mxu0 %v9580_v27  ;;  %p11716_p13 = por %p11715_p12, %p11714_p11 }
 0x6ad   :  { %p11717_p0 = pnand %p11716_p13, %p11710_p10 }
 0x6ae   :  { %9583 = vmatpush3.bf16.msra.mxu0 %v9580_v27  ;;  %v1494_v27 = vld [vmem:[#allocation78] sm:$0xff] }
 0x6af   :  { %8908 = vmatprep.subr.bf16.mxu0 %v12005_v33 }
 0x77c   :  { %v8879_v19 = vpop.f32.mrb[0].mxu0 }
 0x77d   :  { %v1302_v20 = vadd.f32 %v8879_v19, %v8414_v18  ;;  %v1296_v21 = vpop.f32.mrb[1].mxu0 }
 0x77e   :  { %v1297_v22 = vadd.f32 %v8414_v18, %v1296_v21 }
 0x77f   :  { %v1306_v24 = vmax.f32 %v1302_v20, 0.0 }
 0x780   :  { %v1305_v23 = vmax.f32 %v1297_v22, 0.0 }
 0x782   :  { %8888 = vmatprep.mubr.msk.f32.mxu1 %vm1318_vm4, %v1305_v23 }
 0x783   :  { %8889 = vmatmul.mubr.msk.f32.vlgmr.msra.gmra.mrb[0].mxu1 %vm1318_vm4, %v1306_v24 }
 0x784   :  { %8904 = vmatprep.mubr.msk.bf16.mxu1 %vm12006_vm5, %v12005_v33 }
 0x856   :  { %v8890_v29 = vpop.f32.mrb[0].mxu1 }
 0x857   :  { %v1391_v30 = vpop.f32.mrb[1].mxu1  ;;  %v12874_v32 = vadd.f32 %v8890_v29, %v8418_v28 }
 0x858   :  { %v12872_v31 = vadd.f32 %v8418_v28, %v1391_v30 }
 0x85a   :  { %8899 = vmatprep.mubr.msk.f32.mxu0 %vm1318_vm4, %v12872_v31 }
 0x85b   :  { %8900 = vmatmul.mubr.msk.f32.vlgmr.msra.gmra.mrb[2].mxu0 %vm1318_vm4, %v12874_v32 }
 0x85c   :  { %8910 = vmatprep.mubr.msk.bf16.mxu0 %vm12006_vm5, %v12005_v33 }
 0x92e   :  { %v8901_v35 = vpop.f32.mrb[2].mxu0 }
 0x92f   :  { %v1489_v36 = vadd.f32 %v8901_v35, %v8421_v34  ;;  %v1483_v37 = vpop.f32.mrb[3].mxu0 }
 0x930   :  { %v1484_v38 = vadd.f32 %v8421_v34, %v1483_v37 }
 0x931   :  { %v1493_v39 = vmul.f32 0.35355338, %v1489_v36 }
 0x932   :  { %v1492_v40 = vmul.f32 0.35355338, %v1484_v38  ;;  %v12886_v41 = vpack.c.bf16 %v1489_v36, %v1484_v38 }
 0x934   :  { %v1498_v42 = vpack.c.bf16 %v1493_v39, %v1492_v40  ;;  %1501 = vrot.lane.b32.xlu0 %v12886_v41, %s12007_s1 }
 0x936   :  { %1623 = vrot.lane.b32.xlu1 %v1498_v42, %s12008_s7 }
 0x938   :  { %1625 = vrot.lane.b32.xlu0 %v12886_v41, %s12009_s12 }
 0x9a6   :  { %v1502_v43 = vpop.permute.xlu0 %1501 }
 0x9a7   :  { %v1508_v44 = vsel %vm1503_vm6, %v1502_v43, 0 }
 0x9a8   :  { %8903 = vmatpush3.bf16.xpose.msra.mxu1 %v1508_v44  ;;  %v1624_v47 = vpop.permute.xlu1 %1623 }
 0x9a9   :  { %8914 = vmatprep.subr.bf16.mxu1 %v12005_v33 }
 0x9aa   :  { %v1626_v45 = vpop.permute.xlu0 %1625 }
 0x9ab   :  { %v1631_v46 = vsel %vm1503_vm6, %v1626_v45, 0 }
 0x9af   :  { %8905 = vmatmul.mubr.msk.bf16.vlgmr.msra.gmra.mrb[4].mxu1 %vm1503_vm6, %v1498_v42 }
 0x9b0   :  { %8915 = vmatpush3.bf16.xpose.msra.mxu1 %v1631_v46  ;;  %8916 = vmatprep.mubr.msk.bf16.mxu1 %vm12006_vm5, %v12005_v33 }
 0x9b1   :  { %8926 = vmatprep.subr.mxu1 %v1495_v26 }
 0x9b7   :  { %8917 = vmatmul.mubr.msk.bf16.vlgmr.msra.gmra.mrb[8].mxu1 %vm1503_vm6, %v1624_v47 }
 0x9b8   :  { %8927 = vmatpush3.msra.mxu1 %v1495_v26 }
 0x9b9   :  { %8931 = vmatprep.subr.mxu1 %v1494_v27 }
 0xa82   :  { %v1544_v48 = vpop.f32.mrb[4].mxu1 }
 0xa83   :  { %v8906_v49 = vpop.f32.mrb[5].mxu1  ;;  %v1552_v50 = vsel %vm1551_vm7, %v1544_v48, -inf }
 0xa84   :  { %1553 = vmax.xlane.f32.xlu1 %v1552_v50  ;;  %v1547_v51 = vpop.f32.mrb[6].mxu1 }
 0xa85   :  { %v8907_v52 = vpop.f32.mrb[7].mxu1  ;;  %v1555_v53 = vsel %vm1551_vm7, %v1547_v51, -inf }
 0xa86   :  { %1556 = vmax.xlane.f32.xlu0 %v1555_v53 }
 0xa8a   :  { %v1667_v54 = vpop.f32.mrb[8].mxu1 }
 0xa8b   :  { %v8918_v55 = vpop.f32.mrb[9].mxu1  ;;  %v1674_v56 = vsel %vm1551_vm7, %v1667_v54, -inf }
 0xa8c   :  { %1675 = vmax.xlane.f32.xlu0 %v1674_v56  ;;  %v1670_v57 = vpop.f32.mrb[10].mxu1 }
 0xa8d   :  { %v8919_v58 = vpop.f32.mrb[11].mxu1  ;;  %v1677_v59 = vsel %vm1551_vm7, %v1670_v57, -inf }
 0xa95   :  { %1695 = vrot.lane.b32.xlu1 %v12886_v41, %s12010_s0 }
 0xaa2   :  { %1573 = vrot.lane.b32.xlu0 %v12886_v41, %s12011_s10 }
 0xaa6   :  { %1906 = vrot.lane.b32.xlu0 %v1498_v42, %s12012_s26 }
 0xaaa   :  { %2110 = vrot.lane.b32.xlu0 %v1498_v42, %s12013_s19 }
 0xab9   :  { %1678 = vmax.xlane.f32.xlu1 %v1677_v59 }
 0xaca   :  { %1908 = vrot.lane.b32.xlu1 %v12886_v41, %s12014_s25 }
 0xace   :  { %2112 = vrot.lane.b32.xlu1 %v12886_v41, %s12015_s27 }
 0xb11   :  { %v1554_v60 = vpop.xlane.xlu1 %1553 }
 0xb12   :  { %v1558_v61 = vsub.f32 %v1544_v48, %v1554_v60 }
 0xb13   :  { %v1557_v62 = vpop.xlane.xlu0 %1556 }
 0xb14   :  { %v1560_v63 = vmul.f32 1.442695, %v1558_v61  ;;  %v1559_v0 = vsub.f32 %v1547_v51, %v1557_v62 }
 0xb15   :  { %v1696_v10 = vpop.permute.xlu1 %1695 }
 0xb16   :  { %9947 = vpow2.f32 %v1560_v63  ;;  %v1562_v1 = vmul.f32 1.442695, %v1559_v0 }
 0xb18   :  { %9949 = vpow2.f32 %v1562_v1 }
 0xb19   :  { %v1676_v2 = vpop.xlane.xlu0 %1675 }
 0xb1a   :  { %v1680_v3 = vsub.f32 %v1667_v54, %v1676_v2 }
 0xb1c   :  { %v1682_v4 = vmul.f32 1.442695, %v1680_v3 }
 0xb1d   :  { %v1574_v5 = vpop.permute.xlu0 %1573 }
 0xb1e   :  { %9951 = vpow2.f32 %v1682_v4  ;;  %8909 = vmatpush3.bf16.msra.mxu0 %v1574_v5 }
 0xb1f   :  { %8920 = vmatprep.subr.bf16.mxu0 %v12005_v33 }
 0xb20   :  { %v9948_v6 = vpop.eup %9947 }
 0xb21   :  { %v1564_v7 = vsel %vm1551_vm7, %v9948_v6, 0.0  ;;  %v1907_v23 = vpop.permute.xlu0 %1906 }
 0xb22   :  { %v9950_v8 = vpop.eup %9949  ;;  %1565 = vadd.xlane.f32.xlu0 %v1564_v7 }
 0xb23   :  { %v1572_v9 = vpack.c.bf16 %v9950_v8, %v9948_v6  ;;  %v1567_v13 = vsel %vm1551_vm7, %v9950_v8, 0.0 }
 0xb25   :  { %8911 = vmatmul.mubr.msk.bf16.vlgmr.msra.gmra.mrb[4].mxu0 %vm1551_vm7, %v1572_v9  ;;  %v2111_v25 = vpop.permute.xlu0 %2110 }
 0xb26   :  { %8921 = vmatpush3.bf16.msra.mxu0 %v1696_v10  ;;  %8922 = vmatprep.mubr.msk.bf16.mxu0 %vm12006_vm5, %v12005_v33 }
 0xb27   :  { %8936 = vmatprep.subr.bf16.mxu0 %v12005_v33 }
 0xb28   :  { %v9952_v11 = vpop.eup %9951 }
 0xb29   :  { %v1686_v12 = vsel %vm1551_vm7, %v9952_v11, 0.0 }
 0xb2a   :  { %1687 = vadd.xlane.f32.xlu1 %v1686_v12 }
 0xb2e   :  { %1568 = vadd.xlane.f32.xlu1 %v1567_v13 }
 0xb46   :  { %v1679_v14 = vpop.xlane.xlu1 %1678 }
 0xb47   :  { %v1681_v15 = vsub.f32 %v1670_v57, %v1679_v14 }
 0xb49   :  { %v1684_v16 = vmul.f32 1.442695, %v1681_v15 }
 0xb4a   :  { %v1909_v18 = vpop.permute.xlu1 %1908 }
 0xb4b   :  { %9953 = vpow2.f32 %v1684_v16  ;;  %v1914_v21 = vsel %vm1503_vm6, %v1909_v18, 0 }
 0xb4e   :  { %v2113_v22 = vpop.permute.xlu1 %2112 }
 0xb4f   :  { %v2118_v24 = vsel %vm1503_vm6, %v2113_v22, 0 }
 0xb55   :  { %v9954_v17 = vpop.eup %9953 }
 0xb56   :  { %v1689_v19 = vsel %vm1551_vm7, %v9954_v17, 0.0  ;;  %v1694_v20 = vpack.c.bf16 %v9954_v17, %v9952_v11 }
 0xb57   :  { %1690 = vadd.xlane.f32.xlu0 %v1689_v19 }
 0xb58   :  { %8923 = vmatmul.mubr.msk.bf16.vlgmr.msra.gmra.mrb[8].mxu0 %vm1551_vm7, %v1694_v20 }
 0xb59   :  { %8937 = vmatpush3.bf16.xpose.msra.mxu0 %v1914_v21  ;;  %8938 = vmatprep.mubr.msk.bf16.mxu0 %vm12006_vm5, %v12005_v33 }
 0xb5a   :  { %8953 = vmatprep.subr.bf16.mxu0 %v12005_v33 }
 0xb60   :  { %8939 = vmatmul.mubr.msk.bf16.vlgmr.msra.gmra.mrb[12].mxu0 %vm1503_vm6, %v1907_v23  ;;  %v1496_v23 = vld [vmem:[#allocation78 + $0x10] sm:$0xff] }
 0xb61   :  { %8954 = vmatpush3.bf16.xpose.msra.mxu0 %v2118_v24  ;;  %8955 = vmatprep.mubr.msk.bf16.mxu0 %vm12006_vm5, %v12005_v33  ;;  %v1497_v24 = vld [vmem:[#allocation78 + $0x18] sm:$0xff] }
 0xb62   :  { %8959 = vmatprep.subr.bf16.mxu0 %v12005_v33 }
 0xb68   :  { %8956 = vmatmul.mubr.msk.bf16.vlgmr.msra.gmra.mrb[16].mxu0 %vm1503_vm6, %v2111_v25 }
 0xb69   :  { %8961 = vmatprep.mubr.msk.bf16.mxu0 %vm12006_vm5, %v12005_v33 }
 0xbaf   :  { %v1566_v35 = vpop.xlane.xlu0 %1565 }
 0xbb7   :  { %v1688_v36 = vpop.xlane.xlu1 %1687 }
 0xbb8   :  { %9955 = vrcp.f32 %v1688_v36 }
 0xbbb   :  { %v1569_v38 = vpop.xlane.xlu1 %1568 }
 0xbc2   :  { %v9956_v39 = vpop.eup %9955 }
 0xbe4   :  { %v1691_v37 = vpop.xlane.xlu0 %1690 }
 0xbe5   :  { %9957 = vrcp.f32 %v1691_v37 }
 0xbe6   :  { %9959 = vrcp.f32 %v1566_v35 }
 0xbe7   :  { %9961 = vrcp.f32 %v1569_v38 }
 0xbef   :  { %v9958_v44 = vpop.eup %9957 }
 0xbf0   :  { %v9960_v46 = vpop.eup %9959 }
 0xbf1   :  { %v9962_v53 = vpop.eup %9961 }
 0xbf8   :  { %v1613_v28 = vpop.f32.mrb[4].mxu0 }
 0xbf9   :  { %v8912_v29 = vpop.f32.mrb[5].mxu0  ;;  %v1620_v49 = vmul.f32 %v9960_v46, %v1613_v28 }
 0xbfa   :  { %v1616_v30 = vpop.f32.mrb[6].mxu0 }
 0xbfb   :  { %v8913_v34 = vpop.f32.mrb[7].mxu0  ;;  %v1621_v55 = vmul.f32 %v9962_v53, %v1616_v30 }
 0xc2b   :  { %v1735_v40 = vpop.f32.mrb[8].mxu0 }
 0xc2c   :  { %v1742_v42 = vmul.f32 %v9956_v39, %v1735_v40  ;;  %v8924_v43 = vpop.f32.mrb[9].mxu0 }
 0xc2d   :  { %v1738_v45 = vpop.f32.mrb[10].mxu0 }
 0xc2e   :  { %v1743_v47 = vmul.f32 %v9958_v44, %v1738_v45  ;;  %v8925_v48 = vpop.f32.mrb[11].mxu0  ;;  %8928 = vmatprep.mubr.msk.f32.mxu1 %vm1503_vm6, %v1742_v42 }
 0xc30   :  { %8929 = vmatmul.mubr.msk.f32.vlgmr.msra.gmra.mrb[2].mxu1 %vm1503_vm6, %v1743_v47 }
 0xc31   :  { %8933 = vmatprep.mubr.msk.f32.mxu1 %vm1503_vm6, %v1620_v49  ;;  %8932 = vmatpush3.msra.mxu1 %v1494_v27  ;;  %v8440_v49 = vld [vmem:[#allocation75] ss:$0 sm:$0xff] }
 0xc32   :  { %8942 = vmatprep.subr.bf16.mxu1 %v12005_v33 }
 0xc33   :  { %v1950_v50 = vpop.f32.mrb[12].mxu0 }
 0xc34   :  { %v8940_v51 = vpop.f32.mrb[13].mxu0  ;;  %v1957_v52 = vsel %vm1551_vm7, %v1950_v50, -inf }
 0xc35   :  { %1958 = vmax.xlane.f32.xlu0 %v1957_v52  ;;  %v1953_v54 = vpop.f32.mrb[14].mxu0 }
 0xc36   :  { %v8941_v56 = vpop.f32.mrb[15].mxu0  ;;  %v1960_v57 = vsel %vm1551_vm7, %v1953_v54, -inf }
 0xc37   :  { %1961 = vmax.xlane.f32.xlu1 %v1960_v57 }
 0xc38   :  { %8934 = vmatmul.mubr.msk.f32.vlgmr.msra.gmra.mrb[2].mxu1 %vm1503_vm6, %v1621_v55 }
 0xc39   :  { %8944 = vmatprep.mubr.msk.bf16.mxu1 %vm12006_vm5, %v12005_v33 }
 0xc3b   :  { %v2154_v58 = vpop.f32.mrb[16].mxu0 }
 0xc3c   :  { %v8957_v59 = vpop.f32.mrb[17].mxu0  ;;  %v2161_v60 = vsel %vm1551_vm7, %v2154_v58, -inf }
 0xc3d   :  { %2162 = vmax.xlane.f32.xlu0 %v2161_v60  ;;  %v2157_v61 = vpop.f32.mrb[18].mxu0 }
 0xc3e   :  { %v8958_v62 = vpop.f32.mrb[19].mxu0  ;;  %v2164_v63 = vsel %vm1551_vm7, %v2157_v61, -inf }
 0xc3f   :  { %2165 = vmax.xlane.f32.xlu1 %v2164_v63 }
 0xc50   :  { %2182 = vrot.lane.b32.xlu1 %v12886_v41, %s12016_s21 }
 0xc53   :  { %1978 = vrot.lane.b32.xlu0 %v12886_v41, %s12017_s30 }
 0xcc2   :  { %v1959_v0 = vpop.xlane.xlu0 %1958 }
 0xcc3   :  { %v1963_v1 = vsub.f32 %v1950_v50, %v1959_v0 }
 0xcc4   :  { %v1962_v2 = vpop.xlane.xlu1 %1961 }
 0xcc5   :  { %v1965_v3 = vmul.f32 1.442695, %v1963_v1  ;;  %v1964_v4 = vsub.f32 %v1953_v54, %v1962_v2 }
 0xcc7   :  { %9963 = vpow2.f32 %v1965_v3  ;;  %v1967_v5 = vmul.f32 1.442695, %v1964_v4  ;;  %v2371_v3 = vld [vmem:[#allocation62 + $0x8] sm:$0xff]  ;;  %v2372_v4 = vld [vmem:[#allocation62 + $0x10] sm:$0xff] }
 0xcc9   :  { %9965 = vpow2.f32 %v1967_v5 }
 0xcca   :  { %v2163_v6 = vpop.xlane.xlu0 %2162 }
 0xccb   :  { %v2167_v7 = vsub.f32 %v2154_v58, %v2163_v6  ;;  %v2373_v6 = vld [vmem:[#allocation62 + $0x18] sm:$0xff] }
 0xccc   :  { %v2166_v8 = vpop.xlane.xlu1 %2165 }
 0xccd   :  { %v2169_v9 = vmul.f32 1.442695, %v2167_v7  ;;  %v2168_v10 = vsub.f32 %v2157_v61, %v2166_v8  ;;  %v9588_v7 = vpack.c.bf16 %v2373_v6, %v2372_v4  ;;  %v2464_v8 = vld [vmem:[#allocation65] sm:$0xff] }
 0xcce   :  { %v1979_v11 = vpop.permute.xlu0 %1978 }
 0xccf   :  { %9967 = vpow2.f32 %v2169_v9  ;;  %v2171_v12 = vmul.f32 1.442695, %v2168_v10  ;;  %8943 = vmatpush3.bf16.msra.mxu1 %v1979_v11  ;;  %v2465_v9 = vld [vmem:[#allocation65 + $0x8] sm:$0xff]  ;;  %v2466_v10 = vld [vmem:[#allocation65 + $0x10] sm:$0xff] }
 0xcd0   :  { %v2183_v13 = vpop.permute.xlu1 %2182  ;;  %8948 = vmatprep.subr.mxu1 %v1496_v23  ;;  %v9592_v11 = vpack.c.bf16 %v2465_v9, %v2464_v8 }
 0xcd1   :  { %v9964_v14 = vpop.eup %9963  ;;  %9969 = vpow2.f32 %v2171_v12  ;;  %8960 = vmatpush3.bf16.msra.mxu0 %v2183_v13  ;;  %v2467_v12 = vld [vmem:[#allocation65 + $0x18] sm:$0xff] }
 0xcd2   :  { %v1969_v41 = vsel %vm1551_vm7, %v9964_v14, 0.0  ;;  %v9596_v13 = vpack.c.bf16 %v2467_v12, %v2466_v10  ;;  %v8449_v12 = vld [vmem:[#allocation71] ss:$0 sm:$0xff] }
 0xcd3   :  { %v9966_v15 = vpop.eup %9965  ;;  %1970 = vadd.xlane.f32.xlu1 %v1969_v41  ;;  %v2469_v41 = vld [vmem:[#allocation65 + $0x28] sm:$0xff] }
 0xcd4   :  { %v1972_v16 = vsel %vm1551_vm7, %v9966_v15, 0.0  ;;  %v1977_v17 = vpack.c.bf16 %v9966_v15, %v9964_v14  ;;  %v2468_v14 = vld [vmem:[#allocation65 + $0x20] sm:$0xff] }
 0xcd5   :  { %1973 = vadd.xlane.f32.xlu0 %v1972_v16  ;;  %v9600_v15 = vpack.c.bf16 %v2469_v41, %v2468_v14 }
 0xcd6   :  { %8945 = vmatmul.mubr.msk.bf16.vlgmr.msra.gmra.mrb[12].mxu1 %vm1551_vm7, %v1977_v17 }
 0xcd7   :  { %8949 = vmatpush3.msra.mxu1 %v1496_v23  ;;  %v8441_v23 = vld [vmem:[#allocation68] ss:$0 sm:$0xff] }
 0xcd8   :  { %8965 = vmatprep.subr.mxu1 %v1497_v24 }
 0xcd9   :  { %v9968_v18 = vpop.eup %9967 }
 0xcda   :  { %v2173_v19 = vsel %vm1551_vm7, %v9968_v18, 0.0 }
 0xcdb   :  { %v9970_v20 = vpop.eup %9969  ;;  %2174 = vadd.xlane.f32.xlu0 %v2173_v19 }
 0xcdc   :  { %v2176_v21 = vsel %vm1551_vm7, %v9970_v20, 0.0  ;;  %v2181_v22 = vpack.c.bf16 %v9970_v20, %v9968_v18 }
 0xcdd   :  { %2177 = vadd.xlane.f32.xlu1 %v2176_v21 }
 0xcde   :  { %8962 = vmatmul.mubr.msk.bf16.vlgmr.msra.gmra.mrb[20].mxu0 %vm1551_vm7, %v2181_v22 }
 0xd60   :  { %v1971_v25 = vpop.xlane.xlu1 %1970 }
 0xd61   :  { %9971 = vrcp.f32 %v1971_v25 }
 0xd62   :  { %v1974_v26 = vpop.xlane.xlu0 %1973 }
 0xd63   :  { %9973 = vrcp.f32 %v1974_v26 }
 0xd68   :  { %v2175_v27 = vpop.xlane.xlu0 %2174 }
 0xd69   :  { %9975 = vrcp.f32 %v2175_v27 }
 0xd6a   :  { %v2178_v28 = vpop.xlane.xlu1 %2177 }
 0xd6b   :  { %v9972_v29 = vpop.eup %9971  ;;  %9977 = vrcp.f32 %v2178_v28  ;;  %v8442_v28 = vld [vmem:[#allocation69] ss:$0 sm:$0xff] }
 0xd6d   :  { %v9974_v36 = vpop.eup %9973 }
 0xd73   :  { %v9976_v40 = vpop.eup %9975 }
 0xd75   :  { %v9978_v45 = vpop.eup %9977 }
 0xda9   :  { %v2018_v30 = vpop.f32.mrb[12].mxu1 }
 0xdaa   :  { %v2025_v34 = vmul.f32 %v9972_v29, %v2018_v30  ;;  %v8946_v35 = vpop.f32.mrb[13].mxu1 }
 0xdab   :  { %v2021_v37 = vpop.f32.mrb[14].mxu1  ;;  %v2470_v35 = vld [vmem:[#allocation65 + $0x30] sm:$0xff] }
 0xdac   :  { %v2026_v38 = vmul.f32 %v9974_v36, %v2021_v37  ;;  %v8947_v39 = vpop.f32.mrb[15].mxu1  ;;  %8950 = vmatprep.mubr.msk.f32.mxu1 %vm1503_vm6, %v2025_v34  ;;  %v2471_v36 = vld [vmem:[#allocation65 + $0x38] sm:$0xff] }
 0xdad   :  { %v9604_v37 = vpack.c.bf16 %v2471_v36, %v2470_v35 }
 0xdae   :  { %8951 = vmatmul.mubr.msk.f32.vlgmr.msra.gmra.mrb[2].mxu1 %vm1503_vm6, %v2026_v38  ;;  %v8443_v38 = vld [vmem:[#allocation63] ss:$0 sm:$0xff] }
 0xdaf   :  { %8966 = vmatpush3.msra.mxu1 %v1497_v24 }
 0xdb0   :  { %9593 = vmatprep.subr.bf16.mxu1 %v9592_v11 }
 0xdb1   :  { %v2222_v42 = vpop.f32.mrb[20].mxu0 }
 0xdb2   :  { %v2229_v43 = vmul.f32 %v9976_v40, %v2222_v42  ;;  %v8963_v44 = vpop.f32.mrb[21].mxu0 }
 0xdb3   :  { %v2225_v46 = vpop.f32.mrb[22].mxu0 }
 0xdb4   :  { %v2230_v47 = vmul.f32 %v9978_v45, %v2225_v46  ;;  %v8964_v48 = vpop.f32.mrb[23].mxu0  ;;  %8967 = vmatprep.mubr.msk.f32.mxu1 %vm1503_vm6, %v2229_v43  ;;  %v8446_v46 = vld [vmem:[#allocation66] ss:$0 sm:$0xff] }
 0xdb6   :  { %8968 = vmatmul.mubr.msk.f32.vlgmr.msra.gmra.mrb[2].mxu1 %vm1503_vm6, %v2230_v47 }
 0xdb7   :  { %9595 = vmatpush3.bf16.msra.mxu1 %v9592_v11 }
 0xdb8   :  { %9597 = vmatprep.subr.bf16.mxu1 %v9596_v13 }
 0xdbb   :  { %9599 = vmatpush3.bf16.msra.mxu1 %v9596_v13 }
 0xdbc   :  { %9601 = vmatprep.subr.bf16.mxu1 %v9600_v15 }
 0xdbf   :  { %9603 = vmatpush3.bf16.msra.mxu1 %v9600_v15 }
 0xdc0   :  { %9605 = vmatprep.subr.bf16.mxu1 %v9604_v37 }
 0xdc3   :  { %9607 = vmatpush3.bf16.msra.mxu1 %v9604_v37 }
 0xdc4   :  { %9017 = vmatprep.subr.bf16.mxu1 %v12005_v33 }
 0xe89   :  { %v8969_v50 = vpop.f32.mrb[2].mxu1 }
 0xe8a   :  { %v2322_v51 = vadd.f32 %v8969_v50, %v8440_v49  ;;  %v2303_v52 = vpop.f32.mrb[3].mxu1 }
 0xe8b   :  { %v2321_v53 = vadd.f32 %v8440_v49, %v2303_v52 }
 0xe8c   :  { %v2324_v54 = vadd.f32 %v2322_v51, %v12874_v32 }
 0xe8d   :  { %v2323_v55 = vadd.f32 %v2321_v53, %v12872_v31  ;;  %v2370_v31 = vld [vmem:[#allocation62] sm:$0xff] }
 0xe8e   :  { %v2328_v56 = vsel %vm1318_vm4, %v2324_v54, 0.0  ;;  %v9584_v5 = vpack.c.bf16 %v2371_v3, %v2370_v31  ;;  %v2610_v3 = vld [vmem:[#allocation95 + $0x18] sm:$0xff] }
 0xe8f   :  { %2329 = vadd.xlane.f32.xlu1 %v2328_v56  ;;  %v2325_v57 = vsel %vm1318_vm4, %v2323_v55, 0.0 }
 0xe90   :  { %2326 = vadd.xlane.f32.xlu0 %v2325_v57  ;;  %9585 = vmatprep.subr.bf16.mxu0 %v9584_v5 }
 0xe91   :  { %9587 = vmatpush3.bf16.msra.mxu0 %v9584_v5 }
 0xe92   :  { %9589 = vmatprep.subr.bf16.mxu0 %v9588_v7 }
 0xe95   :  { %9591 = vmatpush3.bf16.msra.mxu0 %v9588_v7 }
 0xf1c   :  { %v2330_v58 = vpop.xlane.xlu1 %2329 }
 0xf1d   :  { %v2333_v59 = vmul.f32 0.03125, %v2330_v58  ;;  %v2327_v60 = vpop.xlane.xlu0 %2326 }
 0xf1e   :  { %v2332_v61 = vmul.f32 0.03125, %v2327_v60 }
 0xf1f   :  { %v2335_v62 = vsub.f32 %v2324_v54, %v2333_v59 }
 0xf20   :  { %v2334_v63 = vsub.f32 %v2323_v55, %v2332_v61 }
 0xf21   :  { %v2337_v0 = vmul.f32 %v2335_v62, %v2335_v62 }
 0xf22   :  { %v2336_v1 = vmul.f32 %v2334_v63, %v2334_v63 }
 0xf23   :  { %v2341_v2 = vsel %vm1318_vm4, %v2337_v0, 0.0 }
 0xf24   :  { %2342 = vadd.xlane.f32.xlu1 %v2341_v2  ;;  %v2338_v32 = vsel %vm1318_vm4, %v2336_v1, 0.0  ;;  %v2607_v1 = vld [vmem:[#allocation95] sm:$0xff]  ;;  %v2608_v2 = vld [vmem:[#allocation95 + $0x8] sm:$0xff] }
 0xf25   :  { %2339 = vadd.xlane.f32.xlu0 %v2338_v32  ;;  %v2609_v32 = vld [vmem:[#allocation95 + $0x10] sm:$0xff]  ;;  %v9608_v31 = vpack.c.bf16 %v2608_v2, %v2607_v1 }
 0xf26   :  { %v9612_v4 = vpack.c.bf16 %v2610_v3, %v2609_v32 }
 0xf27   :  { %9609 = vmatprep.subr.bf16.mxu0 %v9608_v31 }
 0xfb1   :  { %v2343_v16 = vpop.xlane.xlu1 %2342 }
 0xfb2   :  { %v2345_v17 = vmul.f32 0.03125, %v2343_v16  ;;  %v2340_v18 = vpop.xlane.xlu0 %2339  ;;  %v8450_v16 = vld [vmem:[#allocation72] ss:$0 sm:$0xff] }
 0xfb3   :  { %v2344_v19 = vmul.f32 0.03125, %v2340_v18 }
 0xfb4   :  { %v2347_v20 = vadd.f32 1e-05, %v2345_v17 }
 0xfb5   :  { %v2346_v21 = vadd.f32 1e-05, %v2344_v19 }
 0xfb6   :  { %9979 = vrsqrt.f32 %v2347_v20  ;;  %v8451_v20 = vld [vmem:[#allocation92] ss:$0 sm:$0xff] }
 0xfb7   :  { %9981 = vrsqrt.f32 %v2346_v21 }
 0xfc0   :  { %v9980_v22 = vpop.eup %9979 }
 0xfc1   :  { %v9982_v24 = vpop.eup %9981  ;;  %v2351_v25 = vmul.f32 %v9980_v22, %v2335_v62 }
 0xfc2   :  { %v2350_v26 = vmul.f32 %v9982_v24, %v2334_v63 }
 0xfc3   :  { %v2360_v27 = vmul.f32 %v8441_v23, %v2351_v25 }
 0xfc4   :  { %v2359_v29 = vmul.f32 %v8441_v23, %v2350_v26 }
 0xfc5   :  { %v2369_v34 = vadd.f32 %v8442_v28, %v2360_v27 }
 0xfc6   :  { %v2368_v30 = vadd.f32 %v8442_v28, %v2359_v29 }
 0xfc8   :  { %8978 = vmatprep.mubr.msk.f32.mxu0 %vm1318_vm4, %v2368_v30 }
 0xfc9   :  { %8979 = vmatmul.mubr.msk.f32.vlgmr.msra.gmra.mrb[24].mxu0 %vm1318_vm4, %v2369_v34 }
 0xfca   :  { %9611 = vmatpush3.bf16.msra.mxu0 %v9608_v31 }
 0xfcb   :  { %9613 = vmatprep.subr.bf16.mxu0 %v9612_v4 }
 0xfce   :  { %9615 = vmatpush3.bf16.msra.mxu0 %v9612_v4 }
 0xfcf   :  { %9011 = vmatprep.subr.bf16.mxu0 %v12005_v33 }
0x109c   :  { %v8980_v39 = vpop.f32.mrb[24].mxu0 }
0x109d   :  { %v2459_v40 = vadd.f32 %v8980_v39, %v8443_v38  ;;  %v2453_v42 = vpop.f32.mrb[25].mxu0 }
0x109e   :  { %v2454_v43 = vadd.f32 %v8443_v38, %v2453_v42 }
0x109f   :  { %v2463_v45 = vmax.f32 %v2459_v40, 0.0 }
0x10a0   :  { %v2462_v44 = vmax.f32 %v2454_v43, 0.0 }
0x10a2   :  { %8997 = vmatprep.mubr.msk.f32.mxu1 %vm2479_vm8, %v2462_v44 }
0x10a3   :  { %8998 = vmatmul.mubr.msk.f32.vlgmr.msra.gmra.mrb[16].mxu1 %vm2479_vm8, %v2463_v45 }
0x10a4   :  { %9019 = vmatprep.mubr.msk.bf16.mxu1 %vm12006_vm5, %v12005_v33 }
0x1176   :  { %v8999_v47 = vpop.f32.mrb[16].mxu1 }
0x1177   :  { %v2558_v48 = vadd.f32 %v8999_v47, %v8446_v46  ;;  %v2552_v49 = vpop.f32.mrb[17].mxu1 }
0x1178   :  { %v2553_v50 = vadd.f32 %v8446_v46, %v2552_v49 }
0x1179   :  { %v2562_v51 = vadd.f32 %v2558_v48, %v2369_v34 }
0x117a   :  { %v2561_v52 = vadd.f32 %v2553_v50, %v2368_v30 }
0x117b   :  { %v2566_v53 = vsel %vm1318_vm4, %v2562_v51, 0.0 }
0x117c   :  { %2567 = vadd.xlane.f32.xlu1 %v2566_v53  ;;  %v2563_v54 = vsel %vm1318_vm4, %v2561_v52, 0.0 }
0x117d   :  { %2564 = vadd.xlane.f32.xlu0 %v2563_v54 }
0x1209   :  { %v2568_v55 = vpop.xlane.xlu1 %2567 }
0x120a   :  { %v2570_v56 = vmul.f32 0.03125, %v2568_v55  ;;  %v2565_v57 = vpop.xlane.xlu0 %2564 }
0x120b   :  { %v2569_v58 = vmul.f32 0.03125, %v2565_v57 }
0x120c   :  { %v2572_v59 = vsub.f32 %v2562_v51, %v2570_v56 }
0x120d   :  { %v2571_v60 = vsub.f32 %v2561_v52, %v2569_v58 }
0x120e   :  { %v2574_v61 = vmul.f32 %v2572_v59, %v2572_v59 }
0x120f   :  { %v2573_v62 = vmul.f32 %v2571_v60, %v2571_v60 }
0x1210   :  { %v2578_v63 = vsel %vm1318_vm4, %v2574_v61, 0.0 }
0x1211   :  { %2579 = vadd.xlane.f32.xlu1 %v2578_v63  ;;  %v2575_v0 = vsel %vm1318_vm4, %v2573_v62, 0.0 }
0x1212   :  { %2576 = vadd.xlane.f32.xlu0 %v2575_v0 }
0x129e   :  { %v2580_v5 = vpop.xlane.xlu1 %2579 }
0x129f   :  { %v2582_v6 = vmul.f32 0.03125, %v2580_v5  ;;  %v2577_v7 = vpop.xlane.xlu0 %2576 }
0x12a0   :  { %v2581_v8 = vmul.f32 0.03125, %v2577_v7 }
0x12a1   :  { %v2584_v9 = vadd.f32 1e-05, %v2582_v6 }
0x12a2   :  { %v2583_v10 = vadd.f32 1e-05, %v2581_v8 }
0x12a3   :  { %9983 = vrsqrt.f32 %v2584_v9 }
0x12a4   :  { %9985 = vrsqrt.f32 %v2583_v10 }
0x12ad   :  { %v9984_v11 = vpop.eup %9983 }
0x12ae   :  { %v9986_v13 = vpop.eup %9985  ;;  %v2588_v14 = vmul.f32 %v9984_v11, %v2572_v59 }
0x12af   :  { %v2587_v41 = vmul.f32 %v9986_v13, %v2571_v60 }
0x12b0   :  { %v2597_v15 = vmul.f32 %v8449_v12, %v2588_v14 }
0x12b1   :  { %v2596_v17 = vmul.f32 %v8449_v12, %v2587_v41 }
0x12b2   :  { %v12981_v19 = vadd.f32 %v8450_v16, %v2597_v15 }
0x12b3   :  { %v12979_v18 = vadd.f32 %v8450_v16, %v2596_v17  ;;  %v2702_v17 = vld [vmem:[#allocation96 + $0x8] sm:$0xff] }
0x12b5   :  { %9008 = vmatprep.mubr.msk.f32.mxu0 %vm1318_vm4, %v12979_v18 }
0x12b6   :  { %9009 = vmatmul.mubr.msk.f32.vlgmr.msra.gmra.mrb[26].mxu0 %vm1318_vm4, %v12981_v19 }
0x12b7   :  { %9013 = vmatprep.mubr.msk.bf16.mxu0 %vm12006_vm5, %v12005_v33 }
0x1389   :  { %v9010_v21 = vpop.f32.mrb[26].mxu0 }
0x138a   :  { %v2696_v22 = vadd.f32 %v9010_v21, %v8451_v20  ;;  %v2690_v23 = vpop.f32.mrb[27].mxu0 }
0x138b   :  { %v2691_v24 = vadd.f32 %v8451_v20, %v2690_v23  ;;  %v2701_v20 = vld [vmem:[#allocation96] sm:$0xff] }
0x138c   :  { %v2700_v25 = vmul.f32 0.35355338, %v2696_v22 }
0x138d   :  { %v2699_v26 = vmul.f32 0.35355338, %v2691_v24  ;;  %v12989_v27 = vpack.c.bf16 %v2696_v22, %v2691_v24 }
0x138f   :  { %v2705_v28 = vpack.c.bf16 %v2700_v25, %v2699_v26  ;;  %2708 = vrot.lane.b32.xlu0 %v12989_v27, %s12007_s1 }
0x1393   :  { %2830 = vrot.lane.b32.xlu0 %v12989_v27, %s12009_s12 }
0x1397   :  { %2828 = vrot.lane.b32.xlu0 %v2705_v28, %s12008_s7 }
0x1401   :  { %v2709_v29 = vpop.permute.xlu0 %2708 }
0x1402   :  { %v2714_v30 = vsel %vm1503_vm6, %v2709_v29, 0 }
0x1403   :  { %9012 = vmatpush3.bf16.xpose.msra.mxu0 %v2714_v30 }
0x1404   :  { %9029 = vmatprep.subr.bf16.mxu0 %v12005_v33 }
0x1405   :  { %v2831_v50 = vpop.permute.xlu0 %2830 }
0x1406   :  { %v2836_v52 = vsel %vm1503_vm6, %v2831_v50, 0 }
0x1409   :  { %v2829_v53 = vpop.permute.xlu0 %2828 }
0x140a   :  { %9014 = vmatmul.mubr.msk.bf16.vlgmr.msra.gmra.mrb[28].mxu0 %vm1503_vm6, %v2705_v28 }
0x140b   :  { %9031 = vmatprep.mubr.msk.bf16.mxu0 %vm12006_vm5, %v12005_v33 }
0x14dd   :  { %v2750_v34 = vpop.f32.mrb[28].mxu0 }
0x14de   :  { %v9015_v35 = vpop.f32.mrb[29].mxu0  ;;  %v2757_v36 = vsel %vm1551_vm7, %v2750_v34, -inf }
0x14df   :  { %2758 = vmax.xlane.f32.xlu1 %v2757_v36  ;;  %v2753_v37 = vpop.f32.mrb[30].mxu0 }
0x14e0   :  { %v9016_v38 = vpop.f32.mrb[31].mxu0  ;;  %v2760_v39 = vsel %vm1551_vm7, %v2753_v37, -inf }
0x14e3   :  { %2761 = vmax.xlane.f32.xlu1 %v2760_v39 }
0x14f4   :  { %2778 = vrot.lane.b32.xlu1 %v12989_v27, %s12011_s10 }
0x156c   :  { %v2759_v40 = vpop.xlane.xlu1 %2758 }
0x156d   :  { %v2763_v42 = vsub.f32 %v2750_v34, %v2759_v40 }
0x156f   :  { %v2765_v43 = vmul.f32 1.442695, %v2763_v42 }
0x1570   :  { %v2762_v44 = vpop.xlane.xlu1 %2761 }
0x1571   :  { %v2764_v45 = vsub.f32 %v2753_v37, %v2762_v44  ;;  %9987 = vpow2.f32 %v2765_v43 }
0x1573   :  { %v2767_v46 = vmul.f32 1.442695, %v2764_v45 }
0x1574   :  { %v2779_v47 = vpop.permute.xlu1 %2778 }
0x1575   :  { %9989 = vpow2.f32 %v2767_v46  ;;  %9018 = vmatpush3.bf16.msra.mxu1 %v2779_v47 }
0x1576   :  { %9023 = vmatprep.subr.bf16.mxu1 %v12005_v33 }
0x157b   :  { %v9988_v48 = vpop.eup %9987 }
0x157c   :  { %v2769_v12 = vsel %vm1551_vm7, %v9988_v48, 0.0 }
0x157f   :  { %v9990_v49 = vpop.eup %9989 }
0x1580   :  { %v2777_v51 = vpack.c.bf16 %v9990_v49, %v9988_v48  ;;  %v2772_v13 = vsel %vm1551_vm7, %v9990_v49, 0.0 }
0x1582   :  { %9020 = vmatmul.mubr.msk.bf16.vlgmr.msra.gmra.mrb[20].mxu1 %vm1551_vm7, %v2777_v51 }
0x1583   :  { %9024 = vmatpush3.bf16.xpose.msra.mxu1 %v2836_v52  ;;  %9025 = vmatprep.mubr.msk.bf16.mxu1 %vm12006_vm5, %v12005_v33 }
0x1584   :  { %9035 = vmatprep.subr.mxu1 %v2702_v17 }
0x158a   :  { %9026 = vmatmul.mubr.msk.bf16.vlgmr.msra.gmra.mrb[24].mxu1 %vm1503_vm6, %v2829_v53 }
0x158b   :  { %9036 = vmatpush3.msra.mxu1 %v2702_v17 }
0x158c   :  { %9040 = vmatprep.subr.mxu1 %v2701_v20 }
0x1655   :  { %v13011_v54 = vpop.f32.mrb[20].mxu1 }
0x1656   :  { %v9021_v55 = vpop.f32.mrb[21].mxu1 }
0x1657   :  { %v13013_v56 = vpop.f32.mrb[22].mxu1 }
0x1658   :  { %v9022_v57 = vpop.f32.mrb[23].mxu1 }
0x165d   :  { %v2872_v58 = vpop.f32.mrb[24].mxu1 }
0x165e   :  { %v9027_v59 = vpop.f32.mrb[25].mxu1  ;;  %v2879_v60 = vsel %vm1551_vm7, %v2872_v58, -inf }
0x165f   :  { %2880 = vmax.xlane.f32.xlu1 %v2879_v60  ;;  %v2875_v61 = vpop.f32.mrb[26].mxu1 }
0x1660   :  { %v9028_v62 = vpop.f32.mrb[27].mxu1  ;;  %v2882_v63 = vsel %vm1551_vm7, %v2875_v61, -inf }
0x1661   :  { %2883 = vmax.xlane.f32.xlu0 %v2882_v63 }
0x1670   :  { %3113 = vrot.lane.b32.xlu1 %v12989_v27, %s12014_s25 }
0x1674   :  { %3111 = vrot.lane.b32.xlu1 %v2705_v28, %s12012_s26 }
0x1677   :  { %2900 = vrot.lane.b32.xlu0 %v12989_v27, %s12010_s0 }
0x1678   :  { %3315 = vrot.lane.b32.xlu1 %v2705_v28, %s12013_s19 }
0x167b   :  { %3317 = vrot.lane.b32.xlu0 %v12989_v27, %s12015_s27 }
0x16ec   :  { %v2881_v0 = vpop.xlane.xlu1 %2880 }
0x16ed   :  { %v2885_v1 = vsub.f32 %v2872_v58, %v2881_v0 }
0x16ee   :  { %v2884_v2 = vpop.xlane.xlu0 %2883 }
0x16ef   :  { %v2887_v32 = vmul.f32 1.442695, %v2885_v1  ;;  %v2886_v31 = vsub.f32 %v2875_v61, %v2884_v2 }
0x16f0   :  { %v3114_v8 = vpop.permute.xlu1 %3113 }
0x16f1   :  { %9991 = vpow2.f32 %v2887_v32  ;;  %v2889_v3 = vmul.f32 1.442695, %v2886_v31  ;;  %v3119_v11 = vsel %vm1503_vm6, %v3114_v8, 0 }
0x16f2   :  { %v2901_v4 = vpop.permute.xlu0 %2900 }
0x16f3   :  { %9993 = vpow2.f32 %v2889_v3  ;;  %9030 = vmatpush3.bf16.msra.mxu0 %v2901_v4 }
0x16f4   :  { %9045 = vmatprep.subr.bf16.mxu0 %v12005_v33  ;;  %v3112_v41 = vpop.permute.xlu1 %3111 }
0x16f6   :  { %v3318_v14 = vpop.permute.xlu0 %3317 }
0x16f7   :  { %v3323_v15 = vsel %vm1503_vm6, %v3318_v14, 0 }
0x16f8   :  { %v3316_v16 = vpop.permute.xlu1 %3315 }
0x16fb   :  { %v9992_v5 = vpop.eup %9991 }
0x16fc   :  { %v2891_v6 = vsel %vm1551_vm7, %v9992_v5, 0.0 }
0x16fd   :  { %v9994_v7 = vpop.eup %9993  ;;  %2892 = vadd.xlane.f32.xlu0 %v2891_v6 }
0x16fe   :  { %v2894_v9 = vsel %vm1551_vm7, %v9994_v7, 0.0  ;;  %v2899_v10 = vpack.c.bf16 %v9994_v7, %v9992_v5 }
0x16ff   :  { %2895 = vadd.xlane.f32.xlu1 %v2894_v9 }
0x1700   :  { %9032 = vmatmul.mubr.msk.bf16.vlgmr.msra.gmra.mrb[32].mxu0 %vm1551_vm7, %v2899_v10 }
0x1701   :  { %9046 = vmatpush3.bf16.xpose.msra.mxu0 %v3119_v11  ;;  %2770 = vadd.xlane.f32.xlu0 %v2769_v12  ;;  %v2703_v11 = vld [vmem:[#allocation96 + $0x10] sm:$0xff]  ;;  %v2704_v12 = vld [vmem:[#allocation96 + $0x18] sm:$0xff] }
0x1702   :  { %9047 = vmatprep.mubr.msk.bf16.mxu0 %vm12006_vm5, %v12005_v33  ;;  %9062 = vmatprep.subr.bf16.mxu0 %v12005_v33 }
0x1705   :  { %2773 = vadd.xlane.f32.xlu0 %v2772_v13 }
0x1708   :  { %9048 = vmatmul.mubr.msk.bf16.vlgmr.msra.gmra.mrb[36].mxu0 %vm1503_vm6, %v3112_v41 }
0x1709   :  { %9063 = vmatpush3.bf16.xpose.msra.mxu0 %v3323_v15  ;;  %9064 = vmatprep.mubr.msk.bf16.mxu0 %vm12006_vm5, %v12005_v33 }
0x170a   :  { %9068 = vmatprep.subr.bf16.mxu0 %v12005_v33 }
0x1710   :  { %9065 = vmatmul.mubr.msk.bf16.vlgmr.msra.gmra.mrb[40].mxu0 %vm1503_vm6, %v3316_v16 }
0x1711   :  { %9070 = vmatprep.mubr.msk.bf16.mxu0 %vm12006_vm5, %v12005_v33 }
0x178a   :  { %v2893_v21 = vpop.xlane.xlu0 %2892 }
0x178b   :  { %9995 = vrcp.f32 %v2893_v21 }
0x178c   :  { %v2896_v23 = vpop.xlane.xlu1 %2895 }
0x178e   :  { %v2771_v22 = vpop.xlane.xlu0 %2770 }
0x178f   :  { %9997 = vrcp.f32 %v2771_v22 }
0x1790   :  { %9999 = vrcp.f32 %v2896_v23 }
0x1792   :  { %v2774_v24 = vpop.xlane.xlu0 %2773 }
0x1793   :  { %10001 = vrcp.f32 %v2774_v24 }
0x1795   :  { %v9996_v25 = vpop.eup %9995 }
0x1799   :  { %v9998_v28 = vpop.eup %9997 }
0x179a   :  { %v10000_v34 = vpop.eup %9999  ;;  %v2825_v38 = vmul.f32 %v9998_v28, %v13011_v54 }
0x179d   :  { %v10002_v39 = vpop.eup %10001 }
0x179e   :  { %v2826_v47 = vmul.f32 %v10002_v39, %v13013_v56 }
0x17d3   :  { %v2940_v26 = vpop.f32.mrb[32].mxu0 }
0x17d4   :  { %v2947_v29 = vmul.f32 %v9996_v25, %v2940_v26  ;;  %v9033_v30 = vpop.f32.mrb[33].mxu0 }
0x17d5   :  { %v2943_v35 = vpop.f32.mrb[34].mxu0 }
0x17d6   :  { %v2948_v36 = vmul.f32 %v10000_v34, %v2943_v35  ;;  %v9034_v37 = vpop.f32.mrb[35].mxu0  ;;  %9037 = vmatprep.mubr.msk.f32.mxu1 %vm1503_vm6, %v2947_v29 }
0x17d8   :  { %9038 = vmatmul.mubr.msk.f32.vlgmr.msra.gmra.mrb[18].mxu1 %vm1503_vm6, %v2948_v36 }
0x17d9   :  { %9042 = vmatprep.mubr.msk.f32.mxu1 %vm1503_vm6, %v2825_v38  ;;  %9041 = vmatpush3.msra.mxu1 %v2701_v20  ;;  %v8470_v38 = vld [vmem:[#allocation93] ss:$0 sm:$0xff] }
0x17da   :  { %9051 = vmatprep.subr.bf16.mxu1 %v12005_v33 }
0x17db   :  { %v3155_v40 = vpop.f32.mrb[36].mxu0 }
0x17dc   :  { %v9049_v42 = vpop.f32.mrb[37].mxu0  ;;  %v3162_v43 = vsel %vm1551_vm7, %v3155_v40, -inf }
0x17dd   :  { %3163 = vmax.xlane.f32.xlu1 %v3162_v43  ;;  %v3158_v44 = vpop.f32.mrb[38].mxu0 }
0x17de   :  { %v9050_v45 = vpop.f32.mrb[39].mxu0  ;;  %v3165_v46 = vsel %vm1551_vm7, %v3158_v44, -inf }
0x17df   :  { %3166 = vmax.xlane.f32.xlu0 %v3165_v46 }
0x17e0   :  { %9043 = vmatmul.mubr.msk.f32.vlgmr.msra.gmra.mrb[18].mxu1 %vm1503_vm6, %v2826_v47 }
0x17e1   :  { %9053 = vmatprep.mubr.msk.bf16.mxu1 %vm12006_vm5, %v12005_v33 }
0x17e3   :  { %v3359_v48 = vpop.f32.mrb[40].mxu0 }
0x17e4   :  { %v9066_v49 = vpop.f32.mrb[41].mxu0  ;;  %v3366_v50 = vsel %vm1551_vm7, %v3359_v48, -inf }
0x17e5   :  { %3367 = vmax.xlane.f32.xlu1 %v3366_v50  ;;  %v3362_v51 = vpop.f32.mrb[42].mxu0 }
0x17e6   :  { %v9067_v52 = vpop.f32.mrb[43].mxu0  ;;  %v3369_v53 = vsel %vm1551_vm7, %v3362_v51, -inf }
0x17e7   :  { %3370 = vmax.xlane.f32.xlu0 %v3369_v53 }
0x17f6   :  { %3183 = vrot.lane.b32.xlu1 %v12989_v27, %s12017_s30 }
0x17fd   :  { %3387 = vrot.lane.b32.xlu0 %v12989_v27, %s12016_s21 }
0x186a   :  { %v3164_v54 = vpop.xlane.xlu1 %3163 }
0x186b   :  { %v3168_v55 = vsub.f32 %v3155_v40, %v3164_v54 }
0x186c   :  { %v3167_v56 = vpop.xlane.xlu0 %3166 }
0x186d   :  { %v3170_v57 = vmul.f32 1.442695, %v3168_v55  ;;  %v3169_v58 = vsub.f32 %v3158_v44, %v3167_v56 }
0x186f   :  { %10003 = vpow2.f32 %v3170_v57  ;;  %v3172_v59 = vmul.f32 1.442695, %v3169_v58  ;;  %v3575_v57 = vld [vmem:[#allocation80 + $0x8] sm:$0xff] }
0x1871   :  { %10005 = vpow2.f32 %v3172_v59  ;;  %v3576_v59 = vld [vmem:[#allocation80 + $0x10] sm:$0xff] }
0x1872   :  { %v3368_v60 = vpop.xlane.xlu1 %3367 }
0x1873   :  { %v3372_v61 = vsub.f32 %v3359_v48, %v3368_v60  ;;  %v3577_v60 = vld [vmem:[#allocation80 + $0x18] sm:$0xff] }
0x1874   :  { %v3371_v62 = vpop.xlane.xlu0 %3370 }
0x1875   :  { %v3374_v63 = vmul.f32 1.442695, %v3372_v61  ;;  %v3373_v0 = vsub.f32 %v3362_v51, %v3371_v62  ;;  %v9620_v61 = vpack.c.bf16 %v3577_v60, %v3576_v59  ;;  %v12018_v62 = vmov 0.0|0.0  }
0x1876   :  { %v3184_v1 = vpop.permute.xlu1 %3183 }
0x1877   :  { %10007 = vpow2.f32 %v3374_v63  ;;  %v3376_v2 = vmul.f32 1.442695, %v3373_v0  ;;  %9052 = vmatpush3.bf16.msra.mxu1 %v3184_v1  ;;  %v3668_v63 = vld [vmem:[#allocation83] sm:$0xff]  ;;  %v3669_v0 = vld [vmem:[#allocation83 + $0x8] sm:$0xff]  ;;  %v3670_v1 = vld [vmem:[#allocation83 + $0x10] sm:$0xff] }
0x1878   :  { %v3388_v32 = vpop.permute.xlu0 %3387  ;;  %9057 = vmatprep.subr.mxu1 %v2703_v11 }
0x1879   :  { %v10004_v31 = vpop.eup %10003  ;;  %10009 = vpow2.f32 %v3376_v2  ;;  %9069 = vmatpush3.bf16.msra.mxu0 %v3388_v32  ;;  %v9624_v2 = vpack.c.bf16 %v3669_v0, %v3668_v63  ;;  %v3671_v32 = vld [vmem:[#allocation83 + $0x18] sm:$0xff] }
0x187a   :  { %v3174_v27 = vsel %vm1551_vm7, %v10004_v31, 0.0 }
0x187b   :  { %v10006_v3 = vpop.eup %10005  ;;  %3175 = vadd.xlane.f32.xlu1 %v3174_v27  ;;  %v3672_v27 = vld [vmem:[#allocation83 + $0x20] sm:$0xff] }
0x187c   :  { %v3177_v4 = vsel %vm1551_vm7, %v10006_v3, 0.0  ;;  %v3182_v5 = vpack.c.bf16 %v10006_v3, %v10004_v31  ;;  %v9628_v31 = vpack.c.bf16 %v3671_v32, %v3670_v1  ;;  %v3673_v3 = vld [vmem:[#allocation83 + $0x28] sm:$0xff] }
0x187d   :  { %3178 = vadd.xlane.f32.xlu0 %v3177_v4  ;;  %v9632_v4 = vpack.c.bf16 %v3673_v3, %v3672_v27 }
0x187e   :  { %9054 = vmatmul.mubr.msk.bf16.vlgmr.msra.gmra.mrb[28].mxu1 %vm1551_vm7, %v3182_v5 }
0x187f   :  { %9058 = vmatpush3.msra.mxu1 %v2703_v11 }
0x1880   :  { %9074 = vmatprep.subr.mxu1 %v2704_v12 }
0x1881   :  { %v10008_v6 = vpop.eup %10007 }
0x1882   :  { %v3378_v7 = vsel %vm1551_vm7, %v10008_v6, 0.0 }
0x1883   :  { %v10010_v8 = vpop.eup %10009  ;;  %3379 = vadd.xlane.f32.xlu1 %v3378_v7 }
0x1884   :  { %v3381_v9 = vsel %vm1551_vm7, %v10010_v8, 0.0  ;;  %v3386_v10 = vpack.c.bf16 %v10010_v8, %v10008_v6 }
0x1885   :  { %3382 = vadd.xlane.f32.xlu0 %v3381_v9 }
0x1886   :  { %9071 = vmatmul.mubr.msk.bf16.vlgmr.msra.gmra.mrb[44].mxu0 %vm1551_vm7, %v3386_v10 }
0x1908   :  { %v3176_v13 = vpop.xlane.xlu1 %3175 }
0x1909   :  { %10011 = vrcp.f32 %v3176_v13 }
0x190a   :  { %v3179_v14 = vpop.xlane.xlu0 %3178 }
0x190b   :  { %10013 = vrcp.f32 %v3179_v14 }
0x1910   :  { %v3380_v41 = vpop.xlane.xlu1 %3379 }
0x1911   :  { %10015 = vrcp.f32 %v3380_v41 }
0x1912   :  { %v3383_v15 = vpop.xlane.xlu0 %3382 }
0x1913   :  { %v10012_v16 = vpop.eup %10011  ;;  %10017 = vrcp.f32 %v3383_v15 }
0x1915   :  { %v10014_v22 = vpop.eup %10013 }
0x191b   :  { %v10016_v26 = vpop.eup %10015 }
0x191d   :  { %v10018_v34 = vpop.eup %10017 }
0x1951   :  { %v3223_v17 = vpop.f32.mrb[28].mxu1 }
0x1952   :  { %v3230_v20 = vmul.f32 %v10012_v16, %v3223_v17  ;;  %v9055_v21 = vpop.f32.mrb[29].mxu1  ;;  %v8472_v16 = vld [vmem:[#allocation87] ss:$0 sm:$0xff]  ;;  %v3811_v17 = vld [vmem:[#allocation32] sm:$0xff] }
0x1953   :  { %v3226_v23 = vpop.f32.mrb[30].mxu1 }
0x1954   :  { %v3231_v24 = vmul.f32 %v10014_v22, %v3226_v23  ;;  %v9056_v25 = vpop.f32.mrb[31].mxu1  ;;  %9059 = vmatprep.mubr.msk.f32.mxu1 %vm1503_vm6, %v3230_v20  ;;  %v3812_v20 = vld [vmem:[#allocation32 + $0x8] sm:$0xff] }
0x1955   :  { %v9641_v23 = vpack.c.bf16 %v3812_v20, %v3811_v17  ;;  %v3813_v25 = vld [vmem:[#allocation32 + $0x10] sm:$0xff] }
0x1956   :  { %9060 = vmatmul.mubr.msk.f32.vlgmr.msra.gmra.mrb[18].mxu1 %vm1503_vm6, %v3231_v24 }
0x1957   :  { %9075 = vmatpush3.msra.mxu1 %v2704_v12  ;;  %v8471_v12 = vld [vmem:[#allocation86] ss:$0 sm:$0xff] }
0x1958   :  { %9625 = vmatprep.subr.bf16.mxu1 %v9624_v2 }
0x1959   :  { %v3427_v28 = vpop.f32.mrb[44].mxu0 }
0x195a   :  { %v3434_v29 = vmul.f32 %v10016_v26, %v3427_v28  ;;  %v9072_v30 = vpop.f32.mrb[45].mxu0  ;;  %v3814_v26 = vld [vmem:[#allocation32 + $0x18] sm:$0xff] }
0x195b   :  { %v3430_v35 = vpop.f32.mrb[46].mxu0  ;;  %v9644_v28 = vpack.c.bf16 %v3814_v26, %v3813_v25  ;;  %v3674_v30 = vld [vmem:[#allocation83 + $0x30] sm:$0xff] }
0x195c   :  { %v3435_v36 = vmul.f32 %v10018_v34, %v3430_v35  ;;  %v9073_v37 = vpop.f32.mrb[47].mxu0  ;;  %9076 = vmatprep.mubr.msk.f32.mxu1 %vm1503_vm6, %v3434_v29  ;;  %v13088_v29 = vld [vmem:[#allocation113] sm:$0xff] }
0x195d   :  { %v3675_v34 = vld [vmem:[#allocation83 + $0x38] sm:$0xff] }
0x195e   :  { %9077 = vmatmul.mubr.msk.f32.vlgmr.msra.gmra.mrb[18].mxu1 %vm1503_vm6, %v3435_v36  ;;  %v9636_v35 = vpack.c.bf16 %v3675_v34, %v3674_v30  ;;  %v8473_v36 = vld [vmem:[#allocation81] ss:$0 sm:$0xff] }
0x195f   :  { %9627 = vmatpush3.bf16.msra.mxu1 %v9624_v2 }
0x1960   :  { %9629 = vmatprep.subr.bf16.mxu1 %v9628_v31 }
0x1963   :  { %9631 = vmatpush3.bf16.msra.mxu1 %v9628_v31 }
0x1964   :  { %9633 = vmatprep.subr.bf16.mxu1 %v9632_v4 }
0x1967   :  { %9635 = vmatpush3.bf16.msra.mxu1 %v9632_v4 }
0x1968   :  { %9637 = vmatprep.subr.bf16.mxu1 %v9636_v35 }
0x196b   :  { %9639 = vmatpush3.bf16.msra.mxu1 %v9636_v35 }
0x196c   :  { %9126 = vmatprep.subr.bf16.mxu1 %v12005_v33 }
0x1a31   :  { %v9078_v39 = vpop.f32.mrb[18].mxu1 }
0x1a32   :  { %v3527_v40 = vadd.f32 %v9078_v39, %v8470_v38  ;;  %v3508_v42 = vpop.f32.mrb[19].mxu1 }
0x1a33   :  { %v3526_v43 = vadd.f32 %v8470_v38, %v3508_v42 }
0x1a34   :  { %v3529_v44 = vadd.f32 %v3527_v40, %v12981_v19 }
0x1a35   :  { %v3528_v45 = vadd.f32 %v3526_v43, %v12979_v18  ;;  %v3574_v18 = vld [vmem:[#allocation80] sm:$0xff] }
0x1a36   :  { %v3533_v46 = vsel %vm1318_vm4, %v3529_v44, 0.0  ;;  %v9616_v58 = vpack.c.bf16 %v3575_v57, %v3574_v18 }
0x1a37   :  { %3534 = vadd.xlane.f32.xlu0 %v3533_v46  ;;  %v3530_v47 = vsel %vm1318_vm4, %v3528_v45, 0.0 }
0x1a38   :  { %3531 = vadd.xlane.f32.xlu1 %v3530_v47  ;;  %9617 = vmatprep.subr.bf16.mxu0 %v9616_v58 }
0x1a39   :  { %9619 = vmatpush3.bf16.msra.mxu0 %v9616_v58 }
0x1a3a   :  { %9621 = vmatprep.subr.bf16.mxu0 %v9620_v61 }
0x1a3d   :  { %9623 = vmatpush3.bf16.msra.mxu0 %v9620_v61 }
0x1a3e   :  { %9640 = vmatprep.subr.bf16.mxu0 %v12018_v62 }
0x1ac4   :  { %v3535_v48 = vpop.xlane.xlu0 %3534 }
0x1ac5   :  { %v3537_v49 = vmul.f32 0.03125, %v3535_v48  ;;  %v3532_v50 = vpop.xlane.xlu1 %3531 }
0x1ac6   :  { %v3536_v51 = vmul.f32 0.03125, %v3532_v50 }
0x1ac7   :  { %v3539_v52 = vsub.f32 %v3529_v44, %v3537_v49  ;;  %v8481_v44 = vld [vmem:[#allocation29] ss:$0 sm:$0xff] }
0x1ac8   :  { %v3538_v53 = vsub.f32 %v3528_v45, %v3536_v51 }
0x1ac9   :  { %v3541_v54 = vmul.f32 %v3539_v52, %v3539_v52 }
0x1aca   :  { %v3540_v55 = vmul.f32 %v3538_v53, %v3538_v53 }
0x1acb   :  { %v3545_v56 = vsel %vm1318_vm4, %v3541_v54, 0.0 }
0x1acc   :  { %3546 = vadd.xlane.f32.xlu0 %v3545_v56  ;;  %v3542_v19 = vsel %vm1318_vm4, %v3540_v55, 0.0 }
0x1acd   :  { %3543 = vadd.xlane.f32.xlu1 %v3542_v19 }
0x1b59   :  { %v3547_v5 = vpop.xlane.xlu0 %3546 }
0x1b5a   :  { %v3549_v6 = vmul.f32 0.03125, %v3547_v5  ;;  %v3544_v7 = vpop.xlane.xlu1 %3543 }
0x1b5b   :  { %v3548_v8 = vmul.f32 0.03125, %v3544_v7 }
0x1b5c   :  { %v3551_v9 = vadd.f32 1e-05, %v3549_v6 }
0x1b5d   :  { %v3550_v10 = vadd.f32 1e-05, %v3548_v8 }
0x1b5e   :  { %10019 = vrsqrt.f32 %v3551_v9 }
0x1b5f   :  { %10021 = vrsqrt.f32 %v3550_v10 }
0x1b68   :  { %v10020_v11 = vpop.eup %10019 }
0x1b69   :  { %v10022_v13 = vpop.eup %10021  ;;  %v3555_v14 = vmul.f32 %v10020_v11, %v3539_v52 }
0x1b6a   :  { %v3554_v41 = vmul.f32 %v10022_v13, %v3538_v53 }
0x1b6b   :  { %v3564_v15 = vmul.f32 %v8471_v12, %v3555_v14 }
0x1b6c   :  { %v3563_v21 = vmul.f32 %v8471_v12, %v3554_v41 }
0x1b6d   :  { %v13079_v24 = vadd.f32 %v8472_v16, %v3564_v15 }
0x1b6e   :  { %v13077_v22 = vadd.f32 %v8472_v16, %v3563_v21  ;;  %v3897_v21 = vld [vmem:[#allocation33 + $0x8] sm:$0xff] }
0x1b70   :  { %9087 = vmatprep.mubr.msk.f32.mxu0 %vm1318_vm4, %v13077_v22 }
0x1b71   :  { %9088 = vmatmul.mubr.msk.f32.vlgmr.msra.gmra.mrb[48].mxu0 %vm1318_vm4, %v13079_v24 }
0x1b72   :  { %9642 = vmatpush3.bf16.msra.mxu0 %v9641_v23  ;;  %9117 = vmatprep.mubr.msk.f32.mxu0 %vm12006_vm5, %v12005_v33 }
0x1b73   :  { %9643 = vmatprep.subr.bf16.mxu0 %v12018_v62 }
0x1b76   :  { %9645 = vmatpush3.bf16.msra.mxu0 %v9644_v28 }
0x1b77   :  { %9120 = vmatprep.subr.bf16.mxu0 %v12005_v33 }
0x1b79   :  { %9118 = vmatmul.mubr.msk.f32.vlgmr.msra.gmra.mrb[50].mxu0 %vm1318_vm4, %v13088_v29 }
0x1b7a   :  { %9122 = vmatprep.mubr.msk.bf16.mxu0 %vm12006_vm5, %v12005_v33 }
0x1c44   :  { %v9089_v37 = vpop.f32.mrb[48].mxu0 }
0x1c45   :  { %v3663_v38 = vadd.f32 %v9089_v37, %v8473_v36  ;;  %v3657_v39 = vpop.f32.mrb[49].mxu0 }
0x1c46   :  { %v3658_v40 = vadd.f32 %v8473_v36, %v3657_v39  ;;  %v3896_v39 = vld [vmem:[#allocation33] sm:$0xff] }
0x1c47   :  { %v3667_v43 = vmax.f32 %v3663_v38, 0.0 }
0x1c48   :  { %v3666_v42 = vmax.f32 %v3658_v40, 0.0 }
0x1c4a   :  { %9106 = vmatprep.mubr.msk.f32.mxu1 %vm2479_vm8, %v3666_v42 }
0x1c4b   :  { %9107 = vmatmul.mubr.msk.f32.vlgmr.msra.gmra.mrb[32].mxu1 %vm2479_vm8, %v3667_v43 }
0x1c4c   :  { %v3891_v45 = vpop.f32.mrb[50].mxu0  ;;  %9128 = vmatprep.mubr.msk.bf16.mxu1 %vm12006_vm5, %v12005_v33 }
0x1c4d   :  { %v3892_v46 = vadd.f32 %v8481_v44, %v3891_v45  ;;  %v9119_v47 = vpop.f32.mrb[51].mxu0 }
0x1c4f   :  { %v13100_v48 = vpack.c.bf16 %v3892_v46, %v3892_v46  ;;  %v3895_v49 = vmul.f32 0.35355338, %v3892_v46 }
0x1c51   :  { %3903 = vrot.lane.b32.xlu1 %v13100_v48, %s12007_s1  ;;  %v13106_v50 = vpack.c.bf16 %v3895_v49, %v3895_v49 }
0x1c55   :  { %4015 = vrot.lane.b32.xlu1 %v13100_v48, %s12009_s12 }
0x1c59   :  { %4013 = vrot.lane.b32.xlu1 %v13106_v50, %s12008_s7 }
0x1cc3   :  { %v3904_v51 = vpop.permute.xlu1 %3903 }
0x1cc4   :  { %v3909_v52 = vsel %vm1503_vm6, %v3904_v51, 0 }
0x1cc5   :  { %9121 = vmatpush3.bf16.xpose.msra.mxu0 %v3909_v52 }
0x1cc6   :  { %9138 = vmatprep.subr.bf16.mxu0 %v12005_v33 }
0x1cc7   :  { %v4016_v32 = vpop.permute.xlu1 %4015 }
0x1cc8   :  { %v4021_v27 = vsel %vm1503_vm6, %v4016_v32, 0 }
0x1ccb   :  { %v4014_v3 = vpop.permute.xlu1 %4013 }
0x1ccc   :  { %9123 = vmatmul.mubr.msk.bf16.vlgmr.msra.gmra.mrb[52].mxu0 %vm1503_vm6, %v13106_v50 }
0x1ccd   :  { %9140 = vmatprep.mubr.msk.bf16.mxu0 %vm12006_vm5, %v12005_v33 }
0x1d1e   :  { %v13116_v53 = vpop.f32.mrb[32].mxu1 }
0x1d1f   :  { %v13118_v54 = vpop.f32.mrb[33].mxu1 }
0x1d9f   :  { %v3945_v55 = vpop.f32.mrb[52].mxu0 }
0x1da0   :  { %v9124_v56 = vpop.f32.mrb[53].mxu0  ;;  %v3951_v19 = vsel %vm1503_vm6, %v3945_v55, -inf }
0x1da1   :  { %3952 = vmax.xlane.f32.xlu0 %v3951_v19  ;;  %v3948_v18 = vpop.f32.mrb[54].mxu0 }
0x1da2   :  { %v9125_v57 = vpop.f32.mrb[55].mxu0 }
0x1db7   :  { %3962 = vrot.lane.b32.xlu0 %v13100_v48, %s12011_s10 }
0x1dbb   :  { %4074 = vrot.lane.b32.xlu0 %v13100_v48, %s12010_s0 }
0x1e2e   :  { %v3953_v58 = vpop.xlane.xlu0 %3952 }
0x1e2f   :  { %v3954_v59 = vsub.f32 %v3945_v55, %v3953_v58 }
0x1e31   :  { %v3955_v60 = vmul.f32 1.442695, %v3954_v59 }
0x1e32   :  { %v3963_v61 = vpop.permute.xlu0 %3962 }
0x1e33   :  { %10023 = vpow2.f32 %v3955_v60  ;;  %v3969_v63 = vsel %vm3967_vm9, %v3963_v61, 0 }
0x1e34   :  { %9127 = vmatpush3.bf16.msra.mxu1 %v3969_v63 }
0x1e35   :  { %9132 = vmatprep.subr.bf16.mxu1 %v12005_v33 }
0x1e36   :  { %v4075_v0 = vpop.permute.xlu0 %4074 }
0x1e37   :  { %v4080_v1 = vsel %vm3967_vm9, %v4075_v0, 0 }
0x1e38   :  { %9139 = vmatpush3.bf16.msra.mxu0 %v4080_v1 }
0x1e39   :  { %9160 = vmatprep.subr.bf16.mxu0 %v12005_v33 }
0x1e3d   :  { %v10024_v2 = vpop.eup %10023 }
0x1e3e   :  { %v3961_v31 = vpack.c.bf16 %v10024_v2, %v10024_v2  ;;  %v3957_v13 = vsel %vm1503_vm6, %v10024_v2, 0.0 }
0x1e40   :  { %9129 = vmatmul.mubr.msk.bf16.vlgmr.msra.gmra.mrb[36].mxu1 %vm1503_vm6, %v3961_v31 }
0x1e41   :  { %9133 = vmatpush3.bf16.xpose.msra.mxu1 %v4021_v27  ;;  %9134 = vmatprep.mubr.msk.bf16.mxu1 %vm12006_vm5, %v12005_v33 }
0x1e42   :  { %9144 = vmatprep.subr.mxu1 %v12005_v33 }
0x1e48   :  { %9135 = vmatmul.mubr.msk.bf16.vlgmr.msra.gmra.mrb[40].mxu1 %vm1503_vm6, %v4014_v3 }
0x1e49   :  { %9146 = vmatprep.mubr.msk.f32.mxu1 %vm12006_vm5, %v12005_v33  ;;  %9145 = vmatpush3.msra.mxu1 %v3897_v21 }
0x1e4a   :  { %9149 = vmatprep.subr.mxu1 %v12005_v33 }
0x1f13   :  { %v4005_v4 = vpop.f32.mrb[36].mxu1 }
0x1f14   :  { %v9130_v5 = vpop.f32.mrb[37].mxu1 }
0x1f15   :  { %v4008_v6 = vpop.f32.mrb[38].mxu1 }
0x1f16   :  { %v9131_v7 = vpop.f32.mrb[39].mxu1 }
0x1f1b   :  { %v4057_v8 = vpop.f32.mrb[40].mxu1 }
0x1f1c   :  { %v9136_v9 = vpop.f32.mrb[41].mxu1  ;;  %v4063_v10 = vsel %vm1503_vm6, %v4057_v8, -inf }
0x1f1d   :  { %4064 = vmax.xlane.f32.xlu1 %v4063_v10  ;;  %v4060_v11 = vpop.f32.mrb[42].mxu1 }
0x1f1e   :  { %v9137_v12 = vpop.f32.mrb[43].mxu1 }
0x1f21   :  { %3958 = vadd.xlane.f32.xlu1 %v3957_v13 }
0x1f32   :  { %4269 = vrot.lane.b32.xlu1 %v13106_v50, %s12012_s26 }
0x1f36   :  { %4455 = vrot.lane.b32.xlu1 %v13100_v48, %s12015_s27 }
0x1faa   :  { %v4065_v14 = vpop.xlane.xlu1 %4064 }
0x1fab   :  { %v4066_v41 = vsub.f32 %v4057_v8, %v4065_v14  ;;  %v8476_v8 = vld [vmem:[#allocation84] ss:$0 sm:$0xff] }
0x1fac   :  { %v3756_v9 = vadd.f32 %v8476_v8, %v13118_v54  ;;  %v3761_v11 = vadd.f32 %v13116_v53, %v8476_v8  ;;  %v3898_v54 = vld [vmem:[#allocation33 + $0x10] sm:$0xff] }
0x1fad   :  { %v4067_v15 = vmul.f32 1.442695, %v4066_v41 }
0x1fae   :  { %v3959_v34 = vpop.xlane.xlu1 %3958  ;;  %v3764_v13 = vadd.f32 %v3756_v9, %v13077_v22  ;;  %v3765_v41 = vadd.f32 %v3761_v11, %v13079_v24 }
0x1faf   :  { %10025 = vpow2.f32 %v4067_v15 }
0x1fb0   :  { %v3766_v14 = vsel %vm1318_vm4, %v3764_v13, 0.0  ;;  %v3769_v15 = vsel %vm1318_vm4, %v3765_v41, 0.0 }
0x1fb2   :  { %v4270_v45 = vpop.permute.xlu1 %4269 }
0x1fb6   :  { %v4456_v47 = vpop.permute.xlu1 %4455 }
0x1fb7   :  { %v4461_v49 = vsel %vm1503_vm6, %v4456_v47, 0  ;;  %v4677_v47 = vld [vmem:[#allocation11 + $0x10] sm:$0xff] }
0x1fb9   :  { %v10026_v16 = vpop.eup %10025 }
0x1fba   :  { %v4069_v17 = vsel %vm1503_vm6, %v10026_v16, 0.0  ;;  %v4073_v20 = vpack.c.bf16 %v10026_v16, %v10026_v16 }
0x1fbb   :  { %4070 = vadd.xlane.f32.xlu0 %v4069_v17 }
0x1fbc   :  { %9141 = vmatmul.mubr.msk.bf16.vlgmr.msra.gmra.mrb[56].mxu0 %vm1503_vm6, %v4073_v20 }
0x1fbd   :  { %9162 = vmatprep.mubr.msk.bf16.mxu0 %vm12006_vm5, %v12005_v33 }
0x1fd1   :  { %4271 = vrot.lane.b32.xlu0 %v13100_v48, %s12014_s25 }
0x1fd5   :  { %4453 = vrot.lane.b32.xlu0 %v13106_v50, %s12013_s19 }
0x1fd9   :  { %4330 = vrot.lane.b32.xlu0 %v13100_v48, %s12017_s30 }
0x2048   :  { %v4071_v23 = vpop.xlane.xlu0 %4070 }
0x2049   :  { %10027 = vrcp.f32 %v4071_v23 }
0x204a   :  { %10029 = vrcp.f32 %v3959_v34 }
0x204c   :  { %v4272_v25 = vpop.permute.xlu0 %4271 }
0x204d   :  { %v4277_v46 = vsel %vm1503_vm6, %v4272_v25, 0 }
0x2050   :  { %v4454_v26 = vpop.permute.xlu0 %4453 }
0x2053   :  { %v10028_v35 = vpop.eup %10027 }
0x2054   :  { %v4331_v28 = vpop.permute.xlu0 %4330  ;;  %v10030_v40 = vpop.eup %10029 }
0x2055   :  { %v4336_v30 = vsel %vm3967_vm9, %v4331_v28, 0  ;;  %v4011_v44 = vmul.f32 %v10030_v40, %v4005_v4 }
0x2056   :  { %9161 = vmatpush3.bf16.msra.mxu0 %v4336_v30 }
0x2057   :  { %9166 = vmatprep.subr.mxu0 %v12005_v33 }
0x208f   :  { %v4116_v36 = vpop.f32.mrb[56].mxu0 }
0x2090   :  { %v4122_v37 = vmul.f32 %v10028_v35, %v4116_v36  ;;  %v9142_v38 = vpop.f32.mrb[57].mxu0 }
0x2091   :  { %v4119_v42 = vpop.f32.mrb[58].mxu0 }
0x2092   :  { %v9143_v43 = vpop.f32.mrb[59].mxu0  ;;  %9147 = vmatmul.mubr.msk.f32.vlgmr.msra.gmra.mrb[34].mxu1 %vm1503_vm6, %v4122_v37 }
0x2093   :  { %9150 = vmatpush3.msra.mxu1 %v3896_v39  ;;  %9151 = vmatprep.mubr.msk.f32.mxu1 %vm12006_vm5, %v12005_v33  ;;  %v4675_v43 = vld [vmem:[#allocation11] sm:$0xff] }
0x2094   :  { %9154 = vmatprep.subr.bf16.mxu1 %v12005_v33 }
0x2096   :  { %9152 = vmatmul.mubr.msk.f32.vlgmr.msra.gmra.mrb[44].mxu1 %vm1503_vm6, %v4011_v44  ;;  %v4676_v44 = vld [vmem:[#allocation11 + $0x8] sm:$0xff] }
0x2097   :  { %9156 = vmatprep.mubr.msk.bf16.mxu1 %vm12006_vm5, %v12005_v33 }
0x209a   :  { %9155 = vmatpush3.bf16.xpose.msra.mxu1 %v4277_v46  ;;  %v9647_v46 = vpack.c.bf16 %v4676_v44, %v4675_v43 }
0x209b   :  { %9171 = vmatprep.subr.bf16.mxu1 %v12005_v33 }
0x20a1   :  { %9157 = vmatmul.mubr.msk.bf16.vlgmr.msra.gmra.mrb[48].mxu1 %vm1503_vm6, %v4270_v45  ;;  %v9927_v45 = vpack.i.bf16 %v4676_v44, %v4675_v43 }
0x20a2   :  { %9172 = vmatpush3.bf16.xpose.msra.mxu1 %v4461_v49  ;;  %9173 = vmatprep.mubr.msk.bf16.mxu1 %vm12006_vm5, %v12005_v33  ;;  %v4678_v49 = vld [vmem:[#allocation11 + $0x18] sm:$0xff] }
0x20a3   :  { %9183 = vmatprep.subr.mxu1 %v12005_v33 }
0x20a9   :  { %9174 = vmatmul.mubr.msk.bf16.vlgmr.msra.gmra.mrb[52].mxu1 %vm1503_vm6, %v4454_v26  ;;  %v3899_v26 = vld [vmem:[#allocation33 + $0x18] sm:$0xff] }
0x20aa   :  { %9185 = vmatprep.mubr.msk.f32.mxu1 %vm12006_vm5, %v12005_v33  ;;  %9184 = vmatpush3.msra.mxu1 %v3899_v26 }
0x2165   :  { %v4192_v50 = vpop.f32.mrb[34].mxu1 }
0x2166   :  { %v9148_v51 = vpop.f32.mrb[35].mxu1 }
0x2167   :  { %v9650_v51 = vpack.c.bf16 %v4678_v49, %v4677_v47 }
0x2169   :  { %v4265_v52 = vpop.f32.mrb[44].mxu1 }
0x216a   :  { %v13173_v55 = vadd.f32 %v4265_v52, %v4192_v50  ;;  %v9153_v56 = vpop.f32.mrb[45].mxu1  ;;  %v9932_v50 = vpack.i.bf16 %v4678_v49, %v4677_v47 }
0x2174   :  { %v4313_v19 = vpop.f32.mrb[48].mxu1 }
0x2175   :  { %v9158_v18 = vpop.f32.mrb[49].mxu1  ;;  %v4319_v57 = vsel %vm1503_vm6, %v4313_v19, -inf }
0x2176   :  { %4320 = vmax.xlane.f32.xlu1 %v4319_v57  ;;  %v4316_v58 = vpop.f32.mrb[50].mxu1  ;;  %v8495_v18 = vld [vmem:[#allocation30] ss:$0 sm:$0xff] }
0x2177   :  { %v9159_v59 = vpop.f32.mrb[51].mxu1 }
0x217c   :  { %v4497_v60 = vpop.f32.mrb[52].mxu1 }
0x217d   :  { %v9175_v61 = vpop.f32.mrb[53].mxu1  ;;  %v4503_v63 = vsel %vm1503_vm6, %v4497_v60, -inf }
0x217e   :  { %4504 = vmax.xlane.f32.xlu1 %v4503_v63  ;;  %v4500_v0 = vpop.f32.mrb[54].mxu1 }
0x217f   :  { %v9176_v1 = vpop.f32.mrb[55].mxu1 }
0x2203   :  { %v4321_v2 = vpop.xlane.xlu1 %4320 }
0x2204   :  { %v4322_v32 = vsub.f32 %v4313_v19, %v4321_v2 }
0x2206   :  { %v4323_v31 = vmul.f32 1.442695, %v4322_v32 }
0x2208   :  { %10031 = vpow2.f32 %v4323_v31 }
0x220b   :  { %v4505_v27 = vpop.xlane.xlu1 %4504 }
0x220c   :  { %v4506_v3 = vsub.f32 %v4497_v60, %v4505_v27 }
0x220e   :  { %v4507_v4 = vmul.f32 1.442695, %v4506_v3  ;;  %v13209_v3 = vld [vmem:[#allocation8] ss:$0 sm:$0xff] }
0x2210   :  { %10033 = vpow2.f32 %v4507_v4 }
0x2212   :  { %v10032_v5 = vpop.eup %10031 }
0x2213   :  { %v4325_v6 = vsel %vm1503_vm6, %v10032_v5, 0.0  ;;  %v4329_v7 = vpack.c.bf16 %v10032_v5, %v10032_v5 }
0x2214   :  { %4326 = vadd.xlane.f32.xlu0 %v4325_v6 }
0x2215   :  { %9163 = vmatmul.mubr.msk.bf16.vlgmr.msra.gmra.mrb[60].mxu0 %vm1503_vm6, %v4329_v7 }
0x2216   :  { %9168 = vmatprep.mubr.msk.f32.mxu0 %vm12006_vm5, %v12005_v33  ;;  %9167 = vmatpush3.msra.mxu0 %v3898_v54 }
0x2217   :  { %9177 = vmatprep.subr.bf16.mxu0 %v12005_v33 }
0x221a   :  { %v10034_v10 = vpop.eup %10033 }
0x221b   :  { %v4509_v12 = vsel %vm1503_vm6, %v10034_v10, 0.0 }
0x221c   :  { %4510 = vadd.xlane.f32.xlu1 %v4509_v12 }
0x2220   :  { %3767 = vadd.xlane.f32.xlu1 %v3766_v14 }
0x2224   :  { %3770 = vadd.xlane.f32.xlu1 %v3769_v15 }
0x222a   :  { %4514 = vrot.lane.b32.xlu0 %v13100_v48, %s12016_s21  ;;  %v4513_v48 = vpack.c.bf16 %v10034_v10, %v10034_v10 }
0x22a1   :  { %v4327_v53 = vpop.xlane.xlu0 %4326 }
0x22a2   :  { %10035 = vrcp.f32 %v4327_v53 }
0x22a5   :  { %v4515_v22 = vpop.permute.xlu0 %4514 }
0x22a6   :  { %v4520_v24 = vsel %vm3967_vm9, %v4515_v22, 0 }
0x22a9   :  { %v4511_v28 = vpop.xlane.xlu1 %4510 }
0x22aa   :  { %10037 = vrcp.f32 %v4511_v28 }
0x22ac   :  { %v10036_v16 = vpop.eup %10035 }
0x22ad   :  { %v3768_v52 = vpop.xlane.xlu1 %3767 }
0x22b1   :  { %v3771_v56 = vpop.xlane.xlu1 %3770 }
0x22b2   :  { %v3773_v60 = vmul.f32 0.03125, %v3771_v56 }
0x22b4   :  { %v10038_v36 = vpop.eup %10037  ;;  %v3775_v0 = vsub.f32 %v3765_v41, %v3773_v60 }
0x22b6   :  { %v3777_v31 = vmul.f32 %v3775_v0, %v3775_v0 }
0x22b8   :  { %v3781_v27 = vsel %vm1318_vm4, %v3777_v31, 0.0 }
0x22e8   :  { %v4372_v17 = vpop.f32.mrb[60].mxu0 }
0x22e9   :  { %v4378_v20 = vmul.f32 %v10036_v16, %v4372_v17  ;;  %v9164_v21 = vpop.f32.mrb[61].mxu0 }
0x22ea   :  { %v4375_v23 = vpop.f32.mrb[62].mxu0  ;;  %v8479_v21 = vld [vmem:[#allocation89] ss:$0 sm:$0xff] }
0x22eb   :  { %v9165_v25 = vpop.f32.mrb[63].mxu0  ;;  %9169 = vmatmul.mubr.msk.f32.vlgmr.msra.gmra.mrb[64].mxu0 %vm1503_vm6, %v4378_v20 }
0x22ec   :  { %9178 = vmatpush3.bf16.msra.mxu0 %v4520_v24  ;;  %9179 = vmatprep.mubr.msk.bf16.mxu0 %vm12006_vm5, %v12005_v33  ;;  %v8480_v24 = vld [vmem:[#allocation90] ss:$0 sm:$0xff] }
0x22ed   :  { %9646 = vmatprep.subr.bf16.mxu0 %v12018_v62 }
0x22ef   :  { %9180 = vmatmul.mubr.msk.bf16.vlgmr.msra.gmra.mrb[68].mxu0 %vm1503_vm6, %v4513_v48 }
0x22f0   :  { %9196 = vmatprep.mubr.msk.f32.mxu0 %vm12006_vm5, %v12005_v33  ;;  %9648 = vmatpush3.bf16.msra.mxu0 %v9647_v46 }
0x22f1   :  { %9649 = vmatprep.subr.bf16.mxu0 %v12018_v62 }
0x22f4   :  { %9651 = vmatpush3.bf16.msra.mxu0 %v9650_v51 }
0x22f5   :  { %9210 = vmatprep.subr.bf16.mxu0 %v12005_v33 }
0x23be   :  { %v4448_v30 = vpop.f32.mrb[64].mxu0 }
0x23bf   :  { %v4452_v34 = vadd.f32 %v4448_v30, %v13173_v55  ;;  %v9170_v35 = vpop.f32.mrb[65].mxu0  ;;  %v3772_v55 = vmul.f32 0.03125, %v3768_v52 }
0x23c1   :  { %v3774_v59 = vsub.f32 %v3764_v13, %v3772_v55 }
0x23c2   :  { %v4556_v37 = vpop.f32.mrb[68].mxu0 }
0x23c3   :  { %v4562_v38 = vmul.f32 %v10038_v36, %v4556_v37  ;;  %v9181_v39 = vpop.f32.mrb[69].mxu0  ;;  %v3776_v2 = vmul.f32 %v3774_v59, %v3774_v59 }
0x23c4   :  { %v4559_v40 = vpop.f32.mrb[70].mxu0  ;;  %v8496_v39 = vld [vmem:[#allocation20] ss:$0 sm:$0xff] }
0x23c5   :  { %v9182_v42 = vpop.f32.mrb[71].mxu0  ;;  %9186 = vmatmul.mubr.msk.f32.vlgmr.msra.gmra.mrb[46].mxu1 %vm1503_vm6, %v4562_v38  ;;  %v3778_v32 = vsel %vm1318_vm4, %v3776_v2, 0.0 }
0x23c6   :  { %v8497_v42 = vld [vmem:[#allocation21] ss:$0 sm:$0xff] }
0x2498   :  { %v4632_v19 = vpop.f32.mrb[46].mxu1 }
0x2499   :  { %v4636_v57 = vadd.f32 %v4632_v19, %v4452_v34  ;;  %v9187_v58 = vpop.f32.mrb[47].mxu1 }
0x249b   :  { %v4644_v61 = vadd.f32 %v8495_v18, %v4636_v57 }
0x249d   :  { %v4645_v63 = vadd.f32 %v4644_v61, %v13088_v29 }
0x249f   :  { %v4646_v1 = vsel %vm1318_vm4, %v4645_v63, 0.0 }
0x24a0   :  { %4647 = vadd.xlane.f32.xlu1 %v4646_v1 }
0x24a4   :  { %3779 = vadd.xlane.f32.xlu1 %v3778_v32 }
0x24a8   :  { %3782 = vadd.xlane.f32.xlu1 %v3781_v27 }
0x24b9   :  { %9928 = vrot.lane.b32.xlu1 %v9927_v45, %s12007_s1 }
0x24bd   :  { %9933 = vrot.lane.b32.xlu1 %v9932_v50, %s12007_s1 }
0x24c1   :  { %4775 = vrot.lane.b32.xlu1 %v13209_v3, %s12007_s1 }
0x252d   :  { %v4648_v29 = vpop.xlane.xlu1 %4647 }
0x252e   :  { %v4649_v4 = vmul.f32 0.03125, %v4648_v29 }
0x2530   :  { %v4650_v5 = vsub.f32 %v4645_v63, %v4649_v4 }
0x2531   :  { %v3780_v6 = vpop.xlane.xlu1 %3779 }
0x2532   :  { %v3784_v7 = vmul.f32 0.03125, %v3780_v6  ;;  %v4651_v8 = vmul.f32 %v4650_v5, %v4650_v5 }
0x2534   :  { %v3786_v9 = vadd.f32 1e-05, %v3784_v7  ;;  %v4652_v10 = vsel %vm1318_vm4, %v4651_v8, 0.0 }
0x2535   :  { %4653 = vadd.xlane.f32.xlu0 %v4652_v10  ;;  %v3783_v11 = vpop.xlane.xlu1 %3782 }
0x2536   :  { %10039 = vrsqrt.f32 %v3786_v9  ;;  %v3785_v12 = vmul.f32 0.03125, %v3783_v11 }
0x2538   :  { %v3787_v13 = vadd.f32 1e-05, %v3785_v12 }
0x2539   :  { %v9929_v14 = vpop.permute.xlu1 %9928 }
0x253a   :  { %10041 = vrsqrt.f32 %v3787_v13  ;;  %v9931_v41 = vunpack.i.h.bf16 %v9929_v14  ;;  %v9930_v15 = vunpack.i.l.bf16 %v9929_v14 }
0x253c   :  { %v9652_v54 = vpack.c.bf16 %v9931_v41, %v9930_v15 }
0x253d   :  { %v9934_v53 = vpop.permute.xlu1 %9933 }
0x253e   :  { %v9936_v16 = vunpack.i.h.bf16 %v9934_v53  ;;  %v9935_v22 = vunpack.i.l.bf16 %v9934_v53  ;;  %9653 = vmatprep.subr.bf16.mxu1 %v9652_v54  ;;  %v4860_v53 = vld [vmem:[#allocation12] sm:$0xff] }
0x253f   :  { %9655 = vmatpush3.bf16.msra.mxu1 %v9652_v54 }
0x2540   :  { %v10040_v17 = vpop.eup %10039  ;;  %v9656_v20 = vpack.c.bf16 %v9936_v16, %v9935_v22  ;;  %v4861_v16 = vld [vmem:[#allocation12 + $0x8] sm:$0xff] }
0x2541   :  { %v3790_v23 = vmul.f32 %v10040_v17, %v3774_v59  ;;  %v4776_v45 = vpop.permute.xlu1 %4775 }
0x2542   :  { %9657 = vmatprep.subr.bf16.mxu1 %v9656_v20 }
0x2543   :  { %v3799_v25 = vmul.f32 %v8479_v21, %v3790_v23  ;;  %9659 = vmatpush3.bf16.msra.mxu1 %v9656_v20 }
0x2544   :  { %v10042_v48 = vpop.eup %10041  ;;  %9216 = vmatprep.subr.bf16.mxu1 %v12005_v33 }
0x2545   :  { %v3791_v26 = vmul.f32 %v10042_v48, %v3775_v0  ;;  %v13215_v28 = vadd.f32 %v8480_v24, %v3799_v25 }
0x2547   :  { %v3800_v30 = vmul.f32 %v8479_v21, %v3791_v26  ;;  %9207 = vmatprep.mubr.msk.f32.mxu1 %vm1318_vm4, %v13215_v28 }
0x2549   :  { %v13219_v34 = vadd.f32 %v8480_v24, %v3800_v30 }
0x254b   :  { %9208 = vmatmul.mubr.msk.f32.vlgmr.msra.gmra.mrb[56].mxu1 %vm1318_vm4, %v13219_v34 }
0x254c   :  { %9218 = vmatprep.mubr.msk.bf16.mxu1 %vm12006_vm5, %v12005_v33 }
0x25c2   :  { %v4654_v35 = vpop.xlane.xlu0 %4653 }
0x25c3   :  { %v4655_v36 = vmul.f32 0.03125, %v4654_v35 }
0x25c5   :  { %v4656_v37 = vadd.f32 1e-05, %v4655_v36 }
0x25c7   :  { %10043 = vrsqrt.f32 %v4656_v37 }
0x25d1   :  { %v10044_v38 = vpop.eup %10043 }
0x25d2   :  { %v4658_v40 = vmul.f32 %v10044_v38, %v4650_v5 }
0x25d4   :  { %v4666_v43 = vmul.f32 %v8496_v39, %v4658_v40 }
0x25d6   :  { %v13225_v44 = vadd.f32 %v8497_v42, %v4666_v43 }
0x25d8   :  { %9197 = vmatmul.mubr.msk.f32.vlgmr.msra.gmra.mrb[66].mxu0 %vm1318_vm4, %v13225_v44 }
0x25d9   :  { %9212 = vmatprep.mubr.msk.bf16.mxu0 %vm12006_vm5, %v12005_v33 }
0x261e   :  { %v9209_v46 = vpop.f32.mrb[56].mxu1 }
0x261f   :  { %v4856_v47 = vadd.f32 %v9209_v46, %v4776_v45  ;;  %v4850_v49 = vpop.f32.mrb[57].mxu1 }
0x2620   :  { %v4851_v50 = vadd.f32 %v4850_v49, %v4776_v45 }
0x2622   :  { %v13231_v51 = vpack.c.bf16 %v4856_v47, %v4851_v50 }
0x2624   :  { %4974 = vrot.lane.b32.xlu1 %v13231_v51, %s12008_s7  ;;  %v4870_v52 = vsel %vm1503_vm6, %v13231_v51, 0 }
0x2625   :  { %9211 = vmatpush3.bf16.xpose.msra.mxu0 %v4870_v52 }
0x2626   :  { %9222 = vmatprep.subr.bf16.mxu0 %v12005_v33 }
0x2696   :  { %v4975_v57 = vpop.permute.xlu1 %4974 }
0x2697   :  { %v4980_v59 = vsel %vm1503_vm6, %v4975_v57, 0 }
0x26ab   :  { %v4755_v55 = vpop.f32.mrb[66].mxu0 }
0x26ac   :  { %v4756_v56 = vadd.f32 %v13209_v3, %v4755_v55  ;;  %v9198_v19 = vpop.f32.mrb[67].mxu0 }
0x26ae   :  { %v4859_v18 = vmul.f32 0.35355338, %v4756_v56 }
0x26b0   :  { %v4864_v58 = vpack.c.bf16 %v4859_v18, %v4859_v18 }
0x26b2   :  { %4972 = vrot.lane.b32.xlu0 %v4864_v58, %s12008_s7  ;;  %9213 = vmatmul.mubr.msk.bf16.vlgmr.msra.gmra.mrb[72].mxu0 %vm1503_vm6, %v4864_v58 }
0x26b3   :  { %9223 = vmatpush3.bf16.xpose.msra.mxu0 %v4980_v59  ;;  %9224 = vmatprep.mubr.msk.bf16.mxu0 %vm12006_vm5, %v12005_v33 }
0x26b4   :  { %9234 = vmatprep.subr.mxu0 %v12005_v33 }
0x2724   :  { %v4973_v60 = vpop.permute.xlu0 %4972 }
0x2725   :  { %9225 = vmatmul.mubr.msk.bf16.vlgmr.msra.gmra.mrb[76].mxu0 %vm1503_vm6, %v4973_v60 }
0x2726   :  { %9236 = vmatprep.mubr.msk.f32.mxu0 %vm12006_vm5, %v12005_v33  ;;  %9235 = vmatpush3.msra.mxu0 %v4861_v16 }
0x2727   :  { %9244 = vmatprep.subr.bf16.mxu0 %v12005_v33 }
0x2785   :  { %v4906_v61 = vpop.f32.mrb[72].mxu0 }
0x2786   :  { %v9214_v63 = vpop.f32.mrb[73].mxu0  ;;  %v4912_v0 = vsel %vm1551_vm7, %v4906_v61, -inf }
0x2787   :  { %4913 = vmax.xlane.f32.xlu1 %v4912_v0  ;;  %v4909_v1 = vpop.f32.mrb[74].mxu0 }
0x2788   :  { %v9215_v2 = vpop.f32.mrb[75].mxu0 }
0x2798   :  { %4924 = vrot.lane.b32.xlu1 %v13231_v51, %s12007_s1 }
0x27f8   :  { %v5016_v32 = vpop.f32.mrb[76].mxu0 }
0x27f9   :  { %v9226_v31 = vpop.f32.mrb[77].mxu0  ;;  %v5022_v27 = vsel %vm1551_vm7, %v5016_v32, -inf }
0x27fa   :  { %5023 = vmax.xlane.f32.xlu0 %v5022_v27  ;;  %v5019_v3 = vpop.f32.mrb[78].mxu0 }
0x27fb   :  { %v9227_v29 = vpop.f32.mrb[79].mxu0 }
0x2810   :  { %5033 = vrot.lane.b32.xlu0 %v13231_v51, %s12009_s12 }
0x2814   :  { %v4914_v4 = vpop.xlane.xlu1 %4913  ;;  %5228 = vrot.lane.b32.xlu0 %v13231_v51, %s12012_s26 }
0x2815   :  { %v4915_v5 = vsub.f32 %v4906_v61, %v4914_v4 }
0x2817   :  { %v4916_v6 = vmul.f32 1.442695, %v4915_v5 }
0x2818   :  { %v4925_v7 = vpop.permute.xlu1 %4924  ;;  %5226 = vrot.lane.b32.xlu0 %v4864_v58, %s12012_s26 }
0x2819   :  { %10045 = vpow2.f32 %v4916_v6  ;;  %9217 = vmatpush3.bf16.msra.mxu1 %v4925_v7 }
0x281a   :  { %9228 = vmatprep.subr.bf16.mxu1 %v12005_v33 }
0x281c   :  { %5410 = vrot.lane.b32.xlu0 %v13231_v51, %s12013_s19 }
0x2820   :  { %5408 = vrot.lane.b32.xlu0 %v4864_v58, %s12013_s19 }
0x2823   :  { %v10046_v8 = vpop.eup %10045 }
0x2824   :  { %v4922_v9 = vpack.c.bf16 %v10046_v8, %v10046_v8  ;;  %v4918_v54 = vsel %vm1551_vm7, %v10046_v8, 0.0  ;;  %v4862_v8 = vld [vmem:[#allocation12 + $0x10] sm:$0xff] }
0x2826   :  { %9219 = vmatmul.mubr.msk.bf16.vlgmr.msra.gmra.mrb[60].mxu1 %vm1551_vm7, %v4922_v9 }
0x2827   :  { %9230 = vmatprep.mubr.msk.bf16.mxu1 %vm12006_vm5, %v12005_v33 }
0x2887   :  { %v5024_v10 = vpop.xlane.xlu0 %5023 }
0x2888   :  { %v5025_v11 = vsub.f32 %v5016_v32, %v5024_v10 }
0x288a   :  { %v5026_v12 = vmul.f32 1.442695, %v5025_v11 }
0x288b   :  { %v5034_v13 = vpop.permute.xlu0 %5033 }
0x288c   :  { %10047 = vpow2.f32 %v5026_v12  ;;  %9229 = vmatpush3.bf16.msra.mxu1 %v5034_v13 }
0x288d   :  { %9239 = vmatprep.subr.mxu1 %v12005_v33 }
0x288f   :  { %v5229_v30 = vpop.permute.xlu0 %5228 }
0x2890   :  { %v5234_v42 = vsel %vm1503_vm6, %v5229_v30, 0 }
0x2893   :  { %v5227_v39 = vpop.permute.xlu0 %5226 }
0x2896   :  { %v10048_v14 = vpop.eup %10047 }
0x2897   :  { %v5028_v41 = vsel %vm1551_vm7, %v10048_v14, 0.0  ;;  %v5032_v15 = vpack.c.bf16 %v10048_v14, %v10048_v14  ;;  %v5411_v45 = vpop.permute.xlu0 %5410 }
0x2898   :  { %5029 = vadd.xlane.f32.xlu1 %v5028_v41  ;;  %v5416_v46 = vsel %vm1503_vm6, %v5411_v45, 0 }
0x2899   :  { %9231 = vmatmul.mubr.msk.bf16.vlgmr.msra.gmra.mrb[64].mxu1 %vm1551_vm7, %v5032_v15 }
0x289a   :  { %9241 = vmatprep.mubr.msk.f32.mxu1 %vm12006_vm5, %v12005_v33  ;;  %9240 = vmatpush3.msra.mxu1 %v4860_v53  ;;  %v4863_v53 = vld [vmem:[#allocation12 + $0x18] sm:$0xff] }
0x289b   :  { %9250 = vmatprep.subr.bf16.mxu1 %v12005_v33  ;;  %v5409_v47 = vpop.permute.xlu0 %5408 }
0x289c   :  { %4919 = vadd.xlane.f32.xlu1 %v4918_v54 }
0x28ad   :  { %5287 = vrot.lane.b32.xlu1 %v13231_v51, %s12014_s25 }
0x28f9   :  { %v4964_v22 = vpop.f32.mrb[60].mxu1 }
0x28fa   :  { %v9220_v17 = vpop.f32.mrb[61].mxu1 }
0x28fb   :  { %v4967_v20 = vpop.f32.mrb[62].mxu1 }
0x28fc   :  { %v9221_v21 = vpop.f32.mrb[63].mxu1 }
0x2925   :  { %v5030_v23 = vpop.xlane.xlu1 %5029 }
0x2929   :  { %v4920_v24 = vpop.xlane.xlu1 %4919 }
0x292a   :  { %10049 = vrcp.f32 %v4920_v24 }
0x292b   :  { %10051 = vrcp.f32 %v5030_v23 }
0x292d   :  { %v5288_v26 = vpop.permute.xlu1 %5287 }
0x2934   :  { %v10050_v25 = vpop.eup %10049 }
0x2935   :  { %v4970_v48 = vmul.f32 %v10050_v25, %v4964_v22  ;;  %v10052_v35 = vpop.eup %10051 }
0x2937   :  { %9242 = vmatmul.mubr.msk.f32.vlgmr.msra.gmra.mrb[58].mxu1 %vm1503_vm6, %v4970_v48 }
0x2938   :  { %9251 = vmatpush3.bf16.msra.mxu1 %v5288_v26  ;;  %9252 = vmatprep.mubr.msk.bf16.mxu1 %vm12006_vm5, %v12005_v33 }
0x2939   :  { %9256 = vmatprep.subr.mxu1 %v12005_v33 }
0x296c   :  { %v5073_v36 = vpop.f32.mrb[64].mxu1 }
0x296d   :  { %v5079_v37 = vmul.f32 %v10052_v35, %v5073_v36  ;;  %v9232_v38 = vpop.f32.mrb[65].mxu1  ;;  %v8514_v35 = vld [vmem:[#allocation9] ss:$0 sm:$0xff] }
0x296e   :  { %v5076_v40 = vpop.f32.mrb[66].mxu1 }
0x296f   :  { %v9233_v43 = vpop.f32.mrb[67].mxu1  ;;  %9237 = vmatmul.mubr.msk.f32.vlgmr.msra.gmra.mrb[80].mxu0 %vm1503_vm6, %v5079_v37 }
0x2970   :  { %9245 = vmatpush3.bf16.xpose.msra.mxu0 %v5234_v42  ;;  %9246 = vmatprep.mubr.msk.bf16.mxu0 %vm12006_vm5, %v12005_v33 }
0x2971   :  { %9261 = vmatprep.subr.bf16.mxu0 %v12005_v33 }
0x2977   :  { %9247 = vmatmul.mubr.msk.bf16.vlgmr.msra.gmra.mrb[84].mxu0 %vm1503_vm6, %v5227_v39 }
0x2978   :  { %9262 = vmatpush3.bf16.xpose.msra.mxu0 %v5416_v46  ;;  %9263 = vmatprep.mubr.msk.bf16.mxu0 %vm12006_vm5, %v12005_v33 }
0x2979   :  { %9273 = vmatprep.subr.mxu0 %v12005_v33 }
0x297f   :  { %9264 = vmatmul.mubr.msk.bf16.vlgmr.msra.gmra.mrb[88].mxu0 %vm1503_vm6, %v5409_v47 }
0x2980   :  { %9275 = vmatprep.mubr.msk.f32.mxu0 %vm12006_vm5, %v12005_v33  ;;  %9274 = vmatpush3.msra.mxu0 %v4863_v53 }
0x2981   :  { %9666 = vmatprep.subr.bf16.mxu0 %v12018_v62 }
0x2a0a   :  { %v5222_v49 = vpop.f32.mrb[58].mxu1 }
0x2a0b   :  { %v9243_v50 = vpop.f32.mrb[59].mxu1 }
0x2a0c   :  { %v5629_v50 = vld [vmem:[#allocation14 + $0x8] sm:$0xff] }
0x2a42   :  { %v5149_v52 = vpop.f32.mrb[80].mxu0 }
0x2a43   :  { %v5223_v55 = vadd.f32 %v5222_v49, %v5149_v52  ;;  %v9238_v56 = vpop.f32.mrb[81].mxu0  ;;  %v5628_v49 = vld [vmem:[#allocation14] sm:$0xff] }
0x2a44   :  { %v9661_v52 = vpack.c.bf16 %v5629_v50, %v5628_v49  ;;  %v5631_v56 = vld [vmem:[#allocation14 + $0x18] sm:$0xff] }
0x2a4a   :  { %v5270_v19 = vpop.f32.mrb[84].mxu0 }
0x2a4b   :  { %v9248_v18 = vpop.f32.mrb[85].mxu0  ;;  %v5276_v57 = vsel %vm1551_vm7, %v5270_v19, -inf }
0x2a4c   :  { %5277 = vmax.xlane.f32.xlu0 %v5276_v57  ;;  %v5273_v58 = vpop.f32.mrb[86].mxu0  ;;  %v5714_v18 = vld [vmem:[#allocation17 + $0x8] sm:$0xff]  ;;  %v5715_v57 = vld [vmem:[#allocation17 + $0x10] sm:$0xff] }
0x2a4d   :  { %v9249_v59 = vpop.f32.mrb[87].mxu0 }
0x2a4e   :  { %v5716_v59 = vld [vmem:[#allocation17 + $0x18] sm:$0xff] }
0x2a52   :  { %v5452_v60 = vpop.f32.mrb[88].mxu0 }
0x2a53   :  { %v9265_v61 = vpop.f32.mrb[89].mxu0  ;;  %v5458_v63 = vsel %vm1551_vm7, %v5452_v60, -inf }
0x2a54   :  { %5459 = vmax.xlane.f32.xlu0 %v5458_v63  ;;  %v5455_v0 = vpop.f32.mrb[90].mxu0  ;;  %v5717_v61 = vld [vmem:[#allocation17 + $0x20] sm:$0xff]  ;;  %v5718_v63 = vld [vmem:[#allocation17 + $0x28] sm:$0xff] }
0x2a55   :  { %v9266_v1 = vpop.f32.mrb[91].mxu0  ;;  %v9673_v0 = vpack.c.bf16 %v5718_v63, %v5717_v61 }
0x2a6a   :  { %5469 = vrot.lane.b32.xlu0 %v13231_v51, %s12015_s27 }
0x2ad9   :  { %v5278_v2 = vpop.xlane.xlu0 %5277 }
0x2ada   :  { %v5279_v32 = vsub.f32 %v5270_v19, %v5278_v2 }
0x2adc   :  { %v5280_v31 = vmul.f32 1.442695, %v5279_v32 }
0x2ade   :  { %10053 = vpow2.f32 %v5280_v31 }
0x2ae1   :  { %v5460_v27 = vpop.xlane.xlu0 %5459 }
0x2ae2   :  { %v5461_v3 = vsub.f32 %v5452_v60, %v5460_v27  ;;  %v9670_v60 = vpack.c.bf16 %v5716_v59, %v5715_v57  ;;  %v8515_v27 = vld [vmem:[#allocation23] ss:$0 sm:$0xff] }
0x2ae4   :  { %v5462_v29 = vmul.f32 1.442695, %v5461_v3 }
0x2ae5   :  { %v5470_v41 = vpop.permute.xlu0 %5469 }
0x2ae6   :  { %10055 = vpow2.f32 %v5462_v29  ;;  %v8516_v29 = vld [vmem:[#allocation24] ss:$0 sm:$0xff] }
0x2ae8   :  { %v10054_v4 = vpop.eup %10053 }
0x2ae9   :  { %v5282_v5 = vsel %vm1551_vm7, %v10054_v4, 0.0  ;;  %v5286_v6 = vpack.c.bf16 %v10054_v4, %v10054_v4 }
0x2aea   :  { %5283 = vadd.xlane.f32.xlu1 %v5282_v5 }
0x2aeb   :  { %9253 = vmatmul.mubr.msk.bf16.vlgmr.msra.gmra.mrb[68].mxu1 %vm1551_vm7, %v5286_v6  ;;  %v5719_v6 = vld [vmem:[#allocation17 + $0x30] sm:$0xff] }
0x2aec   :  { %9258 = vmatprep.mubr.msk.f32.mxu1 %vm12006_vm5, %v12005_v33  ;;  %9257 = vmatpush3.msra.mxu1 %v4862_v8  ;;  %v8517_v8 = vld [vmem:[#allocation15] ss:$0 sm:$0xff] }
0x2aed   :  { %9267 = vmatprep.subr.bf16.mxu1 %v12005_v33 }
0x2af0   :  { %v10056_v7 = vpop.eup %10055 }
0x2af1   :  { %v5464_v51 = vsel %vm1551_vm7, %v10056_v7, 0.0  ;;  %v5468_v54 = vpack.c.bf16 %v10056_v7, %v10056_v7  ;;  %v5720_v7 = vld [vmem:[#allocation17 + $0x38] sm:$0xff] }
0x2af2   :  { %5465 = vadd.xlane.f32.xlu1 %v5464_v51  ;;  %v9676_v51 = vpack.c.bf16 %v5720_v7, %v5719_v6 }
0x2b77   :  { %v5284_v9 = vpop.xlane.xlu1 %5283 }
0x2b78   :  { %10057 = vrcp.f32 %v5284_v9 }
0x2b7f   :  { %v5466_v16 = vpop.xlane.xlu1 %5465 }
0x2b80   :  { %10059 = vrcp.f32 %v5466_v16 }
0x2b82   :  { %v10058_v10 = vpop.eup %10057 }
0x2b8a   :  { %v10060_v21 = vpop.eup %10059 }
0x2bbe   :  { %v5327_v11 = vpop.f32.mrb[68].mxu1 }
0x2bbf   :  { %v5333_v12 = vmul.f32 %v10058_v10, %v5327_v11  ;;  %v9254_v13 = vpop.f32.mrb[69].mxu1 }
0x2bc0   :  { %v5330_v14 = vpop.f32.mrb[70].mxu1  ;;  %v8519_v13 = vld [vmem:[#allocation18] ss:$0 sm:$0xff] }
0x2bc1   :  { %v9255_v15 = vpop.f32.mrb[71].mxu1  ;;  %9259 = vmatmul.mubr.msk.f32.vlgmr.msra.gmra.mrb[72].mxu1 %vm1503_vm6, %v5333_v12 }
0x2bc2   :  { %9268 = vmatpush3.bf16.msra.mxu1 %v5470_v41  ;;  %9269 = vmatprep.mubr.msk.bf16.mxu1 %vm12006_vm5, %v12005_v33 }
0x2bc3   :  { %9660 = vmatprep.subr.bf16.mxu1 %v12018_v62 }
0x2bc5   :  { %9270 = vmatmul.mubr.msk.bf16.vlgmr.msra.gmra.mrb[76].mxu1 %vm1551_vm7, %v5468_v54 }
0x2bc6   :  { %9286 = vmatprep.mubr.msk.f32.mxu1 %vm12006_vm5, %v12005_v33  ;;  %9662 = vmatpush3.bf16.msra.mxu1 %v9661_v52 }
0x2bc7   :  { %9663 = vmatprep.subr.bf16.mxu1 %v12018_v62 }
0x2c94   :  { %v5403_v22 = vpop.f32.mrb[72].mxu1 }
0x2c95   :  { %v5407_v17 = vadd.f32 %v5403_v22, %v5223_v55  ;;  %v9260_v20 = vpop.f32.mrb[73].mxu1  ;;  %v5630_v55 = vld [vmem:[#allocation14 + $0x10] sm:$0xff] }
0x2c96   :  { %v9664_v19 = vpack.c.bf16 %v5631_v56, %v5630_v55 }
0x2c98   :  { %v5509_v23 = vpop.f32.mrb[76].mxu1  ;;  %9665 = vmatpush3.bf16.msra.mxu1 %v9664_v19 }
0x2c99   :  { %v5515_v24 = vmul.f32 %v10060_v21, %v5509_v23  ;;  %v9271_v25 = vpop.f32.mrb[77].mxu1  ;;  %9678 = vmatprep.subr.bf16.mxu1 %v12018_v62  ;;  %v5831_v23 = vld [vmem:[#allocation59] sm:$0xff] }
0x2c9a   :  { %v5512_v48 = vpop.f32.mrb[78].mxu1 }
0x2c9b   :  { %v9272_v26 = vpop.f32.mrb[79].mxu1  ;;  %9276 = vmatmul.mubr.msk.f32.vlgmr.msra.gmra.mrb[82].mxu0 %vm1503_vm6, %v5515_v24  ;;  %v5832_v24 = vld [vmem:[#allocation59 + $0x8] sm:$0xff]  ;;  %v5833_v48 = vld [vmem:[#allocation59 + $0x10] sm:$0xff] }
0x2c9c   :  { %9305 = vmatprep.mubr.msk.f32.mxu0 %vm12006_vm5, %v12005_v33  ;;  %v9679_v25 = vpack.c.bf16 %v5832_v24, %v5831_v23  ;;  %v5834_v26 = vld [vmem:[#allocation59 + $0x18] sm:$0xff] }
0x2d6e   :  { %v5585_v30 = vpop.f32.mrb[82].mxu0 }
0x2d6f   :  { %v5589_v36 = vadd.f32 %v5585_v30, %v5407_v17  ;;  %v9277_v37 = vpop.f32.mrb[83].mxu0  ;;  %v9682_v30 = vpack.c.bf16 %v5834_v26, %v5833_v48 }
0x2d71   :  { %v5597_v38 = vadd.f32 %v8514_v35, %v5589_v36 }
0x2d73   :  { %v5598_v39 = vadd.f32 %v5597_v38, %v13225_v44  ;;  %v5713_v44 = vld [vmem:[#allocation17] sm:$0xff] }
0x2d74   :  { %v9667_v58 = vpack.c.bf16 %v5714_v18, %v5713_v44 }
0x2d75   :  { %v5599_v40 = vsel %vm1318_vm4, %v5598_v39, 0.0 }
0x2d76   :  { %5600 = vadd.xlane.f32.xlu0 %v5599_v40  ;;  %9668 = vmatpush3.bf16.msra.mxu0 %v9667_v58 }
0x2d77   :  { %9669 = vmatprep.subr.bf16.mxu0 %v12018_v62 }
0x2d7a   :  { %9671 = vmatpush3.bf16.msra.mxu0 %v9670_v60 }
0x2d7b   :  { %9672 = vmatprep.subr.bf16.mxu0 %v12018_v62 }
0x2d7e   :  { %9674 = vmatpush3.bf16.msra.mxu0 %v9673_v0 }
0x2d7f   :  { %9675 = vmatprep.subr.bf16.mxu0 %v12018_v62 }
0x2d82   :  { %9677 = vmatpush3.bf16.msra.mxu0 %v9676_v51 }
0x2d83   :  { %9325 = vmatprep.subr.bf16.mxu0 %v12005_v33 }
0x2e03   :  { %v5601_v42 = vpop.xlane.xlu0 %5600 }
0x2e04   :  { %v5602_v43 = vmul.f32 0.03125, %v5601_v42  ;;  %v8522_v42 = vld [vmem:[#allocation27] ss:$0 sm:$0xff] }
0x2e06   :  { %v5603_v45 = vsub.f32 %v5598_v39, %v5602_v43  ;;  %v8521_v39 = vld [vmem:[#allocation26] ss:$0 sm:$0xff] }
0x2e08   :  { %v5604_v46 = vmul.f32 %v5603_v45, %v5603_v45 }
0x2e0a   :  { %v5605_v47 = vsel %vm1318_vm4, %v5604_v46, 0.0  ;;  %v8523_v46 = vld [vmem:[#allocation56] ss:$0 sm:$0xff] }
0x2e0b   :  { %5606 = vadd.xlane.f32.xlu1 %v5605_v47 }
0x2e98   :  { %v5607_v1 = vpop.xlane.xlu1 %5606 }
0x2e99   :  { %v5608_v2 = vmul.f32 0.03125, %v5607_v1 }
0x2e9b   :  { %v5609_v32 = vadd.f32 1e-05, %v5608_v2 }
0x2e9d   :  { %10061 = vrsqrt.f32 %v5609_v32 }
0x2ea7   :  { %v10062_v31 = vpop.eup %10061 }
0x2ea8   :  { %v5611_v3 = vmul.f32 %v10062_v31, %v5603_v45 }
0x2eaa   :  { %v5619_v4 = vmul.f32 %v8515_v27, %v5611_v3 }
0x2eac   :  { %v5627_v5 = vadd.f32 %v8516_v29, %v5619_v4 }
0x2eae   :  { %9287 = vmatmul.mubr.msk.f32.vlgmr.msra.gmra.mrb[74].mxu1 %vm1318_vm4, %v5627_v5 }
0x2eaf   :  { %9316 = vmatprep.mubr.msk.f32.mxu1 %vm12006_vm5, %v12005_v33  ;;  %9680 = vmatpush3.bf16.msra.mxu1 %v9679_v25 }
0x2eb0   :  { %9681 = vmatprep.subr.bf16.mxu1 %v12018_v62 }
0x2eb3   :  { %9683 = vmatpush3.bf16.msra.mxu1 %v9682_v30 }
0x2eb4   :  { %9319 = vmatprep.subr.bf16.mxu1 %v12005_v33 }
0x2f81   :  { %v5708_v9 = vpop.f32.mrb[74].mxu1 }
0x2f82   :  { %v5709_v10 = vadd.f32 %v8517_v8, %v5708_v9  ;;  %v9288_v11 = vpop.f32.mrb[75].mxu1 }
0x2f84   :  { %v5712_v12 = vmax.f32 %v5709_v10, 0.0 }
0x2f86   :  { %9306 = vmatmul.mubr.msk.f32.vlgmr.msra.gmra.mrb[92].mxu0 %vm2479_vm8, %v5712_v12 }
0x2f87   :  { %9327 = vmatprep.mubr.msk.bf16.mxu0 %vm12006_vm5, %v12005_v33 }
0x3059   :  { %v5797_v14 = vpop.f32.mrb[92].mxu0 }
0x305a   :  { %v5798_v41 = vadd.f32 %v8519_v13, %v5797_v14  ;;  %v9307_v15 = vpop.f32.mrb[93].mxu0 }
0x305c   :  { %v5801_v54 = vadd.f32 %v5798_v41, %v5627_v5 }
0x305e   :  { %v5802_v53 = vsel %vm1318_vm4, %v5801_v54, 0.0 }
0x305f   :  { %5803 = vadd.xlane.f32.xlu1 %v5802_v53  ;;  %v5917_v53 = vld [vmem:[#allocation60 + $0x8] sm:$0xff] }
0x30ec   :  { %v5804_v16 = vpop.xlane.xlu1 %5803 }
0x30ed   :  { %v5805_v22 = vmul.f32 0.03125, %v5804_v16 }
0x30ef   :  { %v5806_v17 = vsub.f32 %v5801_v54, %v5805_v22  ;;  %v5916_v54 = vld [vmem:[#allocation60] sm:$0xff] }
0x30f1   :  { %v5807_v20 = vmul.f32 %v5806_v17, %v5806_v17 }
0x30f3   :  { %v5808_v21 = vsel %vm1318_vm4, %v5807_v20, 0.0 }
0x30f4   :  { %5809 = vadd.xlane.f32.xlu1 %v5808_v21 }
0x3181   :  { %v5810_v35 = vpop.xlane.xlu1 %5809 }
0x3182   :  { %v5811_v36 = vmul.f32 0.03125, %v5810_v35 }
0x3184   :  { %v5812_v37 = vadd.f32 1e-05, %v5811_v36 }
0x3186   :  { %10063 = vrsqrt.f32 %v5812_v37 }
0x3190   :  { %v10064_v38 = vpop.eup %10063 }
0x3191   :  { %v5814_v40 = vmul.f32 %v10064_v38, %v5806_v17 }
0x3193   :  { %v5822_v43 = vmul.f32 %v8521_v39, %v5814_v40 }
0x3195   :  { %v13331_v45 = vadd.f32 %v8522_v42, %v5822_v43 }
0x3197   :  { %9317 = vmatmul.mubr.msk.f32.vlgmr.msra.gmra.mrb[80].mxu1 %vm1318_vm4, %v13331_v45 }
0x3198   :  { %9321 = vmatprep.mubr.msk.bf16.mxu1 %vm12006_vm5, %v12005_v33 }
0x326a   :  { %v5911_v47 = vpop.f32.mrb[80].mxu1 }
0x326b   :  { %v5912_v49 = vadd.f32 %v8523_v46, %v5911_v47  ;;  %v9318_v50 = vpop.f32.mrb[81].mxu1 }
0x326d   :  { %v5915_v52 = vmul.f32 0.35355338, %v5912_v49  ;;  %v13337_v55 = vpack.c.bf16 %v5912_v49, %v5912_v49 }
0x326f   :  { %6034 = vrot.lane.b32.xlu0 %v13337_v55, %s12009_s12  ;;  %5923 = vrot.lane.b32.xlu1 %v13337_v55, %s12007_s1  ;;  %v5920_v56 = vpack.c.bf16 %v5915_v52, %v5915_v52 }
0x3273   :  { %6032 = vrot.lane.b32.xlu1 %v5920_v56, %s12008_s7 }
0x32e1   :  { %v5924_v19 = vpop.permute.xlu1 %5923  ;;  %v6035_v18 = vpop.permute.xlu0 %6034 }
0x32e2   :  { %v5929_v44 = vsel %vm1503_vm6, %v5924_v19, 0  ;;  %v6040_v57 = vsel %vm1503_vm6, %v6035_v18, 0 }
0x32e3   :  { %9320 = vmatpush3.bf16.xpose.msra.mxu1 %v5929_v44 }
0x32e4   :  { %9331 = vmatprep.subr.bf16.mxu1 %v12005_v33 }
0x32e5   :  { %v6033_v58 = vpop.permute.xlu1 %6032 }
0x32ea   :  { %9322 = vmatmul.mubr.msk.bf16.vlgmr.msra.gmra.mrb[84].mxu1 %vm1503_vm6, %v5920_v56 }
0x32eb   :  { %9332 = vmatpush3.bf16.xpose.msra.mxu1 %v6040_v57  ;;  %9333 = vmatprep.mubr.msk.bf16.mxu1 %vm12006_vm5, %v12005_v33 }
0x32ec   :  { %9343 = vmatprep.subr.mxu1 %v12005_v33 }
0x32f2   :  { %9334 = vmatmul.mubr.msk.bf16.vlgmr.msra.gmra.mrb[88].mxu1 %vm1503_vm6, %v6033_v58 }
0x32f3   :  { %9345 = vmatprep.mubr.msk.f32.mxu1 %vm12006_vm5, %v12005_v33  ;;  %9344 = vmatpush3.msra.mxu1 %v5917_v53 }
0x32f4   :  { %9353 = vmatprep.subr.bf16.mxu1 %v12005_v33 }
0x33bd   :  { %v5965_v59 = vpop.f32.mrb[84].mxu1 }
0x33be   :  { %v9323_v60 = vpop.f32.mrb[85].mxu1  ;;  %v5971_v61 = vsel %vm1503_vm6, %v5965_v59, -inf }
0x33bf   :  { %5972 = vmax.xlane.f32.xlu1 %v5971_v61  ;;  %v5968_v63 = vpop.f32.mrb[86].mxu1 }
0x33c0   :  { %v9324_v0 = vpop.f32.mrb[87].mxu1 }
0x33c5   :  { %v6076_v1 = vpop.f32.mrb[88].mxu1 }
0x33c6   :  { %v9335_v2 = vpop.f32.mrb[89].mxu1  ;;  %v6082_v32 = vsel %vm1503_vm6, %v6076_v1, -inf }
0x33c7   :  { %6083 = vmax.xlane.f32.xlu0 %v6082_v32  ;;  %v6079_v31 = vpop.f32.mrb[90].mxu1 }
0x33c8   :  { %v9336_v27 = vpop.f32.mrb[91].mxu1 }
0x33d0   :  { %5982 = vrot.lane.b32.xlu1 %v13337_v55, %s12011_s10 }
0x33dd   :  { %6093 = vrot.lane.b32.xlu0 %v13337_v55, %s12010_s0 }
0x33e1   :  { %6290 = vrot.lane.b32.xlu0 %v13337_v55, %s12014_s25 }
0x33e5   :  { %6288 = vrot.lane.b32.xlu0 %v5920_v56, %s12012_s26 }
0x33e9   :  { %6474 = vrot.lane.b32.xlu0 %v13337_v55, %s12015_s27 }
0x33ed   :  { %6472 = vrot.lane.b32.xlu0 %v5920_v56, %s12013_s19 }
0x344c   :  { %v5973_v3 = vpop.xlane.xlu1 %5972 }
0x344d   :  { %v5974_v29 = vsub.f32 %v5965_v59, %v5973_v3 }
0x344f   :  { %v5975_v4 = vmul.f32 1.442695, %v5974_v29 }
0x3450   :  { %v5983_v5 = vpop.permute.xlu1 %5982 }
0x3451   :  { %10065 = vpow2.f32 %v5975_v4  ;;  %v5988_v6 = vsel %vm3967_vm9, %v5983_v5, 0 }
0x3452   :  { %9326 = vmatpush3.bf16.msra.mxu0 %v5988_v6 }
0x3453   :  { %9337 = vmatprep.subr.bf16.mxu0 %v12005_v33 }
0x3454   :  { %v6084_v7 = vpop.xlane.xlu0 %6083 }
0x3455   :  { %v6085_v51 = vsub.f32 %v6076_v1, %v6084_v7 }
0x3457   :  { %v6086_v8 = vmul.f32 1.442695, %v6085_v51 }
0x3458   :  { %v6094_v10 = vpop.permute.xlu0 %6093 }
0x3459   :  { %10067 = vpow2.f32 %v6086_v8  ;;  %v6099_v13 = vsel %vm3967_vm9, %v6094_v10, 0  ;;  %v5918_v8 = vld [vmem:[#allocation60 + $0x10] sm:$0xff] }
0x345b   :  { %v10066_v9 = vpop.eup %10065 }
0x345c   :  { %v5977_v11 = vsel %vm1503_vm6, %v10066_v9, 0.0  ;;  %v5981_v12 = vpack.c.bf16 %v10066_v9, %v10066_v9  ;;  %v6291_v16 = vpop.permute.xlu0 %6290 }
0x345d   :  { %5978 = vadd.xlane.f32.xlu0 %v5977_v11  ;;  %v6296_v42 = vsel %vm1503_vm6, %v6291_v16, 0  ;;  %v5919_v16 = vld [vmem:[#allocation60 + $0x18] sm:$0xff] }
0x345e   :  { %9328 = vmatmul.mubr.msk.bf16.vlgmr.msra.gmra.mrb[96].mxu0 %vm1503_vm6, %v5981_v12 }
0x345f   :  { %9338 = vmatpush3.bf16.msra.mxu0 %v6099_v13  ;;  %9339 = vmatprep.mubr.msk.bf16.mxu0 %vm12006_vm5, %v12005_v33 }
0x3460   :  { %9348 = vmatprep.subr.mxu0 %v12005_v33  ;;  %v6289_v22 = vpop.permute.xlu0 %6288 }
0x3463   :  { %v10068_v14 = vpop.eup %10067 }
0x3464   :  { %v6088_v41 = vsel %vm1503_vm6, %v10068_v14, 0.0  ;;  %v6092_v15 = vpack.c.bf16 %v10068_v14, %v10068_v14  ;;  %v6475_v17 = vpop.permute.xlu0 %6474 }
0x3465   :  { %6089 = vadd.xlane.f32.xlu1 %v6088_v41  ;;  %v6480_v46 = vsel %vm1503_vm6, %v6475_v17, 0 }
0x3466   :  { %9340 = vmatmul.mubr.msk.bf16.vlgmr.msra.gmra.mrb[100].mxu0 %vm1503_vm6, %v6092_v15 }
0x3467   :  { %9350 = vmatprep.mubr.msk.f32.mxu0 %vm12006_vm5, %v12005_v33  ;;  %9349 = vmatpush3.msra.mxu0 %v5916_v54 }
0x3468   :  { %9359 = vmatprep.subr.bf16.mxu0 %v12005_v33  ;;  %v6473_v20 = vpop.permute.xlu0 %6472 }
0x34ea   :  { %v5979_v21 = vpop.xlane.xlu0 %5978 }
0x34eb   :  { %10069 = vrcp.f32 %v5979_v21 }
0x34f2   :  { %v6090_v23 = vpop.xlane.xlu1 %6089 }
0x34f3   :  { %10071 = vrcp.f32 %v6090_v23 }
0x34f5   :  { %v10070_v24 = vpop.eup %10069 }
0x34fd   :  { %v10072_v36 = vpop.eup %10071 }
0x3531   :  { %v6024_v25 = vpop.f32.mrb[96].mxu0 }
0x3532   :  { %v6030_v48 = vmul.f32 %v10070_v24, %v6024_v25  ;;  %v9329_v26 = vpop.f32.mrb[97].mxu0 }
0x3533   :  { %v6027_v30 = vpop.f32.mrb[98].mxu0 }
0x3534   :  { %v9330_v35 = vpop.f32.mrb[99].mxu0  ;;  %9351 = vmatmul.mubr.msk.f32.vlgmr.msra.gmra.mrb[94].mxu0 %vm1503_vm6, %v6030_v48 }
0x3535   :  { %9361 = vmatprep.mubr.msk.bf16.mxu0 %vm12006_vm5, %v12005_v33 }
0x3539   :  { %v6135_v37 = vpop.f32.mrb[100].mxu0 }
0x353a   :  { %v6141_v38 = vmul.f32 %v10072_v36, %v6135_v37  ;;  %v9341_v39 = vpop.f32.mrb[101].mxu0  ;;  %v8537_v36 = vld [vmem:[#allocation57] ss:$0 sm:$0xff] }
0x353b   :  { %v6138_v40 = vpop.f32.mrb[102].mxu0 }
0x353c   :  { %v9342_v43 = vpop.f32.mrb[103].mxu0  ;;  %9346 = vmatmul.mubr.msk.f32.vlgmr.msra.gmra.mrb[82].mxu1 %vm1503_vm6, %v6141_v38 }
0x353d   :  { %9354 = vmatpush3.bf16.xpose.msra.mxu1 %v6296_v42  ;;  %9355 = vmatprep.mubr.msk.bf16.mxu1 %vm12006_vm5, %v12005_v33  ;;  %v6694_v43 = vld [vmem:[#allocation38] sm:$0xff] }
0x353e   :  { %9370 = vmatprep.subr.bf16.mxu1 %v12005_v33 }
0x3544   :  { %9356 = vmatmul.mubr.msk.bf16.vlgmr.msra.gmra.mrb[92].mxu1 %vm1503_vm6, %v6289_v22 }
0x3545   :  { %9371 = vmatpush3.bf16.xpose.msra.mxu1 %v6480_v46  ;;  %9372 = vmatprep.mubr.msk.bf16.mxu1 %vm12006_vm5, %v12005_v33  ;;  %v6695_v46 = vld [vmem:[#allocation38 + $0x8] sm:$0xff] }
0x3546   :  { %9382 = vmatprep.subr.mxu1 %v12005_v33 }
0x354c   :  { %9373 = vmatmul.mubr.msk.bf16.vlgmr.msra.gmra.mrb[96].mxu1 %vm1503_vm6, %v6473_v20 }
0x354d   :  { %9384 = vmatprep.mubr.msk.f32.mxu1 %vm12006_vm5, %v12005_v33  ;;  %9383 = vmatpush3.msra.mxu1 %v5919_v16 }
0x3607   :  { %v6284_v47 = vpop.f32.mrb[94].mxu0 }
0x3608   :  { %v9352_v49 = vpop.f32.mrb[95].mxu0 }
0x360f   :  { %v6211_v50 = vpop.f32.mrb[82].mxu1 }
0x3610   :  { %v6285_v52 = vadd.f32 %v6284_v47, %v6211_v50  ;;  %v9347_v56 = vpop.f32.mrb[83].mxu1  ;;  %v9937_v47 = vpack.i.bf16 %v6695_v46, %v6694_v43 }
0x3617   :  { %v6332_v19 = vpop.f32.mrb[92].mxu1 }
0x3618   :  { %v9357_v44 = vpop.f32.mrb[93].mxu1  ;;  %v6338_v18 = vsel %vm1503_vm6, %v6332_v19, -inf }
0x3619   :  { %6339 = vmax.xlane.f32.xlu1 %v6338_v18  ;;  %v6335_v57 = vpop.f32.mrb[94].mxu1 }
0x361a   :  { %v9358_v58 = vpop.f32.mrb[95].mxu1 }
0x361f   :  { %v6516_v59 = vpop.f32.mrb[96].mxu1 }
0x3620   :  { %v9374_v60 = vpop.f32.mrb[97].mxu1  ;;  %v6522_v61 = vsel %vm1503_vm6, %v6516_v59, -inf }
0x3621   :  { %6523 = vmax.xlane.f32.xlu0 %v6522_v61  ;;  %v6519_v63 = vpop.f32.mrb[98].mxu1  ;;  %v9685_v61 = vpack.c.bf16 %v6695_v46, %v6694_v43 }
0x3622   :  { %v9375_v0 = vpop.f32.mrb[99].mxu1 }
0x3623   :  { %v8540_v0 = vld [vmem:[#allocation35] ss:$0 sm:$0xff] }
0x362a   :  { %6349 = vrot.lane.b32.xlu1 %v13337_v55, %s12017_s30 }
0x3637   :  { %6533 = vrot.lane.b32.xlu0 %v13337_v55, %s12016_s21 }
0x36a6   :  { %v6340_v1 = vpop.xlane.xlu1 %6339 }
0x36a7   :  { %v6341_v2 = vsub.f32 %v6332_v19, %v6340_v1 }
0x36a9   :  { %v6342_v32 = vmul.f32 1.442695, %v6341_v2 }
0x36aa   :  { %v6350_v31 = vpop.permute.xlu1 %6349 }
0x36ab   :  { %10073 = vpow2.f32 %v6342_v32  ;;  %v6355_v27 = vsel %vm3967_vm9, %v6350_v31, 0 }
0x36ac   :  { %9360 = vmatpush3.bf16.msra.mxu0 %v6355_v27 }
0x36ad   :  { %9365 = vmatprep.subr.mxu0 %v12005_v33 }
0x36ae   :  { %v6524_v3 = vpop.xlane.xlu0 %6523 }
0x36af   :  { %v6525_v29 = vsub.f32 %v6516_v59, %v6524_v3  ;;  %v6697_v59 = vld [vmem:[#allocation38 + $0x18] sm:$0xff] }
0x36b1   :  { %v6526_v4 = vmul.f32 1.442695, %v6525_v29 }
0x36b2   :  { %v6534_v11 = vpop.permute.xlu0 %6533 }
0x36b3   :  { %10075 = vpow2.f32 %v6526_v4  ;;  %v6539_v15 = vsel %vm3967_vm9, %v6534_v11, 0 }
0x36b5   :  { %v10074_v5 = vpop.eup %10073 }
0x36b6   :  { %v6344_v6 = vsel %vm1503_vm6, %v10074_v5, 0.0  ;;  %v6348_v7 = vpack.c.bf16 %v10074_v5, %v10074_v5  ;;  %v8538_v5 = vld [vmem:[#allocation47] ss:$0 sm:$0xff] }
0x36b7   :  { %6345 = vadd.xlane.f32.xlu1 %v6344_v6 }
0x36b8   :  { %9362 = vmatmul.mubr.msk.bf16.vlgmr.msra.gmra.mrb[104].mxu0 %vm1503_vm6, %v6348_v7  ;;  %v8539_v7 = vld [vmem:[#allocation48] ss:$0 sm:$0xff] }
0x36b9   :  { %9367 = vmatprep.mubr.msk.f32.mxu0 %vm12006_vm5, %v12005_v33  ;;  %9366 = vmatpush3.msra.mxu0 %v5918_v8 }
0x36ba   :  { %9376 = vmatprep.subr.bf16.mxu0 %v12005_v33 }
0x36bd   :  { %v10076_v55 = vpop.eup %10075 }
0x36be   :  { %v6528_v51 = vsel %vm1503_vm6, %v10076_v55, 0.0  ;;  %v6532_v53 = vpack.c.bf16 %v10076_v55, %v10076_v55 }
0x36bf   :  { %6529 = vadd.xlane.f32.xlu0 %v6528_v51 }
0x36d5   :  { %6794 = vrot.lane.b32.xlu0 %v8540_v0, %s12007_s1 }
0x3744   :  { %v6346_v9 = vpop.xlane.xlu1 %6345 }
0x3745   :  { %10077 = vrcp.f32 %v6346_v9 }
0x374c   :  { %v6530_v22 = vpop.xlane.xlu0 %6529 }
0x374d   :  { %10079 = vrcp.f32 %v6530_v22 }
0x374f   :  { %v10078_v10 = vpop.eup %10077 }
0x3750   :  { %v6795_v8 = vpop.permute.xlu0 %6794 }
0x3757   :  { %v10080_v23 = vpop.eup %10079 }
0x378b   :  { %v6391_v12 = vpop.f32.mrb[104].mxu0 }
0x378c   :  { %v6397_v13 = vmul.f32 %v10078_v10, %v6391_v12  ;;  %v9363_v14 = vpop.f32.mrb[105].mxu0 }
0x378d   :  { %v6394_v41 = vpop.f32.mrb[106].mxu0 }
0x378e   :  { %v9364_v54 = vpop.f32.mrb[107].mxu0  ;;  %9368 = vmatmul.mubr.msk.f32.vlgmr.msra.gmra.mrb[108].mxu0 %vm1503_vm6, %v6397_v13 }
0x378f   :  { %9377 = vmatpush3.bf16.msra.mxu0 %v6539_v15  ;;  %9378 = vmatprep.mubr.msk.bf16.mxu0 %vm12006_vm5, %v12005_v33 }
0x3790   :  { %9684 = vmatprep.subr.bf16.mxu0 %v12018_v62 }
0x3792   :  { %9379 = vmatmul.mubr.msk.bf16.vlgmr.msra.gmra.mrb[112].mxu0 %vm1503_vm6, %v6532_v53 }
0x3793   :  { %9395 = vmatprep.mubr.msk.f32.mxu0 %vm12006_vm5, %v12005_v33  ;;  %9686 = vmatpush3.bf16.msra.mxu0 %v9685_v61 }
0x3794   :  { %9687 = vmatprep.subr.bf16.mxu0 %v12018_v62 }
0x3861   :  { %v6467_v17 = vpop.f32.mrb[108].mxu0 }
0x3862   :  { %v6471_v20 = vadd.f32 %v6467_v17, %v6285_v52  ;;  %v9369_v21 = vpop.f32.mrb[109].mxu0 }
0x3865   :  { %v6575_v24 = vpop.f32.mrb[112].mxu0 }
0x3866   :  { %v6581_v25 = vmul.f32 %v10080_v23, %v6575_v24  ;;  %v9380_v48 = vpop.f32.mrb[113].mxu0 }
0x3867   :  { %v6578_v26 = vpop.f32.mrb[114].mxu0 }
0x3868   :  { %v9381_v30 = vpop.f32.mrb[115].mxu0  ;;  %9385 = vmatmul.mubr.msk.f32.vlgmr.msra.gmra.mrb[100].mxu1 %vm1503_vm6, %v6581_v25 }
0x3869   :  { %9406 = vmatprep.mubr.msk.f32.mxu1 %vm1318_vm4, %v13215_v28 }
0x393b   :  { %v6651_v35 = vpop.f32.mrb[100].mxu1 }
0x393c   :  { %v6655_v37 = vadd.f32 %v6651_v35, %v6471_v20  ;;  %v9386_v38 = vpop.f32.mrb[101].mxu1 }
0x393e   :  { %v6663_v39 = vadd.f32 %v8537_v36, %v6655_v37 }
0x3940   :  { %v6664_v40 = vadd.f32 %v6663_v39, %v13331_v45  ;;  %v6696_v45 = vld [vmem:[#allocation38 + $0x10] sm:$0xff] }
0x3941   :  { %v9942_v60 = vpack.i.bf16 %v6697_v59, %v6696_v45  ;;  %v9688_v63 = vpack.c.bf16 %v6697_v59, %v6696_v45 }
0x3942   :  { %v6665_v42 = vsel %vm1318_vm4, %v6664_v40, 0.0 }
0x3943   :  { %6666 = vadd.xlane.f32.xlu1 %v6665_v42  ;;  %9689 = vmatpush3.bf16.msra.mxu0 %v9688_v63 }
0x3944   :  { %9409 = vmatprep.subr.bf16.mxu0 %v12005_v33 }
0x3954   :  { %9938 = vrot.lane.b32.xlu1 %v9937_v47, %s12007_s1 }
0x39d0   :  { %v6667_v49 = vpop.xlane.xlu1 %6666 }
0x39d1   :  { %v6668_v50 = vmul.f32 0.03125, %v6667_v49 }
0x39d3   :  { %v6669_v52 = vsub.f32 %v6664_v40, %v6668_v50 }
0x39d4   :  { %v9939_v56 = vpop.permute.xlu1 %9938 }
0x39d5   :  { %v6670_v19 = vmul.f32 %v6669_v52, %v6669_v52  ;;  %v9941_v44 = vunpack.i.h.bf16 %v9939_v56  ;;  %v9940_v18 = vunpack.i.l.bf16 %v9939_v56 }
0x39d7   :  { %v6671_v57 = vsel %vm1318_vm4, %v6670_v19, 0.0  ;;  %v9690_v58 = vpack.c.bf16 %v9941_v44, %v9940_v18 }
0x39d8   :  { %6672 = vadd.xlane.f32.xlu1 %v6671_v57  ;;  %v6873_v57 = vld [vmem:[#allocation39] sm:$0xff] }
0x39d9   :  { %9691 = vmatprep.subr.bf16.mxu1 %v9690_v58 }
0x39da   :  { %9693 = vmatpush3.bf16.msra.mxu1 %v9690_v58  ;;  %v6874_v58 = vld [vmem:[#allocation39 + $0x8] sm:$0xff] }
0x39e9   :  { %9943 = vrot.lane.b32.xlu1 %v9942_v60, %s12007_s1 }
0x3a65   :  { %v6673_v1 = vpop.xlane.xlu1 %6672 }
0x3a66   :  { %v6674_v2 = vmul.f32 0.03125, %v6673_v1 }
0x3a68   :  { %v6675_v32 = vadd.f32 1e-05, %v6674_v2 }
0x3a69   :  { %v9944_v31 = vpop.permute.xlu1 %9943 }
0x3a6a   :  { %10081 = vrsqrt.f32 %v6675_v32  ;;  %v9946_v27 = vunpack.i.h.bf16 %v9944_v31  ;;  %v9945_v3 = vunpack.i.l.bf16 %v9944_v31 }
0x3a6c   :  { %v9694_v29 = vpack.c.bf16 %v9946_v27, %v9945_v3 }
0x3a6e   :  { %9695 = vmatprep.subr.bf16.mxu1 %v9694_v29 }
0x3a6f   :  { %9697 = vmatpush3.bf16.msra.mxu1 %v9694_v29 }
0x3a70   :  { %9415 = vmatprep.subr.bf16.mxu1 %v12005_v33 }
0x3a72   :  { %9407 = vmatmul.mubr.msk.f32.vlgmr.msra.gmra.mrb[102].mxu1 %vm1318_vm4, %v13219_v34 }
0x3a73   :  { %9417 = vmatprep.mubr.msk.bf16.mxu1 %vm12006_vm5, %v12005_v33 }
0x3a74   :  { %v10082_v4 = vpop.eup %10081 }
0x3a75   :  { %v6677_v6 = vmul.f32 %v10082_v4, %v6669_v52 }
0x3a77   :  { %v6685_v55 = vmul.f32 %v8538_v5, %v6677_v6 }
0x3a79   :  { %v13434_v51 = vadd.f32 %v8539_v7, %v6685_v55 }
0x3a7b   :  { %9396 = vmatmul.mubr.msk.f32.vlgmr.msra.gmra.mrb[110].mxu0 %vm1318_vm4, %v13434_v51 }
0x3a7c   :  { %9411 = vmatprep.mubr.msk.bf16.mxu0 %vm12006_vm5, %v12005_v33 }
0x3b45   :  { %v9408_v9 = vpop.f32.mrb[102].mxu1 }
0x3b46   :  { %v6869_v10 = vadd.f32 %v9408_v9, %v6795_v8  ;;  %v6863_v11 = vpop.f32.mrb[103].mxu1 }
0x3b47   :  { %v6864_v12 = vadd.f32 %v6863_v11, %v6795_v8 }
0x3b49   :  { %v13440_v13 = vpack.c.bf16 %v6869_v10, %v6864_v12 }
0x3b4b   :  { %6987 = vrot.lane.b32.xlu1 %v13440_v13, %s12008_s7  ;;  %v6883_v14 = vsel %vm1503_vm6, %v13440_v13, 0 }
0x3b4c   :  { %9410 = vmatpush3.bf16.xpose.msra.mxu0 %v6883_v14 }
0x3b4d   :  { %9421 = vmatprep.subr.bf16.mxu0 %v12005_v33 }
0x3b4e   :  { %v6774_v41 = vpop.f32.mrb[110].mxu0 }
0x3b4f   :  { %v6775_v15 = vadd.f32 %v8540_v0, %v6774_v41  ;;  %v9397_v54 = vpop.f32.mrb[111].mxu0 }
0x3b51   :  { %v6872_v53 = vmul.f32 0.35355338, %v6775_v15 }
0x3b53   :  { %v6877_v16 = vpack.c.bf16 %v6872_v53, %v6872_v53 }
0x3b55   :  { %6985 = vrot.lane.b32.xlu1 %v6877_v16, %s12008_s7  ;;  %9412 = vmatmul.mubr.msk.bf16.vlgmr.msra.gmra.mrb[116].mxu0 %vm1503_vm6, %v6877_v16 }
0x3b56   :  { %9423 = vmatprep.mubr.msk.bf16.mxu0 %vm12006_vm5, %v12005_v33 }
0x3bbd   :  { %v6988_v22 = vpop.permute.xlu1 %6987 }
0x3bbe   :  { %v6993_v17 = vsel %vm1503_vm6, %v6988_v22, 0 }
0x3bbf   :  { %9422 = vmatpush3.bf16.xpose.msra.mxu0 %v6993_v17 }
0x3bc0   :  { %9433 = vmatprep.subr.mxu0 %v12005_v33 }
0x3bc7   :  { %v6986_v20 = vpop.permute.xlu1 %6985 }
0x3bc8   :  { %9424 = vmatmul.mubr.msk.bf16.vlgmr.msra.gmra.mrb[120].mxu0 %vm1503_vm6, %v6986_v20 }
0x3bc9   :  { %9435 = vmatprep.mubr.msk.f32.mxu0 %vm12006_vm5, %v12005_v33  ;;  %9434 = vmatpush3.msra.mxu0 %v6874_v58 }
0x3bca   :  { %9443 = vmatprep.subr.bf16.mxu0 %v12005_v33 }
0x3c28   :  { %v6919_v21 = vpop.f32.mrb[116].mxu0 }
0x3c29   :  { %v9413_v23 = vpop.f32.mrb[117].mxu0  ;;  %v6925_v24 = vsel %vm1551_vm7, %v6919_v21, -inf }
0x3c2a   :  { %6926 = vmax.xlane.f32.xlu1 %v6925_v24  ;;  %v6922_v25 = vpop.f32.mrb[118].mxu0 }
0x3c2b   :  { %v9414_v48 = vpop.f32.mrb[119].mxu0 }
0x3c3b   :  { %6937 = vrot.lane.b32.xlu1 %v13440_v13, %s12007_s1 }
0x3c9b   :  { %v7029_v26 = vpop.f32.mrb[120].mxu0 }
0x3c9c   :  { %v9425_v30 = vpop.f32.mrb[121].mxu0  ;;  %v7035_v35 = vsel %vm1551_vm7, %v7029_v26, -inf }
0x3c9d   :  { %7036 = vmax.xlane.f32.xlu0 %v7035_v35  ;;  %v7032_v36 = vpop.f32.mrb[122].mxu0 }
0x3c9e   :  { %v9426_v37 = vpop.f32.mrb[123].mxu0 }
0x3cb3   :  { %7046 = vrot.lane.b32.xlu0 %v13440_v13, %s12009_s12 }
0x3cb7   :  { %v6927_v38 = vpop.xlane.xlu1 %6926  ;;  %7241 = vrot.lane.b32.xlu0 %v13440_v13, %s12012_s26 }
0x3cb8   :  { %v6928_v39 = vsub.f32 %v6919_v21, %v6927_v38 }
0x3cba   :  { %v6929_v40 = vmul.f32 1.442695, %v6928_v39 }
0x3cbb   :  { %v6938_v42 = vpop.permute.xlu1 %6937  ;;  %7239 = vrot.lane.b32.xlu0 %v6877_v16, %s12012_s26 }
0x3cbc   :  { %10083 = vpow2.f32 %v6929_v40  ;;  %9416 = vmatpush3.bf16.msra.mxu1 %v6938_v42 }
0x3cbd   :  { %9427 = vmatprep.subr.bf16.mxu1 %v12005_v33 }
0x3cbf   :  { %7423 = vrot.lane.b32.xlu0 %v13440_v13, %s12013_s19 }
0x3cc3   :  { %7421 = vrot.lane.b32.xlu0 %v6877_v16, %s12013_s19 }
0x3cc6   :  { %v10084_v43 = vpop.eup %10083 }
0x3cc7   :  { %v6935_v46 = vpack.c.bf16 %v10084_v43, %v10084_v43  ;;  %v6931_v47 = vsel %vm1551_vm7, %v10084_v43, 0.0  ;;  %v6875_v43 = vld [vmem:[#allocation39 + $0x10] sm:$0xff] }
0x3cc9   :  { %9418 = vmatmul.mubr.msk.bf16.vlgmr.msra.gmra.mrb[104].mxu1 %vm1551_vm7, %v6935_v46 }
0x3cca   :  { %9429 = vmatprep.mubr.msk.bf16.mxu1 %vm12006_vm5, %v12005_v33 }
0x3ce2   :  { %6932 = vadd.xlane.f32.xlu0 %v6931_v47 }
0x3d2a   :  { %v7037_v49 = vpop.xlane.xlu0 %7036 }
0x3d2b   :  { %v7038_v50 = vsub.f32 %v7029_v26, %v7037_v49 }
0x3d2d   :  { %v7039_v52 = vmul.f32 1.442695, %v7038_v50 }
0x3d2e   :  { %v7047_v56 = vpop.permute.xlu0 %7046 }
0x3d2f   :  { %10085 = vpow2.f32 %v7039_v52  ;;  %9428 = vmatpush3.bf16.msra.mxu1 %v7047_v56 }
0x3d30   :  { %9438 = vmatprep.subr.mxu1 %v12005_v33 }
0x3d32   :  { %v7242_v45 = vpop.permute.xlu0 %7241 }
0x3d33   :  { %v7247_v55 = vsel %vm1503_vm6, %v7242_v45, 0 }
0x3d36   :  { %v7240_v59 = vpop.permute.xlu0 %7239 }
0x3d39   :  { %v10086_v19 = vpop.eup %10085 }
0x3d3a   :  { %v7041_v44 = vsel %vm1551_vm7, %v10086_v19, 0.0  ;;  %v7045_v18 = vpack.c.bf16 %v10086_v19, %v10086_v19  ;;  %v7424_v60 = vpop.permute.xlu0 %7423 }
0x3d3b   :  { %7042 = vadd.xlane.f32.xlu1 %v7041_v44  ;;  %v7429_v9 = vsel %vm1503_vm6, %v7424_v60, 0 }
0x3d3c   :  { %9430 = vmatmul.mubr.msk.bf16.vlgmr.msra.gmra.mrb[108].mxu1 %vm1551_vm7, %v7045_v18 }
0x3d3d   :  { %9439 = vmatpush3.msra.mxu1 %v6873_v57  ;;  %9440 = vmatprep.mubr.msk.f32.mxu1 %vm12006_vm5, %v12005_v33  ;;  %v6876_v57 = vld [vmem:[#allocation39 + $0x18] sm:$0xff] }
0x3d3e   :  { %9449 = vmatprep.subr.bf16.mxu1 %v12005_v33  ;;  %v7422_v61 = vpop.permute.xlu0 %7421 }
0x3d6f   :  { %v6933_v63 = vpop.xlane.xlu0 %6932 }
0x3d70   :  { %10087 = vrcp.f32 %v6933_v63 }
0x3d7a   :  { %v10088_v0 = vpop.eup %10087 }
0x3d9c   :  { %v6977_v1 = vpop.f32.mrb[104].mxu1 }
0x3d9d   :  { %v6983_v2 = vmul.f32 %v10088_v0, %v6977_v1  ;;  %v9419_v32 = vpop.f32.mrb[105].mxu1 }
0x3d9e   :  { %v6980_v31 = vpop.f32.mrb[106].mxu1 }
0x3d9f   :  { %v9420_v27 = vpop.f32.mrb[107].mxu1  ;;  %9441 = vmatmul.mubr.msk.f32.vlgmr.msra.gmra.mrb[112].mxu1 %vm1503_vm6, %v6983_v2 }
0x3da0   :  { %9451 = vmatprep.mubr.msk.bf16.mxu1 %vm12006_vm5, %v12005_v33  ;;  %v8556_v27 = vld [vmem:[#allocation36] ss:$0 sm:$0xff] }
0x3dc8   :  { %v7043_v3 = vpop.xlane.xlu1 %7042 }
0x3dc9   :  { %10089 = vrcp.f32 %v7043_v3 }
0x3dd3   :  { %v10090_v29 = vpop.eup %10089 }
0x3e0f   :  { %v7086_v4 = vpop.f32.mrb[108].mxu1 }
0x3e10   :  { %v7092_v5 = vmul.f32 %v10090_v29, %v7086_v4  ;;  %v9431_v6 = vpop.f32.mrb[109].mxu1 }
0x3e11   :  { %v7089_v7 = vpop.f32.mrb[110].mxu1 }
0x3e12   :  { %v9432_v8 = vpop.f32.mrb[111].mxu1  ;;  %9436 = vmatmul.mubr.msk.f32.vlgmr.msra.gmra.mrb[124].mxu0 %vm1503_vm6, %v7092_v5 }
0x3e13   :  { %9444 = vmatpush3.bf16.xpose.msra.mxu0 %v7247_v55  ;;  %9445 = vmatprep.mubr.msk.bf16.mxu0 %vm12006_vm5, %v12005_v33 }
0x3e14   :  { %9460 = vmatprep.subr.bf16.mxu0 %v12005_v33 }
0x3e1a   :  { %9446 = vmatmul.mubr.msk.bf16.vlgmr.msra.gmra.mrb[128].mxu0 %vm1503_vm6, %v7240_v59 }
0x3e1b   :  { %9461 = vmatpush3.bf16.xpose.msra.mxu0 %v7429_v9  ;;  %9462 = vmatprep.mubr.msk.bf16.mxu0 %vm12006_vm5, %v12005_v33 }
0x3e1c   :  { %9472 = vmatprep.subr.mxu0 %v12005_v33 }
0x3e22   :  { %9463 = vmatmul.mubr.msk.bf16.vlgmr.msra.gmra.mrb[132].mxu0 %vm1503_vm6, %v7422_v61 }
0x3e23   :  { %9474 = vmatprep.mubr.msk.f32.mxu0 %vm12006_vm5, %v12005_v33  ;;  %9473 = vmatpush3.msra.mxu0 %v6876_v57 }
0x3e24   :  { %9704 = vmatprep.subr.bf16.mxu0 %v12018_v62 }
0x3e72   :  { %v7235_v10 = vpop.f32.mrb[112].mxu1 }
0x3e73   :  { %v9442_v11 = vpop.f32.mrb[113].mxu1 }
0x3e74   :  { %v7641_v11 = vld [vmem:[#allocation41] sm:$0xff] }
0x3ee5   :  { %v7162_v12 = vpop.f32.mrb[124].mxu0 }
0x3ee6   :  { %v7236_v14 = vadd.f32 %v7235_v10, %v7162_v12  ;;  %v9437_v41 = vpop.f32.mrb[125].mxu0  ;;  %v7642_v12 = vld [vmem:[#allocation41 + $0x8] sm:$0xff] }
0x3ee7   :  { %v7643_v41 = vld [vmem:[#allocation41 + $0x10] sm:$0xff] }
0x3eed   :  { %v7283_v15 = vpop.f32.mrb[128].mxu0 }
0x3eee   :  { %v9447_v54 = vpop.f32.mrb[129].mxu0  ;;  %v7289_v53 = vsel %vm1551_vm7, %v7283_v15, -inf }
0x3eef   :  { %7290 = vmax.xlane.f32.xlu1 %v7289_v53  ;;  %v7286_v16 = vpop.f32.mrb[130].mxu0  ;;  %v7727_v53 = vld [vmem:[#allocation44 + $0x8] sm:$0xff] }
0x3ef0   :  { %v9448_v22 = vpop.f32.mrb[131].mxu0  ;;  %v7728_v16 = vld [vmem:[#allocation44 + $0x10] sm:$0xff] }
0x3ef5   :  { %v7465_v17 = vpop.f32.mrb[132].mxu0 }
0x3ef6   :  { %v9464_v20 = vpop.f32.mrb[133].mxu0  ;;  %v7471_v21 = vsel %vm1551_vm7, %v7465_v17, -inf }
0x3ef7   :  { %7472 = vmax.xlane.f32.xlu0 %v7471_v21  ;;  %v7468_v23 = vpop.f32.mrb[134].mxu0  ;;  %v7730_v21 = vld [vmem:[#allocation44 + $0x20] sm:$0xff] }
0x3ef8   :  { %v9465_v24 = vpop.f32.mrb[135].mxu0  ;;  %v7731_v23 = vld [vmem:[#allocation44 + $0x28] sm:$0xff] }
0x3ef9   :  { %v9711_v24 = vpack.c.bf16 %v7731_v23, %v7730_v21  ;;  %v8096_v23 = vld [vmem:[#allocation98 + $0x10] sm:$0xff] }
0x3f00   :  { %7300 = vrot.lane.b32.xlu1 %v13440_v13, %s12014_s25 }
0x3f0d   :  { %7482 = vrot.lane.b32.xlu0 %v13440_v13, %s12015_s27 }
0x3f7c   :  { %v7291_v25 = vpop.xlane.xlu1 %7290 }
0x3f7d   :  { %v7292_v48 = vsub.f32 %v7283_v15, %v7291_v25  ;;  %v7644_v15 = vld [vmem:[#allocation41 + $0x18] sm:$0xff] }
0x3f7e   :  { %v9702_v54 = vpack.c.bf16 %v7644_v15, %v7643_v41  ;;  %v8564_v41 = vld [vmem:[#allocation54] ss:$0 sm:$0xff] }
0x3f7f   :  { %v7293_v26 = vmul.f32 1.442695, %v7292_v48 }
0x3f80   :  { %v7301_v30 = vpop.permute.xlu1 %7300 }
0x3f81   :  { %10091 = vpow2.f32 %v7293_v26  ;;  %9450 = vmatpush3.bf16.msra.mxu1 %v7301_v30 }
0x3f82   :  { %9455 = vmatprep.subr.mxu1 %v12005_v33 }
0x3f84   :  { %v7473_v35 = vpop.xlane.xlu0 %7472 }
0x3f85   :  { %v7474_v36 = vsub.f32 %v7465_v17, %v7473_v35  ;;  %v7729_v17 = vld [vmem:[#allocation44 + $0x18] sm:$0xff]  ;;  %v8557_v35 = vld [vmem:[#allocation50] ss:$0 sm:$0xff] }
0x3f86   :  { %v9708_v20 = vpack.c.bf16 %v7729_v17, %v7728_v16  ;;  %v7933_v16 = vld [vmem:[#allocation110 + $0x18] sm:$0xff]  ;;  %v8095_v17 = vld [vmem:[#allocation98 + $0x8] sm:$0xff] }
0x3f87   :  { %v7475_v37 = vmul.f32 1.442695, %v7474_v36 }
0x3f88   :  { %v7483_v19 = vpop.permute.xlu0 %7482 }
0x3f89   :  { %10093 = vpow2.f32 %v7475_v37  ;;  %v8558_v37 = vld [vmem:[#allocation51] ss:$0 sm:$0xff] }
0x3f8b   :  { %v10092_v38 = vpop.eup %10091 }
0x3f8c   :  { %v7295_v39 = vsel %vm1551_vm7, %v10092_v38, 0.0  ;;  %v7299_v40 = vpack.c.bf16 %v10092_v38, %v10092_v38 }
0x3f8d   :  { %7296 = vadd.xlane.f32.xlu1 %v7295_v39 }
0x3f8e   :  { %9452 = vmatmul.mubr.msk.bf16.vlgmr.msra.gmra.mrb[116].mxu1 %vm1551_vm7, %v7299_v40  ;;  %v7732_v40 = vld [vmem:[#allocation44 + $0x30] sm:$0xff] }
0x3f8f   :  { %9457 = vmatprep.mubr.msk.f32.mxu1 %vm12006_vm5, %v12005_v33  ;;  %9456 = vmatpush3.msra.mxu1 %v6875_v43  ;;  %v8559_v43 = vld [vmem:[#allocation42] ss:$0 sm:$0xff] }
0x3f90   :  { %9466 = vmatprep.subr.bf16.mxu1 %v12005_v33 }
0x3f93   :  { %v10094_v13 = vpop.eup %10093 }
0x3f94   :  { %v7477_v42 = vsel %vm1551_vm7, %v10094_v13, 0.0  ;;  %v7481_v18 = vpack.c.bf16 %v10094_v13, %v10094_v13  ;;  %v7733_v13 = vld [vmem:[#allocation44 + $0x38] sm:$0xff] }
0x3f95   :  { %7478 = vadd.xlane.f32.xlu0 %v7477_v42  ;;  %v9714_v42 = vpack.c.bf16 %v7733_v13, %v7732_v40 }
0x401a   :  { %v7297_v46 = vpop.xlane.xlu1 %7296 }
0x401b   :  { %10095 = vrcp.f32 %v7297_v46 }
0x4022   :  { %v7479_v58 = vpop.xlane.xlu0 %7478 }
0x4023   :  { %10097 = vrcp.f32 %v7479_v58 }
0x4025   :  { %v10096_v47 = vpop.eup %10095 }
0x402d   :  { %v10098_v61 = vpop.eup %10097 }
0x4061   :  { %v7340_v49 = vpop.f32.mrb[116].mxu1 }
0x4062   :  { %v7346_v50 = vmul.f32 %v10096_v47, %v7340_v49  ;;  %v9453_v52 = vpop.f32.mrb[117].mxu1 }
0x4063   :  { %v7343_v56 = vpop.f32.mrb[118].mxu1  ;;  %v8561_v52 = vld [vmem:[#allocation45] ss:$0 sm:$0xff] }
0x4064   :  { %v9454_v44 = vpop.f32.mrb[119].mxu1  ;;  %9458 = vmatmul.mubr.msk.f32.vlgmr.msra.gmra.mrb[114].mxu1 %vm1503_vm6, %v7346_v50 }
0x4065   :  { %9467 = vmatpush3.bf16.msra.mxu1 %v7483_v19  ;;  %9468 = vmatprep.mubr.msk.bf16.mxu1 %vm12006_vm5, %v12005_v33 }
0x4066   :  { %9698 = vmatprep.subr.bf16.mxu1 %v12018_v62 }
0x4068   :  { %9469 = vmatmul.mubr.msk.bf16.vlgmr.msra.gmra.mrb[120].mxu1 %vm1551_vm7, %v7481_v18 }
0x4069   :  { %9485 = vmatprep.mubr.msk.f32.mxu1 %vm12006_vm5, %v12005_v33 }
0x4137   :  { %v7416_v45 = vpop.f32.mrb[114].mxu1 }
0x4138   :  { %v7420_v59 = vadd.f32 %v7416_v45, %v7236_v14  ;;  %v9459_v60 = vpop.f32.mrb[115].mxu1  ;;  %v9699_v14 = vpack.c.bf16 %v7642_v12, %v7641_v11  ;;  %v7930_v12 = vld [vmem:[#allocation110] sm:$0xff] }
0x413a   :  { %9700 = vmatpush3.bf16.msra.mxu1 %v9699_v14  ;;  %v7931_v14 = vld [vmem:[#allocation110 + $0x8] sm:$0xff] }
0x413b   :  { %v7522_v63 = vpop.f32.mrb[120].mxu1  ;;  %9701 = vmatprep.subr.bf16.mxu1 %v12018_v62 }
0x413c   :  { %v7528_v0 = vmul.f32 %v10098_v61, %v7522_v63  ;;  %v9470_v1 = vpop.f32.mrb[121].mxu1  ;;  %v7844_v63 = vld [vmem:[#allocation6] sm:$0xff] }
0x413d   :  { %v7525_v2 = vpop.f32.mrb[122].mxu1 }
0x413e   :  { %v9471_v32 = vpop.f32.mrb[123].mxu1  ;;  %9475 = vmatmul.mubr.msk.f32.vlgmr.msra.gmra.mrb[126].mxu0 %vm1503_vm6, %v7528_v0  ;;  %9703 = vmatpush3.bf16.msra.mxu1 %v9702_v54  ;;  %v7845_v0 = vld [vmem:[#allocation6 + $0x8] sm:$0xff]  ;;  %v8013_v2 = vld [vmem:[#allocation107] sm:$0xff]  ;;  %v9723_v54 = vpack.c.bf16 %v7931_v14, %v7930_v12 }
0x413f   :  { %9504 = vmatprep.mubr.msk.f32.mxu0 %vm12006_vm5, %v12005_v33  ;;  %9716 = vmatprep.subr.bf16.mxu1 %v12018_v62  ;;  %v9717_v1 = vpack.c.bf16 %v7845_v0, %v7844_v63  ;;  %v8014_v32 = vld [vmem:[#allocation107 + $0x8] sm:$0xff] }
0x4211   :  { %v7598_v31 = vpop.f32.mrb[126].mxu0 }
0x4212   :  { %v7602_v3 = vadd.f32 %v7598_v31, %v7420_v59  ;;  %v9476_v29 = vpop.f32.mrb[127].mxu0  ;;  %v9729_v31 = vpack.c.bf16 %v8014_v32, %v8013_v2 }
0x4214   :  { %v7610_v4 = vadd.f32 %v8556_v27, %v7602_v3  ;;  %v7846_v27 = vld [vmem:[#allocation6 + $0x10] sm:$0xff]  ;;  %v7847_v3 = vld [vmem:[#allocation6 + $0x18] sm:$0xff] }
0x4215   :  { %v9720_v29 = vpack.c.bf16 %v7847_v3, %v7846_v27 }
0x4216   :  { %v7611_v5 = vadd.f32 %v7610_v4, %v13434_v51  ;;  %v7726_v51 = vld [vmem:[#allocation44] sm:$0xff]  ;;  %v8015_v4 = vld [vmem:[#allocation107 + $0x10] sm:$0xff] }
0x4217   :  { %v9705_v22 = vpack.c.bf16 %v7727_v53, %v7726_v51  ;;  %v7932_v53 = vld [vmem:[#allocation110 + $0x10] sm:$0xff] }
0x4218   :  { %v7612_v6 = vsel %vm1318_vm4, %v7611_v5, 0.0 }
0x4219   :  { %7613 = vadd.xlane.f32.xlu1 %v7612_v6  ;;  %9706 = vmatpush3.bf16.msra.mxu0 %v9705_v22  ;;  %v8094_v22 = vld [vmem:[#allocation98] sm:$0xff] }
0x421a   :  { %9707 = vmatprep.subr.bf16.mxu0 %v12018_v62  ;;  %v9734_v21 = vpack.c.bf16 %v8095_v17, %v8094_v22 }
0x421d   :  { %9709 = vmatpush3.bf16.msra.mxu0 %v9708_v20  ;;  %v9726_v20 = vpack.c.bf16 %v7933_v16, %v7932_v53 }
0x421e   :  { %9710 = vmatprep.subr.bf16.mxu0 %v12018_v62 }
0x4221   :  { %9712 = vmatpush3.bf16.msra.mxu0 %v9711_v24  ;;  %v8097_v24 = vld [vmem:[#allocation98 + $0x18] sm:$0xff] }
0x4222   :  { %9713 = vmatprep.subr.bf16.mxu0 %v12018_v62 }
0x4225   :  { %9715 = vmatpush3.bf16.msra.mxu0 %v9714_v42 }
0x4226   :  { %9728 = vmatprep.subr.bf16.mxu0 %v12018_v62 }
0x42a6   :  { %v7614_v7 = vpop.xlane.xlu1 %7613 }
0x42a7   :  { %v7615_v55 = vmul.f32 0.03125, %v7614_v7 }
0x42a9   :  { %v7616_v8 = vsub.f32 %v7611_v5, %v7615_v55  ;;  %v8016_v5 = vld [vmem:[#allocation107 + $0x18] sm:$0xff] }
0x42aa   :  { %v9732_v6 = vpack.c.bf16 %v8016_v5, %v8015_v4 }
0x42ab   :  { %v7617_v9 = vmul.f32 %v7616_v8, %v7616_v8 }
0x42ad   :  { %v7618_v10 = vsel %vm1318_vm4, %v7617_v9, 0.0 }
0x42ae   :  { %7619 = vadd.xlane.f32.xlu1 %v7618_v10  ;;  %v8563_v10 = vld [vmem:[#allocation53] ss:$0 sm:$0xff] }
0x433b   :  { %v7620_v25 = vpop.xlane.xlu1 %7619 }
0x433c   :  { %v7621_v48 = vmul.f32 0.03125, %v7620_v25  ;;  %v9738_v25 = vpack.c.bf16 %v8097_v24, %v8096_v23 }
0x433e   :  { %v7622_v26 = vadd.f32 1e-05, %v7621_v48 }
0x4340   :  { %10099 = vrsqrt.f32 %v7622_v26 }
0x434a   :  { %v10100_v30 = vpop.eup %10099 }
0x434b   :  { %v7624_v36 = vmul.f32 %v10100_v30, %v7616_v8 }
0x434d   :  { %v7632_v38 = vmul.f32 %v8557_v35, %v7624_v36  ;;  %v8567_v36 = vld [vmem:[#allocation111] ss:$0 sm:$0xff] }
0x434f   :  { %v7640_v39 = vadd.f32 %v8558_v37, %v7632_v38 }
0x4351   :  { %9486 = vmatmul.mubr.msk.f32.vlgmr.msra.gmra.mrb[124].mxu1 %vm1318_vm4, %v7640_v39 }
0x4352   :  { %9515 = vmatprep.mubr.msk.f32.mxu1 %vm12006_vm5, %v12005_v33  ;;  %9718 = vmatpush3.bf16.msra.mxu1 %v9717_v1 }
0x4353   :  { %9719 = vmatprep.subr.bf16.mxu1 %v12018_v62 }
0x4356   :  { %9721 = vmatpush3.bf16.msra.mxu1 %v9720_v29 }
0x4357   :  { %9722 = vmatprep.subr.bf16.mxu1 %v12018_v62 }
0x4424   :  { %v7721_v46 = vpop.f32.mrb[124].mxu1 }
0x4425   :  { %v7722_v47 = vadd.f32 %v8559_v43, %v7721_v46  ;;  %v9487_v49 = vpop.f32.mrb[125].mxu1  ;;  %v8569_v46 = vld [vmem:[#allocation108] ss:$0 sm:$0xff] }
0x4427   :  { %v7725_v50 = vmax.f32 %v7722_v47, 0.0 }
0x4429   :  { %9505 = vmatmul.mubr.msk.f32.vlgmr.msra.gmra.mrb[136].mxu0 %vm2479_vm8, %v7725_v50 }
0x442a   :  { %9537 = vmatprep.mubr.msk.f32.mxu0 %vm12006_vm5, %v12005_v33  ;;  %9730 = vmatpush3.bf16.msra.mxu0 %v9729_v31 }
0x442b   :  { %9731 = vmatprep.subr.bf16.mxu0 %v12018_v62 }
0x442e   :  { %9733 = vmatpush3.bf16.msra.mxu0 %v9732_v6 }
0x442f   :  { %9742 = vmatprep.subr.bf16.mxu0 %v12018_v62 }
0x44fc   :  { %v7810_v56 = vpop.f32.mrb[136].mxu0 }
0x44fd   :  { %v7811_v19 = vadd.f32 %v8561_v52, %v7810_v56  ;;  %v9506_v44 = vpop.f32.mrb[137].mxu0 }
0x44ff   :  { %v7814_v18 = vadd.f32 %v7811_v19, %v7640_v39 }
0x4501   :  { %v7815_v57 = vsel %vm1318_vm4, %v7814_v18, 0.0 }
0x4502   :  { %7816 = vadd.xlane.f32.xlu1 %v7815_v57 }
0x458f   :  { %v7817_v58 = vpop.xlane.xlu1 %7816 }
0x4590   :  { %v7818_v45 = vmul.f32 0.03125, %v7817_v58 }
0x4592   :  { %v7819_v59 = vsub.f32 %v7814_v18, %v7818_v45 }
0x4594   :  { %v7820_v60 = vmul.f32 %v7819_v59, %v7819_v59 }
0x4596   :  { %v7821_v61 = vsel %vm1318_vm4, %v7820_v60, 0.0 }
0x4597   :  { %7822 = vadd.xlane.f32.xlu1 %v7821_v61 }
0x4624   :  { %v7823_v7 = vpop.xlane.xlu1 %7822 }
0x4625   :  { %v7824_v55 = vmul.f32 0.03125, %v7823_v7 }
0x4627   :  { %v7825_v8 = vadd.f32 1e-05, %v7824_v55 }
0x4629   :  { %10101 = vrsqrt.f32 %v7825_v8 }
0x4633   :  { %v10102_v9 = vpop.eup %10101 }
0x4634   :  { %v7827_v11 = vmul.f32 %v10102_v9, %v7819_v59 }
0x4636   :  { %v7835_v15 = vmul.f32 %v8563_v10, %v7827_v11 }
0x4638   :  { %v7843_v51 = vadd.f32 %v8564_v41, %v7835_v15 }
0x463a   :  { %9516 = vmatmul.mubr.msk.f32.vlgmr.msra.gmra.mrb[126].mxu1 %vm1318_vm4, %v7843_v51  ;;  %9538 = vmatmul.mubr.msk.f32.vlgmr.msra.gmra.mrb[138].mxu0 %vm1318_vm4, %v7843_v51 }
0x463b   :  { %9724 = vmatpush3.bf16.msra.mxu1 %v9723_v54  ;;  %9526 = vmatprep.mubr.msk.f32.mxu1 %vm12006_vm5, %v12005_v33 }
0x463c   :  { %9725 = vmatprep.subr.bf16.mxu1 %v12018_v62  ;;  %9555 = vmatprep.mubr.msk.f32.mxu0 %vm12006_vm5, %v12005_v33  ;;  %v8565_v62 = vld [vmem:[#allocation2] ss:$0 sm:$0xff] }
0x463f   :  { %9727 = vmatpush3.bf16.msra.mxu1 %v9726_v20 }
0x4640   :  { %9735 = vmatprep.subr.bf16.mxu1 %v9734_v21 }
0x4642   :  { %9527 = vmatmul.mubr.msk.f32.vlgmr.msra.gmra.mrb[128].mxu1 %vm1318_vm4, %v7843_v51 }
0x4643   :  { %9737 = vmatpush3.bf16.msra.mxu1 %v9734_v21  ;;  %9548 = vmatprep.mubr.msk.f32.mxu1 %vm1318_vm4, %v13215_v28  ;;  %v8571_v28 = vld [vmem:[#allocation99] ss:$0 sm:$0xff] }
0x4644   :  { %9739 = vmatprep.subr.bf16.mxu1 %v9738_v25 }
0x4647   :  { %9741 = vmatpush3.bf16.msra.mxu1 %v9738_v25 }
0x464a   :  { %9549 = vmatmul.mubr.msk.f32.vlgmr.msra.gmra.mrb[130].mxu1 %vm1318_vm4, %v13219_v34 }
0x470d   :  { %v7924_v48 = vpop.f32.mrb[126].mxu1  ;;  %v8090_v26 = vpop.f32.mrb[138].mxu0 }
0x470e   :  { %v7925_v33 = vadd.f32 %v8565_v62, %v7924_v48  ;;  %v9517_v30 = vpop.f32.mrb[127].mxu1  ;;  %v9539_v35 = vpop.f32.mrb[139].mxu0  ;;  %v8091_v47 = vadd.f32 %v8569_v46, %v8090_v26 }
0x4710   :  { %7929 = vst.msk [vmem:[#allocation114] sm:$0xff] %vm7928_vm10, %v7925_v33 }
0x4715   :  { %v8007_v37 = vpop.f32.mrb[128].mxu1 }
0x4716   :  { %v8008_v38 = vadd.f32 %v8567_v36, %v8007_v37  ;;  %v9528_v39 = vpop.f32.mrb[129].mxu1 }
0x4718   :  { %8012 = vst.msk [vmem:[#allocation115] sm:$0xff] %vm8011_vm11, %v8008_v38 }
0x471d   :  { %v9550_v40 = vpop.f32.mrb[130].mxu1 }
0x471e   :  { %v8177_v13 = vadd.f32 %v9550_v40, %v8571_v28  ;;  %v8171_v42 = vpop.f32.mrb[131].mxu1 }
0x471f   :  { %v8172_v43 = vadd.f32 %v8571_v28, %v8171_v42 }
0x4721   :  { %v9743_v34 = vpack.c.bf16 %v8177_v13, %v8172_v43 }
0x4723   :  { %9745 = vmatpush3.bf16.xpose.msk.msra.mxu0 %vm9744_vm12, %v9743_v34 }
0x472a   :  { %9556 = vmatmul.mubr.msk.f32.vlgmr.msra.gmra.mrb[140].mxu0 %vm1318_vm4, %v8091_v47 }
0x472b   :  { %11720 = shalt.err (!%p11717_p0)
}
0x472c   :  { %s11721_s29 = scalar_lea.hbm %s12403_s18, 128 }
0x472d   :  { %p11722_p1 = scmp.ne.s32.totalorder %s12403_s18, %s11721_s29  ;;  %p11725_p2 = scmp.lt.u32.totalorder %s11721_s29, %s12403_s18 }
0x472f   :  { %p11727_p3 = pnand %p11725_p2, %p11722_p1 }
0x4731   :  { %11730 = shalt.err (!%p11727_p3)
}
0x4732   :  { %8279 = dma.vmem_to_hbm [thread:$0]  %s8277_s4, 128, %s12403_s18, [#allocation116]  }
0x4733   :  { %s11731_s15 = scalar_lea.vmem %s8267_s24, 128  ;;  %p11736_p5 = scmp.lt.s32.totalorder %s8267_s24, %s8267_s24 }
0x4734   :  { %p11732_p4 = scmp.ne.s32.totalorder %s8267_s24, %s11731_s15  ;;  %p11737_p6 = scmp.lt.s32.totalorder %s11731_s15, %s11731_s15 }
0x4736   :  { %p11738_p7 = por %p11737_p6, %p11736_p5 }
0x4738   :  { %p11739_p8 = pnand %p11738_p7, %p11732_p4 }
0x473a   :  { %11742 = shalt.err (!%p11739_p8)
}
0x473b   :  { %s11743_s16 = scalar_lea.hbm %s12398_s17, 128 }
0x473c   :  { %p11744_p9 = scmp.ne.s32.totalorder %s12398_s17, %s11743_s16  ;;  %p11747_p10 = scmp.lt.u32.totalorder %s11743_s16, %s12398_s17 }
0x473e   :  { %p11749_p11 = pnand %p11747_p10, %p11744_p9 }
0x4740   :  { %11752 = shalt.err (!%p11749_p11)
}
0x4741   :  { %8269 = dma.vmem_to_hbm [thread:$0]  %s8267_s24, 128, %s12398_s17, [#allocation5]  }
0x4742   :  { %s12021_s11 = smov [#allocation117]  }
0x4743   :  { %s8286_s18 = sshll.u32 %s12021_s11, 4  ;;  %s8287_s18 = int_to_ptr.vmem [resolvable:$true] %s8286_s18 }
0x4744   :  { %s11753_s20 = scalar_lea.vmem %s8287_s18, 128  ;;  %p11758_p13 = scmp.lt.s32.totalorder %s8287_s18, %s8287_s18 }
0x4745   :  { %p11754_p12 = scmp.ne.s32.totalorder %s8287_s18, %s11753_s20  ;;  %p11759_p0 = scmp.lt.s32.totalorder %s11753_s20, %s11753_s20 }
0x4747   :  { %p11760_p1 = por %p11759_p0, %p11758_p13 }
0x4749   :  { %p11761_p2 = pnand %p11760_p1, %p11754_p12 }
0x47fd   :  { %v8255_v49 = vpop.f32.mrb[140].mxu0 }
0x47fe   :  { %8259 = vst.msk [vmem:[#allocation117] sm:$0xff] %vm1551_vm7, %v8255_v49  ;;  %v9557_v50 = vpop.f32.mrb[141].mxu0 }
0x47ff   :  { %11764 = shalt.err (!%p11761_p2)
}
0x4800   :  { %s11765_s14 = scalar_lea.hbm %s12408_s5, 128 }
0x4801   :  { %p11766_p3 = scmp.ne.s32.totalorder %s12408_s5, %s11765_s14  ;;  %p11769_p4 = scmp.lt.u32.totalorder %s11765_s14, %s12408_s5 }
0x4803   :  { %p11771_p5 = pnand %p11769_p4, %p11766_p3 }
0x4805   :  { %11774 = shalt.err (!%p11771_p5)
}
0x4806   :  { %8289 = dma.vmem_to_hbm [thread:$0]  %s8287_s18, 128, %s12408_s5, [#allocation116]  }
0x4807   :  { %11849 = dma.done.wait [#allocation5], 128  }
0x4808   :  { %11850 = vsyncadd [#allocation5], 4294967168 }
0x4809   :  { %11851 = dma.done.wait [#allocation116], 256  }
0x480a   :  { %11852 = vsyncadd [#allocation116], 4294967040 }
0x480b   :  { %8299 = vsyncpa [#allocation4], 1 }
0x480c   :  { %8300 = vsyncpa [#allocation7], 1 }
0x480d   :  { %8301 = vsyncpa [#allocation10], 1 }
0x480e   :  { %8302 = vsyncpa [#allocation13], 1 }
0x480f   :  { %8303 = vsyncpa [#allocation16], 1 }
0x4810   :  { %8304 = vsyncpa [#allocation19], 1 }
0x4811   :  { %8305 = vsyncpa [#allocation22], 1 }
0x4812   :  { %8306 = vsyncpa [#allocation25], 1 }
0x4813   :  { %8307 = vsyncpa [#allocation28], 1 }
0x4814   :  { %8308 = vsyncpa [#allocation31], 1 }
0x4815   :  { %8309 = vsyncpa [#allocation34], 1 }
0x4816   :  { %8310 = vsyncpa [#allocation37], 1 }
0x4817   :  { %8311 = vsyncpa [#allocation40], 1 }
0x4818   :  { %8312 = vsyncpa [#allocation43], 1 }
0x4819   :  { %8313 = vsyncpa [#allocation46], 1 }
0x481a   :  { %8314 = vsyncpa [#allocation49], 1 }
0x481b   :  { %8315 = vsyncpa [#allocation52], 1 }
0x481c   :  { %8316 = vsyncpa [#allocation55], 1 }
0x481d   :  { %8317 = vsyncpa [#allocation58], 1 }
0x481e   :  { %8318 = vsyncpa [#allocation61], 1 }
0x481f   :  { %8319 = vsyncpa [#allocation64], 1 }
0x4820   :  { %8320 = vsyncpa [#allocation67], 1 }
0x4821   :  { %8321 = vsyncpa [#allocation70], 1 }
0x4822   :  { %8322 = vsyncpa [#allocation73], 1 }
0x4823   :  { %8323 = vsyncpa [#allocation76], 1 }
0x4824   :  { %8324 = vsyncpa [#allocation79], 1 }
0x4825   :  { %8325 = vsyncpa [#allocation82], 1 }
0x4826   :  { %8326 = vsyncpa [#allocation85], 1 }
0x4827   :  { %8327 = vsyncpa [#allocation88], 1 }
0x4828   :  { %8328 = vsyncpa [#allocation91], 1 }
0x4829   :  { %8329 = vsyncpa [#allocation94], 1 }
0x482a   :  { %8330 = vsyncpa [#allocation97], 1 }
0x482b   :  { %8331 = vsyncpa [#allocation100], 1 }
0x482c   :  { %8332 = vsyncpa [#allocation103], 1 }
0x482d   :  { %8333 = vsyncpa [#allocation106], 1 }
0x482e   :  { %8334 = vsyncpa [#allocation109], 1 }
0x482f   :  { %8335 = vsyncpa [#allocation112], 1 }
0x4830   :  { %8336 = vsyncpa [#allocation5], 1 }
0x4831   :  { %8337 = vsyncpa [#allocation116], 1 }

</bundles_post_ra>
